<compile_context>
chip_gen: v7x
topology: tpu7x:2x2x1
jax: 0.10.0
libtpu: 0.0.40
codegen_flags: <defaults>
</compile_context>

<pallas_src>
import math

import numpy as np
import jax
import jax.numpy as jnp
from jax.experimental import pallas as pl
from jax.experimental.pallas import tpu as pltpu


# ---------------------------------------------------------------------------
# in-kernel helpers (MXU / VPU friendly; no pad / concat / gather primitives)
# ---------------------------------------------------------------------------

def _mm(a, b):
    """(m, k) @ (k, n); degenerate k == 1 contraction handled as an outer product."""
    if a.shape[1] == 1:
        return a * b
    return jnp.dot(a, b, preferred_element_type=jnp.float32)


def _pw(w_ref, b_ref, x, relu):
    """1x1 conv + folded BN (+ReLU). x: (Cin, HW); w: (Cout, Cin); b: (Cout, 1)."""
    y = _mm(w_ref[...], x) + b_ref[...]
    return jnp.maximum(y, 0.0) if relu else y


def _dw(w_ref, b_ref, m_ref, x, relu):
    """Depthwise 3x3 (stride 1, pad 1) + folded BN (+ReLU) as shift-matmuls.

    x: (C, HW); w: (C, 9) BN-folded taps (index kh*3+kw); b: (C, 1);
    m_ref: (9, HW, HW) 0/1 shift matrices (centre tap is the identity -> skipped).
    """
    w = w_ref[...]
    acc = x * w[:, 4:5] + b_ref[...]          # centre tap == identity shift
    for t in (0, 1, 2, 3, 5, 6, 7, 8):
        acc = acc + _mm(x, m_ref[t]) * w[:, t:t + 1]
    return jnp.maximum(acc, 0.0) if relu else acc


def _stack_rows(parts):
    """Concatenate (rows_i, HW) blocks along the channel (sublane) axis via 0/1
    selection matmuls -- robust alternative to unaligned sublane concatenation."""
    total = sum(int(p.shape[0]) for p in parts)
    hw = int(parts[0].shape[1])
    out = jnp.zeros((total, hw), jnp.float32)
    off = 0
    for p in parts:
        k = int(p.shape[0])
        r = jax.lax.broadcasted_iota(jnp.int32, (total, k), 0)
        c = jax.lax.broadcasted_iota(jnp.int32, (total, k), 1)
        sel = (r == c + off).astype(jnp.float32)
        out = out + _mm(sel, p)
        off += k
    return out


def _ghost(x, pw_w, pw_b, dw_w, dw_b, m_ref, oup, relu):
    """GhostModuleV2 (mode='original', ratio=2): primary 1x1 + cheap dw3x3,
    concat on channels, keep first `oup` channels."""
    x1 = _pw(pw_w, pw_b, x, relu)
    init = int(x1.shape[0])
    need = oup - init
    if need <= 0:
        return x1[:oup]
    x2 = _dw(dw_w, dw_b, m_ref, x1, relu)
    return _stack_rows([x1, x2[:need]])


def _bottleneck(x, prm, m_ref):
    """GhostBottleneckV2 (stride=1, no SE, in_chs != out_chs)."""
    (g1_pw_w, g1_pw_b, g1_dw_w, g1_dw_b,
     g2_pw_w, g2_pw_b, g2_dw_w, g2_dw_b,
     sc_dw_w, sc_dw_b, sc_pw_w, sc_pw_b) = prm
    mid = int(g2_pw_w.shape[1])
    out_c = int(sc_pw_w.shape[0])
    g1 = _ghost(x, g1_pw_w, g1_pw_b, g1_dw_w, g1_dw_b, m_ref, mid, relu=True)
    g2 = _ghost(g1, g2_pw_w, g2_pw_b, g2_dw_w, g2_dw_b, m_ref, out_c, relu=False)
    sc = _dw(sc_dw_w, sc_dw_b, m_ref, x, relu=False)
    sc = _pw(sc_pw_w, sc_pw_b, sc, relu=False)
    return g2 + sc


def _seg_head_kernel(x9_ref, x6_ref, x4_ref,
                     m9_ref, m6_ref, m4_ref,
                     u24_ref, u48_ref, u864_ref,
                     *rest):
    o_ref = rest[-1]
    prm = rest[:-1]
    p960, p112, p40 = prm[0:12], prm[12:24], prm[24:36]

    y = _bottleneck(x9_ref[0], p960, m9_ref)                              # (ncls, HW9)
    x = jnp.dot(y, u24_ref[...], preferred_element_type=jnp.float32)     # (ncls, HW6)
    x = x + _bottleneck(x6_ref[0], p112, m6_ref)
    x = jnp.dot(x, u48_ref[...], preferred_element_type=jnp.float32)     # (ncls, HW4)
    x = x + _bottleneck(x4_ref[0], p40, m4_ref)
    x = jnp.dot(x, u864_ref[...], preferred_element_type=jnp.float32)    # (ncls, HWf) lane-dense
    o_ref[0] = x.astype(o_ref.dtype)


# ---------------------------------------------------------------------------
# wrapper: constant matrices (host numpy), specs, pallas_call
# ---------------------------------------------------------------------------

def _lin_idx_np(in_size, scale):
    """PyTorch bilinear (align_corners=False) source indices / weights."""
    out_size = in_size * scale
    i = np.arange(out_size, dtype=np.float64)
    src = np.maximum((i + 0.5) / scale - 0.5, 0.0)
    i0 = np.minimum(np.floor(src).astype(np.int64), in_size - 1)
    i1 = np.minimum(i0 + 1, in_size - 1)
    w1 = (src - i0).astype(np.float32)
    w0 = (1.0 - w1).astype(np.float32)
    return i0, i1, w0, w1


def _upsample_matrix(h_in, w_in, scale):
    """(h_in*w_in, h_out*w_out): x_flat @ U == bilinear-upsampled x_flat."""
    def lin(n):
        i0, i1, w0, w1 = _lin_idx_np(n, scale)
        u = np.zeros((n * scale, n), np.float32)
        u[np.arange(n * scale), i0] += w0
        u[np.arange(n * scale), i1] += w1
        return u
    k = np.kron(lin(h_in), lin(w_in))          # (HoWo, HiWi)
    return jnp.asarray(k.T)


def _shift_matrices(h, w):
    """(9, HW, HW) 0/1 matrices: x_flat @ M[kh*3+kw] == x shifted by (kh-1, kw-1), zero pad."""
    hw = h * w
    hh, ww = np.meshgrid(np.arange(h), np.arange(w), indexing="ij")
    cols = (hh * w + ww).reshape(-1)
    mats = np.zeros((9, hw, hw), np.float32)
    for kh in range(3):
        for kw in range(3):
            dh, dw = kh - 1, kw - 1
            hs, ws = hh + dh, ww + dw
            valid = ((hs >= 0) & (hs < h) & (ws >= 0) & (ws < w)).reshape(-1)
            rows = (np.clip(hs, 0, h - 1) * w + np.clip(ws, 0, w - 1)).reshape(-1)
            mats[kh * 3 + kw, rows, cols] = valid.astype(np.float32)
    return jnp.asarray(mats)


def _const_spec(a):
    nd = a.ndim
    return pl.BlockSpec(a.shape, lambda b, _nd=nd: (0,) * _nd)


@jax.jit
def _seg_head_fused(x9, x6, x4, params):
    B, C9, H9, W9 = x9.shape
    _, C6, H6, W6 = x6.shape
    _, C4, H4, W4 = x4.shape
    assert (H6, W6) == (2 * H9, 2 * W9) and (H4, W4) == (2 * H6, 2 * W6)
    Hf, Wf = 8 * H4, 8 * W4
    ncls = params['b960'][10].shape[0]

    # NCHW -> (B, C, H*W): pure reshape, no transpose.
    x9f = x9.reshape(B, C9, H9 * W9)
    x6f = x6.reshape(B, C6, H6 * W6)
    x4f = x4.reshape(B, C4, H4 * W4)

    m9 = _shift_matrices(H9, W9)
    m6 = _shift_matrices(H6, W6)
    m4 = _shift_matrices(H4, W4)
    u24 = _upsample_matrix(H9, W9, 2)
    u48 = _upsample_matrix(H6, W6, 2)
    u864 = _upsample_matrix(H4, W4, 8)

    flat_params = list(params['b960']) + list(params['b112']) + list(params['b40'])
    args = [x9f, x6f, x4f, m9, m6, m4, u24, u48, u864] + flat_params

    in_specs = [
        pl.BlockSpec((1, C9, H9 * W9), lambda b: (b, 0, 0)),
        pl.BlockSpec((1, C6, H6 * W6), lambda b: (b, 0, 0)),
        pl.BlockSpec((1, C4, H4 * W4), lambda b: (b, 0, 0)),
    ] + [_const_spec(a) for a in args[3:]]

    out = pl.pallas_call(
        _seg_head_kernel,
        out_shape=jax.ShapeDtypeStruct((B, ncls, Hf * Wf), jnp.float32),
        grid=(B,),
        in_specs=in_specs,
        out_specs=pl.BlockSpec((1, ncls, Hf * Wf), lambda b: (b, 0, 0)),
        compiler_params=pltpu.CompilerParams(dimension_semantics=("parallel",)),
    )(*args)
    return out.reshape(B, ncls, Hf, Wf)


def segmentation_head_forward(tensors, params):
    """Forward pass of SegmentationHeadGhostBN (NCHW in / NCHW out)."""
    return _seg_head_fused(tensors[9], tensors[6], tensors[4], params)


# ---------------------------------------------------------------------------
# deterministic parameter init (eval-mode BN folded into conv weights / bias)
# ---------------------------------------------------------------------------

def _bn_fold(key, c):
    # fresh eval-mode nn.BatchNorm2d: running_mean=0, running_var=1
    kg, kb = jax.random.split(key)
    gamma = 1.0 + 0.1 * jax.random.normal(kg, (c,), jnp.float32)
    beta = 0.1 * jax.random.normal(kb, (c,), jnp.float32)
    scale = gamma / jnp.sqrt(1.0 + 1e-5)
    return scale, beta


def _init_conv1x1_bn(key, out_c, in_c):
    kw, kb = jax.random.split(key)
    w = 0.1 * jax.random.normal(kw, (out_c, in_c), jnp.float32)
    s, b = _bn_fold(kb, out_c)
    return s[:, None] * w, b[:, None]


def _init_dwconv3x3_bn(key, c):
    kw, kb = jax.random.split(key)
    w = 0.1 * jax.random.normal(kw, (c, 9), jnp.float32)   # taps flattened as kh*3+kw
    s, b = _bn_fold(kb, c)
    return s[:, None] * w, b[:, None]


def _init_bottleneck(key, in_chs, mid, out_c):
    k = jax.random.split(key, 6)
    init1 = math.ceil(mid / 2)
    init2 = math.ceil(out_c / 2)
    g1_pw_w, g1_pw_b = _init_conv1x1_bn(k[0], init1, in_chs)
    g1_dw_w, g1_dw_b = _init_dwconv3x3_bn(k[1], init1)
    g2_pw_w, g2_pw_b = _init_conv1x1_bn(k[2], init2, mid)
    g2_dw_w, g2_dw_b = _init_dwconv3x3_bn(k[3], init2)
    sc_dw_w, sc_dw_b = _init_dwconv3x3_bn(k[4], in_chs)
    sc_pw_w, sc_pw_b = _init_conv1x1_bn(k[5], out_c, in_chs)
    return [g1_pw_w, g1_pw_b, g1_dw_w, g1_dw_b,
            g2_pw_w, g2_pw_b, g2_dw_w, g2_dw_b,
            sc_dw_w, sc_dw_b, sc_pw_w, sc_pw_b]


def init_params(key, in_channels, num_classes):
    k = jax.random.split(key, 3)
    return {
        'b960': _init_bottleneck(k[0], in_channels[0], in_channels[0] // 4, num_classes),
        'b112': _init_bottleneck(k[1], in_channels[1], in_channels[1] // 4, num_classes),
        'b40':  _init_bottleneck(k[2], in_channels[2], in_channels[2] // 4, num_classes),
    }


# ---------------------------------------------------------------------------
# straightforward jnp reference (NCHW) for a correctness check
# ---------------------------------------------------------------------------

def _ref_pw(x, w, b):
    y = jnp.einsum('oi,bihw->bohw', w, x, precision=jax.lax.Precision.HIGHEST)
    return y + b.reshape(1, -1, 1, 1)


def _ref_dw(x, w, b):
    B, C, H, W = x.shape
    xp = jnp.pad(x, ((0, 0), (0, 0), (1, 1), (1, 1)))
    acc = jnp.zeros_like(x)
    for kh in range(3):
        for kw in range(3):
            acc = acc + xp[:, :, kh:kh + H, kw:kw + W] * w[None, :, kh * 3 + kw, None, None]
    return acc + b.reshape(1, -1, 1, 1)


def _ref_ghost(x, pw_w, pw_b, dw_w, dw_b, oup, relu):
    x1 = _ref_pw(x, pw_w, pw_b)
    if relu:
        x1 = jnp.maximum(x1, 0.0)
    x2 = _ref_dw(x1, dw_w, dw_b)
    if relu:
        x2 = jnp.maximum(x2, 0.0)
    return jnp.concatenate([x1, x2], axis=1)[:, :oup]


def _ref_bottleneck(x, prm):
    (g1_pw_w, g1_pw_b, g1_dw_w, g1_dw_b,
     g2_pw_w, g2_pw_b, g2_dw_w, g2_dw_b,
     sc_dw_w, sc_dw_b, sc_pw_w, sc_pw_b) = prm
    mid = g2_pw_w.shape[1]
    out_c = sc_pw_w.shape[0]
    g1 = _ref_ghost(x, g1_pw_w, g1_pw_b, g1_dw_w, g1_dw_b, mid, True)
    g2 = _ref_ghost(g1, g2_pw_w, g2_pw_b, g2_dw_w, g2_dw_b, out_c, False)
    sc = _ref_pw(_ref_dw(x, sc_dw_w, sc_dw_b), sc_pw_w, sc_pw_b)
    return g2 + sc


def _ref_upsample(x, scale):
    B, C, H, W = x.shape
    i0, i1, w0, w1 = _lin_idx_np(H, scale)
    x = x[:, :, i0, :] * w0[None, None, :, None] + x[:, :, i1, :] * w1[None, None, :, None]
    j0, j1, v0, v1 = _lin_idx_np(W, scale)
    x = x[:, :, :, j0] * v0[None, None, None, :] + x[:, :, :, j1] * v1[None, None, None, :]
    return x


def _reference_forward(tensors, params):
    y = _ref_bottleneck(tensors[9], params['b960'])
    x = _ref_upsample(y, 2)
    x = x + _ref_bottleneck(tensors[6], params['b112'])
    x = _ref_upsample(x, 2)
    x = x + _ref_bottleneck(tensors[4], params['b40'])
    return _ref_upsample(x, 8)


if __name__ == "__main__":
    key = jax.random.PRNGKey(0)
    num_classes = 6
    width = 0.1
    in_channels = [math.ceil(c * width) for c in [960, 112, 40]]   # [96, 12, 4]
    B, H, W = 2, 64, 64

    k1, k2, k3, kp = jax.random.split(key, 4)
    tensors = [None] * 10
    tensors[9] = jax.random.normal(k1, (B, in_channels[0], H // 32, W // 32), jnp.float32)
    tensors[6] = jax.random.normal(k2, (B, in_channels[1], H // 16, W // 16), jnp.float32)
    tensors[4] = jax.random.normal(k3, (B, in_channels[2], H // 8, W // 8), jnp.float32)

    params = init_params(kp, in_channels, num_classes)

    out = jax.block_until_ready(segmentation_head_forward(tensors, params))
    assert out.shape == (B, num_classes, H, W), out.shape
    assert bool(jnp.all(jnp.isfinite(out)))

    # correctness check against a plain-jnp reference using the same folded params
    ref = jax.block_until_ready(_reference_forward(tensors, params))
    err = float(jnp.max(jnp.abs(out - ref)))
    assert err < 2e-3, f"max abs error vs reference: {err}"

    print("KERNEL_OK")
</pallas_src>

<mosaic_0001>
module attributes {stable_mosaic.version = 11 : i64} {
  func.func @_seg_head_kernel(%arg0: i32, %arg1: memref<1x96x4xf32, #tpu.memory_space<vmem>>, %arg2: memref<1x12x16xf32, #tpu.memory_space<vmem>>, %arg3: memref<1x4x64xf32, #tpu.memory_space<vmem>>, %arg4: memref<9x4x4xf32, #tpu.memory_space<vmem>>, %arg5: memref<9x16x16xf32, #tpu.memory_space<vmem>>, %arg6: memref<9x64x64xf32, #tpu.memory_space<vmem>>, %arg7: memref<4x16xf32, #tpu.memory_space<vmem>>, %arg8: memref<16x64xf32, #tpu.memory_space<vmem>>, %arg9: memref<64x4096xf32, #tpu.memory_space<vmem>>, %arg10: memref<12x96xf32, #tpu.memory_space<vmem>>, %arg11: memref<12x1xf32, #tpu.memory_space<vmem>>, %arg12: memref<12x9xf32, #tpu.memory_space<vmem>>, %arg13: memref<12x1xf32, #tpu.memory_space<vmem>>, %arg14: memref<3x24xf32, #tpu.memory_space<vmem>>, %arg15: memref<3x1xf32, #tpu.memory_space<vmem>>, %arg16: memref<3x9xf32, #tpu.memory_space<vmem>>, %arg17: memref<3x1xf32, #tpu.memory_space<vmem>>, %arg18: memref<96x9xf32, #tpu.memory_space<vmem>>, %arg19: memref<96x1xf32, #tpu.memory_space<vmem>>, %arg20: memref<6x96xf32, #tpu.memory_space<vmem>>, %arg21: memref<6x1xf32, #tpu.memory_space<vmem>>, %arg22: memref<2x12xf32, #tpu.memory_space<vmem>>, %arg23: memref<2x1xf32, #tpu.memory_space<vmem>>, %arg24: memref<2x9xf32, #tpu.memory_space<vmem>>, %arg25: memref<2x1xf32, #tpu.memory_space<vmem>>, %arg26: memref<3x3xf32, #tpu.memory_space<vmem>>, %arg27: memref<3x1xf32, #tpu.memory_space<vmem>>, %arg28: memref<3x9xf32, #tpu.memory_space<vmem>>, %arg29: memref<3x1xf32, #tpu.memory_space<vmem>>, %arg30: memref<12x9xf32, #tpu.memory_space<vmem>>, %arg31: memref<12x1xf32, #tpu.memory_space<vmem>>, %arg32: memref<6x12xf32, #tpu.memory_space<vmem>>, %arg33: memref<6x1xf32, #tpu.memory_space<vmem>>, %arg34: memref<1x4xf32, #tpu.memory_space<vmem>>, %arg35: memref<1x1xf32, #tpu.memory_space<vmem>>, %arg36: memref<1x9xf32, #tpu.memory_space<vmem>>, %arg37: memref<1x1xf32, #tpu.memory_space<vmem>>, %arg38: memref<3x1xf32, #tpu.memory_space<vmem>>, %arg39: memref<3x1xf32, #tpu.memory_space<vmem>>, %arg40: memref<3x9xf32, #tpu.memory_space<vmem>>, %arg41: memref<3x1xf32, #tpu.memory_space<vmem>>, %arg42: memref<4x9xf32, #tpu.memory_space<vmem>>, %arg43: memref<4x1xf32, #tpu.memory_space<vmem>>, %arg44: memref<6x4xf32, #tpu.memory_space<vmem>>, %arg45: memref<6x1xf32, #tpu.memory_space<vmem>>, %arg46: memref<1x6x4096xf32, #tpu.memory_space<vmem>>) attributes {dimension_semantics = [#tpu.dimension_semantics<parallel>], iteration_bounds = array<i64: 2>, scalar_prefetch = 0 : i64, scratch_operands = 0 : i64, tpu.core_type = #tpu.core_type<tc>, window_params = [{transform_indices = @transform_0, window_bounds = array<i64: 1, 96, 4>}, {transform_indices = @transform_1, window_bounds = array<i64: 1, 12, 16>}, {transform_indices = @transform_2, window_bounds = array<i64: 1, 4, 64>}, {pipeline_mode = #tpu.pipeline_mode<synchronous>, transform_indices = @transform_3, window_bounds = array<i64: 9, 4, 4>}, {pipeline_mode = #tpu.pipeline_mode<synchronous>, transform_indices = @transform_4, window_bounds = array<i64: 9, 16, 16>}, {pipeline_mode = #tpu.pipeline_mode<synchronous>, transform_indices = @transform_5, window_bounds = array<i64: 9, 64, 64>}, {pipeline_mode = #tpu.pipeline_mode<synchronous>, transform_indices = @transform_6, window_bounds = array<i64: 4, 16>}, {pipeline_mode = #tpu.pipeline_mode<synchronous>, transform_indices = @transform_7, window_bounds = array<i64: 16, 64>}, {pipeline_mode = #tpu.pipeline_mode<synchronous>, transform_indices = @transform_8, window_bounds = array<i64: 64, 4096>}, {pipeline_mode = #tpu.pipeline_mode<synchronous>, transform_indices = @transform_9, window_bounds = array<i64: 12, 96>}, {pipeline_mode = #tpu.pipeline_mode<synchronous>, transform_indices = @transform_10, window_bounds = array<i64: 12, 1>}, {pipeline_mode = #tpu.pipeline_mode<synchronous>, transform_indices = @transform_11, window_bounds = array<i64: 12, 9>}, {pipeline_mode = #tpu.pipeline_mode<synchronous>, transform_indices = @transform_12, window_bounds = array<i64: 12, 1>}, {pipeline_mode = #tpu.pipeline_mode<synchronous>, transform_indices = @transform_13, window_bounds = array<i64: 3, 24>}, {pipeline_mode = #tpu.pipeline_mode<synchronous>, transform_indices = @transform_14, window_bounds = array<i64: 3, 1>}, {pipeline_mode = #tpu.pipeline_mode<synchronous>, transform_indices = @transform_15, window_bounds = array<i64: 3, 9>}, {pipeline_mode = #tpu.pipeline_mode<synchronous>, transform_indices = @transform_16, window_bounds = array<i64: 3, 1>}, {pipeline_mode = #tpu.pipeline_mode<synchronous>, transform_indices = @transform_17, window_bounds = array<i64: 96, 9>}, {pipeline_mode = #tpu.pipeline_mode<synchronous>, transform_indices = @transform_18, window_bounds = array<i64: 96, 1>}, {pipeline_mode = #tpu.pipeline_mode<synchronous>, transform_indices = @transform_19, window_bounds = array<i64: 6, 96>}, {pipeline_mode = #tpu.pipeline_mode<synchronous>, transform_indices = @transform_20, window_bounds = array<i64: 6, 1>}, {pipeline_mode = #tpu.pipeline_mode<synchronous>, transform_indices = @transform_21, window_bounds = array<i64: 2, 12>}, {pipeline_mode = #tpu.pipeline_mode<synchronous>, transform_indices = @transform_22, window_bounds = array<i64: 2, 1>}, {pipeline_mode = #tpu.pipeline_mode<synchronous>, transform_indices = @transform_23, window_bounds = array<i64: 2, 9>}, {pipeline_mode = #tpu.pipeline_mode<synchronous>, transform_indices = @transform_24, window_bounds = array<i64: 2, 1>}, {pipeline_mode = #tpu.pipeline_mode<synchronous>, transform_indices = @transform_25, window_bounds = array<i64: 3, 3>}, {pipeline_mode = #tpu.pipeline_mode<synchronous>, transform_indices = @transform_26, window_bounds = array<i64: 3, 1>}, {pipeline_mode = #tpu.pipeline_mode<synchronous>, transform_indices = @transform_27, window_bounds = array<i64: 3, 9>}, {pipeline_mode = #tpu.pipeline_mode<synchronous>, transform_indices = @transform_28, window_bounds = array<i64: 3, 1>}, {pipeline_mode = #tpu.pipeline_mode<synchronous>, transform_indices = @transform_29, window_bounds = array<i64: 12, 9>}, {pipeline_mode = #tpu.pipeline_mode<synchronous>, transform_indices = @transform_30, window_bounds = array<i64: 12, 1>}, {pipeline_mode = #tpu.pipeline_mode<synchronous>, transform_indices = @transform_31, window_bounds = array<i64: 6, 12>}, {pipeline_mode = #tpu.pipeline_mode<synchronous>, transform_indices = @transform_32, window_bounds = array<i64: 6, 1>}, {pipeline_mode = #tpu.pipeline_mode<synchronous>, transform_indices = @transform_33, window_bounds = array<i64: 1, 4>}, {pipeline_mode = #tpu.pipeline_mode<synchronous>, transform_indices = @transform_34, window_bounds = array<i64: 1, 1>}, {pipeline_mode = #tpu.pipeline_mode<synchronous>, transform_indices = @transform_35, window_bounds = array<i64: 1, 9>}, {pipeline_mode = #tpu.pipeline_mode<synchronous>, transform_indices = @transform_36, window_bounds = array<i64: 1, 1>}, {pipeline_mode = #tpu.pipeline_mode<synchronous>, transform_indices = @transform_37, window_bounds = array<i64: 3, 1>}, {pipeline_mode = #tpu.pipeline_mode<synchronous>, transform_indices = @transform_38, window_bounds = array<i64: 3, 1>}, {pipeline_mode = #tpu.pipeline_mode<synchronous>, transform_indices = @transform_39, window_bounds = array<i64: 3, 9>}, {pipeline_mode = #tpu.pipeline_mode<synchronous>, transform_indices = @transform_40, window_bounds = array<i64: 3, 1>}, {pipeline_mode = #tpu.pipeline_mode<synchronous>, transform_indices = @transform_41, window_bounds = array<i64: 4, 9>}, {pipeline_mode = #tpu.pipeline_mode<synchronous>, transform_indices = @transform_42, window_bounds = array<i64: 4, 1>}, {pipeline_mode = #tpu.pipeline_mode<synchronous>, transform_indices = @transform_43, window_bounds = array<i64: 6, 4>}, {pipeline_mode = #tpu.pipeline_mode<synchronous>, transform_indices = @transform_44, window_bounds = array<i64: 6, 1>}, {transform_indices = @transform_45, window_bounds = array<i64: 1, 6, 4096>}]} {
    %c0 = arith.constant 0 : index
    %c0_0 = arith.constant 0 : index
    %c0_1 = arith.constant 0 : index
    %0 = vector.load %arg1[%c0, %c0_0, %c0_1] : memref<1x96x4xf32, #tpu.memory_space<vmem>>, vector<1x96x4xf32>
    %1 = vector.shape_cast %0 : vector<1x96x4xf32> to vector<96x4xf32>
    %c0_2 = arith.constant 0 : index
    %c0_3 = arith.constant 0 : index
    %2 = vector.load %arg10[%c0_2, %c0_3] : memref<12x96xf32, #tpu.memory_space<vmem>>, vector<12x96xf32>
    %cst = arith.constant dense<0.000000e+00> : vector<12x4xf32>
    %3 = tpu.matmul %2, %1, %cst {dimension_numbers = #tpu.dot_dimension_numbers<[1], [0], [0], [1], [0, 0, 1, 1], [], []>} : vector<12x96xf32>, vector<96x4xf32>, vector<12x4xf32> -> vector<12x4xf32>
    %c0_4 = arith.constant 0 : index
    %c0_5 = arith.constant 0 : index
    %4 = vector.load %arg11[%c0_4, %c0_5] : memref<12x1xf32, #tpu.memory_space<vmem>>, vector<12x1xf32>
    %5 = vector.broadcast %4 : vector<12x1xf32> to vector<12x4xf32>
    %6 = arith.addf %3, %5 : vector<12x4xf32>
    %cst_6 = arith.constant 0.000000e+00 : f32
    %7 = vector.broadcast %cst_6 : f32 to vector<12x4xf32>
    %8 = arith.maximumf %6, %7 : vector<12x4xf32>
    %c0_7 = arith.constant 0 : index
    %c0_8 = arith.constant 0 : index
    %9 = vector.load %arg12[%c0_7, %c0_8] : memref<12x9xf32, #tpu.memory_space<vmem>>, vector<12x9xf32>
    %10 = vector.extract_strided_slice %9 {offsets = [0, 4], sizes = [12, 1], strides = [1, 1]} : vector<12x9xf32> to vector<12x1xf32>
    %11 = vector.broadcast %10 : vector<12x1xf32> to vector<12x4xf32>
    %12 = arith.mulf %8, %11 : vector<12x4xf32>
    %c0_9 = arith.constant 0 : index
    %c0_10 = arith.constant 0 : index
    %13 = vector.load %arg13[%c0_9, %c0_10] : memref<12x1xf32, #tpu.memory_space<vmem>>, vector<12x1xf32>
    %14 = vector.broadcast %13 : vector<12x1xf32> to vector<12x4xf32>
    %15 = arith.addf %12, %14 : vector<12x4xf32>
    %c0_11 = arith.constant 0 : index
    %c0_12 = arith.constant 0 : index
    %c0_13 = arith.constant 0 : index
    %16 = vector.load %arg4[%c0_11, %c0_12, %c0_13] : memref<9x4x4xf32, #tpu.memory_space<vmem>>, vector<1x4x4xf32>
    %17 = vector.shape_cast %16 : vector<1x4x4xf32> to vector<4x4xf32>
    %cst_14 = arith.constant dense<0.000000e+00> : vector<12x4xf32>
    %18 = tpu.matmul %8, %17, %cst_14 {dimension_numbers = #tpu.dot_dimension_numbers<[1], [0], [0], [1], [0, 0, 1, 1], [], []>} : vector<12x4xf32>, vector<4x4xf32>, vector<12x4xf32> -> vector<12x4xf32>
    %19 = vector.extract_strided_slice %9 {offsets = [0, 0], sizes = [12, 1], strides = [1, 1]} : vector<12x9xf32> to vector<12x1xf32>
    %20 = vector.broadcast %19 : vector<12x1xf32> to vector<12x4xf32>
    %21 = arith.mulf %18, %20 : vector<12x4xf32>
    %22 = arith.addf %15, %21 : vector<12x4xf32>
    %c1 = arith.constant 1 : index
    %c0_15 = arith.constant 0 : index
    %c0_16 = arith.constant 0 : index
    %23 = vector.load %arg4[%c1, %c0_15, %c0_16] : memref<9x4x4xf32, #tpu.memory_space<vmem>>, vector<1x4x4xf32>
    %24 = vector.shape_cast %23 : vector<1x4x4xf32> to vector<4x4xf32>
    %cst_17 = arith.constant dense<0.000000e+00> : vector<12x4xf32>
    %25 = tpu.matmul %8, %24, %cst_17 {dimension_numbers = #tpu.dot_dimension_numbers<[1], [0], [0], [1], [0, 0, 1, 1], [], []>} : vector<12x4xf32>, vector<4x4xf32>, vector<12x4xf32> -> vector<12x4xf32>
    %26 = vector.extract_strided_slice %9 {offsets = [0, 1], sizes = [12, 1], strides = [1, 1]} : vector<12x9xf32> to vector<12x1xf32>
    %27 = vector.broadcast %26 : vector<12x1xf32> to vector<12x4xf32>
    %28 = arith.mulf %25, %27 : vector<12x4xf32>
    %29 = arith.addf %22, %28 : vector<12x4xf32>
    %c2 = arith.constant 2 : index
    %c0_18 = arith.constant 0 : index
    %c0_19 = arith.constant 0 : index
    %30 = vector.load %arg4[%c2, %c0_18, %c0_19] : memref<9x4x4xf32, #tpu.memory_space<vmem>>, vector<1x4x4xf32>
    %31 = vector.shape_cast %30 : vector<1x4x4xf32> to vector<4x4xf32>
    %cst_20 = arith.constant dense<0.000000e+00> : vector<12x4xf32>
    %32 = tpu.matmul %8, %31, %cst_20 {dimension_numbers = #tpu.dot_dimension_numbers<[1], [0], [0], [1], [0, 0, 1, 1], [], []>} : vector<12x4xf32>, vector<4x4xf32>, vector<12x4xf32> -> vector<12x4xf32>
    %33 = vector.extract_strided_slice %9 {offsets = [0, 2], sizes = [12, 1], strides = [1, 1]} : vector<12x9xf32> to vector<12x1xf32>
    %34 = vector.broadcast %33 : vector<12x1xf32> to vector<12x4xf32>
    %35 = arith.mulf %32, %34 : vector<12x4xf32>
    %36 = arith.addf %29, %35 : vector<12x4xf32>
    %c3 = arith.constant 3 : index
    %c0_21 = arith.constant 0 : index
    %c0_22 = arith.constant 0 : index
    %37 = vector.load %arg4[%c3, %c0_21, %c0_22] : memref<9x4x4xf32, #tpu.memory_space<vmem>>, vector<1x4x4xf32>
    %38 = vector.shape_cast %37 : vector<1x4x4xf32> to vector<4x4xf32>
    %cst_23 = arith.constant dense<0.000000e+00> : vector<12x4xf32>
    %39 = tpu.matmul %8, %38, %cst_23 {dimension_numbers = #tpu.dot_dimension_numbers<[1], [0], [0], [1], [0, 0, 1, 1], [], []>} : vector<12x4xf32>, vector<4x4xf32>, vector<12x4xf32> -> vector<12x4xf32>
    %40 = vector.extract_strided_slice %9 {offsets = [0, 3], sizes = [12, 1], strides = [1, 1]} : vector<12x9xf32> to vector<12x1xf32>
    %41 = vector.broadcast %40 : vector<12x1xf32> to vector<12x4xf32>
    %42 = arith.mulf %39, %41 : vector<12x4xf32>
    %43 = arith.addf %36, %42 : vector<12x4xf32>
    %c5 = arith.constant 5 : index
    %c0_24 = arith.constant 0 : index
    %c0_25 = arith.constant 0 : index
    %44 = vector.load %arg4[%c5, %c0_24, %c0_25] : memref<9x4x4xf32, #tpu.memory_space<vmem>>, vector<1x4x4xf32>
    %45 = vector.shape_cast %44 : vector<1x4x4xf32> to vector<4x4xf32>
    %cst_26 = arith.constant dense<0.000000e+00> : vector<12x4xf32>
    %46 = tpu.matmul %8, %45, %cst_26 {dimension_numbers = #tpu.dot_dimension_numbers<[1], [0], [0], [1], [0, 0, 1, 1], [], []>} : vector<12x4xf32>, vector<4x4xf32>, vector<12x4xf32> -> vector<12x4xf32>
    %47 = vector.extract_strided_slice %9 {offsets = [0, 5], sizes = [12, 1], strides = [1, 1]} : vector<12x9xf32> to vector<12x1xf32>
    %48 = vector.broadcast %47 : vector<12x1xf32> to vector<12x4xf32>
    %49 = arith.mulf %46, %48 : vector<12x4xf32>
    %50 = arith.addf %43, %49 : vector<12x4xf32>
    %c6 = arith.constant 6 : index
    %c0_27 = arith.constant 0 : index
    %c0_28 = arith.constant 0 : index
    %51 = vector.load %arg4[%c6, %c0_27, %c0_28] : memref<9x4x4xf32, #tpu.memory_space<vmem>>, vector<1x4x4xf32>
    %52 = vector.shape_cast %51 : vector<1x4x4xf32> to vector<4x4xf32>
    %cst_29 = arith.constant dense<0.000000e+00> : vector<12x4xf32>
    %53 = tpu.matmul %8, %52, %cst_29 {dimension_numbers = #tpu.dot_dimension_numbers<[1], [0], [0], [1], [0, 0, 1, 1], [], []>} : vector<12x4xf32>, vector<4x4xf32>, vector<12x4xf32> -> vector<12x4xf32>
    %54 = vector.extract_strided_slice %9 {offsets = [0, 6], sizes = [12, 1], strides = [1, 1]} : vector<12x9xf32> to vector<12x1xf32>
    %55 = vector.broadcast %54 : vector<12x1xf32> to vector<12x4xf32>
    %56 = arith.mulf %53, %55 : vector<12x4xf32>
    %57 = arith.addf %50, %56 : vector<12x4xf32>
    %c7 = arith.constant 7 : index
    %c0_30 = arith.constant 0 : index
    %c0_31 = arith.constant 0 : index
    %58 = vector.load %arg4[%c7, %c0_30, %c0_31] : memref<9x4x4xf32, #tpu.memory_space<vmem>>, vector<1x4x4xf32>
    %59 = vector.shape_cast %58 : vector<1x4x4xf32> to vector<4x4xf32>
    %cst_32 = arith.constant dense<0.000000e+00> : vector<12x4xf32>
    %60 = tpu.matmul %8, %59, %cst_32 {dimension_numbers = #tpu.dot_dimension_numbers<[1], [0], [0], [1], [0, 0, 1, 1], [], []>} : vector<12x4xf32>, vector<4x4xf32>, vector<12x4xf32> -> vector<12x4xf32>
    %61 = vector.extract_strided_slice %9 {offsets = [0, 7], sizes = [12, 1], strides = [1, 1]} : vector<12x9xf32> to vector<12x1xf32>
    %62 = vector.broadcast %61 : vector<12x1xf32> to vector<12x4xf32>
    %63 = arith.mulf %60, %62 : vector<12x4xf32>
    %64 = arith.addf %57, %63 : vector<12x4xf32>
    %c8 = arith.constant 8 : index
    %c0_33 = arith.constant 0 : index
    %c0_34 = arith.constant 0 : index
    %65 = vector.load %arg4[%c8, %c0_33, %c0_34] : memref<9x4x4xf32, #tpu.memory_space<vmem>>, vector<1x4x4xf32>
    %66 = vector.shape_cast %65 : vector<1x4x4xf32> to vector<4x4xf32>
    %cst_35 = arith.constant dense<0.000000e+00> : vector<12x4xf32>
    %67 = tpu.matmul %8, %66, %cst_35 {dimension_numbers = #tpu.dot_dimension_numbers<[1], [0], [0], [1], [0, 0, 1, 1], [], []>} : vector<12x4xf32>, vector<4x4xf32>, vector<12x4xf32> -> vector<12x4xf32>
    %68 = vector.extract_strided_slice %9 {offsets = [0, 8], sizes = [12, 1], strides = [1, 1]} : vector<12x9xf32> to vector<12x1xf32>
    %69 = vector.broadcast %68 : vector<12x1xf32> to vector<12x4xf32>
    %70 = arith.mulf %67, %69 : vector<12x4xf32>
    %71 = arith.addf %64, %70 : vector<12x4xf32>
    %cst_36 = arith.constant 0.000000e+00 : f32
    %72 = vector.broadcast %cst_36 : f32 to vector<12x4xf32>
    %73 = arith.maximumf %71, %72 : vector<12x4xf32>
    %cst_37 = arith.constant 0.000000e+00 : f32
    %74 = vector.broadcast %cst_37 : f32 to vector<24x4xf32>
    %75 = tpu.iota {dimensions = array<i32: 0>} : vector<24x12xi32>
    %76 = tpu.iota {dimensions = array<i32: 1>} : vector<24x12xi32>
    %c0_i32 = arith.constant 0 : i32
    %77 = vector.broadcast %c0_i32 : i32 to vector<24x12xi32>
    %78 = arith.addi %76, %77 : vector<24x12xi32>
    %79 = arith.cmpi eq, %75, %78 : vector<24x12xi32>
    %80 = arith.extui %79 : vector<24x12xi1> to vector<24x12xi32>
    %81 = arith.sitofp %80 : vector<24x12xi32> to vector<24x12xf32>
    %cst_38 = arith.constant dense<0.000000e+00> : vector<24x4xf32>
    %82 = tpu.matmul %81, %8, %cst_38 {dimension_numbers = #tpu.dot_dimension_numbers<[1], [0], [0], [1], [0, 0, 1, 1], [], []>} : vector<24x12xf32>, vector<12x4xf32>, vector<24x4xf32> -> vector<24x4xf32>
    %83 = arith.addf %74, %82 : vector<24x4xf32>
    %84 = tpu.iota {dimensions = array<i32: 0>} : vector<24x12xi32>
    %85 = tpu.iota {dimensions = array<i32: 1>} : vector<24x12xi32>
    %c12_i32 = arith.constant 12 : i32
    %86 = vector.broadcast %c12_i32 : i32 to vector<24x12xi32>
    %87 = arith.addi %85, %86 : vector<24x12xi32>
    %88 = arith.cmpi eq, %84, %87 : vector<24x12xi32>
    %89 = arith.extui %88 : vector<24x12xi1> to vector<24x12xi32>
    %90 = arith.sitofp %89 : vector<24x12xi32> to vector<24x12xf32>
    %cst_39 = arith.constant dense<0.000000e+00> : vector<24x4xf32>
    %91 = tpu.matmul %90, %73, %cst_39 {dimension_numbers = #tpu.dot_dimension_numbers<[1], [0], [0], [1], [0, 0, 1, 1], [], []>} : vector<24x12xf32>, vector<12x4xf32>, vector<24x4xf32> -> vector<24x4xf32>
    %92 = arith.addf %83, %91 : vector<24x4xf32>
    %c0_40 = arith.constant 0 : index
    %c0_41 = arith.constant 0 : index
    %93 = vector.load %arg14[%c0_40, %c0_41] : memref<3x24xf32, #tpu.memory_space<vmem>>, vector<3x24xf32>
    %cst_42 = arith.constant dense<0.000000e+00> : vector<3x4xf32>
    %94 = tpu.matmul %93, %92, %cst_42 {dimension_numbers = #tpu.dot_dimension_numbers<[1], [0], [0], [1], [0, 0, 1, 1], [], []>} : vector<3x24xf32>, vector<24x4xf32>, vector<3x4xf32> -> vector<3x4xf32>
    %c0_43 = arith.constant 0 : index
    %c0_44 = arith.constant 0 : index
    %95 = vector.load %arg15[%c0_43, %c0_44] : memref<3x1xf32, #tpu.memory_space<vmem>>, vector<3x1xf32>
    %96 = vector.broadcast %95 : vector<3x1xf32> to vector<3x4xf32>
    %97 = arith.addf %94, %96 : vector<3x4xf32>
    %c0_45 = arith.constant 0 : index
    %c0_46 = arith.constant 0 : index
    %98 = vector.load %arg16[%c0_45, %c0_46] : memref<3x9xf32, #tpu.memory_space<vmem>>, vector<3x9xf32>
    %99 = vector.extract_strided_slice %98 {offsets = [0, 4], sizes = [3, 1], strides = [1, 1]} : vector<3x9xf32> to vector<3x1xf32>
    %100 = vector.broadcast %99 : vector<3x1xf32> to vector<3x4xf32>
    %101 = arith.mulf %97, %100 : vector<3x4xf32>
    %c0_47 = arith.constant 0 : index
    %c0_48 = arith.constant 0 : index
    %102 = vector.load %arg17[%c0_47, %c0_48] : memref<3x1xf32, #tpu.memory_space<vmem>>, vector<3x1xf32>
    %103 = vector.broadcast %102 : vector<3x1xf32> to vector<3x4xf32>
    %104 = arith.addf %101, %103 : vector<3x4xf32>
    %c0_49 = arith.constant 0 : index
    %c0_50 = arith.constant 0 : index
    %c0_51 = arith.constant 0 : index
    %105 = vector.load %arg4[%c0_49, %c0_50, %c0_51] : memref<9x4x4xf32, #tpu.memory_space<vmem>>, vector<1x4x4xf32>
    %106 = vector.shape_cast %105 : vector<1x4x4xf32> to vector<4x4xf32>
    %cst_52 = arith.constant dense<0.000000e+00> : vector<3x4xf32>
    %107 = tpu.matmul %97, %106, %cst_52 {dimension_numbers = #tpu.dot_dimension_numbers<[1], [0], [0], [1], [0, 0, 1, 1], [], []>} : vector<3x4xf32>, vector<4x4xf32>, vector<3x4xf32> -> vector<3x4xf32>
    %108 = vector.extract_strided_slice %98 {offsets = [0, 0], sizes = [3, 1], strides = [1, 1]} : vector<3x9xf32> to vector<3x1xf32>
    %109 = vector.broadcast %108 : vector<3x1xf32> to vector<3x4xf32>
    %110 = arith.mulf %107, %109 : vector<3x4xf32>
    %111 = arith.addf %104, %110 : vector<3x4xf32>
    %c1_53 = arith.constant 1 : index
    %c0_54 = arith.constant 0 : index
    %c0_55 = arith.constant 0 : index
    %112 = vector.load %arg4[%c1_53, %c0_54, %c0_55] : memref<9x4x4xf32, #tpu.memory_space<vmem>>, vector<1x4x4xf32>
    %113 = vector.shape_cast %112 : vector<1x4x4xf32> to vector<4x4xf32>
    %cst_56 = arith.constant dense<0.000000e+00> : vector<3x4xf32>
    %114 = tpu.matmul %97, %113, %cst_56 {dimension_numbers = #tpu.dot_dimension_numbers<[1], [0], [0], [1], [0, 0, 1, 1], [], []>} : vector<3x4xf32>, vector<4x4xf32>, vector<3x4xf32> -> vector<3x4xf32>
    %115 = vector.extract_strided_slice %98 {offsets = [0, 1], sizes = [3, 1], strides = [1, 1]} : vector<3x9xf32> to vector<3x1xf32>
    %116 = vector.broadcast %115 : vector<3x1xf32> to vector<3x4xf32>
    %117 = arith.mulf %114, %116 : vector<3x4xf32>
    %118 = arith.addf %111, %117 : vector<3x4xf32>
    %c2_57 = arith.constant 2 : index
    %c0_58 = arith.constant 0 : index
    %c0_59 = arith.constant 0 : index
    %119 = vector.load %arg4[%c2_57, %c0_58, %c0_59] : memref<9x4x4xf32, #tpu.memory_space<vmem>>, vector<1x4x4xf32>
    %120 = vector.shape_cast %119 : vector<1x4x4xf32> to vector<4x4xf32>
    %cst_60 = arith.constant dense<0.000000e+00> : vector<3x4xf32>
    %121 = tpu.matmul %97, %120, %cst_60 {dimension_numbers = #tpu.dot_dimension_numbers<[1], [0], [0], [1], [0, 0, 1, 1], [], []>} : vector<3x4xf32>, vector<4x4xf32>, vector<3x4xf32> -> vector<3x4xf32>
    %122 = vector.extract_strided_slice %98 {offsets = [0, 2], sizes = [3, 1], strides = [1, 1]} : vector<3x9xf32> to vector<3x1xf32>
    %123 = vector.broadcast %122 : vector<3x1xf32> to vector<3x4xf32>
    %124 = arith.mulf %121, %123 : vector<3x4xf32>
    %125 = arith.addf %118, %124 : vector<3x4xf32>
    %c3_61 = arith.constant 3 : index
    %c0_62 = arith.constant 0 : index
    %c0_63 = arith.constant 0 : index
    %126 = vector.load %arg4[%c3_61, %c0_62, %c0_63] : memref<9x4x4xf32, #tpu.memory_space<vmem>>, vector<1x4x4xf32>
    %127 = vector.shape_cast %126 : vector<1x4x4xf32> to vector<4x4xf32>
    %cst_64 = arith.constant dense<0.000000e+00> : vector<3x4xf32>
    %128 = tpu.matmul %97, %127, %cst_64 {dimension_numbers = #tpu.dot_dimension_numbers<[1], [0], [0], [1], [0, 0, 1, 1], [], []>} : vector<3x4xf32>, vector<4x4xf32>, vector<3x4xf32> -> vector<3x4xf32>
    %129 = vector.extract_strided_slice %98 {offsets = [0, 3], sizes = [3, 1], strides = [1, 1]} : vector<3x9xf32> to vector<3x1xf32>
    %130 = vector.broadcast %129 : vector<3x1xf32> to vector<3x4xf32>
    %131 = arith.mulf %128, %130 : vector<3x4xf32>
    %132 = arith.addf %125, %131 : vector<3x4xf32>
    %c5_65 = arith.constant 5 : index
    %c0_66 = arith.constant 0 : index
    %c0_67 = arith.constant 0 : index
    %133 = vector.load %arg4[%c5_65, %c0_66, %c0_67] : memref<9x4x4xf32, #tpu.memory_space<vmem>>, vector<1x4x4xf32>
    %134 = vector.shape_cast %133 : vector<1x4x4xf32> to vector<4x4xf32>
    %cst_68 = arith.constant dense<0.000000e+00> : vector<3x4xf32>
    %135 = tpu.matmul %97, %134, %cst_68 {dimension_numbers = #tpu.dot_dimension_numbers<[1], [0], [0], [1], [0, 0, 1, 1], [], []>} : vector<3x4xf32>, vector<4x4xf32>, vector<3x4xf32> -> vector<3x4xf32>
    %136 = vector.extract_strided_slice %98 {offsets = [0, 5], sizes = [3, 1], strides = [1, 1]} : vector<3x9xf32> to vector<3x1xf32>
    %137 = vector.broadcast %136 : vector<3x1xf32> to vector<3x4xf32>
    %138 = arith.mulf %135, %137 : vector<3x4xf32>
    %139 = arith.addf %132, %138 : vector<3x4xf32>
    %c6_69 = arith.constant 6 : index
    %c0_70 = arith.constant 0 : index
    %c0_71 = arith.constant 0 : index
    %140 = vector.load %arg4[%c6_69, %c0_70, %c0_71] : memref<9x4x4xf32, #tpu.memory_space<vmem>>, vector<1x4x4xf32>
    %141 = vector.shape_cast %140 : vector<1x4x4xf32> to vector<4x4xf32>
    %cst_72 = arith.constant dense<0.000000e+00> : vector<3x4xf32>
    %142 = tpu.matmul %97, %141, %cst_72 {dimension_numbers = #tpu.dot_dimension_numbers<[1], [0], [0], [1], [0, 0, 1, 1], [], []>} : vector<3x4xf32>, vector<4x4xf32>, vector<3x4xf32> -> vector<3x4xf32>
    %143 = vector.extract_strided_slice %98 {offsets = [0, 6], sizes = [3, 1], strides = [1, 1]} : vector<3x9xf32> to vector<3x1xf32>
    %144 = vector.broadcast %143 : vector<3x1xf32> to vector<3x4xf32>
    %145 = arith.mulf %142, %144 : vector<3x4xf32>
    %146 = arith.addf %139, %145 : vector<3x4xf32>
    %c7_73 = arith.constant 7 : index
    %c0_74 = arith.constant 0 : index
    %c0_75 = arith.constant 0 : index
    %147 = vector.load %arg4[%c7_73, %c0_74, %c0_75] : memref<9x4x4xf32, #tpu.memory_space<vmem>>, vector<1x4x4xf32>
    %148 = vector.shape_cast %147 : vector<1x4x4xf32> to vector<4x4xf32>
    %cst_76 = arith.constant dense<0.000000e+00> : vector<3x4xf32>
    %149 = tpu.matmul %97, %148, %cst_76 {dimension_numbers = #tpu.dot_dimension_numbers<[1], [0], [0], [1], [0, 0, 1, 1], [], []>} : vector<3x4xf32>, vector<4x4xf32>, vector<3x4xf32> -> vector<3x4xf32>
    %150 = vector.extract_strided_slice %98 {offsets = [0, 7], sizes = [3, 1], strides = [1, 1]} : vector<3x9xf32> to vector<3x1xf32>
    %151 = vector.broadcast %150 : vector<3x1xf32> to vector<3x4xf32>
    %152 = arith.mulf %149, %151 : vector<3x4xf32>
    %153 = arith.addf %146, %152 : vector<3x4xf32>
    %c8_77 = arith.constant 8 : index
    %c0_78 = arith.constant 0 : index
    %c0_79 = arith.constant 0 : index
    %154 = vector.load %arg4[%c8_77, %c0_78, %c0_79] : memref<9x4x4xf32, #tpu.memory_space<vmem>>, vector<1x4x4xf32>
    %155 = vector.shape_cast %154 : vector<1x4x4xf32> to vector<4x4xf32>
    %cst_80 = arith.constant dense<0.000000e+00> : vector<3x4xf32>
    %156 = tpu.matmul %97, %155, %cst_80 {dimension_numbers = #tpu.dot_dimension_numbers<[1], [0], [0], [1], [0, 0, 1, 1], [], []>} : vector<3x4xf32>, vector<4x4xf32>, vector<3x4xf32> -> vector<3x4xf32>
    %157 = vector.extract_strided_slice %98 {offsets = [0, 8], sizes = [3, 1], strides = [1, 1]} : vector<3x9xf32> to vector<3x1xf32>
    %158 = vector.broadcast %157 : vector<3x1xf32> to vector<3x4xf32>
    %159 = arith.mulf %156, %158 : vector<3x4xf32>
    %160 = arith.addf %153, %159 : vector<3x4xf32>
    %cst_81 = arith.constant 0.000000e+00 : f32
    %161 = vector.broadcast %cst_81 : f32 to vector<6x4xf32>
    %162 = tpu.iota {dimensions = array<i32: 0>} : vector<6x3xi32>
    %163 = tpu.iota {dimensions = array<i32: 1>} : vector<6x3xi32>
    %c0_i32_82 = arith.constant 0 : i32
    %164 = vector.broadcast %c0_i32_82 : i32 to vector<6x3xi32>
    %165 = arith.addi %163, %164 : vector<6x3xi32>
    %166 = arith.cmpi eq, %162, %165 : vector<6x3xi32>
    %167 = arith.extui %166 : vector<6x3xi1> to vector<6x3xi32>
    %168 = arith.sitofp %167 : vector<6x3xi32> to vector<6x3xf32>
    %cst_83 = arith.constant dense<0.000000e+00> : vector<6x4xf32>
    %169 = tpu.matmul %168, %97, %cst_83 {dimension_numbers = #tpu.dot_dimension_numbers<[1], [0], [0], [1], [0, 0, 1, 1], [], []>} : vector<6x3xf32>, vector<3x4xf32>, vector<6x4xf32> -> vector<6x4xf32>
    %170 = arith.addf %161, %169 : vector<6x4xf32>
    %171 = tpu.iota {dimensions = array<i32: 0>} : vector<6x3xi32>
    %172 = tpu.iota {dimensions = array<i32: 1>} : vector<6x3xi32>
    %c3_i32 = arith.constant 3 : i32
    %173 = vector.broadcast %c3_i32 : i32 to vector<6x3xi32>
    %174 = arith.addi %172, %173 : vector<6x3xi32>
    %175 = arith.cmpi eq, %171, %174 : vector<6x3xi32>
    %176 = arith.extui %175 : vector<6x3xi1> to vector<6x3xi32>
    %177 = arith.sitofp %176 : vector<6x3xi32> to vector<6x3xf32>
    %cst_84 = arith.constant dense<0.000000e+00> : vector<6x4xf32>
    %178 = tpu.matmul %177, %160, %cst_84 {dimension_numbers = #tpu.dot_dimension_numbers<[1], [0], [0], [1], [0, 0, 1, 1], [], []>} : vector<6x3xf32>, vector<3x4xf32>, vector<6x4xf32> -> vector<6x4xf32>
    %179 = arith.addf %170, %178 : vector<6x4xf32>
    %c0_85 = arith.constant 0 : index
    %c0_86 = arith.constant 0 : index
    %180 = vector.load %arg18[%c0_85, %c0_86] : memref<96x9xf32, #tpu.memory_space<vmem>>, vector<96x9xf32>
    %181 = vector.extract_strided_slice %180 {offsets = [0, 4], sizes = [96, 1], strides = [1, 1]} : vector<96x9xf32> to vector<96x1xf32>
    %182 = vector.broadcast %181 : vector<96x1xf32> to vector<96x4xf32>
    %183 = arith.mulf %1, %182 : vector<96x4xf32>
    %c0_87 = arith.constant 0 : index
    %c0_88 = arith.constant 0 : index
    %184 = vector.load %arg19[%c0_87, %c0_88] : memref<96x1xf32, #tpu.memory_space<vmem>>, vector<96x1xf32>
    %185 = vector.broadcast %184 : vector<96x1xf32> to vector<96x4xf32>
    %186 = arith.addf %183, %185 : vector<96x4xf32>
    %c0_89 = arith.constant 0 : index
    %c0_90 = arith.constant 0 : index
    %c0_91 = arith.constant 0 : index
    %187 = vector.load %arg4[%c0_89, %c0_90, %c0_91] : memref<9x4x4xf32, #tpu.memory_space<vmem>>, vector<1x4x4xf32>
    %188 = vector.shape_cast %187 : vector<1x4x4xf32> to vector<4x4xf32>
    %cst_92 = arith.constant dense<0.000000e+00> : vector<96x4xf32>
    %189 = tpu.matmul %1, %188, %cst_92 {dimension_numbers = #tpu.dot_dimension_numbers<[1], [0], [0], [1], [0, 0, 1, 1], [], []>} : vector<96x4xf32>, vector<4x4xf32>, vector<96x4xf32> -> vector<96x4xf32>
    %190 = vector.extract_strided_slice %180 {offsets = [0, 0], sizes = [96, 1], strides = [1, 1]} : vector<96x9xf32> to vector<96x1xf32>
    %191 = vector.broadcast %190 : vector<96x1xf32> to vector<96x4xf32>
    %192 = arith.mulf %189, %191 : vector<96x4xf32>
    %193 = arith.addf %186, %192 : vector<96x4xf32>
    %c1_93 = arith.constant 1 : index
    %c0_94 = arith.constant 0 : index
    %c0_95 = arith.constant 0 : index
    %194 = vector.load %arg4[%c1_93, %c0_94, %c0_95] : memref<9x4x4xf32, #tpu.memory_space<vmem>>, vector<1x4x4xf32>
    %195 = vector.shape_cast %194 : vector<1x4x4xf32> to vector<4x4xf32>
    %cst_96 = arith.constant dense<0.000000e+00> : vector<96x4xf32>
    %196 = tpu.matmul %1, %195, %cst_96 {dimension_numbers = #tpu.dot_dimension_numbers<[1], [0], [0], [1], [0, 0, 1, 1], [], []>} : vector<96x4xf32>, vector<4x4xf32>, vector<96x4xf32> -> vector<96x4xf32>
    %197 = vector.extract_strided_slice %180 {offsets = [0, 1], sizes = [96, 1], strides = [1, 1]} : vector<96x9xf32> to vector<96x1xf32>
    %198 = vector.broadcast %197 : vector<96x1xf32> to vector<96x4xf32>
    %199 = arith.mulf %196, %198 : vector<96x4xf32>
    %200 = arith.addf %193, %199 : vector<96x4xf32>
    %c2_97 = arith.constant 2 : index
    %c0_98 = arith.constant 0 : index
    %c0_99 = arith.constant 0 : index
    %201 = vector.load %arg4[%c2_97, %c0_98, %c0_99] : memref<9x4x4xf32, #tpu.memory_space<vmem>>, vector<1x4x4xf32>
    %202 = vector.shape_cast %201 : vector<1x4x4xf32> to vector<4x4xf32>
    %cst_100 = arith.constant dense<0.000000e+00> : vector<96x4xf32>
    %203 = tpu.matmul %1, %202, %cst_100 {dimension_numbers = #tpu.dot_dimension_numbers<[1], [0], [0], [1], [0, 0, 1, 1], [], []>} : vector<96x4xf32>, vector<4x4xf32>, vector<96x4xf32> -> vector<96x4xf32>
    %204 = vector.extract_strided_slice %180 {offsets = [0, 2], sizes = [96, 1], strides = [1, 1]} : vector<96x9xf32> to vector<96x1xf32>
    %205 = vector.broadcast %204 : vector<96x1xf32> to vector<96x4xf32>
    %206 = arith.mulf %203, %205 : vector<96x4xf32>
    %207 = arith.addf %200, %206 : vector<96x4xf32>
    %c3_101 = arith.constant 3 : index
    %c0_102 = arith.constant 0 : index
    %c0_103 = arith.constant 0 : index
    %208 = vector.load %arg4[%c3_101, %c0_102, %c0_103] : memref<9x4x4xf32, #tpu.memory_space<vmem>>, vector<1x4x4xf32>
    %209 = vector.shape_cast %208 : vector<1x4x4xf32> to vector<4x4xf32>
    %cst_104 = arith.constant dense<0.000000e+00> : vector<96x4xf32>
    %210 = tpu.matmul %1, %209, %cst_104 {dimension_numbers = #tpu.dot_dimension_numbers<[1], [0], [0], [1], [0, 0, 1, 1], [], []>} : vector<96x4xf32>, vector<4x4xf32>, vector<96x4xf32> -> vector<96x4xf32>
    %211 = vector.extract_strided_slice %180 {offsets = [0, 3], sizes = [96, 1], strides = [1, 1]} : vector<96x9xf32> to vector<96x1xf32>
    %212 = vector.broadcast %211 : vector<96x1xf32> to vector<96x4xf32>
    %213 = arith.mulf %210, %212 : vector<96x4xf32>
    %214 = arith.addf %207, %213 : vector<96x4xf32>
    %c5_105 = arith.constant 5 : index
    %c0_106 = arith.constant 0 : index
    %c0_107 = arith.constant 0 : index
    %215 = vector.load %arg4[%c5_105, %c0_106, %c0_107] : memref<9x4x4xf32, #tpu.memory_space<vmem>>, vector<1x4x4xf32>
    %216 = vector.shape_cast %215 : vector<1x4x4xf32> to vector<4x4xf32>
    %cst_108 = arith.constant dense<0.000000e+00> : vector<96x4xf32>
    %217 = tpu.matmul %1, %216, %cst_108 {dimension_numbers = #tpu.dot_dimension_numbers<[1], [0], [0], [1], [0, 0, 1, 1], [], []>} : vector<96x4xf32>, vector<4x4xf32>, vector<96x4xf32> -> vector<96x4xf32>
    %218 = vector.extract_strided_slice %180 {offsets = [0, 5], sizes = [96, 1], strides = [1, 1]} : vector<96x9xf32> to vector<96x1xf32>
    %219 = vector.broadcast %218 : vector<96x1xf32> to vector<96x4xf32>
    %220 = arith.mulf %217, %219 : vector<96x4xf32>
    %221 = arith.addf %214, %220 : vector<96x4xf32>
    %c6_109 = arith.constant 6 : index
    %c0_110 = arith.constant 0 : index
    %c0_111 = arith.constant 0 : index
    %222 = vector.load %arg4[%c6_109, %c0_110, %c0_111] : memref<9x4x4xf32, #tpu.memory_space<vmem>>, vector<1x4x4xf32>
    %223 = vector.shape_cast %222 : vector<1x4x4xf32> to vector<4x4xf32>
    %cst_112 = arith.constant dense<0.000000e+00> : vector<96x4xf32>
    %224 = tpu.matmul %1, %223, %cst_112 {dimension_numbers = #tpu.dot_dimension_numbers<[1], [0], [0], [1], [0, 0, 1, 1], [], []>} : vector<96x4xf32>, vector<4x4xf32>, vector<96x4xf32> -> vector<96x4xf32>
    %225 = vector.extract_strided_slice %180 {offsets = [0, 6], sizes = [96, 1], strides = [1, 1]} : vector<96x9xf32> to vector<96x1xf32>
    %226 = vector.broadcast %225 : vector<96x1xf32> to vector<96x4xf32>
    %227 = arith.mulf %224, %226 : vector<96x4xf32>
    %228 = arith.addf %221, %227 : vector<96x4xf32>
    %c7_113 = arith.constant 7 : index
    %c0_114 = arith.constant 0 : index
    %c0_115 = arith.constant 0 : index
    %229 = vector.load %arg4[%c7_113, %c0_114, %c0_115] : memref<9x4x4xf32, #tpu.memory_space<vmem>>, vector<1x4x4xf32>
    %230 = vector.shape_cast %229 : vector<1x4x4xf32> to vector<4x4xf32>
    %cst_116 = arith.constant dense<0.000000e+00> : vector<96x4xf32>
    %231 = tpu.matmul %1, %230, %cst_116 {dimension_numbers = #tpu.dot_dimension_numbers<[1], [0], [0], [1], [0, 0, 1, 1], [], []>} : vector<96x4xf32>, vector<4x4xf32>, vector<96x4xf32> -> vector<96x4xf32>
    %232 = vector.extract_strided_slice %180 {offsets = [0, 7], sizes = [96, 1], strides = [1, 1]} : vector<96x9xf32> to vector<96x1xf32>
    %233 = vector.broadcast %232 : vector<96x1xf32> to vector<96x4xf32>
    %234 = arith.mulf %231, %233 : vector<96x4xf32>
    %235 = arith.addf %228, %234 : vector<96x4xf32>
    %c8_117 = arith.constant 8 : index
    %c0_118 = arith.constant 0 : index
    %c0_119 = arith.constant 0 : index
    %236 = vector.load %arg4[%c8_117, %c0_118, %c0_119] : memref<9x4x4xf32, #tpu.memory_space<vmem>>, vector<1x4x4xf32>
    %237 = vector.shape_cast %236 : vector<1x4x4xf32> to vector<4x4xf32>
    %cst_120 = arith.constant dense<0.000000e+00> : vector<96x4xf32>
    %238 = tpu.matmul %1, %237, %cst_120 {dimension_numbers = #tpu.dot_dimension_numbers<[1], [0], [0], [1], [0, 0, 1, 1], [], []>} : vector<96x4xf32>, vector<4x4xf32>, vector<96x4xf32> -> vector<96x4xf32>
    %239 = vector.extract_strided_slice %180 {offsets = [0, 8], sizes = [96, 1], strides = [1, 1]} : vector<96x9xf32> to vector<96x1xf32>
    %240 = vector.broadcast %239 : vector<96x1xf32> to vector<96x4xf32>
    %241 = arith.mulf %238, %240 : vector<96x4xf32>
    %242 = arith.addf %235, %241 : vector<96x4xf32>
    %c0_121 = arith.constant 0 : index
    %c0_122 = arith.constant 0 : index
    %243 = vector.load %arg20[%c0_121, %c0_122] : memref<6x96xf32, #tpu.memory_space<vmem>>, vector<6x96xf32>
    %cst_123 = arith.constant dense<0.000000e+00> : vector<6x4xf32>
    %244 = tpu.matmul %243, %242, %cst_123 {dimension_numbers = #tpu.dot_dimension_numbers<[1], [0], [0], [1], [0, 0, 1, 1], [], []>} : vector<6x96xf32>, vector<96x4xf32>, vector<6x4xf32> -> vector<6x4xf32>
    %c0_124 = arith.constant 0 : index
    %c0_125 = arith.constant 0 : index
    %245 = vector.load %arg21[%c0_124, %c0_125] : memref<6x1xf32, #tpu.memory_space<vmem>>, vector<6x1xf32>
    %246 = vector.broadcast %245 : vector<6x1xf32> to vector<6x4xf32>
    %247 = arith.addf %244, %246 : vector<6x4xf32>
    %248 = arith.addf %179, %247 : vector<6x4xf32>
    %c0_126 = arith.constant 0 : index
    %c0_127 = arith.constant 0 : index
    %249 = vector.load %arg7[%c0_126, %c0_127] : memref<4x16xf32, #tpu.memory_space<vmem>>, vector<4x16xf32>
    %cst_128 = arith.constant dense<0.000000e+00> : vector<6x16xf32>
    %250 = tpu.matmul %248, %249, %cst_128 {dimension_numbers = #tpu.dot_dimension_numbers<[1], [0], [0], [1], [0, 0, 1, 1], [], []>} : vector<6x4xf32>, vector<4x16xf32>, vector<6x16xf32> -> vector<6x16xf32>
    %c0_129 = arith.constant 0 : index
    %c0_130 = arith.constant 0 : index
    %c0_131 = arith.constant 0 : index
    %251 = vector.load %arg2[%c0_129, %c0_130, %c0_131] : memref<1x12x16xf32, #tpu.memory_space<vmem>>, vector<1x12x16xf32>
    %252 = vector.shape_cast %251 : vector<1x12x16xf32> to vector<12x16xf32>
    %c0_132 = arith.constant 0 : index
    %c0_133 = arith.constant 0 : index
    %253 = vector.load %arg22[%c0_132, %c0_133] : memref<2x12xf32, #tpu.memory_space<vmem>>, vector<2x12xf32>
    %cst_134 = arith.constant dense<0.000000e+00> : vector<2x16xf32>
    %254 = tpu.matmul %253, %252, %cst_134 {dimension_numbers = #tpu.dot_dimension_numbers<[1], [0], [0], [1], [0, 0, 1, 1], [], []>} : vector<2x12xf32>, vector<12x16xf32>, vector<2x16xf32> -> vector<2x16xf32>
    %c0_135 = arith.constant 0 : index
    %c0_136 = arith.constant 0 : index
    %255 = vector.load %arg23[%c0_135, %c0_136] : memref<2x1xf32, #tpu.memory_space<vmem>>, vector<2x1xf32>
    %256 = vector.broadcast %255 : vector<2x1xf32> to vector<2x16xf32>
    %257 = arith.addf %254, %256 : vector<2x16xf32>
    %cst_137 = arith.constant 0.000000e+00 : f32
    %258 = vector.broadcast %cst_137 : f32 to vector<2x16xf32>
    %259 = arith.maximumf %257, %258 : vector<2x16xf32>
    %c0_138 = arith.constant 0 : index
    %c0_139 = arith.constant 0 : index
    %260 = vector.load %arg24[%c0_138, %c0_139] : memref<2x9xf32, #tpu.memory_space<vmem>>, vector<2x9xf32>
    %261 = vector.extract_strided_slice %260 {offsets = [0, 4], sizes = [2, 1], strides = [1, 1]} : vector<2x9xf32> to vector<2x1xf32>
    %262 = vector.broadcast %261 : vector<2x1xf32> to vector<2x16xf32>
    %263 = arith.mulf %259, %262 : vector<2x16xf32>
    %c0_140 = arith.constant 0 : index
    %c0_141 = arith.constant 0 : index
    %264 = vector.load %arg25[%c0_140, %c0_141] : memref<2x1xf32, #tpu.memory_space<vmem>>, vector<2x1xf32>
    %265 = vector.broadcast %264 : vector<2x1xf32> to vector<2x16xf32>
    %266 = arith.addf %263, %265 : vector<2x16xf32>
    %c0_142 = arith.constant 0 : index
    %c0_143 = arith.constant 0 : index
    %c0_144 = arith.constant 0 : index
    %267 = vector.load %arg5[%c0_142, %c0_143, %c0_144] : memref<9x16x16xf32, #tpu.memory_space<vmem>>, vector<1x16x16xf32>
    %268 = vector.shape_cast %267 : vector<1x16x16xf32> to vector<16x16xf32>
    %cst_145 = arith.constant dense<0.000000e+00> : vector<2x16xf32>
    %269 = tpu.matmul %259, %268, %cst_145 {dimension_numbers = #tpu.dot_dimension_numbers<[1], [0], [0], [1], [0, 0, 1, 1], [], []>} : vector<2x16xf32>, vector<16x16xf32>, vector<2x16xf32> -> vector<2x16xf32>
    %270 = vector.extract_strided_slice %260 {offsets = [0, 0], sizes = [2, 1], strides = [1, 1]} : vector<2x9xf32> to vector<2x1xf32>
    %271 = vector.broadcast %270 : vector<2x1xf32> to vector<2x16xf32>
    %272 = arith.mulf %269, %271 : vector<2x16xf32>
    %273 = arith.addf %266, %272 : vector<2x16xf32>
    %c1_146 = arith.constant 1 : index
    %c0_147 = arith.constant 0 : index
    %c0_148 = arith.constant 0 : index
    %274 = vector.load %arg5[%c1_146, %c0_147, %c0_148] : memref<9x16x16xf32, #tpu.memory_space<vmem>>, vector<1x16x16xf32>
    %275 = vector.shape_cast %274 : vector<1x16x16xf32> to vector<16x16xf32>
    %cst_149 = arith.constant dense<0.000000e+00> : vector<2x16xf32>
    %276 = tpu.matmul %259, %275, %cst_149 {dimension_numbers = #tpu.dot_dimension_numbers<[1], [0], [0], [1], [0, 0, 1, 1], [], []>} : vector<2x16xf32>, vector<16x16xf32>, vector<2x16xf32> -> vector<2x16xf32>
    %277 = vector.extract_strided_slice %260 {offsets = [0, 1], sizes = [2, 1], strides = [1, 1]} : vector<2x9xf32> to vector<2x1xf32>
    %278 = vector.broadcast %277 : vector<2x1xf32> to vector<2x16xf32>
    %279 = arith.mulf %276, %278 : vector<2x16xf32>
    %280 = arith.addf %273, %279 : vector<2x16xf32>
    %c2_150 = arith.constant 2 : index
    %c0_151 = arith.constant 0 : index
    %c0_152 = arith.constant 0 : index
    %281 = vector.load %arg5[%c2_150, %c0_151, %c0_152] : memref<9x16x16xf32, #tpu.memory_space<vmem>>, vector<1x16x16xf32>
    %282 = vector.shape_cast %281 : vector<1x16x16xf32> to vector<16x16xf32>
    %cst_153 = arith.constant dense<0.000000e+00> : vector<2x16xf32>
    %283 = tpu.matmul %259, %282, %cst_153 {dimension_numbers = #tpu.dot_dimension_numbers<[1], [0], [0], [1], [0, 0, 1, 1], [], []>} : vector<2x16xf32>, vector<16x16xf32>, vector<2x16xf32> -> vector<2x16xf32>
    %284 = vector.extract_strided_slice %260 {offsets = [0, 2], sizes = [2, 1], strides = [1, 1]} : vector<2x9xf32> to vector<2x1xf32>
    %285 = vector.broadcast %284 : vector<2x1xf32> to vector<2x16xf32>
    %286 = arith.mulf %283, %285 : vector<2x16xf32>
    %287 = arith.addf %280, %286 : vector<2x16xf32>
    %c3_154 = arith.constant 3 : index
    %c0_155 = arith.constant 0 : index
    %c0_156 = arith.constant 0 : index
    %288 = vector.load %arg5[%c3_154, %c0_155, %c0_156] : memref<9x16x16xf32, #tpu.memory_space<vmem>>, vector<1x16x16xf32>
    %289 = vector.shape_cast %288 : vector<1x16x16xf32> to vector<16x16xf32>
    %cst_157 = arith.constant dense<0.000000e+00> : vector<2x16xf32>
    %290 = tpu.matmul %259, %289, %cst_157 {dimension_numbers = #tpu.dot_dimension_numbers<[1], [0], [0], [1], [0, 0, 1, 1], [], []>} : vector<2x16xf32>, vector<16x16xf32>, vector<2x16xf32> -> vector<2x16xf32>
    %291 = vector.extract_strided_slice %260 {offsets = [0, 3], sizes = [2, 1], strides = [1, 1]} : vector<2x9xf32> to vector<2x1xf32>
    %292 = vector.broadcast %291 : vector<2x1xf32> to vector<2x16xf32>
    %293 = arith.mulf %290, %292 : vector<2x16xf32>
    %294 = arith.addf %287, %293 : vector<2x16xf32>
    %c5_158 = arith.constant 5 : index
    %c0_159 = arith.constant 0 : index
    %c0_160 = arith.constant 0 : index
    %295 = vector.load %arg5[%c5_158, %c0_159, %c0_160] : memref<9x16x16xf32, #tpu.memory_space<vmem>>, vector<1x16x16xf32>
    %296 = vector.shape_cast %295 : vector<1x16x16xf32> to vector<16x16xf32>
    %cst_161 = arith.constant dense<0.000000e+00> : vector<2x16xf32>
    %297 = tpu.matmul %259, %296, %cst_161 {dimension_numbers = #tpu.dot_dimension_numbers<[1], [0], [0], [1], [0, 0, 1, 1], [], []>} : vector<2x16xf32>, vector<16x16xf32>, vector<2x16xf32> -> vector<2x16xf32>
    %298 = vector.extract_strided_slice %260 {offsets = [0, 5], sizes = [2, 1], strides = [1, 1]} : vector<2x9xf32> to vector<2x1xf32>
    %299 = vector.broadcast %298 : vector<2x1xf32> to vector<2x16xf32>
    %300 = arith.mulf %297, %299 : vector<2x16xf32>
    %301 = arith.addf %294, %300 : vector<2x16xf32>
    %c6_162 = arith.constant 6 : index
    %c0_163 = arith.constant 0 : index
    %c0_164 = arith.constant 0 : index
    %302 = vector.load %arg5[%c6_162, %c0_163, %c0_164] : memref<9x16x16xf32, #tpu.memory_space<vmem>>, vector<1x16x16xf32>
    %303 = vector.shape_cast %302 : vector<1x16x16xf32> to vector<16x16xf32>
    %cst_165 = arith.constant dense<0.000000e+00> : vector<2x16xf32>
    %304 = tpu.matmul %259, %303, %cst_165 {dimension_numbers = #tpu.dot_dimension_numbers<[1], [0], [0], [1], [0, 0, 1, 1], [], []>} : vector<2x16xf32>, vector<16x16xf32>, vector<2x16xf32> -> vector<2x16xf32>
    %305 = vector.extract_strided_slice %260 {offsets = [0, 6], sizes = [2, 1], strides = [1, 1]} : vector<2x9xf32> to vector<2x1xf32>
    %306 = vector.broadcast %305 : vector<2x1xf32> to vector<2x16xf32>
    %307 = arith.mulf %304, %306 : vector<2x16xf32>
    %308 = arith.addf %301, %307 : vector<2x16xf32>
    %c7_166 = arith.constant 7 : index
    %c0_167 = arith.constant 0 : index
    %c0_168 = arith.constant 0 : index
    %309 = vector.load %arg5[%c7_166, %c0_167, %c0_168] : memref<9x16x16xf32, #tpu.memory_space<vmem>>, vector<1x16x16xf32>
    %310 = vector.shape_cast %309 : vector<1x16x16xf32> to vector<16x16xf32>
    %cst_169 = arith.constant dense<0.000000e+00> : vector<2x16xf32>
    %311 = tpu.matmul %259, %310, %cst_169 {dimension_numbers = #tpu.dot_dimension_numbers<[1], [0], [0], [1], [0, 0, 1, 1], [], []>} : vector<2x16xf32>, vector<16x16xf32>, vector<2x16xf32> -> vector<2x16xf32>
    %312 = vector.extract_strided_slice %260 {offsets = [0, 7], sizes = [2, 1], strides = [1, 1]} : vector<2x9xf32> to vector<2x1xf32>
    %313 = vector.broadcast %312 : vector<2x1xf32> to vector<2x16xf32>
    %314 = arith.mulf %311, %313 : vector<2x16xf32>
    %315 = arith.addf %308, %314 : vector<2x16xf32>
    %c8_170 = arith.constant 8 : index
    %c0_171 = arith.constant 0 : index
    %c0_172 = arith.constant 0 : index
    %316 = vector.load %arg5[%c8_170, %c0_171, %c0_172] : memref<9x16x16xf32, #tpu.memory_space<vmem>>, vector<1x16x16xf32>
    %317 = vector.shape_cast %316 : vector<1x16x16xf32> to vector<16x16xf32>
    %cst_173 = arith.constant dense<0.000000e+00> : vector<2x16xf32>
    %318 = tpu.matmul %259, %317, %cst_173 {dimension_numbers = #tpu.dot_dimension_numbers<[1], [0], [0], [1], [0, 0, 1, 1], [], []>} : vector<2x16xf32>, vector<16x16xf32>, vector<2x16xf32> -> vector<2x16xf32>
    %319 = vector.extract_strided_slice %260 {offsets = [0, 8], sizes = [2, 1], strides = [1, 1]} : vector<2x9xf32> to vector<2x1xf32>
    %320 = vector.broadcast %319 : vector<2x1xf32> to vector<2x16xf32>
    %321 = arith.mulf %318, %320 : vector<2x16xf32>
    %322 = arith.addf %315, %321 : vector<2x16xf32>
    %cst_174 = arith.constant 0.000000e+00 : f32
    %323 = vector.broadcast %cst_174 : f32 to vector<2x16xf32>
    %324 = arith.maximumf %322, %323 : vector<2x16xf32>
    %325 = vector.extract_strided_slice %324 {offsets = [0, 0], sizes = [1, 16], strides = [1, 1]} : vector<2x16xf32> to vector<1x16xf32>
    %cst_175 = arith.constant 0.000000e+00 : f32
    %326 = vector.broadcast %cst_175 : f32 to vector<3x16xf32>
    %327 = tpu.iota {dimensions = array<i32: 0>} : vector<3x2xi32>
    %328 = tpu.iota {dimensions = array<i32: 1>} : vector<3x2xi32>
    %c0_i32_176 = arith.constant 0 : i32
    %329 = vector.broadcast %c0_i32_176 : i32 to vector<3x2xi32>
    %330 = arith.addi %328, %329 : vector<3x2xi32>
    %331 = arith.cmpi eq, %327, %330 : vector<3x2xi32>
    %332 = arith.extui %331 : vector<3x2xi1> to vector<3x2xi32>
    %333 = arith.sitofp %332 : vector<3x2xi32> to vector<3x2xf32>
    %cst_177 = arith.constant dense<0.000000e+00> : vector<3x16xf32>
    %334 = tpu.matmul %333, %259, %cst_177 {dimension_numbers = #tpu.dot_dimension_numbers<[1], [0], [0], [1], [0, 0, 1, 1], [], []>} : vector<3x2xf32>, vector<2x16xf32>, vector<3x16xf32> -> vector<3x16xf32>
    %335 = arith.addf %326, %334 : vector<3x16xf32>
    %336 = tpu.iota {dimensions = array<i32: 0>} : vector<3x1xi32>
    %337 = tpu.iota {dimensions = array<i32: 1>} : vector<3x1xi32>
    %c2_i32 = arith.constant 2 : i32
    %338 = vector.broadcast %c2_i32 : i32 to vector<3x1xi32>
    %339 = arith.addi %337, %338 : vector<3x1xi32>
    %340 = arith.cmpi eq, %336, %339 : vector<3x1xi32>
    %341 = arith.extui %340 : vector<3x1xi1> to vector<3x1xi32>
    %342 = arith.sitofp %341 : vector<3x1xi32> to vector<3x1xf32>
    %343 = vector.broadcast %342 : vector<3x1xf32> to vector<3x16xf32>
    %344 = vector.broadcast %325 : vector<1x16xf32> to vector<3x16xf32>
    %345 = arith.mulf %343, %344 : vector<3x16xf32>
    %346 = arith.addf %335, %345 : vector<3x16xf32>
    %c0_178 = arith.constant 0 : index
    %c0_179 = arith.constant 0 : index
    %347 = vector.load %arg26[%c0_178, %c0_179] : memref<3x3xf32, #tpu.memory_space<vmem>>, vector<3x3xf32>
    %cst_180 = arith.constant dense<0.000000e+00> : vector<3x16xf32>
    %348 = tpu.matmul %347, %346, %cst_180 {dimension_numbers = #tpu.dot_dimension_numbers<[1], [0], [0], [1], [0, 0, 1, 1], [], []>} : vector<3x3xf32>, vector<3x16xf32>, vector<3x16xf32> -> vector<3x16xf32>
    %c0_181 = arith.constant 0 : index
    %c0_182 = arith.constant 0 : index
    %349 = vector.load %arg27[%c0_181, %c0_182] : memref<3x1xf32, #tpu.memory_space<vmem>>, vector<3x1xf32>
    %350 = vector.broadcast %349 : vector<3x1xf32> to vector<3x16xf32>
    %351 = arith.addf %348, %350 : vector<3x16xf32>
    %c0_183 = arith.constant 0 : index
    %c0_184 = arith.constant 0 : index
    %352 = vector.load %arg28[%c0_183, %c0_184] : memref<3x9xf32, #tpu.memory_space<vmem>>, vector<3x9xf32>
    %353 = vector.extract_strided_slice %352 {offsets = [0, 4], sizes = [3, 1], strides = [1, 1]} : vector<3x9xf32> to vector<3x1xf32>
    %354 = vector.broadcast %353 : vector<3x1xf32> to vector<3x16xf32>
    %355 = arith.mulf %351, %354 : vector<3x16xf32>
    %c0_185 = arith.constant 0 : index
    %c0_186 = arith.constant 0 : index
    %356 = vector.load %arg29[%c0_185, %c0_186] : memref<3x1xf32, #tpu.memory_space<vmem>>, vector<3x1xf32>
    %357 = vector.broadcast %356 : vector<3x1xf32> to vector<3x16xf32>
    %358 = arith.addf %355, %357 : vector<3x16xf32>
    %c0_187 = arith.constant 0 : index
    %c0_188 = arith.constant 0 : index
    %c0_189 = arith.constant 0 : index
    %359 = vector.load %arg5[%c0_187, %c0_188, %c0_189] : memref<9x16x16xf32, #tpu.memory_space<vmem>>, vector<1x16x16xf32>
    %360 = vector.shape_cast %359 : vector<1x16x16xf32> to vector<16x16xf32>
    %cst_190 = arith.constant dense<0.000000e+00> : vector<3x16xf32>
    %361 = tpu.matmul %351, %360, %cst_190 {dimension_numbers = #tpu.dot_dimension_numbers<[1], [0], [0], [1], [0, 0, 1, 1], [], []>} : vector<3x16xf32>, vector<16x16xf32>, vector<3x16xf32> -> vector<3x16xf32>
    %362 = vector.extract_strided_slice %352 {offsets = [0, 0], sizes = [3, 1], strides = [1, 1]} : vector<3x9xf32> to vector<3x1xf32>
    %363 = vector.broadcast %362 : vector<3x1xf32> to vector<3x16xf32>
    %364 = arith.mulf %361, %363 : vector<3x16xf32>
    %365 = arith.addf %358, %364 : vector<3x16xf32>
    %c1_191 = arith.constant 1 : index
    %c0_192 = arith.constant 0 : index
    %c0_193 = arith.constant 0 : index
    %366 = vector.load %arg5[%c1_191, %c0_192, %c0_193] : memref<9x16x16xf32, #tpu.memory_space<vmem>>, vector<1x16x16xf32>
    %367 = vector.shape_cast %366 : vector<1x16x16xf32> to vector<16x16xf32>
    %cst_194 = arith.constant dense<0.000000e+00> : vector<3x16xf32>
    %368 = tpu.matmul %351, %367, %cst_194 {dimension_numbers = #tpu.dot_dimension_numbers<[1], [0], [0], [1], [0, 0, 1, 1], [], []>} : vector<3x16xf32>, vector<16x16xf32>, vector<3x16xf32> -> vector<3x16xf32>
    %369 = vector.extract_strided_slice %352 {offsets = [0, 1], sizes = [3, 1], strides = [1, 1]} : vector<3x9xf32> to vector<3x1xf32>
    %370 = vector.broadcast %369 : vector<3x1xf32> to vector<3x16xf32>
    %371 = arith.mulf %368, %370 : vector<3x16xf32>
    %372 = arith.addf %365, %371 : vector<3x16xf32>
    %c2_195 = arith.constant 2 : index
    %c0_196 = arith.constant 0 : index
    %c0_197 = arith.constant 0 : index
    %373 = vector.load %arg5[%c2_195, %c0_196, %c0_197] : memref<9x16x16xf32, #tpu.memory_space<vmem>>, vector<1x16x16xf32>
    %374 = vector.shape_cast %373 : vector<1x16x16xf32> to vector<16x16xf32>
    %cst_198 = arith.constant dense<0.000000e+00> : vector<3x16xf32>
    %375 = tpu.matmul %351, %374, %cst_198 {dimension_numbers = #tpu.dot_dimension_numbers<[1], [0], [0], [1], [0, 0, 1, 1], [], []>} : vector<3x16xf32>, vector<16x16xf32>, vector<3x16xf32> -> vector<3x16xf32>
    %376 = vector.extract_strided_slice %352 {offsets = [0, 2], sizes = [3, 1], strides = [1, 1]} : vector<3x9xf32> to vector<3x1xf32>
    %377 = vector.broadcast %376 : vector<3x1xf32> to vector<3x16xf32>
    %378 = arith.mulf %375, %377 : vector<3x16xf32>
    %379 = arith.addf %372, %378 : vector<3x16xf32>
    %c3_199 = arith.constant 3 : index
    %c0_200 = arith.constant 0 : index
    %c0_201 = arith.constant 0 : index
    %380 = vector.load %arg5[%c3_199, %c0_200, %c0_201] : memref<9x16x16xf32, #tpu.memory_space<vmem>>, vector<1x16x16xf32>
    %381 = vector.shape_cast %380 : vector<1x16x16xf32> to vector<16x16xf32>
    %cst_202 = arith.constant dense<0.000000e+00> : vector<3x16xf32>
    %382 = tpu.matmul %351, %381, %cst_202 {dimension_numbers = #tpu.dot_dimension_numbers<[1], [0], [0], [1], [0, 0, 1, 1], [], []>} : vector<3x16xf32>, vector<16x16xf32>, vector<3x16xf32> -> vector<3x16xf32>
    %383 = vector.extract_strided_slice %352 {offsets = [0, 3], sizes = [3, 1], strides = [1, 1]} : vector<3x9xf32> to vector<3x1xf32>
    %384 = vector.broadcast %383 : vector<3x1xf32> to vector<3x16xf32>
    %385 = arith.mulf %382, %384 : vector<3x16xf32>
    %386 = arith.addf %379, %385 : vector<3x16xf32>
    %c5_203 = arith.constant 5 : index
    %c0_204 = arith.constant 0 : index
    %c0_205 = arith.constant 0 : index
    %387 = vector.load %arg5[%c5_203, %c0_204, %c0_205] : memref<9x16x16xf32, #tpu.memory_space<vmem>>, vector<1x16x16xf32>
    %388 = vector.shape_cast %387 : vector<1x16x16xf32> to vector<16x16xf32>
    %cst_206 = arith.constant dense<0.000000e+00> : vector<3x16xf32>
    %389 = tpu.matmul %351, %388, %cst_206 {dimension_numbers = #tpu.dot_dimension_numbers<[1], [0], [0], [1], [0, 0, 1, 1], [], []>} : vector<3x16xf32>, vector<16x16xf32>, vector<3x16xf32> -> vector<3x16xf32>
    %390 = vector.extract_strided_slice %352 {offsets = [0, 5], sizes = [3, 1], strides = [1, 1]} : vector<3x9xf32> to vector<3x1xf32>
    %391 = vector.broadcast %390 : vector<3x1xf32> to vector<3x16xf32>
    %392 = arith.mulf %389, %391 : vector<3x16xf32>
    %393 = arith.addf %386, %392 : vector<3x16xf32>
    %c6_207 = arith.constant 6 : index
    %c0_208 = arith.constant 0 : index
    %c0_209 = arith.constant 0 : index
    %394 = vector.load %arg5[%c6_207, %c0_208, %c0_209] : memref<9x16x16xf32, #tpu.memory_space<vmem>>, vector<1x16x16xf32>
    %395 = vector.shape_cast %394 : vector<1x16x16xf32> to vector<16x16xf32>
    %cst_210 = arith.constant dense<0.000000e+00> : vector<3x16xf32>
    %396 = tpu.matmul %351, %395, %cst_210 {dimension_numbers = #tpu.dot_dimension_numbers<[1], [0], [0], [1], [0, 0, 1, 1], [], []>} : vector<3x16xf32>, vector<16x16xf32>, vector<3x16xf32> -> vector<3x16xf32>
    %397 = vector.extract_strided_slice %352 {offsets = [0, 6], sizes = [3, 1], strides = [1, 1]} : vector<3x9xf32> to vector<3x1xf32>
    %398 = vector.broadcast %397 : vector<3x1xf32> to vector<3x16xf32>
    %399 = arith.mulf %396, %398 : vector<3x16xf32>
    %400 = arith.addf %393, %399 : vector<3x16xf32>
    %c7_211 = arith.constant 7 : index
    %c0_212 = arith.constant 0 : index
    %c0_213 = arith.constant 0 : index
    %401 = vector.load %arg5[%c7_211, %c0_212, %c0_213] : memref<9x16x16xf32, #tpu.memory_space<vmem>>, vector<1x16x16xf32>
    %402 = vector.shape_cast %401 : vector<1x16x16xf32> to vector<16x16xf32>
    %cst_214 = arith.constant dense<0.000000e+00> : vector<3x16xf32>
    %403 = tpu.matmul %351, %402, %cst_214 {dimension_numbers = #tpu.dot_dimension_numbers<[1], [0], [0], [1], [0, 0, 1, 1], [], []>} : vector<3x16xf32>, vector<16x16xf32>, vector<3x16xf32> -> vector<3x16xf32>
    %404 = vector.extract_strided_slice %352 {offsets = [0, 7], sizes = [3, 1], strides = [1, 1]} : vector<3x9xf32> to vector<3x1xf32>
    %405 = vector.broadcast %404 : vector<3x1xf32> to vector<3x16xf32>
    %406 = arith.mulf %403, %405 : vector<3x16xf32>
    %407 = arith.addf %400, %406 : vector<3x16xf32>
    %c8_215 = arith.constant 8 : index
    %c0_216 = arith.constant 0 : index
    %c0_217 = arith.constant 0 : index
    %408 = vector.load %arg5[%c8_215, %c0_216, %c0_217] : memref<9x16x16xf32, #tpu.memory_space<vmem>>, vector<1x16x16xf32>
    %409 = vector.shape_cast %408 : vector<1x16x16xf32> to vector<16x16xf32>
    %cst_218 = arith.constant dense<0.000000e+00> : vector<3x16xf32>
    %410 = tpu.matmul %351, %409, %cst_218 {dimension_numbers = #tpu.dot_dimension_numbers<[1], [0], [0], [1], [0, 0, 1, 1], [], []>} : vector<3x16xf32>, vector<16x16xf32>, vector<3x16xf32> -> vector<3x16xf32>
    %411 = vector.extract_strided_slice %352 {offsets = [0, 8], sizes = [3, 1], strides = [1, 1]} : vector<3x9xf32> to vector<3x1xf32>
    %412 = vector.broadcast %411 : vector<3x1xf32> to vector<3x16xf32>
    %413 = arith.mulf %410, %412 : vector<3x16xf32>
    %414 = arith.addf %407, %413 : vector<3x16xf32>
    %cst_219 = arith.constant 0.000000e+00 : f32
    %415 = vector.broadcast %cst_219 : f32 to vector<6x16xf32>
    %416 = tpu.iota {dimensions = array<i32: 0>} : vector<6x3xi32>
    %417 = tpu.iota {dimensions = array<i32: 1>} : vector<6x3xi32>
    %c0_i32_220 = arith.constant 0 : i32
    %418 = vector.broadcast %c0_i32_220 : i32 to vector<6x3xi32>
    %419 = arith.addi %417, %418 : vector<6x3xi32>
    %420 = arith.cmpi eq, %416, %419 : vector<6x3xi32>
    %421 = arith.extui %420 : vector<6x3xi1> to vector<6x3xi32>
    %422 = arith.sitofp %421 : vector<6x3xi32> to vector<6x3xf32>
    %cst_221 = arith.constant dense<0.000000e+00> : vector<6x16xf32>
    %423 = tpu.matmul %422, %351, %cst_221 {dimension_numbers = #tpu.dot_dimension_numbers<[1], [0], [0], [1], [0, 0, 1, 1], [], []>} : vector<6x3xf32>, vector<3x16xf32>, vector<6x16xf32> -> vector<6x16xf32>
    %424 = arith.addf %415, %423 : vector<6x16xf32>
    %425 = tpu.iota {dimensions = array<i32: 0>} : vector<6x3xi32>
    %426 = tpu.iota {dimensions = array<i32: 1>} : vector<6x3xi32>
    %c3_i32_222 = arith.constant 3 : i32
    %427 = vector.broadcast %c3_i32_222 : i32 to vector<6x3xi32>
    %428 = arith.addi %426, %427 : vector<6x3xi32>
    %429 = arith.cmpi eq, %425, %428 : vector<6x3xi32>
    %430 = arith.extui %429 : vector<6x3xi1> to vector<6x3xi32>
    %431 = arith.sitofp %430 : vector<6x3xi32> to vector<6x3xf32>
    %cst_223 = arith.constant dense<0.000000e+00> : vector<6x16xf32>
    %432 = tpu.matmul %431, %414, %cst_223 {dimension_numbers = #tpu.dot_dimension_numbers<[1], [0], [0], [1], [0, 0, 1, 1], [], []>} : vector<6x3xf32>, vector<3x16xf32>, vector<6x16xf32> -> vector<6x16xf32>
    %433 = arith.addf %424, %432 : vector<6x16xf32>
    %c0_224 = arith.constant 0 : index
    %c0_225 = arith.constant 0 : index
    %434 = vector.load %arg30[%c0_224, %c0_225] : memref<12x9xf32, #tpu.memory_space<vmem>>, vector<12x9xf32>
    %435 = vector.extract_strided_slice %434 {offsets = [0, 4], sizes = [12, 1], strides = [1, 1]} : vector<12x9xf32> to vector<12x1xf32>
    %436 = vector.broadcast %435 : vector<12x1xf32> to vector<12x16xf32>
    %437 = arith.mulf %252, %436 : vector<12x16xf32>
    %c0_226 = arith.constant 0 : index
    %c0_227 = arith.constant 0 : index
    %438 = vector.load %arg31[%c0_226, %c0_227] : memref<12x1xf32, #tpu.memory_space<vmem>>, vector<12x1xf32>
    %439 = vector.broadcast %438 : vector<12x1xf32> to vector<12x16xf32>
    %440 = arith.addf %437, %439 : vector<12x16xf32>
    %c0_228 = arith.constant 0 : index
    %c0_229 = arith.constant 0 : index
    %c0_230 = arith.constant 0 : index
    %441 = vector.load %arg5[%c0_228, %c0_229, %c0_230] : memref<9x16x16xf32, #tpu.memory_space<vmem>>, vector<1x16x16xf32>
    %442 = vector.shape_cast %441 : vector<1x16x16xf32> to vector<16x16xf32>
    %cst_231 = arith.constant dense<0.000000e+00> : vector<12x16xf32>
    %443 = tpu.matmul %252, %442, %cst_231 {dimension_numbers = #tpu.dot_dimension_numbers<[1], [0], [0], [1], [0, 0, 1, 1], [], []>} : vector<12x16xf32>, vector<16x16xf32>, vector<12x16xf32> -> vector<12x16xf32>
    %444 = vector.extract_strided_slice %434 {offsets = [0, 0], sizes = [12, 1], strides = [1, 1]} : vector<12x9xf32> to vector<12x1xf32>
    %445 = vector.broadcast %444 : vector<12x1xf32> to vector<12x16xf32>
    %446 = arith.mulf %443, %445 : vector<12x16xf32>
    %447 = arith.addf %440, %446 : vector<12x16xf32>
    %c1_232 = arith.constant 1 : index
    %c0_233 = arith.constant 0 : index
    %c0_234 = arith.constant 0 : index
    %448 = vector.load %arg5[%c1_232, %c0_233, %c0_234] : memref<9x16x16xf32, #tpu.memory_space<vmem>>, vector<1x16x16xf32>
    %449 = vector.shape_cast %448 : vector<1x16x16xf32> to vector<16x16xf32>
    %cst_235 = arith.constant dense<0.000000e+00> : vector<12x16xf32>
    %450 = tpu.matmul %252, %449, %cst_235 {dimension_numbers = #tpu.dot_dimension_numbers<[1], [0], [0], [1], [0, 0, 1, 1], [], []>} : vector<12x16xf32>, vector<16x16xf32>, vector<12x16xf32> -> vector<12x16xf32>
    %451 = vector.extract_strided_slice %434 {offsets = [0, 1], sizes = [12, 1], strides = [1, 1]} : vector<12x9xf32> to vector<12x1xf32>
    %452 = vector.broadcast %451 : vector<12x1xf32> to vector<12x16xf32>
    %453 = arith.mulf %450, %452 : vector<12x16xf32>
    %454 = arith.addf %447, %453 : vector<12x16xf32>
    %c2_236 = arith.constant 2 : index
    %c0_237 = arith.constant 0 : index
    %c0_238 = arith.constant 0 : index
    %455 = vector.load %arg5[%c2_236, %c0_237, %c0_238] : memref<9x16x16xf32, #tpu.memory_space<vmem>>, vector<1x16x16xf32>
    %456 = vector.shape_cast %455 : vector<1x16x16xf32> to vector<16x16xf32>
    %cst_239 = arith.constant dense<0.000000e+00> : vector<12x16xf32>
    %457 = tpu.matmul %252, %456, %cst_239 {dimension_numbers = #tpu.dot_dimension_numbers<[1], [0], [0], [1], [0, 0, 1, 1], [], []>} : vector<12x16xf32>, vector<16x16xf32>, vector<12x16xf32> -> vector<12x16xf32>
    %458 = vector.extract_strided_slice %434 {offsets = [0, 2], sizes = [12, 1], strides = [1, 1]} : vector<12x9xf32> to vector<12x1xf32>
    %459 = vector.broadcast %458 : vector<12x1xf32> to vector<12x16xf32>
    %460 = arith.mulf %457, %459 : vector<12x16xf32>
    %461 = arith.addf %454, %460 : vector<12x16xf32>
    %c3_240 = arith.constant 3 : index
    %c0_241 = arith.constant 0 : index
    %c0_242 = arith.constant 0 : index
    %462 = vector.load %arg5[%c3_240, %c0_241, %c0_242] : memref<9x16x16xf32, #tpu.memory_space<vmem>>, vector<1x16x16xf32>
    %463 = vector.shape_cast %462 : vector<1x16x16xf32> to vector<16x16xf32>
    %cst_243 = arith.constant dense<0.000000e+00> : vector<12x16xf32>
    %464 = tpu.matmul %252, %463, %cst_243 {dimension_numbers = #tpu.dot_dimension_numbers<[1], [0], [0], [1], [0, 0, 1, 1], [], []>} : vector<12x16xf32>, vector<16x16xf32>, vector<12x16xf32> -> vector<12x16xf32>
    %465 = vector.extract_strided_slice %434 {offsets = [0, 3], sizes = [12, 1], strides = [1, 1]} : vector<12x9xf32> to vector<12x1xf32>
    %466 = vector.broadcast %465 : vector<12x1xf32> to vector<12x16xf32>
    %467 = arith.mulf %464, %466 : vector<12x16xf32>
    %468 = arith.addf %461, %467 : vector<12x16xf32>
    %c5_244 = arith.constant 5 : index
    %c0_245 = arith.constant 0 : index
    %c0_246 = arith.constant 0 : index
    %469 = vector.load %arg5[%c5_244, %c0_245, %c0_246] : memref<9x16x16xf32, #tpu.memory_space<vmem>>, vector<1x16x16xf32>
    %470 = vector.shape_cast %469 : vector<1x16x16xf32> to vector<16x16xf32>
    %cst_247 = arith.constant dense<0.000000e+00> : vector<12x16xf32>
    %471 = tpu.matmul %252, %470, %cst_247 {dimension_numbers = #tpu.dot_dimension_numbers<[1], [0], [0], [1], [0, 0, 1, 1], [], []>} : vector<12x16xf32>, vector<16x16xf32>, vector<12x16xf32> -> vector<12x16xf32>
    %472 = vector.extract_strided_slice %434 {offsets = [0, 5], sizes = [12, 1], strides = [1, 1]} : vector<12x9xf32> to vector<12x1xf32>
    %473 = vector.broadcast %472 : vector<12x1xf32> to vector<12x16xf32>
    %474 = arith.mulf %471, %473 : vector<12x16xf32>
    %475 = arith.addf %468, %474 : vector<12x16xf32>
    %c6_248 = arith.constant 6 : index
    %c0_249 = arith.constant 0 : index
    %c0_250 = arith.constant 0 : index
    %476 = vector.load %arg5[%c6_248, %c0_249, %c0_250] : memref<9x16x16xf32, #tpu.memory_space<vmem>>, vector<1x16x16xf32>
    %477 = vector.shape_cast %476 : vector<1x16x16xf32> to vector<16x16xf32>
    %cst_251 = arith.constant dense<0.000000e+00> : vector<12x16xf32>
    %478 = tpu.matmul %252, %477, %cst_251 {dimension_numbers = #tpu.dot_dimension_numbers<[1], [0], [0], [1], [0, 0, 1, 1], [], []>} : vector<12x16xf32>, vector<16x16xf32>, vector<12x16xf32> -> vector<12x16xf32>
    %479 = vector.extract_strided_slice %434 {offsets = [0, 6], sizes = [12, 1], strides = [1, 1]} : vector<12x9xf32> to vector<12x1xf32>
    %480 = vector.broadcast %479 : vector<12x1xf32> to vector<12x16xf32>
    %481 = arith.mulf %478, %480 : vector<12x16xf32>
    %482 = arith.addf %475, %481 : vector<12x16xf32>
    %c7_252 = arith.constant 7 : index
    %c0_253 = arith.constant 0 : index
    %c0_254 = arith.constant 0 : index
    %483 = vector.load %arg5[%c7_252, %c0_253, %c0_254] : memref<9x16x16xf32, #tpu.memory_space<vmem>>, vector<1x16x16xf32>
    %484 = vector.shape_cast %483 : vector<1x16x16xf32> to vector<16x16xf32>
    %cst_255 = arith.constant dense<0.000000e+00> : vector<12x16xf32>
    %485 = tpu.matmul %252, %484, %cst_255 {dimension_numbers = #tpu.dot_dimension_numbers<[1], [0], [0], [1], [0, 0, 1, 1], [], []>} : vector<12x16xf32>, vector<16x16xf32>, vector<12x16xf32> -> vector<12x16xf32>
    %486 = vector.extract_strided_slice %434 {offsets = [0, 7], sizes = [12, 1], strides = [1, 1]} : vector<12x9xf32> to vector<12x1xf32>
    %487 = vector.broadcast %486 : vector<12x1xf32> to vector<12x16xf32>
    %488 = arith.mulf %485, %487 : vector<12x16xf32>
    %489 = arith.addf %482, %488 : vector<12x16xf32>
    %c8_256 = arith.constant 8 : index
    %c0_257 = arith.constant 0 : index
    %c0_258 = arith.constant 0 : index
    %490 = vector.load %arg5[%c8_256, %c0_257, %c0_258] : memref<9x16x16xf32, #tpu.memory_space<vmem>>, vector<1x16x16xf32>
    %491 = vector.shape_cast %490 : vector<1x16x16xf32> to vector<16x16xf32>
    %cst_259 = arith.constant dense<0.000000e+00> : vector<12x16xf32>
    %492 = tpu.matmul %252, %491, %cst_259 {dimension_numbers = #tpu.dot_dimension_numbers<[1], [0], [0], [1], [0, 0, 1, 1], [], []>} : vector<12x16xf32>, vector<16x16xf32>, vector<12x16xf32> -> vector<12x16xf32>
    %493 = vector.extract_strided_slice %434 {offsets = [0, 8], sizes = [12, 1], strides = [1, 1]} : vector<12x9xf32> to vector<12x1xf32>
    %494 = vector.broadcast %493 : vector<12x1xf32> to vector<12x16xf32>
    %495 = arith.mulf %492, %494 : vector<12x16xf32>
    %496 = arith.addf %489, %495 : vector<12x16xf32>
    %c0_260 = arith.constant 0 : index
    %c0_261 = arith.constant 0 : index
    %497 = vector.load %arg32[%c0_260, %c0_261] : memref<6x12xf32, #tpu.memory_space<vmem>>, vector<6x12xf32>
    %cst_262 = arith.constant dense<0.000000e+00> : vector<6x16xf32>
    %498 = tpu.matmul %497, %496, %cst_262 {dimension_numbers = #tpu.dot_dimension_numbers<[1], [0], [0], [1], [0, 0, 1, 1], [], []>} : vector<6x12xf32>, vector<12x16xf32>, vector<6x16xf32> -> vector<6x16xf32>
    %c0_263 = arith.constant 0 : index
    %c0_264 = arith.constant 0 : index
    %499 = vector.load %arg33[%c0_263, %c0_264] : memref<6x1xf32, #tpu.memory_space<vmem>>, vector<6x1xf32>
    %500 = vector.broadcast %499 : vector<6x1xf32> to vector<6x16xf32>
    %501 = arith.addf %498, %500 : vector<6x16xf32>
    %502 = arith.addf %433, %501 : vector<6x16xf32>
    %503 = arith.addf %250, %502 : vector<6x16xf32>
    %c0_265 = arith.constant 0 : index
    %c0_266 = arith.constant 0 : index
    %504 = vector.load %arg8[%c0_265, %c0_266] : memref<16x64xf32, #tpu.memory_space<vmem>>, vector<16x64xf32>
    %cst_267 = arith.constant dense<0.000000e+00> : vector<6x64xf32>
    %505 = tpu.matmul %503, %504, %cst_267 {dimension_numbers = #tpu.dot_dimension_numbers<[1], [0], [0], [1], [0, 0, 1, 1], [], []>} : vector<6x16xf32>, vector<16x64xf32>, vector<6x64xf32> -> vector<6x64xf32>
    %c0_268 = arith.constant 0 : index
    %c0_269 = arith.constant 0 : index
    %c0_270 = arith.constant 0 : index
    %506 = vector.load %arg3[%c0_268, %c0_269, %c0_270] : memref<1x4x64xf32, #tpu.memory_space<vmem>>, vector<1x4x64xf32>
    %507 = vector.shape_cast %506 : vector<1x4x64xf32> to vector<4x64xf32>
    %c0_271 = arith.constant 0 : index
    %c0_272 = arith.constant 0 : index
    %508 = vector.load %arg34[%c0_271, %c0_272] : memref<1x4xf32, #tpu.memory_space<vmem>>, vector<1x4xf32>
    %cst_273 = arith.constant dense<0.000000e+00> : vector<1x64xf32>
    %509 = tpu.matmul %508, %507, %cst_273 {dimension_numbers = #tpu.dot_dimension_numbers<[1], [0], [0], [1], [0, 0, 1, 1], [], []>} : vector<1x4xf32>, vector<4x64xf32>, vector<1x64xf32> -> vector<1x64xf32>
    %c0_274 = arith.constant 0 : index
    %c0_275 = arith.constant 0 : index
    %510 = vector.load %arg35[%c0_274, %c0_275] : memref<1x1xf32, #tpu.memory_space<vmem>>, vector<1x1xf32>
    %511 = vector.broadcast %510 : vector<1x1xf32> to vector<1x64xf32>
    %512 = arith.addf %509, %511 : vector<1x64xf32>
    %cst_276 = arith.constant 0.000000e+00 : f32
    %513 = vector.broadcast %cst_276 : f32 to vector<1x64xf32>
    %514 = arith.maximumf %512, %513 : vector<1x64xf32>
    %c0_277 = arith.constant 0 : index
    %c0_278 = arith.constant 0 : index
    %515 = vector.load %arg38[%c0_277, %c0_278] : memref<3x1xf32, #tpu.memory_space<vmem>>, vector<3x1xf32>
    %516 = vector.broadcast %515 : vector<3x1xf32> to vector<3x64xf32>
    %517 = vector.broadcast %514 : vector<1x64xf32> to vector<3x64xf32>
    %518 = arith.mulf %516, %517 : vector<3x64xf32>
    %c0_279 = arith.constant 0 : index
    %c0_280 = arith.constant 0 : index
    %519 = vector.load %arg39[%c0_279, %c0_280] : memref<3x1xf32, #tpu.memory_space<vmem>>, vector<3x1xf32>
    %520 = vector.broadcast %519 : vector<3x1xf32> to vector<3x64xf32>
    %521 = arith.addf %518, %520 : vector<3x64xf32>
    %c0_281 = arith.constant 0 : index
    %c0_282 = arith.constant 0 : index
    %522 = vector.load %arg40[%c0_281, %c0_282] : memref<3x9xf32, #tpu.memory_space<vmem>>, vector<3x9xf32>
    %523 = vector.extract_strided_slice %522 {offsets = [0, 4], sizes = [3, 1], strides = [1, 1]} : vector<3x9xf32> to vector<3x1xf32>
    %524 = vector.broadcast %523 : vector<3x1xf32> to vector<3x64xf32>
    %525 = arith.mulf %521, %524 : vector<3x64xf32>
    %c0_283 = arith.constant 0 : index
    %c0_284 = arith.constant 0 : index
    %526 = vector.load %arg41[%c0_283, %c0_284] : memref<3x1xf32, #tpu.memory_space<vmem>>, vector<3x1xf32>
    %527 = vector.broadcast %526 : vector<3x1xf32> to vector<3x64xf32>
    %528 = arith.addf %525, %527 : vector<3x64xf32>
    %c0_285 = arith.constant 0 : index
    %c0_286 = arith.constant 0 : index
    %c0_287 = arith.constant 0 : index
    %529 = vector.load %arg6[%c0_285, %c0_286, %c0_287] : memref<9x64x64xf32, #tpu.memory_space<vmem>>, vector<1x64x64xf32>
    %530 = vector.shape_cast %529 : vector<1x64x64xf32> to vector<64x64xf32>
    %cst_288 = arith.constant dense<0.000000e+00> : vector<3x64xf32>
    %531 = tpu.matmul %521, %530, %cst_288 {dimension_numbers = #tpu.dot_dimension_numbers<[1], [0], [0], [1], [0, 0, 1, 1], [], []>} : vector<3x64xf32>, vector<64x64xf32>, vector<3x64xf32> -> vector<3x64xf32>
    %532 = vector.extract_strided_slice %522 {offsets = [0, 0], sizes = [3, 1], strides = [1, 1]} : vector<3x9xf32> to vector<3x1xf32>
    %533 = vector.broadcast %532 : vector<3x1xf32> to vector<3x64xf32>
    %534 = arith.mulf %531, %533 : vector<3x64xf32>
    %535 = arith.addf %528, %534 : vector<3x64xf32>
    %c1_289 = arith.constant 1 : index
    %c0_290 = arith.constant 0 : index
    %c0_291 = arith.constant 0 : index
    %536 = vector.load %arg6[%c1_289, %c0_290, %c0_291] : memref<9x64x64xf32, #tpu.memory_space<vmem>>, vector<1x64x64xf32>
    %537 = vector.shape_cast %536 : vector<1x64x64xf32> to vector<64x64xf32>
    %cst_292 = arith.constant dense<0.000000e+00> : vector<3x64xf32>
    %538 = tpu.matmul %521, %537, %cst_292 {dimension_numbers = #tpu.dot_dimension_numbers<[1], [0], [0], [1], [0, 0, 1, 1], [], []>} : vector<3x64xf32>, vector<64x64xf32>, vector<3x64xf32> -> vector<3x64xf32>
    %539 = vector.extract_strided_slice %522 {offsets = [0, 1], sizes = [3, 1], strides = [1, 1]} : vector<3x9xf32> to vector<3x1xf32>
    %540 = vector.broadcast %539 : vector<3x1xf32> to vector<3x64xf32>
    %541 = arith.mulf %538, %540 : vector<3x64xf32>
    %542 = arith.addf %535, %541 : vector<3x64xf32>
    %c2_293 = arith.constant 2 : index
    %c0_294 = arith.constant 0 : index
    %c0_295 = arith.constant 0 : index
    %543 = vector.load %arg6[%c2_293, %c0_294, %c0_295] : memref<9x64x64xf32, #tpu.memory_space<vmem>>, vector<1x64x64xf32>
    %544 = vector.shape_cast %543 : vector<1x64x64xf32> to vector<64x64xf32>
    %cst_296 = arith.constant dense<0.000000e+00> : vector<3x64xf32>
    %545 = tpu.matmul %521, %544, %cst_296 {dimension_numbers = #tpu.dot_dimension_numbers<[1], [0], [0], [1], [0, 0, 1, 1], [], []>} : vector<3x64xf32>, vector<64x64xf32>, vector<3x64xf32> -> vector<3x64xf32>
    %546 = vector.extract_strided_slice %522 {offsets = [0, 2], sizes = [3, 1], strides = [1, 1]} : vector<3x9xf32> to vector<3x1xf32>
    %547 = vector.broadcast %546 : vector<3x1xf32> to vector<3x64xf32>
    %548 = arith.mulf %545, %547 : vector<3x64xf32>
    %549 = arith.addf %542, %548 : vector<3x64xf32>
    %c3_297 = arith.constant 3 : index
    %c0_298 = arith.constant 0 : index
    %c0_299 = arith.constant 0 : index
    %550 = vector.load %arg6[%c3_297, %c0_298, %c0_299] : memref<9x64x64xf32, #tpu.memory_space<vmem>>, vector<1x64x64xf32>
    %551 = vector.shape_cast %550 : vector<1x64x64xf32> to vector<64x64xf32>
    %cst_300 = arith.constant dense<0.000000e+00> : vector<3x64xf32>
    %552 = tpu.matmul %521, %551, %cst_300 {dimension_numbers = #tpu.dot_dimension_numbers<[1], [0], [0], [1], [0, 0, 1, 1], [], []>} : vector<3x64xf32>, vector<64x64xf32>, vector<3x64xf32> -> vector<3x64xf32>
    %553 = vector.extract_strided_slice %522 {offsets = [0, 3], sizes = [3, 1], strides = [1, 1]} : vector<3x9xf32> to vector<3x1xf32>
    %554 = vector.broadcast %553 : vector<3x1xf32> to vector<3x64xf32>
    %555 = arith.mulf %552, %554 : vector<3x64xf32>
    %556 = arith.addf %549, %555 : vector<3x64xf32>
    %c5_301 = arith.constant 5 : index
    %c0_302 = arith.constant 0 : index
    %c0_303 = arith.constant 0 : index
    %557 = vector.load %arg6[%c5_301, %c0_302, %c0_303] : memref<9x64x64xf32, #tpu.memory_space<vmem>>, vector<1x64x64xf32>
    %558 = vector.shape_cast %557 : vector<1x64x64xf32> to vector<64x64xf32>
    %cst_304 = arith.constant dense<0.000000e+00> : vector<3x64xf32>
    %559 = tpu.matmul %521, %558, %cst_304 {dimension_numbers = #tpu.dot_dimension_numbers<[1], [0], [0], [1], [0, 0, 1, 1], [], []>} : vector<3x64xf32>, vector<64x64xf32>, vector<3x64xf32> -> vector<3x64xf32>
    %560 = vector.extract_strided_slice %522 {offsets = [0, 5], sizes = [3, 1], strides = [1, 1]} : vector<3x9xf32> to vector<3x1xf32>
    %561 = vector.broadcast %560 : vector<3x1xf32> to vector<3x64xf32>
    %562 = arith.mulf %559, %561 : vector<3x64xf32>
    %563 = arith.addf %556, %562 : vector<3x64xf32>
    %c6_305 = arith.constant 6 : index
    %c0_306 = arith.constant 0 : index
    %c0_307 = arith.constant 0 : index
    %564 = vector.load %arg6[%c6_305, %c0_306, %c0_307] : memref<9x64x64xf32, #tpu.memory_space<vmem>>, vector<1x64x64xf32>
    %565 = vector.shape_cast %564 : vector<1x64x64xf32> to vector<64x64xf32>
    %cst_308 = arith.constant dense<0.000000e+00> : vector<3x64xf32>
    %566 = tpu.matmul %521, %565, %cst_308 {dimension_numbers = #tpu.dot_dimension_numbers<[1], [0], [0], [1], [0, 0, 1, 1], [], []>} : vector<3x64xf32>, vector<64x64xf32>, vector<3x64xf32> -> vector<3x64xf32>
    %567 = vector.extract_strided_slice %522 {offsets = [0, 6], sizes = [3, 1], strides = [1, 1]} : vector<3x9xf32> to vector<3x1xf32>
    %568 = vector.broadcast %567 : vector<3x1xf32> to vector<3x64xf32>
    %569 = arith.mulf %566, %568 : vector<3x64xf32>
    %570 = arith.addf %563, %569 : vector<3x64xf32>
    %c7_309 = arith.constant 7 : index
    %c0_310 = arith.constant 0 : index
    %c0_311 = arith.constant 0 : index
    %571 = vector.load %arg6[%c7_309, %c0_310, %c0_311] : memref<9x64x64xf32, #tpu.memory_space<vmem>>, vector<1x64x64xf32>
    %572 = vector.shape_cast %571 : vector<1x64x64xf32> to vector<64x64xf32>
    %cst_312 = arith.constant dense<0.000000e+00> : vector<3x64xf32>
    %573 = tpu.matmul %521, %572, %cst_312 {dimension_numbers = #tpu.dot_dimension_numbers<[1], [0], [0], [1], [0, 0, 1, 1], [], []>} : vector<3x64xf32>, vector<64x64xf32>, vector<3x64xf32> -> vector<3x64xf32>
    %574 = vector.extract_strided_slice %522 {offsets = [0, 7], sizes = [3, 1], strides = [1, 1]} : vector<3x9xf32> to vector<3x1xf32>
    %575 = vector.broadcast %574 : vector<3x1xf32> to vector<3x64xf32>
    %576 = arith.mulf %573, %575 : vector<3x64xf32>
    %577 = arith.addf %570, %576 : vector<3x64xf32>
    %c8_313 = arith.constant 8 : index
    %c0_314 = arith.constant 0 : index
    %c0_315 = arith.constant 0 : index
    %578 = vector.load %arg6[%c8_313, %c0_314, %c0_315] : memref<9x64x64xf32, #tpu.memory_space<vmem>>, vector<1x64x64xf32>
    %579 = vector.shape_cast %578 : vector<1x64x64xf32> to vector<64x64xf32>
    %cst_316 = arith.constant dense<0.000000e+00> : vector<3x64xf32>
    %580 = tpu.matmul %521, %579, %cst_316 {dimension_numbers = #tpu.dot_dimension_numbers<[1], [0], [0], [1], [0, 0, 1, 1], [], []>} : vector<3x64xf32>, vector<64x64xf32>, vector<3x64xf32> -> vector<3x64xf32>
    %581 = vector.extract_strided_slice %522 {offsets = [0, 8], sizes = [3, 1], strides = [1, 1]} : vector<3x9xf32> to vector<3x1xf32>
    %582 = vector.broadcast %581 : vector<3x1xf32> to vector<3x64xf32>
    %583 = arith.mulf %580, %582 : vector<3x64xf32>
    %584 = arith.addf %577, %583 : vector<3x64xf32>
    %cst_317 = arith.constant 0.000000e+00 : f32
    %585 = vector.broadcast %cst_317 : f32 to vector<6x64xf32>
    %586 = tpu.iota {dimensions = array<i32: 0>} : vector<6x3xi32>
    %587 = tpu.iota {dimensions = array<i32: 1>} : vector<6x3xi32>
    %c0_i32_318 = arith.constant 0 : i32
    %588 = vector.broadcast %c0_i32_318 : i32 to vector<6x3xi32>
    %589 = arith.addi %587, %588 : vector<6x3xi32>
    %590 = arith.cmpi eq, %586, %589 : vector<6x3xi32>
    %591 = arith.extui %590 : vector<6x3xi1> to vector<6x3xi32>
    %592 = arith.sitofp %591 : vector<6x3xi32> to vector<6x3xf32>
    %cst_319 = arith.constant dense<0.000000e+00> : vector<6x64xf32>
    %593 = tpu.matmul %592, %521, %cst_319 {dimension_numbers = #tpu.dot_dimension_numbers<[1], [0], [0], [1], [0, 0, 1, 1], [], []>} : vector<6x3xf32>, vector<3x64xf32>, vector<6x64xf32> -> vector<6x64xf32>
    %594 = arith.addf %585, %593 : vector<6x64xf32>
    %595 = tpu.iota {dimensions = array<i32: 0>} : vector<6x3xi32>
    %596 = tpu.iota {dimensions = array<i32: 1>} : vector<6x3xi32>
    %c3_i32_320 = arith.constant 3 : i32
    %597 = vector.broadcast %c3_i32_320 : i32 to vector<6x3xi32>
    %598 = arith.addi %596, %597 : vector<6x3xi32>
    %599 = arith.cmpi eq, %595, %598 : vector<6x3xi32>
    %600 = arith.extui %599 : vector<6x3xi1> to vector<6x3xi32>
    %601 = arith.sitofp %600 : vector<6x3xi32> to vector<6x3xf32>
    %cst_321 = arith.constant dense<0.000000e+00> : vector<6x64xf32>
    %602 = tpu.matmul %601, %584, %cst_321 {dimension_numbers = #tpu.dot_dimension_numbers<[1], [0], [0], [1], [0, 0, 1, 1], [], []>} : vector<6x3xf32>, vector<3x64xf32>, vector<6x64xf32> -> vector<6x64xf32>
    %603 = arith.addf %594, %602 : vector<6x64xf32>
    %c0_322 = arith.constant 0 : index
    %c0_323 = arith.constant 0 : index
    %604 = vector.load %arg42[%c0_322, %c0_323] : memref<4x9xf32, #tpu.memory_space<vmem>>, vector<4x9xf32>
    %605 = vector.extract_strided_slice %604 {offsets = [0, 4], sizes = [4, 1], strides = [1, 1]} : vector<4x9xf32> to vector<4x1xf32>
    %606 = vector.broadcast %605 : vector<4x1xf32> to vector<4x64xf32>
    %607 = arith.mulf %507, %606 : vector<4x64xf32>
    %c0_324 = arith.constant 0 : index
    %c0_325 = arith.constant 0 : index
    %608 = vector.load %arg43[%c0_324, %c0_325] : memref<4x1xf32, #tpu.memory_space<vmem>>, vector<4x1xf32>
    %609 = vector.broadcast %608 : vector<4x1xf32> to vector<4x64xf32>
    %610 = arith.addf %607, %609 : vector<4x64xf32>
    %c0_326 = arith.constant 0 : index
    %c0_327 = arith.constant 0 : index
    %c0_328 = arith.constant 0 : index
    %611 = vector.load %arg6[%c0_326, %c0_327, %c0_328] : memref<9x64x64xf32, #tpu.memory_space<vmem>>, vector<1x64x64xf32>
    %612 = vector.shape_cast %611 : vector<1x64x64xf32> to vector<64x64xf32>
    %cst_329 = arith.constant dense<0.000000e+00> : vector<4x64xf32>
    %613 = tpu.matmul %507, %612, %cst_329 {dimension_numbers = #tpu.dot_dimension_numbers<[1], [0], [0], [1], [0, 0, 1, 1], [], []>} : vector<4x64xf32>, vector<64x64xf32>, vector<4x64xf32> -> vector<4x64xf32>
    %614 = vector.extract_strided_slice %604 {offsets = [0, 0], sizes = [4, 1], strides = [1, 1]} : vector<4x9xf32> to vector<4x1xf32>
    %615 = vector.broadcast %614 : vector<4x1xf32> to vector<4x64xf32>
    %616 = arith.mulf %613, %615 : vector<4x64xf32>
    %617 = arith.addf %610, %616 : vector<4x64xf32>
    %c1_330 = arith.constant 1 : index
    %c0_331 = arith.constant 0 : index
    %c0_332 = arith.constant 0 : index
    %618 = vector.load %arg6[%c1_330, %c0_331, %c0_332] : memref<9x64x64xf32, #tpu.memory_space<vmem>>, vector<1x64x64xf32>
    %619 = vector.shape_cast %618 : vector<1x64x64xf32> to vector<64x64xf32>
    %cst_333 = arith.constant dense<0.000000e+00> : vector<4x64xf32>
    %620 = tpu.matmul %507, %619, %cst_333 {dimension_numbers = #tpu.dot_dimension_numbers<[1], [0], [0], [1], [0, 0, 1, 1], [], []>} : vector<4x64xf32>, vector<64x64xf32>, vector<4x64xf32> -> vector<4x64xf32>
    %621 = vector.extract_strided_slice %604 {offsets = [0, 1], sizes = [4, 1], strides = [1, 1]} : vector<4x9xf32> to vector<4x1xf32>
    %622 = vector.broadcast %621 : vector<4x1xf32> to vector<4x64xf32>
    %623 = arith.mulf %620, %622 : vector<4x64xf32>
    %624 = arith.addf %617, %623 : vector<4x64xf32>
    %c2_334 = arith.constant 2 : index
    %c0_335 = arith.constant 0 : index
    %c0_336 = arith.constant 0 : index
    %625 = vector.load %arg6[%c2_334, %c0_335, %c0_336] : memref<9x64x64xf32, #tpu.memory_space<vmem>>, vector<1x64x64xf32>
    %626 = vector.shape_cast %625 : vector<1x64x64xf32> to vector<64x64xf32>
    %cst_337 = arith.constant dense<0.000000e+00> : vector<4x64xf32>
    %627 = tpu.matmul %507, %626, %cst_337 {dimension_numbers = #tpu.dot_dimension_numbers<[1], [0], [0], [1], [0, 0, 1, 1], [], []>} : vector<4x64xf32>, vector<64x64xf32>, vector<4x64xf32> -> vector<4x64xf32>
    %628 = vector.extract_strided_slice %604 {offsets = [0, 2], sizes = [4, 1], strides = [1, 1]} : vector<4x9xf32> to vector<4x1xf32>
    %629 = vector.broadcast %628 : vector<4x1xf32> to vector<4x64xf32>
    %630 = arith.mulf %627, %629 : vector<4x64xf32>
    %631 = arith.addf %624, %630 : vector<4x64xf32>
    %c3_338 = arith.constant 3 : index
    %c0_339 = arith.constant 0 : index
    %c0_340 = arith.constant 0 : index
    %632 = vector.load %arg6[%c3_338, %c0_339, %c0_340] : memref<9x64x64xf32, #tpu.memory_space<vmem>>, vector<1x64x64xf32>
    %633 = vector.shape_cast %632 : vector<1x64x64xf32> to vector<64x64xf32>
    %cst_341 = arith.constant dense<0.000000e+00> : vector<4x64xf32>
    %634 = tpu.matmul %507, %633, %cst_341 {dimension_numbers = #tpu.dot_dimension_numbers<[1], [0], [0], [1], [0, 0, 1, 1], [], []>} : vector<4x64xf32>, vector<64x64xf32>, vector<4x64xf32> -> vector<4x64xf32>
    %635 = vector.extract_strided_slice %604 {offsets = [0, 3], sizes = [4, 1], strides = [1, 1]} : vector<4x9xf32> to vector<4x1xf32>
    %636 = vector.broadcast %635 : vector<4x1xf32> to vector<4x64xf32>
    %637 = arith.mulf %634, %636 : vector<4x64xf32>
    %638 = arith.addf %631, %637 : vector<4x64xf32>
    %c5_342 = arith.constant 5 : index
    %c0_343 = arith.constant 0 : index
    %c0_344 = arith.constant 0 : index
    %639 = vector.load %arg6[%c5_342, %c0_343, %c0_344] : memref<9x64x64xf32, #tpu.memory_space<vmem>>, vector<1x64x64xf32>
    %640 = vector.shape_cast %639 : vector<1x64x64xf32> to vector<64x64xf32>
    %cst_345 = arith.constant dense<0.000000e+00> : vector<4x64xf32>
    %641 = tpu.matmul %507, %640, %cst_345 {dimension_numbers = #tpu.dot_dimension_numbers<[1], [0], [0], [1], [0, 0, 1, 1], [], []>} : vector<4x64xf32>, vector<64x64xf32>, vector<4x64xf32> -> vector<4x64xf32>
    %642 = vector.extract_strided_slice %604 {offsets = [0, 5], sizes = [4, 1], strides = [1, 1]} : vector<4x9xf32> to vector<4x1xf32>
    %643 = vector.broadcast %642 : vector<4x1xf32> to vector<4x64xf32>
    %644 = arith.mulf %641, %643 : vector<4x64xf32>
    %645 = arith.addf %638, %644 : vector<4x64xf32>
    %c6_346 = arith.constant 6 : index
    %c0_347 = arith.constant 0 : index
    %c0_348 = arith.constant 0 : index
    %646 = vector.load %arg6[%c6_346, %c0_347, %c0_348] : memref<9x64x64xf32, #tpu.memory_space<vmem>>, vector<1x64x64xf32>
    %647 = vector.shape_cast %646 : vector<1x64x64xf32> to vector<64x64xf32>
    %cst_349 = arith.constant dense<0.000000e+00> : vector<4x64xf32>
    %648 = tpu.matmul %507, %647, %cst_349 {dimension_numbers = #tpu.dot_dimension_numbers<[1], [0], [0], [1], [0, 0, 1, 1], [], []>} : vector<4x64xf32>, vector<64x64xf32>, vector<4x64xf32> -> vector<4x64xf32>
    %649 = vector.extract_strided_slice %604 {offsets = [0, 6], sizes = [4, 1], strides = [1, 1]} : vector<4x9xf32> to vector<4x1xf32>
    %650 = vector.broadcast %649 : vector<4x1xf32> to vector<4x64xf32>
    %651 = arith.mulf %648, %650 : vector<4x64xf32>
    %652 = arith.addf %645, %651 : vector<4x64xf32>
    %c7_350 = arith.constant 7 : index
    %c0_351 = arith.constant 0 : index
    %c0_352 = arith.constant 0 : index
    %653 = vector.load %arg6[%c7_350, %c0_351, %c0_352] : memref<9x64x64xf32, #tpu.memory_space<vmem>>, vector<1x64x64xf32>
    %654 = vector.shape_cast %653 : vector<1x64x64xf32> to vector<64x64xf32>
    %cst_353 = arith.constant dense<0.000000e+00> : vector<4x64xf32>
    %655 = tpu.matmul %507, %654, %cst_353 {dimension_numbers = #tpu.dot_dimension_numbers<[1], [0], [0], [1], [0, 0, 1, 1], [], []>} : vector<4x64xf32>, vector<64x64xf32>, vector<4x64xf32> -> vector<4x64xf32>
    %656 = vector.extract_strided_slice %604 {offsets = [0, 7], sizes = [4, 1], strides = [1, 1]} : vector<4x9xf32> to vector<4x1xf32>
    %657 = vector.broadcast %656 : vector<4x1xf32> to vector<4x64xf32>
    %658 = arith.mulf %655, %657 : vector<4x64xf32>
    %659 = arith.addf %652, %658 : vector<4x64xf32>
    %c8_354 = arith.constant 8 : index
    %c0_355 = arith.constant 0 : index
    %c0_356 = arith.constant 0 : index
    %660 = vector.load %arg6[%c8_354, %c0_355, %c0_356] : memref<9x64x64xf32, #tpu.memory_space<vmem>>, vector<1x64x64xf32>
    %661 = vector.shape_cast %660 : vector<1x64x64xf32> to vector<64x64xf32>
    %cst_357 = arith.constant dense<0.000000e+00> : vector<4x64xf32>
    %662 = tpu.matmul %507, %661, %cst_357 {dimension_numbers = #tpu.dot_dimension_numbers<[1], [0], [0], [1], [0, 0, 1, 1], [], []>} : vector<4x64xf32>, vector<64x64xf32>, vector<4x64xf32> -> vector<4x64xf32>
    %663 = vector.extract_strided_slice %604 {offsets = [0, 8], sizes = [4, 1], strides = [1, 1]} : vector<4x9xf32> to vector<4x1xf32>
    %664 = vector.broadcast %663 : vector<4x1xf32> to vector<4x64xf32>
    %665 = arith.mulf %662, %664 : vector<4x64xf32>
    %666 = arith.addf %659, %665 : vector<4x64xf32>
    %c0_358 = arith.constant 0 : index
    %c0_359 = arith.constant 0 : index
    %667 = vector.load %arg44[%c0_358, %c0_359] : memref<6x4xf32, #tpu.memory_space<vmem>>, vector<6x4xf32>
    %cst_360 = arith.constant dense<0.000000e+00> : vector<6x64xf32>
    %668 = tpu.matmul %667, %666, %cst_360 {dimension_numbers = #tpu.dot_dimension_numbers<[1], [0], [0], [1], [0, 0, 1, 1], [], []>} : vector<6x4xf32>, vector<4x64xf32>, vector<6x64xf32> -> vector<6x64xf32>
    %c0_361 = arith.constant 0 : index
    %c0_362 = arith.constant 0 : index
    %669 = vector.load %arg45[%c0_361, %c0_362] : memref<6x1xf32, #tpu.memory_space<vmem>>, vector<6x1xf32>
    %670 = vector.broadcast %669 : vector<6x1xf32> to vector<6x64xf32>
    %671 = arith.addf %668, %670 : vector<6x64xf32>
    %672 = arith.addf %603, %671 : vector<6x64xf32>
    %673 = arith.addf %505, %672 : vector<6x64xf32>
    %c0_363 = arith.constant 0 : index
    %c0_364 = arith.constant 0 : index
    %674 = vector.load %arg9[%c0_363, %c0_364] : memref<64x4096xf32, #tpu.memory_space<vmem>>, vector<64x4096xf32>
    %cst_365 = arith.constant dense<0.000000e+00> : vector<6x4096xf32>
    %675 = tpu.matmul %673, %674, %cst_365 {dimension_numbers = #tpu.dot_dimension_numbers<[1], [0], [0], [1], [0, 0, 1, 1], [], []>} : vector<6x64xf32>, vector<64x4096xf32>, vector<6x4096xf32> -> vector<6x4096xf32>
    %c0_366 = arith.constant 0 : index
    %c0_367 = arith.constant 0 : index
    %c0_368 = arith.constant 0 : index
    %676 = vector.load %arg46[%c0_366, %c0_367, %c0_368] : memref<1x6x4096xf32, #tpu.memory_space<vmem>>, vector<1x6x4096xf32>
    %677 = vector.shape_cast %676 : vector<1x6x4096xf32> to vector<6x4096xf32>
    %678 = vector.shape_cast %675 : vector<6x4096xf32> to vector<1x6x4096xf32>
    tpu.vector_store %arg46[%c0_366, %c0_367, %c0_368], %678 {strides = array<i32>} : memref<1x6x4096xf32, #tpu.memory_space<vmem>>, vector<1x6x4096xf32>,
    return
  }
  func.func @transform_0(%arg0: i32) -> (i32, i32, i32) {
    %c0_i32 = arith.constant 0 : i32
    %c0_i32_0 = arith.constant 0 : i32
    %c0_i32_1 = arith.constant 0 : i32
    return %arg0, %c0_i32, %c0_i32_0 : i32, i32, i32
  }
  func.func @transform_1(%arg0: i32) -> (i32, i32, i32) {
    %c0_i32 = arith.constant 0 : i32
    %c0_i32_0 = arith.constant 0 : i32
    %c0_i32_1 = arith.constant 0 : i32
    return %arg0, %c0_i32, %c0_i32_0 : i32, i32, i32
  }
  func.func @transform_2(%arg0: i32) -> (i32, i32, i32) {
    %c0_i32 = arith.constant 0 : i32
    %c0_i32_0 = arith.constant 0 : i32
    %c0_i32_1 = arith.constant 0 : i32
    return %arg0, %c0_i32, %c0_i32_0 : i32, i32, i32
  }
  func.func @transform_3(%arg0: i32) -> (i32, i32, i32) {
    %c0_i32 = arith.constant 0 : i32
    %c0_i32_0 = arith.constant 0 : i32
    %c0_i32_1 = arith.constant 0 : i32
    %c0_i32_2 = arith.constant 0 : i32
    return %c0_i32, %c0_i32_0, %c0_i32_1 : i32, i32, i32
  }
  func.func @transform_4(%arg0: i32) -> (i32, i32, i32) {
    %c0_i32 = arith.constant 0 : i32
    %c0_i32_0 = arith.constant 0 : i32
    %c0_i32_1 = arith.constant 0 : i32
    %c0_i32_2 = arith.constant 0 : i32
    return %c0_i32, %c0_i32_0, %c0_i32_1 : i32, i32, i32
  }
  func.func @transform_5(%arg0: i32) -> (i32, i32, i32) {
    %c0_i32 = arith.constant 0 : i32
    %c0_i32_0 = arith.constant 0 : i32
    %c0_i32_1 = arith.constant 0 : i32
    %c0_i32_2 = arith.constant 0 : i32
    return %c0_i32, %c0_i32_0, %c0_i32_1 : i32, i32, i32
  }
  func.func @transform_6(%arg0: i32) -> (i32, i32) {
    %c0_i32 = arith.constant 0 : i32
    %c0_i32_0 = arith.constant 0 : i32
    %c0_i32_1 = arith.constant 0 : i32
    return %c0_i32, %c0_i32_0 : i32, i32
  }
  func.func @transform_7(%arg0: i32) -> (i32, i32) {
    %c0_i32 = arith.constant 0 : i32
    %c0_i32_0 = arith.constant 0 : i32
    %c0_i32_1 = arith.constant 0 : i32
    return %c0_i32, %c0_i32_0 : i32, i32
  }
  func.func @transform_8(%arg0: i32) -> (i32, i32) {
    %c0_i32 = arith.constant 0 : i32
    %c0_i32_0 = arith.constant 0 : i32
    %c0_i32_1 = arith.constant 0 : i32
    return %c0_i32, %c0_i32_0 : i32, i32
  }
  func.func @transform_9(%arg0: i32) -> (i32, i32) {
    %c0_i32 = arith.constant 0 : i32
    %c0_i32_0 = arith.constant 0 : i32
    %c0_i32_1 = arith.constant 0 : i32
    return %c0_i32, %c0_i32_0 : i32, i32
  }
  func.func @transform_10(%arg0: i32) -> (i32, i32) {
    %c0_i32 = arith.constant 0 : i32
    %c0_i32_0 = arith.constant 0 : i32
    %c0_i32_1 = arith.constant 0 : i32
    return %c0_i32, %c0_i32_0 : i32, i32
  }
  func.func @transform_11(%arg0: i32) -> (i32, i32) {
    %c0_i32 = arith.constant 0 : i32
    %c0_i32_0 = arith.constant 0 : i32
    %c0_i32_1 = arith.constant 0 : i32
    return %c0_i32, %c0_i32_0 : i32, i32
  }
  func.func @transform_12(%arg0: i32) -> (i32, i32) {
    %c0_i32 = arith.constant 0 : i32
    %c0_i32_0 = arith.constant 0 : i32
    %c0_i32_1 = arith.constant 0 : i32
    return %c0_i32, %c0_i32_0 : i32, i32
  }
  func.func @transform_13(%arg0: i32) -> (i32, i32) {
    %c0_i32 = arith.constant 0 : i32
    %c0_i32_0 = arith.constant 0 : i32
    %c0_i32_1 = arith.constant 0 : i32
    return %c0_i32, %c0_i32_0 : i32, i32
  }
  func.func @transform_14(%arg0: i32) -> (i32, i32) {
    %c0_i32 = arith.constant 0 : i32
    %c0_i32_0 = arith.constant 0 : i32
    %c0_i32_1 = arith.constant 0 : i32
    return %c0_i32, %c0_i32_0 : i32, i32
  }
  func.func @transform_15(%arg0: i32) -> (i32, i32) {
    %c0_i32 = arith.constant 0 : i32
    %c0_i32_0 = arith.constant 0 : i32
    %c0_i32_1 = arith.constant 0 : i32
    return %c0_i32, %c0_i32_0 : i32, i32
  }
  func.func @transform_16(%arg0: i32) -> (i32, i32) {
    %c0_i32 = arith.constant 0 : i32
    %c0_i32_0 = arith.constant 0 : i32
    %c0_i32_1 = arith.constant 0 : i32
    return %c0_i32, %c0_i32_0 : i32, i32
  }
  func.func @transform_17(%arg0: i32) -> (i32, i32) {
    %c0_i32 = arith.constant 0 : i32
    %c0_i32_0 = arith.constant 0 : i32
    %c0_i32_1 = arith.constant 0 : i32
    return %c0_i32, %c0_i32_0 : i32, i32
  }
  func.func @transform_18(%arg0: i32) -> (i32, i32) {
    %c0_i32 = arith.constant 0 : i32
    %c0_i32_0 = arith.constant 0 : i32
    %c0_i32_1 = arith.constant 0 : i32
    return %c0_i32, %c0_i32_0 : i32, i32
  }
  func.func @transform_19(%arg0: i32) -> (i32, i32) {
    %c0_i32 = arith.constant 0 : i32
    %c0_i32_0 = arith.constant 0 : i32
    %c0_i32_1 = arith.constant 0 : i32
    return %c0_i32, %c0_i32_0 : i32, i32
  }
  func.func @transform_20(%arg0: i32) -> (i32, i32) {
    %c0_i32 = arith.constant 0 : i32
    %c0_i32_0 = arith.constant 0 : i32
    %c0_i32_1 = arith.constant 0 : i32
    return %c0_i32, %c0_i32_0 : i32, i32
  }
  func.func @transform_21(%arg0: i32) -> (i32, i32) {
    %c0_i32 = arith.constant 0 : i32
    %c0_i32_0 = arith.constant 0 : i32
    %c0_i32_1 = arith.constant 0 : i32
    return %c0_i32, %c0_i32_0 : i32, i32
  }
  func.func @transform_22(%arg0: i32) -> (i32, i32) {
    %c0_i32 = arith.constant 0 : i32
    %c0_i32_0 = arith.constant 0 : i32
    %c0_i32_1 = arith.constant 0 : i32
    return %c0_i32, %c0_i32_0 : i32, i32
  }
  func.func @transform_23(%arg0: i32) -> (i32, i32) {
    %c0_i32 = arith.constant 0 : i32
    %c0_i32_0 = arith.constant 0 : i32
    %c0_i32_1 = arith.constant 0 : i32
    return %c0_i32, %c0_i32_0 : i32, i32
  }
  func.func @transform_24(%arg0: i32) -> (i32, i32) {
    %c0_i32 = arith.constant 0 : i32
    %c0_i32_0 = arith.constant 0 : i32
    %c0_i32_1 = arith.constant 0 : i32
    return %c0_i32, %c0_i32_0 : i32, i32
  }
  func.func @transform_25(%arg0: i32) -> (i32, i32) {
    %c0_i32 = arith.constant 0 : i32
    %c0_i32_0 = arith.constant 0 : i32
    %c0_i32_1 = arith.constant 0 : i32
    return %c0_i32, %c0_i32_0 : i32, i32
  }
  func.func @transform_26(%arg0: i32) -> (i32, i32) {
    %c0_i32 = arith.constant 0 : i32
    %c0_i32_0 = arith.constant 0 : i32
    %c0_i32_1 = arith.constant 0 : i32
    return %c0_i32, %c0_i32_0 : i32, i32
  }
  func.func @transform_27(%arg0: i32) -> (i32, i32) {
    %c0_i32 = arith.constant 0 : i32
    %c0_i32_0 = arith.constant 0 : i32
    %c0_i32_1 = arith.constant 0 : i32
    return %c0_i32, %c0_i32_0 : i32, i32
  }
  func.func @transform_28(%arg0: i32) -> (i32, i32) {
    %c0_i32 = arith.constant 0 : i32
    %c0_i32_0 = arith.constant 0 : i32
    %c0_i32_1 = arith.constant 0 : i32
    return %c0_i32, %c0_i32_0 : i32, i32
  }
  func.func @transform_29(%arg0: i32) -> (i32, i32) {
    %c0_i32 = arith.constant 0 : i32
    %c0_i32_0 = arith.constant 0 : i32
    %c0_i32_1 = arith.constant 0 : i32
    return %c0_i32, %c0_i32_0 : i32, i32
  }
  func.func @transform_30(%arg0: i32) -> (i32, i32) {
    %c0_i32 = arith.constant 0 : i32
    %c0_i32_0 = arith.constant 0 : i32
    %c0_i32_1 = arith.constant 0 : i32
    return %c0_i32, %c0_i32_0 : i32, i32
  }
  func.func @transform_31(%arg0: i32) -> (i32, i32) {
    %c0_i32 = arith.constant 0 : i32
    %c0_i32_0 = arith.constant 0 : i32
    %c0_i32_1 = arith.constant 0 : i32
    return %c0_i32, %c0_i32_0 : i32, i32
  }
  func.func @transform_32(%arg0: i32) -> (i32, i32) {
    %c0_i32 = arith.constant 0 : i32
    %c0_i32_0 = arith.constant 0 : i32
    %c0_i32_1 = arith.constant 0 : i32
    return %c0_i32, %c0_i32_0 : i32, i32
  }
  func.func @transform_33(%arg0: i32) -> (i32, i32) {
    %c0_i32 = arith.constant 0 : i32
    %c0_i32_0 = arith.constant 0 : i32
    %c0_i32_1 = arith.constant 0 : i32
    return %c0_i32, %c0_i32_0 : i32, i32
  }
  func.func @transform_34(%arg0: i32) -> (i32, i32) {
    %c0_i32 = arith.constant 0 : i32
    %c0_i32_0 = arith.constant 0 : i32
    %c0_i32_1 = arith.constant 0 : i32
    return %c0_i32, %c0_i32_0 : i32, i32
  }
  func.func @transform_35(%arg0: i32) -> (i32, i32) {
    %c0_i32 = arith.constant 0 : i32
    %c0_i32_0 = arith.constant 0 : i32
    %c0_i32_1 = arith.constant 0 : i32
    return %c0_i32, %c0_i32_0 : i32, i32
  }
  func.func @transform_36(%arg0: i32) -> (i32, i32) {
    %c0_i32 = arith.constant 0 : i32
    %c0_i32_0 = arith.constant 0 : i32
    %c0_i32_1 = arith.constant 0 : i32
    return %c0_i32, %c0_i32_0 : i32, i32
  }
  func.func @transform_37(%arg0: i32) -> (i32, i32) {
    %c0_i32 = arith.constant 0 : i32
    %c0_i32_0 = arith.constant 0 : i32
    %c0_i32_1 = arith.constant 0 : i32
    return %c0_i32, %c0_i32_0 : i32, i32
  }
  func.func @transform_38(%arg0: i32) -> (i32, i32) {
    %c0_i32 = arith.constant 0 : i32
    %c0_i32_0 = arith.constant 0 : i32
    %c0_i32_1 = arith.constant 0 : i32
    return %c0_i32, %c0_i32_0 : i32, i32
  }
  func.func @transform_39(%arg0: i32) -> (i32, i32) {
    %c0_i32 = arith.constant 0 : i32
    %c0_i32_0 = arith.constant 0 : i32
    %c0_i32_1 = arith.constant 0 : i32
    return %c0_i32, %c0_i32_0 : i32, i32
  }
  func.func @transform_40(%arg0: i32) -> (i32, i32) {
    %c0_i32 = arith.constant 0 : i32
    %c0_i32_0 = arith.constant 0 : i32
    %c0_i32_1 = arith.constant 0 : i32
    return %c0_i32, %c0_i32_0 : i32, i32
  }
  func.func @transform_41(%arg0: i32) -> (i32, i32) {
    %c0_i32 = arith.constant 0 : i32
    %c0_i32_0 = arith.constant 0 : i32
    %c0_i32_1 = arith.constant 0 : i32
    return %c0_i32, %c0_i32_0 : i32, i32
  }
  func.func @transform_42(%arg0: i32) -> (i32, i32) {
    %c0_i32 = arith.constant 0 : i32
    %c0_i32_0 = arith.constant 0 : i32
    %c0_i32_1 = arith.constant 0 : i32
    return %c0_i32, %c0_i32_0 : i32, i32
  }
  func.func @transform_43(%arg0: i32) -> (i32, i32) {
    %c0_i32 = arith.constant 0 : i32
    %c0_i32_0 = arith.constant 0 : i32
    %c0_i32_1 = arith.constant 0 : i32
    return %c0_i32, %c0_i32_0 : i32, i32
  }
  func.func @transform_44(%arg0: i32) -> (i32, i32) {
    %c0_i32 = arith.constant 0 : i32
    %c0_i32_0 = arith.constant 0 : i32
    %c0_i32_1 = arith.constant 0 : i32
    return %c0_i32, %c0_i32_0 : i32, i32
  }
  func.func @transform_45(%arg0: i32) -> (i32, i32, i32) {
    %c0_i32 = arith.constant 0 : i32
    %c0_i32_0 = arith.constant 0 : i32
    %c0_i32_1 = arith.constant 0 : i32
    return %arg0, %c0_i32, %c0_i32_0 : i32, i32, i32
  }
}

</mosaic_0001>

<bundles_post_ra>
// kernel: _seg_head_fused.1
= control target key start
LH: loop header
LB: loop body
LE: loop exit
PB: predicated region body
PF: predicated region fallthrough
CT: control target
= control target key end

     0   :  { %s14166_s6 = smov 1   ;;  %s14167_s10 = smov 2   ;;  %s17030_s0 = inlined_call_operand.smem [shape: u32[46], index: -1, kind: input, shape index: {}] }
   0x1   :  { %s14242_s5 = sld [smem:[%s17030_s0]]   ;;  %s14168_s14 = smov 3  }
   0x2   :  { %s14247_s9 = sld [smem:[%s17030_s0 + %s14166_s6]]   ;;  %s14169_s18 = smov 4  }
   0x3   :  { %s14252_s13 = sld [smem:[%s17030_s0 + %s14167_s10]]   ;;  %s14170_s22 = smov 5  }
   0x4   :  { %s14257_s17 = sld [smem:[%s17030_s0 + %s14168_s14]]   ;;  %s14171_s26 = smov 6  }
   0x5   :  { %s14262_s21 = sld [smem:[%s17030_s0 + %s14169_s18]]   ;;  %s14172_s30 = smov 7  }
   0x6   :  { %s14267_s25 = sld [smem:[%s17030_s0 + %s14170_s22]]   ;;  %s14173_s4 = smov 8  }
   0x7   :  { %s14272_s29 = sld [smem:[%s17030_s0 + %s14171_s26]]   ;;  %s14174_s10 = smov 9  }
   0x8   :  { %17101 = sst [smem:[#allocation23_spill]] %s14247_s9  ;;  %s14175_s15 = smov 10  }
   0x9   :  { %17102 = sst [smem:[#allocation24_spill]] %s14252_s13  ;;  %s14176_s20 = smov 11  }
   0xa   :  { %s14277_s3 = sld [smem:[%s17030_s0 + %s14172_s30]]   ;;  %s14177_s26 = smov 12  }
   0xb   :  { %17103 = sst [smem:[#allocation25_spill]] %s14262_s21  ;;  %s14178_s1 = smov 13  }
   0xc   :  { %17104 = sst [smem:[#allocation26_spill]] %s14267_s25  ;;  %s14179_s7 = smov 14  }
   0xd   :  { %17105 = sst [smem:[#allocation27_spill]] %s14272_s29  ;;  %s14181_s22 = smov 16  }
   0xe   :  { %s14282_s8 = sld [smem:[%s17030_s0 + %s14173_s4]]   ;;  %s14182_s28 = smov 17  }
   0xf   :  { %s14287_s14 = sld [smem:[%s17030_s0 + %s14174_s10]]   ;;  %s14200_s16 = smov 35  }
  0x10   :  { %17106 = sst [smem:[#allocation28_spill]] %s14277_s3  ;;  %s14201_s23 = smov 37  }
  0x11   :  { %s14292_s19 = sld [smem:[%s17030_s0 + %s14175_s15]]   ;;  %s14180_s15 = smov 15  }
  0x12   :  { %s14297_s24 = sld [smem:[%s17030_s0 + %s14176_s20]]   ;;  %s14203_s10 = smov 39  }
  0x13   :  { %s14302_s30 = sld [smem:[%s17030_s0 + %s14177_s26]]  }
  0x14   :  { %s14307_s6 = sld [smem:[%s17030_s0 + %s14178_s1]]   ;;  %s14202_s1 = smov 38  }
  0x15   :  { %s14312_s12 = sld [smem:[%s17030_s0 + %s14179_s7]]   ;;  %s14183_s7 = smov 18  }
  0x16   :  { %s14317_s20 = sld [smem:[%s17030_s0 + %s14180_s15]]   ;;  %s14184_s15 = smov 19  }
  0x17   :  { %s14322_s27 = sld [smem:[%s17030_s0 + %s14181_s22]]   ;;  %s14185_s22 = smov 20  }
  0x18   :  { %s14327_s4 = sld [smem:[%s17030_s0 + %s14182_s28]]   ;;  %s14186_s28 = smov 21  }
  0x19   :  { %s14332_s3 = sld [smem:[%s17030_s0 + %s14183_s7]]   ;;  %s14187_s7 = smov 22  }
  0x1a   :  { %17107 = sst [smem:[#allocation29_spill]] %s14307_s6 }
  0x1b   :  { %17108 = sst [smem:[#allocation30_spill]] %s14312_s12 }
  0x1c   :  { %17109 = sst [smem:[#allocation31_spill]] %s14317_s20 }
  0x1d   :  { %17110 = sst [smem:[#allocation32_spill]] %s14322_s27 }
  0x1e   :  { %17111 = sst [smem:[#allocation33_spill]] %s14327_s4 }
  0x1f   :  { %17112 = sst [smem:[#allocation34_spill]] %s14332_s3 }
  0x20   :  { %s14337_s29 = sld [smem:[%s17030_s0 + %s14184_s15]]   ;;  %s14188_s15 = smov 23  }
  0x21   :  { %s14342_s25 = sld [smem:[%s17030_s0 + %s14185_s22]]   ;;  %s14189_s22 = smov 24  }
  0x22   :  { %s14347_s13 = sld [smem:[%s17030_s0 + %s14186_s28]]   ;;  %s14190_s28 = smov 25  }
  0x23   :  { %s14352_s21 = sld [smem:[%s17030_s0 + %s14187_s7]]   ;;  %s14191_s7 = smov 26  }
  0x24   :  { %s14367_s9 = sld [smem:[%s17030_s0 + %s14190_s28]]   ;;  %s14194_s28 = smov 29  }
  0x25   :  { %s14387_s3 = sld [smem:[%s17030_s0 + %s14194_s28]]   ;;  %s14198_s28 = smov 33  }
  0x26   :  { %17113 = sst [smem:[#allocation35_spill]] %s14337_s29 }
  0x27   :  { %17114 = sst [smem:[#allocation36_spill]] %s14342_s25 }
  0x28   :  { %s14357_s29 = sld [smem:[%s17030_s0 + %s14188_s15]]   ;;  %s14192_s15 = smov 27  }
  0x29   :  { %17115 = sst [smem:[#allocation37_spill]] %s14352_s21 }
  0x2a   :  { %s14362_s25 = sld [smem:[%s17030_s0 + %s14189_s22]]   ;;  %s14193_s22 = smov 28  }
  0x2b   :  { %17117 = sst [smem:[#allocation39_spill]] %s14367_s9 }
  0x2c   :  { %s14372_s21 = sld [smem:[%s17030_s0 + %s14191_s7]]   ;;  %s14195_s7 = smov 30  }
  0x2d   :  { %s14377_s6 = sld [smem:[%s17030_s0 + %s14192_s15]]   ;;  %s14196_s15 = smov 31  }
  0x2e   :  { %17120 = sst [smem:[#allocation42_spill]] %s14387_s3 }
  0x2f   :  { %s14397_s4 = sld [smem:[%s17030_s0 + %s14196_s15]]   ;;  %s14208_s15 = smov 44  }
  0x30   :  { %17116 = sst [smem:[#allocation38_spill]] %s14362_s25 }
  0x31   :  { %s14382_s25 = sld [smem:[%s17030_s0 + %s14193_s22]]   ;;  %s14197_s22 = smov 32  }
  0x32   :  { %17118 = sst [smem:[#allocation40_spill]] %s14372_s21 }
  0x33   :  { %s14392_s21 = sld [smem:[%s17030_s0 + %s14195_s7]]   ;;  %s14199_s7 = smov 34  }
  0x34   :  { %s14407_s3 = sld [smem:[%s17030_s0 + %s14198_s28]]  }
  0x35   :  { %17122 = sst [smem:[#allocation44_spill]] %s14397_s4 }
  0x36   :  { %s14415_s4 = sld [smem:[%s17030_s0 + %s14200_s16]]   ;;  %s14204_s16 = smov 40  }
  0x37   :  { %17119 = sst [smem:[#allocation41_spill]] %s14382_s25 }
  0x38   :  { %s14402_s25 = sld [smem:[%s17030_s0 + %s14197_s22]]  }
  0x39   :  { %17121 = sst [smem:[#allocation43_spill]] %s14392_s21 }
  0x3a   :  { %17124 = sst [smem:[#allocation46_spill]] %s14407_s3 }
  0x3b   :  { %s11250_s21 = sld [smem:[%s17030_s0 + %s14199_s7]]  }
  0x3c   :  { %s14425_s27 = sld [smem:[%s17030_s0 + %s14202_s1]]   ;;  %s14206_s1 = smov 42  }
  0x3d   :  { %s14430_s20 = sld [smem:[%s17030_s0 + %s14203_s10]]   ;;  %s14207_s10 = smov 43  }
  0x3e   :  { %17123 = sst [smem:[#allocation45_spill]] %s14402_s25 }
  0x3f   :  { %s14420_s25 = sld [smem:[%s17030_s0 + %s14201_s23]]   ;;  %s14205_s23 = smov 41  }
  0x40   :  { %s14435_s12 = sld [smem:[%s17030_s0 + %s14204_s16]]  }
  0x41   :  { %v96_v0 = vstv %s11250_s21  ;;  %s14445_s7 = sld [smem:[%s17030_s0 + %s14206_s1]]   ;;  %s14209_s21 = smov 45  }
  0x42   :  { %17126 = sst [smem:[#allocation48_spill]] %s14425_s27  ;;  %97 = vst [vmem:[#allocation2] sm:$0x1] %v96_v0 }
  0x43   :  { %s14450_s16 = sld [smem:[%s17030_s0 + %s14207_s10]]  }
  0x44   :  { %s14460_s28 = sld [smem:[%s17030_s0 + %s14209_s21]]  }
  0x45   :  { %17125 = sst [smem:[#allocation47_spill]] %s14420_s25 }
  0x46   :  { %17127 = sst [smem:[#allocation49_spill]] %s14435_s12 }
  0x47   :  { %s14440_s25 = sld [smem:[%s17030_s0 + %s14205_s23]]  }
  0x48   :  { %s14455_s23 = sld [smem:[%s17030_s0 + %s14208_s15]]  }
  0x49   :  { %100 = vsyncpa [#allocation5], 0 }
  0x4a   :  { %101 = vsyncpa [#allocation7], 0 }
  0x4b   :  { %102 = vsyncpa [#allocation10], 0 }
  0x4c   :  { %103 = vsyncpa [#allocation13], 0 }
  0x4d   :  { %104 = vsyncpa [#allocation16], 0  ;;  %s14462_s27 = smov 0  }
  0x4e LB: > { %s17128_s9 = sld [smem:[#allocation39_spill]]  ;;  %s17129_s3 = sld [smem:[#allocation46_spill]]  ;;  %s14164_s27 = sphi %s14462_s27, %s110_s27  }
  0x4f   : > { %s14210_s12 = smov [#allocation6]   ;;  %s14468_s2 = sadd.s32 4294967295, %s14164_s27  }
  0x50   : > { %s1178_s1 = sshll.u32 %s14210_s12, 4  ;;  %p11264_p0 = scmp.ge.s32.totalorder %s14164_s27, 1  ;;  %s14473_s1 = int_to_ptr.vmem [resolvable:$true] %s1178_s1 }
  0x51   : > { %p1101_p1 = scmp.lt.s32.totalorder %s14164_s27, 3  ;;  %p17038_p2 = scmp.eq.s32.totalorder %s14468_s2, 0 }
  0x52   : > { %s14211_s10 = smov [#allocation9]   ;;  %s14212_s15 = smov [#allocation12]  }
  0x53   : > { %p14475_p3 = pnand %p11264_p0, %p1101_p1  ;;  %s1206_s11 = sshll.u32 %s14211_s10, 4  ;;  %s14481_s11 = int_to_ptr.vmem [resolvable:$true] %s1206_s11 }
  0x54   : > { %s1246_s18 = sshll.u32 %s14212_s15, 4  ;;  %s14213_s22 = smov [#allocation15]   ;;  %s14489_s18 = int_to_ptr.vmem [resolvable:$true] %s1246_s18 }
  0x55   : > { %s17130_s0 = scalar_select %p14475_p3, 1, 0 }
  0x56   : > { %p13596_p4 = pneg %p14475_p3  ;;  %s1280_s26 = sshll.u32 %s14213_s22, 4  ;;  %s14491_s26 = int_to_ptr.vmem [resolvable:$true] %s1280_s26 }
  0x57   : > { %s13886_s12 = scalar_lea.hbm %s14347_s13, 32 }
  0x58   : > { %p14485_p5 = pnand %p17038_p2, %p13596_p4  ;;  %p13887_p6 = scmp.ne.s32.totalorder %s14347_s13, %s13886_s12 }
  0x59   : > { %p13893_p10 = scmp.lt.u32.totalorder %s13886_s12, %s14347_s13 }
  0x5a   : > { %p14497_p7 = pneg %p14485_p5 }
  0x5c   : > { %p13889_p8 = pnand %p14497_p7, %p13887_p6 }
  0x5e   : > { %p13890_p9 = pneg %p13889_p8 }
  0x60   : > { %p13895_p11 = pnand %p13893_p10, %p13890_p9 }
  0x62   : > { %13898 = shalt.err (!%p13895_p11)
}
  0x63   : > { %s13899_s15 = scalar_lea.vmem %s14473_s1, 32  ;;  %p13907_p1 = scmp.lt.s32.totalorder %s14473_s1, %s14473_s1 }
  0x64   : > { %p13900_p12 = scmp.ne.s32.totalorder %s14473_s1, %s13899_s15  ;;  %p13908_p4 = scmp.lt.s32.totalorder %s13899_s15, %s13899_s15 }
  0x66   : > { %p13902_p13 = pnand %p13900_p12, %p14497_p7  ;;  %p13909_p2 = por %p13908_p4, %p13907_p1 }
  0x68   : > { %p13903_p0 = pneg %p13902_p13 }
  0x6a   : > { %p13910_p3 = pnand %p13909_p2, %p13903_p0 }
  0x6c   : > { %13913 = shalt.err (!%p13910_p3)
}
  0x6d   : > { %13602 = dma.hbm_to_vmem [thread:$0]  (!%p14485_p5), %s14347_s13, 32, %s14473_s1, [#allocation7]  }
  0x6e   : > { %s13914_s22 = scalar_lea.hbm %s17128_s9, 64 }
  0x6f   : > { %p13915_p6 = scmp.ne.s32.totalorder %s17128_s9, %s13914_s22  ;;  %p13921_p10 = scmp.lt.u32.totalorder %s13914_s22, %s17128_s9 }
  0x71   : > { %p13917_p8 = pnand %p13915_p6, %p14497_p7 }
  0x73   : > { %p13918_p9 = pneg %p13917_p8 }
  0x75   : > { %p13923_p11 = pnand %p13921_p10, %p13918_p9 }
  0x77   : > { %13926 = shalt.err (!%p13923_p11)
}
  0x78   : > { %s13927_s12 = scalar_lea.vmem %s14481_s11, 64  ;;  %p13935_p13 = scmp.lt.s32.totalorder %s14481_s11, %s14481_s11 }
  0x79   : > { %p13928_p2 = scmp.ne.s32.totalorder %s14481_s11, %s13927_s12  ;;  %p13936_p0 = scmp.lt.s32.totalorder %s13927_s12, %s13927_s12 }
  0x7b   : > { %p13930_p3 = pnand %p13928_p2, %p14497_p7  ;;  %p13937_p1 = por %p13936_p0, %p13935_p13 }
  0x7d   : > { %p13931_p12 = pneg %p13930_p3 }
  0x7f   : > { %p13938_p4 = pnand %p13937_p1, %p13931_p12 }
  0x81   : > { %13941 = shalt.err (!%p13938_p4)
}
  0x82   : > { %13608 = dma.hbm_to_vmem [thread:$0]  (!%p14485_p5), %s17128_s9, 64, %s14481_s11, [#allocation10]  }
  0x83   : > { %s13942_s1 = scalar_lea.hbm %s17129_s3, 16 }
  0x84   : > { %p13943_p6 = scmp.ne.s32.totalorder %s17129_s3, %s13942_s1  ;;  %p13949_p10 = scmp.lt.u32.totalorder %s13942_s1, %s17129_s3 }
  0x86   : > { %p13945_p8 = pnand %p13943_p6, %p14497_p7 }
  0x88   : > { %p13946_p9 = pneg %p13945_p8 }
  0x8a   : > { %p13951_p11 = pnand %p13949_p10, %p13946_p9 }
  0x8c   : > { %13954 = shalt.err (!%p13951_p11)
}
  0x8d   : > { %s13955_s15 = scalar_lea.vmem %s14489_s18, 16  ;;  %s13962_s22 = scalar_lea.vmem %s14489_s18, 32 }
  0x8e   : > { %p13956_p2 = scmp.ne.s32.totalorder %s14489_s18, %s13955_s15  ;;  %p13963_p13 = scmp.lt.s32.totalorder %s14489_s18, %s14489_s18 }
  0x8f   : > { %p13964_p0 = scmp.lt.s32.totalorder %s13962_s22, %s13955_s15 }
  0x90   : > { %p13958_p3 = pnand %p13956_p2, %p14497_p7 }
  0x91   : > { %p13965_p1 = por %p13964_p0, %p13963_p13 }
  0x92   : > { %p13959_p12 = pneg %p13958_p3 }
  0x94   : > { %p13966_p4 = pnand %p13965_p1, %p13959_p12 }
  0x96   : > { %13969 = shalt.err (!%p13966_p4)
}
  0x97   : > { %13614 = dma.hbm_to_vmem [thread:$0]  (!%p14485_p5), %s17129_s3, 16, %s14489_s18, [#allocation13]  }
  0x98   : > { %s13970_s11 = scalar_lea.hbm %s14430_s20, 64 }
  0x99   : > { %p13971_p6 = scmp.ne.s32.totalorder %s14430_s20, %s13970_s11  ;;  %p13977_p10 = scmp.lt.u32.totalorder %s13970_s11, %s14430_s20 }
  0x9b   : > { %p13973_p8 = pnand %p13971_p6, %p14497_p7 }
  0x9d   : > { %p13974_p9 = pneg %p13973_p8 }
  0x9f   : > { %p13979_p11 = pnand %p13977_p10, %p13974_p9 }
  0xa1   : > { %13982 = shalt.err (!%p13979_p11)
}
  0xa2   : > { %s13983_s12 = scalar_lea.vmem %s14491_s26, 64  ;;  %p13991_p13 = scmp.lt.s32.totalorder %s14491_s26, %s14491_s26 }
  0xa3   : > { %p13984_p2 = scmp.ne.s32.totalorder %s14491_s26, %s13983_s12  ;;  %p13992_p0 = scmp.lt.s32.totalorder %s13983_s12, %s13983_s12 }
  0xa5   : > { %p13986_p3 = pnand %p13984_p2, %p14497_p7  ;;  %p13993_p1 = por %p13992_p0, %p13991_p13 }
  0xa7   : > { %p13987_p12 = pneg %p13986_p3 }
  0xa9   : > { %p13994_p4 = pnand %p13993_p1, %p13987_p12 }
  0xab   : > { %13997 = shalt.err (!%p13994_p4)
}
  0xac   : > { %13620 = dma.hbm_to_vmem [thread:$0]  (!%p14485_p5), %s14430_s20, 64, %s14491_s26, [#allocation16]  }
  0xad   : > { %s14214_s18 = smov [#allocation4]   ;;  %s13998_s15 = scalar_lea.hbm %s14282_s8, 32768 }
  0xae   : > { %s1128_s1 = sshll.u32 %s14214_s18, 4  ;;  %p13999_p6 = scmp.ne.s32.totalorder %s14282_s8, %s13998_s15  ;;  %s1129_s1 = int_to_ptr.vmem [resolvable:$true] %s1128_s1 }
  0xaf   : > { %p14005_p10 = scmp.lt.u32.totalorder %s13998_s15, %s14282_s8 }
  0xb0   : > { %p14001_p8 = pnand %p13999_p6, %p14497_p7 }
  0xb2   : > { %p14002_p9 = pneg %p14001_p8 }
  0xb4   : > { %p14007_p11 = pnand %p14005_p10, %p14002_p9 }
  0xb6   : > { %14010 = shalt.err (!%p14007_p11)
}
  0xb7   : > { %s14011_s22 = scalar_lea.vmem %s1129_s1, 32768  ;;  %p14019_p13 = scmp.lt.s32.totalorder %s1129_s1, %s1129_s1 }
  0xb8   : > { %p14012_p2 = scmp.ne.s32.totalorder %s1129_s1, %s14011_s22  ;;  %p14020_p0 = scmp.lt.s32.totalorder %s14011_s22, %s14011_s22 }
  0xba   : > { %p14014_p3 = pnand %p14012_p2, %p14497_p7  ;;  %p14021_p1 = por %p14020_p0, %p14019_p13 }
  0xbc   : > { %p14015_p12 = pneg %p14014_p3 }
  0xbe   : > { %p14022_p4 = pnand %p14021_p1, %p14015_p12 }
  0xc0   : > { %14025 = shalt.err (!%p14022_p4)
}
  0xc1   : > { %s14215_s26 = smov 4096   ;;  %s14216_s11 = smov 256  }
  0xc2   : > { %13599 = dma.hbm_to_vmem [thread:$0]  (!%p14485_p5), %s14282_s8, 32768, %s1129_s1, [#allocation5], %s14215_s26, %s14215_s26, %s14216_s11  }
  0xc3   : > { %s14217_s12 = smov [#allocation8]   ;;  %s14218_s15 = smov [#allocation11]  }
  0xc4   : > { %s1192_s18 = sshll.u32 %s14217_s12, 4  ;;  %s1220_s3 = sshll.u32 %s14218_s15, 4  ;;  %s1193_s18 = int_to_ptr.vmem [resolvable:$true] %s1192_s18  ;;  %s14570_s3 = int_to_ptr.vmem [resolvable:$true] %s1220_s3 }
  0xc5   : > { %s14026_s22 = scalar_lea.hbm %s14357_s29, 32 }
  0xc6   : > { %p14027_p6 = scmp.ne.s32.totalorder %s14357_s29, %s14026_s22  ;;  %p14033_p10 = scmp.lt.u32.totalorder %s14026_s22, %s14357_s29 }
  0xc8   : > { %p14029_p8 = pnand %p14027_p6, %p14497_p7 }
  0xca   : > { %p14030_p9 = pneg %p14029_p8 }
  0xcc   : > { %p14035_p11 = pnand %p14033_p10, %p14030_p9 }
  0xce   : > { %14038 = shalt.err (!%p14035_p11)
}
  0xcf   : > { %s14039_s9 = scalar_lea.vmem %s1193_s18, 32  ;;  %p14047_p13 = scmp.lt.s32.totalorder %s1193_s18, %s1193_s18 }
  0xd0   : > { %p14040_p2 = scmp.ne.s32.totalorder %s1193_s18, %s14039_s9  ;;  %p14048_p0 = scmp.lt.s32.totalorder %s14039_s9, %s14039_s9 }
  0xd2   : > { %p14042_p3 = pnand %p14040_p2, %p14497_p7  ;;  %p14049_p1 = por %p14048_p0, %p14047_p13 }
  0xd4   : > { %p14043_p12 = pneg %p14042_p3 }
  0xd6   : > { %p14050_p4 = pnand %p14049_p1, %p14043_p12 }
  0xd8   : > { %14053 = shalt.err (!%p14050_p4)
}
  0xd9   : > { %13605 = dma.hbm_to_vmem [thread:$0]  (!%p14485_p5), %s14357_s29, 32, %s1193_s18, [#allocation7]  }
  0xda   : > { %s14054_s1 = scalar_lea.hbm %s14377_s6, 64 }
  0xdb   : > { %p14055_p6 = scmp.ne.s32.totalorder %s14377_s6, %s14054_s1  ;;  %p14061_p10 = scmp.lt.u32.totalorder %s14054_s1, %s14377_s6 }
  0xdd   : > { %p14057_p8 = pnand %p14055_p6, %p14497_p7 }
  0xdf   : > { %p14058_p9 = pneg %p14057_p8 }
  0xe1   : > { %p14063_p11 = pnand %p14061_p10, %p14058_p9 }
  0xe3   : > { %14066 = shalt.err (!%p14063_p11)
}
  0xe4   : > { %s14067_s9 = scalar_lea.vmem %s14570_s3, 64  ;;  %p14075_p13 = scmp.lt.s32.totalorder %s14570_s3, %s14570_s3 }
  0xe5   : > { %p14068_p2 = scmp.ne.s32.totalorder %s14570_s3, %s14067_s9  ;;  %p14076_p0 = scmp.lt.s32.totalorder %s14067_s9, %s14067_s9 }
  0xe7   : > { %p14070_p3 = pnand %p14068_p2, %p14497_p7  ;;  %p14077_p1 = por %p14076_p0, %p14075_p13 }
  0xe9   : > { %p14071_p12 = pneg %p14070_p3 }
  0xeb   : > { %p14078_p4 = pnand %p14077_p1, %p14071_p12 }
  0xed   : > { %14081 = shalt.err (!%p14078_p4)
}
  0xee   : > { %13611 = dma.hbm_to_vmem [thread:$0]  (!%p14485_p5), %s14377_s6, 64, %s14570_s3, [#allocation10]  }
  0xef   : > { %s14219_s26 = smov [#allocation14]   ;;  %s14220_s12 = smov [#allocation17]  }
  0xf0   : > { %s1260_s11 = sshll.u32 %s14219_s26, 4  ;;  %s1294_s18 = sshll.u32 %s14220_s12, 4  ;;  %s1261_s11 = int_to_ptr.vmem [resolvable:$true] %s1260_s11  ;;  %s14597_s18 = int_to_ptr.vmem [resolvable:$true] %s1294_s18 }
  0xf1   : > { %s14082_s15 = scalar_lea.hbm %s14415_s4, 16 }
  0xf2   : > { %p14083_p6 = scmp.ne.s32.totalorder %s14415_s4, %s14082_s15  ;;  %p14089_p10 = scmp.lt.u32.totalorder %s14082_s15, %s14415_s4 }
  0xf4   : > { %p14085_p8 = pnand %p14083_p6, %p14497_p7 }
  0xf6   : > { %p14086_p9 = pneg %p14085_p8 }
  0xf8   : > { %p14091_p11 = pnand %p14089_p10, %p14086_p9 }
  0xfa   : > { %14094 = shalt.err (!%p14091_p11)
}
  0xfb   : > { %s14095_s22 = scalar_lea.vmem %s1261_s11, 16  ;;  %s14102_s3 = scalar_lea.vmem %s1261_s11, 32 }
  0xfc   : > { %p14096_p2 = scmp.ne.s32.totalorder %s1261_s11, %s14095_s22  ;;  %p14103_p13 = scmp.lt.s32.totalorder %s1261_s11, %s1261_s11 }
  0xfd   : > { %p14104_p0 = scmp.lt.s32.totalorder %s14102_s3, %s14095_s22 }
  0xfe   : > { %p14098_p3 = pnand %p14096_p2, %p14497_p7 }
  0xff   : > { %p14105_p1 = por %p14104_p0, %p14103_p13 }
 0x100   : > { %p14099_p12 = pneg %p14098_p3 }
 0x102   : > { %p14106_p4 = pnand %p14105_p1, %p14099_p12 }
 0x104   : > { %14109 = shalt.err (!%p14106_p4)
}
 0x105   : > { %13617 = dma.hbm_to_vmem [thread:$0]  (!%p14485_p5), %s14415_s4, 16, %s1261_s11, [#allocation13]  }
 0x106   : > { %s14110_s1 = scalar_lea.hbm %s14440_s25, 64 }
 0x107   : > { %p14111_p6 = scmp.ne.s32.totalorder %s14440_s25, %s14110_s1  ;;  %p14117_p10 = scmp.lt.u32.totalorder %s14110_s1, %s14440_s25 }
 0x109   : > { %p14113_p8 = pnand %p14111_p6, %p14497_p7 }
 0x10b   : > { %p14114_p9 = pneg %p14113_p8 }
 0x10d   : > { %p14119_p11 = pnand %p14117_p10, %p14114_p9 }
 0x10f   : > { %14122 = shalt.err (!%p14119_p11)
}
 0x110   : > { %s14123_s9 = scalar_lea.vmem %s14597_s18, 64  ;;  %p14131_p13 = scmp.lt.s32.totalorder %s14597_s18, %s14597_s18 }
 0x111   : > { %p14124_p2 = scmp.ne.s32.totalorder %s14597_s18, %s14123_s9  ;;  %p14132_p0 = scmp.lt.s32.totalorder %s14123_s9, %s14123_s9 }
 0x113   : > { %p14126_p3 = pnand %p14124_p2, %p14497_p7  ;;  %p14133_p1 = por %p14132_p0, %p14131_p13 }
 0x115   : > { %p14127_p12 = pneg %p14126_p3 }
 0x117   : > { %p14134_p4 = pnand %p14133_p1, %p14127_p12 }
 0x119   : > { %14137 = shalt.err (!%p14134_p4)
}
 0x11a   : > { %13623 = dma.hbm_to_vmem [thread:$0]  (!%p14485_p5), %s14440_s25, 64, %s14597_s18, [#allocation16]  }
 0x11b   : > { %p17133_p6 = scmp.ne.s32.totalorder %s17130_s0, 0 }
 0x11d   : > { %1339 = sbr.rel (%p17133_p6) target bundleno = 3871 (0xf1f), region = 200 }
 0x124   : > { %p17134_p8 = scmp.eq.s32.totalorder %s14468_s2, 0 }
 0x126   : > { %14143 = dma.done.wait (%p17134_p8), [#allocation5], 32768   ;;  %p17135_p7 = pmov %p17134_p8 }
 0x128   : > { %14145 = vsyncadd (%p17135_p7), [#allocation5], 4294934528  ;;  %p17136_p9 = pmov %p17135_p7 }
 0x129   : > { %p17137_p10 = pmov %p17135_p7 }
 0x12a   : > { %14147 = dma.done.wait (%p17136_p9), [#allocation7], 64  }
 0x12b   : > { %14149 = vsyncadd (%p17137_p10), [#allocation7], 4294967232  ;;  %p17138_p11 = pmov %p17135_p7 }
 0x12c   : > { %p17139_p5 = pmov %p17135_p7 }
 0x12d   : > { %14151 = dma.done.wait (%p17138_p11), [#allocation10], 128  }
 0x12e   : > { %14153 = vsyncadd (%p17139_p5), [#allocation10], 4294967168  ;;  %p17140_p2 = pmov %p17139_p5 }
 0x130   : > { %14155 = dma.done.wait (%p17140_p2), [#allocation13], 32   ;;  %p17141_p3 = pmov %p17140_p2 }
 0x131   : > { %p17142_p12 = pmov %p17140_p2 }
 0x132   : > { %14157 = vsyncadd (%p17141_p3), [#allocation13], 4294967264 }
 0x133   : > { %14159 = dma.done.wait (%p17142_p12), [#allocation16], 128   ;;  %p17143_p13 = pmov %p17140_p2 }
 0x134   : > { %p1488_p0 = scmp.lt.s32.totalorder %s14468_s2, 1  ;;  %v17042_v1 = vmov 0   ;;  %v17048_v2 = vmov 4   ;;  %vm1533_vm0 = vcmask 785408   ;;  %v1519_v11 = vld [vmem:[%s14287_s14] sm:$0xff]  ;;  %vm1653_vm1 = vcmask 1043456  }
 0x135   : > { %14161 = vsyncadd (%p17143_p13), [#allocation16], 4294967168  ;;  %13719 = vset.pattern.permute.xlu0 %v17042_v1  ;;  %13720 = vset.pattern.permute.xlu1 %v17048_v2  ;;  %v1521_v12 = vld [vmem:[%s14292_s19] sm:$0xff]  ;;  %v1522_v17 = vld [vmem:[%s14292_s19 + $0x8] sm:$0xf]  ;;  %v17056_v32 = vmov 1  }
 0x136   : > { %s17424_s2 = smov (!%p1488_p0, %s14468_s2), 1  ;;  %12089 = vmatprep.mubr.msk.f32.mxu0 %vm1533_vm0, %v1519_v11  ;;  %v14684_v14 = vld [vmem:[%s14297_s24] sm:$0xff]  ;;  %1525 = vperm.xlu0 %13719, %v1521_v12   ;;  %v14695_v18 = vld [vmem:[%s14297_s24 + $0x8] sm:$0xf]  ;;  %v17060_v33 = vmov 2   ;;  %v17054_v34 = vmov 3  }
 0x137   : > { %s13559_s0 = smul.u32 96, %s17424_s2  ;;  %1621 = vperm.xlu1 %13720, %v14684_v14   ;;  %v1631_v22 = vld [vmem:[%s14302_s30] sm:$0xff]  ;;  %v1632_v23 = vld [vmem:[%s14302_s30 + $0x8] sm:$0xf]  ;;  %v17058_v35 = vmov 5   ;;  %v17046_v36 = vmov 6  }
 0x138   : > { %v1520_v28 = vld [vmem:[%s14287_s14 + $0x8] sm:$0xf]  ;;  %v14724_v29 = vld [vmem:[%s14257_s17] sm:$0xf]  ;;  %v14738_v31 = vld [vmem:[%s14257_s17 + $0x4] sm:$0xf] }
 0x139   : > { %s14654_s21 = scalar_lea.vmem %s14242_s5, %s13559_s0  ;;  %v14727_v30 = vld [vmem:[%s14257_s17 + $0x20] sm:$0xf]  ;;  %12092 = vmatprep.subr.msk.mxu1 %vm1653_vm1, %v14724_v29  ;;  %v17062_v37 = vmov 8   ;;  %v17044_v38 = vmov 7   ;;  %vm1646_vm2 = vcmask 31744   ;;  %v17050_v53 = vmov 0.0|0.0  }
 0x13a   : > { %v14657_v3 = vld [vmem:[%s14654_s21] sm:$0xff]  ;;  %v14660_v4 = vld [vmem:[%s14654_s21 + $0x8] sm:$0xff]  ;;  %v14663_v5 = vld [vmem:[%s14654_s21 + $0x10] sm:$0xff]  ;;  %1530 = vperm.xlu0 %13719, %v1522_v17   ;;  %12093 = vmatpush3.msk.msra.mxu1 %vm1653_vm1, %v14724_v29  ;;  %vm14231_vm3 = vmmov 0   ;;  %v17052_v54 = vmov 0.0   ;;  %vm14233_vm4 = vmmov 1  }
 0x13b   : > { %v12942_v6 = vpack.c.bf16 %v14660_v4, %v14657_v3  ;;  %v14668_v7 = vld [vmem:[%s14654_s21 + $0x18] sm:$0xff]  ;;  %v14673_v9 = vld [vmem:[%s14654_s21 + $0x20] sm:$0xff]  ;;  %v14676_v10 = vld [vmem:[%s14654_s21 + $0x28] sm:$0xff]  ;;  %1626 = vperm.xlu1 %13720, %v14695_v18   ;;  %12097 = vmatprep.subr.msk.mxu1 %vm1653_vm1, %v14738_v31  ;;  %vm2415_vm7 = vcmask 97280   ;;  %s17149_s10 = sld [smem:[#allocation30_spill]]  ;;  %s17150_s26 = sld [smem:[#allocation31_spill]] }
 0x13c   : > { %v12946_v8 = vpack.c.bf16 %v14668_v7, %v14663_v5  ;;  %v12950_v13 = vpack.c.bf16 %v14676_v10, %v14673_v9  ;;  %v14687_v15 = vld [vmem:[%s14654_s21 + $0x30] sm:$0xff]  ;;  %v14690_v16 = vld [vmem:[%s14654_s21 + $0x38] sm:$0xff]  ;;  %v14700_v20 = vld [vmem:[%s14654_s21 + $0x40] sm:$0xff]  ;;  %s17151_s11 = sld [smem:[#allocation32_spill]]  ;;  %s17152_s12 = sld [smem:[#allocation33_spill]]  ;;  %vm2606_vm12 = vcmask 195584  }
 0x13d   : > { %12943 = vmatprep.subr.bf16.mxu0 %v12942_v6  ;;  %v12954_v19 = vpack.c.bf16 %v14690_v16, %v14687_v15  ;;  %v14703_v21 = vld [vmem:[%s14654_s21 + $0x48] sm:$0xff]  ;;  %v14711_v25 = vld [vmem:[%s14654_s21 + $0x50] sm:$0xff]  ;;  %v14714_v26 = vld [vmem:[%s14654_s21 + $0x58] sm:$0xff]  ;;  %s17153_s18 = sld [smem:[#allocation34_spill]]  ;;  %s17158_s15 = sld [smem:[#allocation29_spill]]  ;;  %vm3313_vm14 = vcmask 1042432  }
 0x13e   : > { %12945 = vmatpush3.bf16.msra.mxu0 %v12942_v6  ;;  %v12958_v24 = vpack.c.bf16 %v14703_v21, %v14700_v20  ;;  %1635 = vperm.xlu0 %13719, %v1631_v22   ;;  %v12962_v27 = vpack.c.bf16 %v14714_v26, %v14711_v25  ;;  %v14779_v47 = vld [vmem:[%s14257_s17 + $0x8] sm:$0xf]  ;;  %v14794_v49 = vld [vmem:[%s14257_s17 + $0xc] sm:$0xf]  ;;  %v14805_v50 = vld [vmem:[%s14257_s17 + $0x14] sm:$0xf] }
 0x13f   : > { %12947 = vmatprep.subr.bf16.mxu0 %v12946_v8  ;;  %13721 = vset.pattern.permute.xlu1 %v17042_v1  ;;  %v14816_v51 = vld [vmem:[%s14257_s17 + $0x18] sm:$0xf]  ;;  %v14827_v52 = vld [vmem:[%s14257_s17 + $0x1c] sm:$0xf]  ;;  %vm14860_vm5 = vmpackc.low %vm1653_vm1, %vm14233_vm4  ;;  %s17197_s22 = sld [smem:[#allocation23_spill]]  ;;  %s11623_s3 = sshll.u32 %s17424_s2, 4 }
 0x140   : > { %1640 = vperm.xlu1 %13721, %v1632_v23   ;;  %s17203_s9 = sld [smem:[#allocation37_spill]]  ;;  %s17229_s0 = sld [smem:[#allocation25_spill]]  ;;  %vm3309_vm15 = vcmask 23552   ;;  %vm5425_vm4 = vcmask 130048  }
 0x142   : > { %12949 = vmatpush3.bf16.msra.mxu0 %v12946_v8  ;;  %1733 = vperm.xlu0 %13719, %v14684_v14  }
 0x143   : > { %12951 = vmatprep.subr.bf16.mxu0 %v12950_v13 }
 0x144   : > { %1737 = vperm.xlu1 %13721, %v14695_v18  }
 0x145   : > { %s15366_s1 = scalar_lea.vmem %s17197_s22, %s11623_s3  ;;  %s17368_s22 = sld [smem:[#allocation36_spill]] }
 0x146   : > { %12953 = vmatpush3.bf16.msra.mxu0 %v12950_v13  ;;  %13722 = vset.pattern.permute.xlu0 %v17056_v32  ;;  %s17401_s3 = sld [smem:[#allocation35_spill]] }
 0x147   : > { %12955 = vmatprep.subr.bf16.mxu0 %v12954_v19  ;;  %1825 = vperm.xlu0 %13722, %v14684_v14  }
 0x148   : > { %13723 = vset.pattern.permute.xlu1 %v17056_v32 }
 0x149   : > { %1829 = vperm.xlu1 %13723, %v14695_v18  }
 0x14a   : > { %12957 = vmatpush3.bf16.msra.mxu0 %v12954_v19 }
 0x14b   : > { %12959 = vmatprep.subr.bf16.mxu0 %v12958_v24  ;;  %13725 = vset.pattern.permute.xlu0 %v17060_v33 }
 0x14c   : > { %1921 = vperm.xlu0 %13725, %v14695_v18  }
 0x14d   : > { %13724 = vset.pattern.permute.xlu1 %v17060_v33 }
 0x14e   : > { %12961 = vmatpush3.bf16.msra.mxu0 %v12958_v24  ;;  %1917 = vperm.xlu1 %13724, %v14684_v14  }
 0x14f   : > { %12963 = vmatprep.subr.bf16.mxu0 %v12962_v27 }
 0x150   : > { %13727 = vset.pattern.permute.xlu0 %v17058_v35 }
 0x151   : > { %2101 = vperm.xlu0 %13727, %v14684_v14  }
 0x152   : > { %12965 = vmatpush3.bf16.msra.mxu0 %v12962_v27  ;;  %13726 = vset.pattern.permute.xlu1 %v17054_v34 }
 0x153   : > { %12127 = vmatprep.subr.msk.mxu0 %vm1653_vm1, %v14727_v30  ;;  %2009 = vperm.xlu1 %13726, %v14684_v14  }
 0x155   : > { %12090 = vmatmul.mubr.msk.f32.vlgmr.msra.gmra.mrb[0].mxu0 %vm1533_vm0, %v1520_v28  ;;  %13730 = vset.pattern.permute.xlu0 %v17046_v36 }
 0x156   : > { %12128 = vmatpush3.msk.msra.mxu0 %vm1653_vm1, %v14727_v30  ;;  %2197 = vperm.xlu0 %13730, %v14695_v18  }
 0x157   : > { %2013 = vperm.xlu1 %13726, %v14695_v18   ;;  %12966 = vmatprep.subr.bf16.mxu0 %v17050_v53 }
 0x15a   : > { %13732 = vset.pattern.permute.xlu0 %v17062_v37 }
 0x15b   : > { %13728 = vset.pattern.permute.xlu1 %v17058_v35  ;;  %2377 = vperm.xlu0 %13732, %v14684_v14  }
 0x15c   : > { %2105 = vperm.xlu1 %13728, %v14695_v18  }
 0x15f   : > { %13735 = vset.pattern.permute.xlu0 %v17048_v2 }
 0x160   : > { %13729 = vset.pattern.permute.xlu1 %v17046_v36 }
 0x161   : > { %2193 = vperm.xlu1 %13729, %v14684_v14  }
 0x165   : > { %13731 = vset.pattern.permute.xlu1 %v17044_v38 }
 0x166   : > { %2285 = vperm.xlu1 %13731, %v14684_v14  }
 0x16a   : > { %2289 = vperm.xlu1 %13731, %v14695_v18  }
 0x16e   : > { %13733 = vset.pattern.permute.xlu1 %v17062_v37 }
 0x16f   : > { %2381 = vperm.xlu1 %13733, %v14695_v18  }
 0x173   : > { %13734 = vset.pattern.permute.xlu1 %v17042_v1 }
 0x1b5   : > { %v1526_v39 = vpop.permute.xlu0 %1525 }
 0x1b6   : > { %v1622_v55 = vpop.permute.xlu1 %1621 }
 0x1b9   : > { %v1531_v40 = vpop.permute.xlu0 %1530 }
 0x1ba   : > { %v1627_v56 = vpop.permute.xlu1 %1626 }
 0x1bd   : > { %v1636_v62 = vpop.permute.xlu0 %1635 }
 0x1bf   : > { %v1641_v57 = vpop.permute.xlu1 %1640 }
 0x1c1   : > { %v1734_v0 = vpop.permute.xlu0 %1733 }
 0x1c3   : > { %v1738_v58 = vpop.permute.xlu1 %1737 }
 0x1c6   : > { %v1826_v12 = vpop.permute.xlu0 %1825 }
 0x1c8   : > { %v1830_v59 = vpop.permute.xlu1 %1829 }
 0x1cd   : > { %v1918_v60 = vpop.permute.xlu1 %1917 }
 0x1d2   : > { %v2010_v61 = vpop.permute.xlu1 %2009 }
 0x1d6   : > { %v2014_v63 = vpop.permute.xlu1 %2013 }
 0x1db   : > { %v2106_v11 = vpop.permute.xlu1 %2105 }
 0x228   : > { %v12091_v41 = vpop.f32.mrb[0].mxu0 }
 0x229   : > { %v1612_v42 = vadd.f32 %v12091_v41, %v1531_v40  ;;  %v1606_v43 = vpop.f32.mrb[1].mxu0 }
 0x22a   : > { %v1607_v44 = vadd.f32 %v1606_v43, %v1526_v39 }
 0x22b   : > { %v14770_v45 = vmax.f32 %v1612_v42, 0.0  ;;  %v2194_v42 = vpop.permute.xlu1 %2193 }
 0x22c   : > { %v14772_v46 = vmax.f32 %v1607_v44, 0.0  ;;  %v1922_v44 = vpop.permute.xlu0 %1921 }
 0x22d   : > { %v1630_v6 = vmul.f32 %v1627_v56, %v14770_v45 }
 0x22e   : > { %12094 = vmatprep.mubr.msk.f32.mxu1 %vm1646_vm2, %v14772_v46  ;;  %12129 = vmatprep.mubr.msk.f32.mxu0 %vm1646_vm2, %v14772_v46  ;;  %v12971_v48 = vpack.c.bf16 %v14770_v45, %v14772_v46  ;;  %v1629_v8 = vmul.f32 %v1622_v55, %v14772_v46 }
 0x22f   : > { %12095 = vmatmul.mubr.msk.f32.vlgmr.msra.gmra.mrb[0].mxu1 %vm1646_vm2, %v14770_v45  ;;  %12130 = vmatmul.mubr.msk.f32.vlgmr.msra.gmra.mrb[2].mxu0 %vm1646_vm2, %v14770_v45  ;;  %v1644_v17 = vadd.f32 %v1641_v57, %v1630_v6 }
 0x230   : > { %12099 = vmatprep.mubr.msk.f32.mxu1 %vm1646_vm2, %v14772_v46  ;;  %12098 = vmatpush3.msk.msra.mxu1 %vm1653_vm1, %v14738_v31  ;;  %v1643_v23 = vadd.f32 %v1636_v62, %v1629_v8  ;;  %v2102_v62 = vpop.permute.xlu0 %2101 }
 0x231   : > { %12102 = vmatprep.subr.msk.mxu1 %vm1653_vm1, %v14779_v47  ;;  %12136 = vmatprep.mubr.msk.f32.mxu0 %vm14231_vm3, %v17052_v54 }
 0x233   : > { %12100 = vmatmul.mubr.msk.f32.vlgmr.msra.gmra.mrb[2].mxu1 %vm1646_vm2, %v14770_v45 }
 0x234   : > { %12104 = vmatprep.mubr.msk.f32.mxu1 %vm1646_vm2, %v14772_v46  ;;  %12103 = vmatpush3.msk.msra.mxu1 %vm1653_vm1, %v14779_v47 }
 0x235   : > { %12107 = vmatprep.subr.msk.mxu1 %vm1653_vm1, %v14794_v49 }
 0x237   : > { %12105 = vmatmul.mubr.msk.f32.vlgmr.msra.gmra.mrb[4].mxu1 %vm1646_vm2, %v14770_v45 }
 0x238   : > { %12109 = vmatprep.mubr.msk.f32.mxu1 %vm1646_vm2, %v14772_v46  ;;  %12108 = vmatpush3.msk.msra.mxu1 %vm1653_vm1, %v14794_v49 }
 0x239   : > { %12112 = vmatprep.subr.msk.mxu1 %vm1653_vm1, %v14805_v50 }
 0x23b   : > { %12110 = vmatmul.mubr.msk.f32.vlgmr.msra.gmra.mrb[6].mxu1 %vm1646_vm2, %v14770_v45 }
 0x23c   : > { %12114 = vmatprep.mubr.msk.f32.mxu1 %vm1646_vm2, %v14772_v46  ;;  %12113 = vmatpush3.msk.msra.mxu1 %vm1653_vm1, %v14805_v50 }
 0x23d   : > { %12117 = vmatprep.subr.msk.mxu1 %vm1653_vm1, %v14816_v51 }
 0x23f   : > { %12115 = vmatmul.mubr.msk.f32.vlgmr.msra.gmra.mrb[8].mxu1 %vm1646_vm2, %v14770_v45 }
 0x240   : > { %12119 = vmatprep.mubr.msk.f32.mxu1 %vm1646_vm2, %v14772_v46  ;;  %12118 = vmatpush3.msk.msra.mxu1 %vm1653_vm1, %v14816_v51 }
 0x241   : > { %12122 = vmatprep.subr.msk.mxu1 %vm1653_vm1, %v14827_v52 }
 0x243   : > { %12120 = vmatmul.mubr.msk.f32.vlgmr.msra.gmra.mrb[10].mxu1 %vm1646_vm2, %v14770_v45 }
 0x244   : > { %12124 = vmatprep.mubr.msk.f32.mxu1 %vm1646_vm2, %v14772_v46  ;;  %12123 = vmatpush3.msk.msra.mxu1 %vm1653_vm1, %v14827_v52 }
 0x245   : > { %13534 = vmatprep.subr.bf16.mxu1 %v17050_v53 }
 0x247   : > { %12125 = vmatmul.mubr.msk.f32.vlgmr.msra.gmra.mrb[12].mxu1 %vm1646_vm2, %v14770_v45 }
 0x248   : > { %12142 = vmatprep.mubr.msk.f32.mxu1 %vm14231_vm3, %v17052_v54 }
 0x302   : > { %v12096_v13 = vpop.f32.mrb[0].mxu1  ;;  %v12131_v14 = vpop.f32.mrb[2].mxu0 }
 0x303   : > { %v1741_v18 = vmul.f32 %v12096_v13, %v1738_v58  ;;  %v1723_v19 = vpop.f32.mrb[1].mxu1  ;;  %v2367_v22 = vpop.f32.mrb[3].mxu0 }
 0x304   : > { %v1740_v24 = vmul.f32 %v1734_v0, %v1723_v19  ;;  %v2286_v58 = vpop.permute.xlu1 %2285 }
 0x305   : > { %v1743_v27 = vadd.f32 %v1741_v18, %v1644_v17 }
 0x306   : > { %v1742_v28 = vadd.f32 %v1740_v24, %v1643_v23  ;;  %v12101_v39 = vpop.f32.mrb[2].mxu1 }
 0x307   : > { %v1833_v40 = vmul.f32 %v12101_v39, %v1830_v59  ;;  %v1815_v41 = vpop.f32.mrb[3].mxu1 }
 0x308   : > { %v1832_v43 = vmul.f32 %v1826_v12, %v1815_v41  ;;  %v2290_v24 = vpop.permute.xlu1 %2289 }
 0x309   : > { %v1835_v56 = vadd.f32 %v1833_v40, %v1743_v27 }
 0x30a   : > { %v1834_v55 = vadd.f32 %v1832_v43, %v1742_v28  ;;  %v12106_v1 = vpop.f32.mrb[4].mxu1  ;;  %v2198_v28 = vpop.permute.xlu0 %2197 }
 0x30b   : > { %v1925_v38 = vmul.f32 %v12106_v1, %v1922_v44  ;;  %v1907_v36 = vpop.f32.mrb[5].mxu1 }
 0x30c   : > { %v1924_v2 = vmul.f32 %v1918_v60, %v1907_v36  ;;  %v2390_v60 = vlaneseq  ;;  %v2382_v43 = vpop.permute.xlu1 %2381 }
 0x30d   : > { %v1927_v57 = vadd.f32 %v1925_v38, %v1835_v56 }
 0x30e   : > { %v1926_v6 = vadd.f32 %v1924_v2, %v1834_v55  ;;  %v12111_v13 = vpop.f32.mrb[6].mxu1 }
 0x30f   : > { %v2017_v0 = vmul.f32 %v12111_v13, %v2014_v63  ;;  %v1999_v8 = vpop.f32.mrb[7].mxu1  ;;  %v2385_v13 = vmul.f32 %v12131_v14, %v2382_v43  ;;  %v17157_v43 = vmov 0  }
 0x310   : > { %v2016_v17 = vmul.f32 %v2010_v61, %v1999_v8  ;;  %v2378_v61 = vpop.permute.xlu0 %2377 }
 0x311   : > { %v2019_v18 = vadd.f32 %v2017_v0, %v1927_v57  ;;  %v14853_v57 = vshrl.u32 %v2390_v60, 7  ;;  %v2384_v0 = vmul.f32 %v2378_v61, %v2367_v22  ;;  %v14955_v61 = vld [vmem:[%s17152_s12 + $0x20] sm:$0xff] }
 0x312   : > { %v2018_v59 = vadd.f32 %v2016_v17, %v1926_v6  ;;  %v12116_v19 = vpop.f32.mrb[8].mxu1 }
 0x313   : > { %v2109_v23 = vmul.f32 %v12116_v19, %v2106_v11  ;;  %v2091_v12 = vpop.f32.mrb[9].mxu1  ;;  %17144 = vst [vmem:[#allocation50_spill] sm:$0xff] %v14853_v57  ;;  %v14855_v11 = vand.u32 127, %v2390_v60  ;;  %v2392_v14 = vadd.s32 8, %v14853_v57  ;;  %v14930_v60 = vld [vmem:[%s17152_s12] sm:$0xff] }
 0x314   : > { %v2108_v27 = vmul.f32 %v2102_v62, %v2091_v12  ;;  %v17145_v12 = vmov 0 }
 0x315   : > { %v2111_v39 = vadd.f32 %v2109_v23, %v2019_v18  ;;  %v2393_v18 = vadd.s32 16, %v14853_v57  ;;  %v17146_v12 = vsel %vm14860_vm5, 4294967295, %v17145_v12  ;;  %vm2396_vm8 = vcmp.eq.s32.totalorder %v14853_v57, %v14855_v11 }
 0x316   : > { %v2110_v1 = vadd.f32 %v2108_v27, %v2018_v59  ;;  %v12121_v40 = vpop.f32.mrb[10].mxu1  ;;  %17147 = vst [vmem:[#allocation51_spill] sm:$0xff] %v17146_v12  ;;  %vm2397_vm10 = vcmp.eq.s32.totalorder %v2392_v14, %v14855_v11 }
 0x317   : > { %v2201_v36 = vmul.f32 %v12121_v40, %v2198_v28  ;;  %v2183_v38 = vpop.f32.mrb[11].mxu1  ;;  %v11325_v45 = vsel %vm2397_vm10, 1.0, %v17052_v54  ;;  %vm2398_vm11 = vcmp.eq.s32.totalorder %v2393_v18, %v14855_v11  ;;  %v2680_v28 = vld [vmem:[%s17150_s26] sm:$0x7]  ;;  %v17155_v40 = vmov 6   ;;  %s17288_s26 = sld [smem:[#allocation42_spill]] }
 0x318   : > { %v2200_v2 = vmul.f32 %v2194_v42, %v2183_v38  ;;  %v2405_v42 = vadd.s32 12, %v14855_v11  ;;  %v11326_v46 = vsel %vm2398_vm11, 1.0, %v17052_v54  ;;  %2683 = vperm.xlu0 %13735, %v2680_v28   ;;  %v17156_v38 = vmov 7  }
 0x319   : > { %v2203_v41 = vadd.f32 %v2201_v36, %v2111_v39  ;;  %v14919_v39 = vld [vmem:[%s17152_s12 + $0x18] sm:$0xff]  ;;  %v14925_v36 = vld [vmem:[%s17152_s12 + $0x30] sm:$0xff] }
 0x31a   : > { %v2202_v63 = vadd.f32 %v2200_v2, %v2110_v1  ;;  %v12126_v44 = vpop.f32.mrb[12].mxu1  ;;  %vm2408_vm6 = vcmp.eq.s32.totalorder %v2393_v18, %v2405_v42  ;;  %vm2407_vm9 = vcmp.eq.s32.totalorder %v2392_v14, %v2405_v42  ;;  %v17154_v1 = vmov 4   ;;  %v14935_v2 = vld [vmem:[%s17152_s12 + $0x8] sm:$0xff] }
 0x31b   : > { %v2293_v56 = vmul.f32 %v12126_v44, %v2290_v24  ;;  %v2275_v55 = vpop.f32.mrb[13].mxu1  ;;  %v11328_v22 = vsel %vm2408_vm6, 1.0, %v17052_v54  ;;  %v14884_v24 = vsel %vm2396_vm8, 1.0, %v17052_v54  ;;  %v11327_v27 = vsel %vm2407_vm9, 1.0, %v17052_v54  ;;  %v3548_v44 = vld [vmem:[%s17153_s18 + $0x18] sm:$0xff] }
 0x31c   : > { %v2292_v6 = vmul.f32 %v2286_v58, %v2275_v55  ;;  %17148 = vst [vmem:[#allocation52_spill] sm:$0xff] %v14884_v24  ;;  %13736 = vset.pattern.permute.xlu0 %v17056_v32  ;;  %v3549_v55 = vld [vmem:[%s17153_s18 + $0x20] sm:$0xff]  ;;  %vm6073_vm8 = vcmask 15360   ;;  %vm8022_vm9 = vcmask 523264  }
 0x31d   : > { %v2295_v62 = vadd.f32 %v2293_v56, %v2203_v41  ;;  %2844 = vperm.xlu0 %13736, %v2680_v28   ;;  %v3546_v41 = vld [vmem:[%s17153_s18 + $0x8] sm:$0xff] }
 0x31e   : > { %v2294_v8 = vadd.f32 %v2292_v6, %v2202_v63  ;;  %v14942_v63 = vld [vmem:[%s17152_s12 + $0x10] sm:$0xff]  ;;  %v14960_v56 = vld [vmem:[%s17152_s12 + $0x28] sm:$0xff] }
 0x31f   : > { %v2387_v17 = vadd.f32 %v2385_v13, %v2295_v62  ;;  %v3550_v6 = vld [vmem:[%s17153_s18 + $0x28] sm:$0xff] }
 0x320   : > { %v2386_v59 = vadd.f32 %v2384_v0, %v2294_v8 }
 0x321   : > { %v2389_v19 = vmax.f32 %v2387_v17, 0.0  ;;  %13739 = vset.pattern.permute.xlu0 %v17058_v35 }
 0x322   : > { %v2388_v23 = vmax.f32 %v2386_v59, 0.0  ;;  %3072 = vperm.xlu0 %13739, %v2680_v28  }
 0x324   : > { %v12967_v58 = vpack.c.bf16 %v2389_v19, %v2388_v23 }
 0x326   : > { %12969 = vmatpush3.bf16.msk.msra.mxu0 %vm14860_vm5, %v12967_v58  ;;  %13535 = vmatpush3.bf16.msk.msra.mxu1 %vm14860_vm5, %v12967_v58 }
 0x327   : > { %12970 = vmatprep.subr.bf16.mxu1 %v17050_v53  ;;  %12974 = vmatprep.subr.bf16.mxu0 %v17050_v53 }
 0x328   : > { %13742 = vset.pattern.permute.xlu0 %v17062_v37 }
 0x329   : > { %12143 = vmatmul.mubr.msk.f32.vlgmr.msra.gmra.mrb[14].mxu1 %vm2415_vm7, %v11328_v22  ;;  %12137 = vmatmul.mubr.f32.vlgmr.msra.gmra.mrb[4].mxu0 %v17052_v54 }
 0x32a   : > { %12973 = vmatpush3.bf16.msk.msra.mxu1 %vm14860_vm5, %v12971_v48  ;;  %12149 = vmatprep.mubr.msk.f32.mxu1 %vm14231_vm3, %v17052_v54  ;;  %v2600_v48 = vld [vmem:[%s17149_s10] sm:$0x7]  ;;  %s17282_s10 = sld [smem:[#allocation40_spill]] }
 0x32b   : > { %12139 = vmatprep.mubr.msk.f32.mxu0 %vm14231_vm3, %v17052_v54  ;;  %12192 = vmatprep.subr.mxu1 %v17052_v54 }
 0x32c   : > { %2603 = vperm.xlu1 %13734, %v2600_v48   ;;  %3300 = vperm.xlu0 %13742, %v2680_v28   ;;  %v15008_v48 = vld [vmem:[%s17152_s12 + $0x48] sm:$0xff] }
 0x32d   : > { %12150 = vmatmul.mubr.msk.f32.vlgmr.msra.gmra.mrb[16].mxu1 %vm2415_vm7, %v14884_v24  ;;  %12140 = vmatmul.mubr.msk.f32.gmra.mrb[6].mxu0 %vm2415_vm7, %v11327_v27  ;;  %v14977_v27 = vld [vmem:[%s17152_s12 + $0x38] sm:$0xff]  ;;  %v17173_v24 = vmov 1  }
 0x32e   : > { %12152 = vmatprep.mubr.msk.f32.mxu1 %vm14231_vm3, %v17052_v54  ;;  %12164 = vmatprep.mubr.msk.f32.mxu0 %vm14231_vm3, %v17052_v54 }
 0x32f   : > { %12193 = vmatpush3.msk.msra.mxu1 %vm1653_vm1, %v14816_v51  ;;  %v2687_v51 = vld [vmem:[%s17151_s11] sm:$0x7]  ;;  %s17290_s11 = sld [smem:[#allocation41_spill]] }
 0x330   : > { %12202 = vmatprep.subr.mxu1 %v17052_v54  ;;  %2690 = vperm.xlu1 %13734, %v2687_v51  }
 0x331   : > { %12153 = vmatmul.mubr.msk.f32.gmra.mrb[18].mxu1 %vm2415_vm7, %v11325_v45  ;;  %13746 = vset.pattern.permute.xlu0 %v17154_v1  ;;  %v2599_v45 = vld [vmem:[%s17158_s15] sm:$0x7]  ;;  %s17294_s15 = sld [smem:[#allocation43_spill]] }
 0x332   : > { %12155 = vmatprep.mubr.msk.f32.mxu1 %vm14231_vm3, %v17052_v54  ;;  %3490 = vperm.xlu0 %13746, %v14919_v39  }
 0x334   : > { %2768 = vperm.xlu1 %13734, %v2680_v28  }
 0x335   : > { %12156 = vmatmul.mubr.msk.f32.gmra.mrb[14].mxu1 %vm2415_vm7, %v11326_v46  ;;  %v3551_v46 = vld [vmem:[%s17153_s18 + $0x30] sm:$0xff] }
 0x336   : > { %12194 = vmatprep.mubr.msk.f32.mxu1 %vm14231_vm3, %v17052_v54  ;;  %3505 = vperm.xlu0 %13746, %v14925_v36  }
 0x338   : > { %13737 = vset.pattern.permute.xlu1 %v17060_v33 }
 0x339   : > { %2920 = vperm.xlu1 %13737, %v2680_v28  }
 0x33d   : > { %13738 = vset.pattern.permute.xlu1 %v17054_v34 }
 0x33e   : > { %2996 = vperm.xlu1 %13738, %v2680_v28  }
 0x342   : > { %13740 = vset.pattern.permute.xlu1 %v17155_v40 }
 0x343   : > { %3148 = vperm.xlu1 %13740, %v2680_v28  }
 0x347   : > { %13741 = vset.pattern.permute.xlu1 %v17156_v38 }
 0x348   : > { %3224 = vperm.xlu1 %13741, %v2680_v28  }
 0x34c   : > { %13743 = vset.pattern.permute.xlu1 %v17154_v1 }
 0x34d   : > { %3475 = vperm.xlu1 %13743, %v14930_v60  }
 0x351   : > { %3480 = vperm.xlu1 %13743, %v14935_v2  }
 0x355   : > { %13744 = vset.pattern.permute.xlu1 %v17157_v43 }
 0x356   : > { %3564 = vperm.xlu1 %13744, %v3546_v41  }
 0x35a   : > { %3791 = vperm.xlu1 %13744, %v14930_v60  }
 0x35e   : > { %13745 = vset.pattern.permute.xlu1 %v17154_v1 }
 0x35f   : > { %3485 = vperm.xlu1 %13745, %v14942_v63  }
 0x363   : > { %13747 = vset.pattern.permute.xlu1 %v17056_v32 }
 0x364   : > { %3988 = vperm.xlu1 %13747, %v14930_v60  }
 0x368   : > { %3992 = vperm.xlu1 %13747, %v14935_v2  }
 0x36c   : > { %13748 = vset.pattern.permute.xlu1 %v17157_v43 }
 0x36d   : > { %3574 = vperm.xlu1 %13748, %v3548_v44  }
 0x371   : > { %3799 = vperm.xlu1 %13748, %v14942_v63  }
 0x375   : > { %13749 = vset.pattern.permute.xlu1 %v17060_v33 }
 0x376   : > { %4185 = vperm.xlu1 %13749, %v14930_v60  }
 0x37a   : > { %13750 = vset.pattern.permute.xlu1 %v17154_v1 }
 0x37b   : > { %3495 = vperm.xlu1 %13750, %v14955_v61  }
 0x37f   : > { %3500 = vperm.xlu1 %13750, %v14960_v56  }
 0x383   : > { %13751 = vset.pattern.permute.xlu1 %v17056_v32 }
 0x384   : > { %4000 = vperm.xlu1 %13751, %v14919_v39  }
 0x388   : > { %13752 = vset.pattern.permute.xlu1 %v17054_v34 }
 0x389   : > { %4382 = vperm.xlu1 %13752, %v14930_v60  }
 0x38d   : > { %13753 = vset.pattern.permute.xlu1 %v17157_v43 }
 0x38e   : > { %3579 = vperm.xlu1 %13753, %v3549_v55  }
 0x392   : > { %3584 = vperm.xlu1 %13753, %v3550_v6  }
 0x396   : > { %3811 = vperm.xlu1 %13753, %v14960_v56  }
 0x39a   : > { %13754 = vset.pattern.permute.xlu1 %v17060_v33 }
 0x39b   : > { %4193 = vperm.xlu1 %13754, %v14942_v63  }
 0x39f   : > { %13755 = vset.pattern.permute.xlu1 %v17058_v35 }
 0x3a0   : > { %4579 = vperm.xlu1 %13755, %v14930_v60  }
 0x3a4   : > { %4583 = vperm.xlu1 %13755, %v14935_v2  }
 0x3a8   : > { %13756 = vset.pattern.permute.xlu1 %v17154_v1 }
 0x3a9   : > { %3510 = vperm.xlu1 %13756, %v14977_v27  }
 0x3ab   : > { %v15021_v28 = vpop.permute.xlu1 %2603 }
 0x3ad   : > { %13757 = vset.pattern.permute.xlu1 %v17056_v32 }
 0x3ae   : > { %4004 = vperm.xlu1 %13757, %v14955_v61  }
 0x3af   : > { %v15024_v51 = vpop.permute.xlu1 %2690 }
 0x3b2   : > { %13758 = vset.pattern.permute.xlu1 %v17054_v34 }
 0x3b3   : > { %4390 = vperm.xlu1 %13758, %v14942_v63   ;;  %v15026_v41 = vpop.permute.xlu1 %2768 }
 0x3b7   : > { %4394 = vperm.xlu1 %13758, %v14919_v39  }
 0x3b8   : > { %v15028_v44 = vpop.permute.xlu1 %2920 }
 0x3bb   : > { %13759 = vset.pattern.permute.xlu1 %v17155_v40 }
 0x3bc   : > { %4780 = vperm.xlu1 %13759, %v14935_v2  }
 0x3bd   : > { %v15030_v55 = vpop.permute.xlu1 %2996 }
 0x3c0   : > { %13760 = vset.pattern.permute.xlu1 %v17157_v43 }
 0x3c1   : > { %3589 = vperm.xlu1 %13760, %v3551_v46   ;;  %v15070_v46 = vld [vmem:[%s17152_s12 + $0x50] sm:$0xff] }
 0x3c2   : > { %v15032_v6 = vpop.permute.xlu1 %3148 }
 0x3c5   : > { %3815 = vperm.xlu1 %13760, %v14925_v36  }
 0x3c9   : > { %3819 = vperm.xlu1 %13760, %v14977_v27  }
 0x3cd   : > { %13761 = vset.pattern.permute.xlu1 %v17060_v33 }
 0x3ce   : > { %4205 = vperm.xlu1 %13761, %v14960_v56  }
 0x3d2   : > { %13762 = vset.pattern.permute.xlu1 %v17058_v35 }
 0x3d3   : > { %4587 = vperm.xlu1 %13762, %v14942_v63  }
 0x3d7   : > { %13763 = vset.pattern.permute.xlu1 %v17156_v38 }
 0x3d8   : > { %4973 = vperm.xlu1 %13763, %v14930_v60  }
 0x3dc   : > { %4977 = vperm.xlu1 %13763, %v14935_v2  }
 0x3e0   : > { %13764 = vset.pattern.permute.xlu1 %v17154_v1 }
 0x3e1   : > { %3520 = vperm.xlu1 %13764, %v15008_v48  }
 0x3e5   : > { %13765 = vset.pattern.permute.xlu1 %v17056_v32 }
 0x3e6   : > { %4012 = vperm.xlu1 %13765, %v14925_v36  }
 0x3ea   : > { %13766 = vset.pattern.permute.xlu1 %v17054_v34 }
 0x3eb   : > { %4398 = vperm.xlu1 %13766, %v14955_v61  }
 0x3ef   : > { %4402 = vperm.xlu1 %13766, %v14960_v56  }
 0x3f3   : > { %13767 = vset.pattern.permute.xlu1 %v17155_v40 }
 0x3f4   : > { %4788 = vperm.xlu1 %13767, %v14919_v39  }
 0x3f8   : > { %13768 = vset.pattern.permute.xlu1 %v17062_v37 }
 0x3f9   : > { %5170 = vperm.xlu1 %13768, %v14930_v60  }
 0x3fc   : > { %v2494_v13 = vpop.f32.mrb[4].mxu0 }
 0x3fd   : > { %v12138_v62 = vpop.f32.mrb[5].mxu0  ;;  %13769 = vset.pattern.permute.xlu1 %v17157_v43 }
 0x3fe   : > { %v15035_v62 = vpop.permute.xlu1 %3224 }
 0x3ff   : > { %17159 = vst [vmem:[#allocation53_spill] sm:$0xff] %v15035_v62 }
 0x400   : > { %v2585_v0 = vpop.f32.mrb[16].mxu1  ;;  %v2499_v8 = vpop.f32.mrb[6].mxu0 }
 0x401   : > { %v2586_v17 = vadd.f32 %v2585_v0, %v2494_v13  ;;  %v12151_v18 = vpop.f32.mrb[17].mxu1  ;;  %v12141_v42 = vpop.f32.mrb[7].mxu0  ;;  %v3553_v13 = vld [vmem:[%s17153_s18 + $0x40] sm:$0xff]  ;;  %v3554_v0 = vld [vmem:[%s17153_s18 + $0x48] sm:$0xff] }
 0x402   : > { %3599 = vperm.xlu1 %13769, %v3553_v13  }
 0x404   : > { %v2590_v59 = vpop.f32.mrb[18].mxu1 }
 0x405   : > { %v2591_v19 = vadd.f32 %v2590_v59, %v2499_v8  ;;  %v12154_v23 = vpop.f32.mrb[19].mxu1  ;;  %v15038_v8 = vpop.permute.xlu1 %3475 }
 0x406   : > { %3604 = vperm.xlu1 %13769, %v3554_v0   ;;  %v15049_v23 = vld [vmem:[%s17152_s12 + $0x40] sm:$0xff] }
 0x407   : > { %v12975_v14 = vpack.c.bf16 %v2591_v19, %v2586_v17  ;;  %3515 = vperm.xlu0 %13746, %v15049_v23   ;;  %v3545_v0 = vld [vmem:[%s17153_s18] sm:$0xff] }
 0x408   : > { %v2595_v58 = vpop.f32.mrb[14].mxu1 }
 0x409   : > { %v12157_v22 = vpop.f32.mrb[15].mxu1  ;;  %12976 = vmatpush3.bf16.msra.mxu0 %v12975_v14  ;;  %v3481_v17 = vpop.permute.xlu1 %3480 }
 0x40a   : > { %12162 = vmatprep.subr.mxu0 %v17052_v54  ;;  %3827 = vperm.xlu1 %13769, %v15008_v48   ;;  %v3534_v18 = vmul.f32 %v3481_v17, %v14660_v4 }
 0x40d   : > { %12163 = vmatpush3.msra.mxu0 %v2595_v58  ;;  %v3565_v42 = vpop.permute.xlu1 %3564  ;;  %v15057_v58 = vld [vmem:[%s17152_s12 + $0x58] sm:$0xff] }
 0x40e   : > { %12165 = vmatmul.mubr.msk.f32.vlgmr.msra.gmra.mrb[8].mxu0 %vm2606_vm12, %v2599_v45  ;;  %12167 = vmatprep.subr.mxu0 %v17052_v54  ;;  %v15043_v59 = vadd.f32 %v3565_v42, %v3534_v18  ;;  %v3547_v42 = vld [vmem:[%s17153_s18 + $0x10] sm:$0xff] }
 0x40f   : > { %12168 = vmatpush3.msk.msra.mxu0 %vm1653_vm1, %v14724_v29  ;;  %12169 = vmatprep.mubr.msk.f32.mxu0 %vm14231_vm3, %v17052_v54 }
 0x410   : > { %12172 = vmatprep.subr.mxu0 %v17052_v54  ;;  %13770 = vset.pattern.permute.xlu1 %v17060_v33 }
 0x411   : > { %4209 = vperm.xlu1 %13770, %v14925_v36   ;;  %v15046_v19 = vpop.permute.xlu1 %3791  ;;  %3530 = vperm.xlu0 %13746, %v15057_v58  }
 0x415   : > { %13771 = vset.pattern.permute.xlu1 %v17058_v35  ;;  %v15054_v14 = vpop.permute.xlu1 %3485  ;;  %13774 = vset.pattern.permute.xlu0 %v17054_v34 }
 0x416   : > { %4595 = vperm.xlu1 %13771, %v14955_v61   ;;  %4386 = vperm.xlu0 %13774, %v14935_v2  }
 0x419   : > { %v15061_v22 = vpop.permute.xlu1 %3988 }
 0x41a   : > { %4599 = vperm.xlu1 %13771, %v14960_v56   ;;  %17160 = vst [vmem:[#allocation54_spill] sm:$0xff] %v15061_v22  ;;  %4406 = vperm.xlu0 %13774, %v14925_v36  }
 0x41d   : > { %v15067_v45 = vpop.permute.xlu1 %3992 }
 0x41e   : > { %13772 = vset.pattern.permute.xlu1 %v17156_v38  ;;  %17161 = vst [vmem:[#allocation55_spill] sm:$0xff] %v15067_v45  ;;  %13776 = vset.pattern.permute.xlu0 %v17157_v43  ;;  %v3552_v45 = vld [vmem:[%s17153_s18 + $0x38] sm:$0xff] }
 0x41f   : > { %4985 = vperm.xlu1 %13772, %v14919_v39   ;;  %3559 = vperm.xlu0 %13776, %v3545_v0  }
 0x421   : > { %v15074_v13 = vpop.permute.xlu1 %3574 }
 0x423   : > { %13773 = vset.pattern.permute.xlu1 %v17154_v1  ;;  %3795 = vperm.xlu0 %13776, %v14935_v2  }
 0x424   : > { %3525 = vperm.xlu1 %13773, %v15070_v46  }
 0x425   : > { %v15079_v17 = vpop.permute.xlu1 %3799 }
 0x427   : > { %3569 = vperm.xlu0 %13776, %v3547_v42  }
 0x428   : > { %13775 = vset.pattern.permute.xlu1 %v17056_v32  ;;  %v3556_v32 = vld [vmem:[%s17153_s18 + $0x58] sm:$0xff] }
 0x429   : > { %4020 = vperm.xlu1 %13775, %v15049_v23   ;;  %v15084_v18 = vpop.permute.xlu1 %4185 }
 0x42a   : > { %17162 = vst [vmem:[#allocation56_spill] sm:$0xff] %v15084_v18  ;;  %v17168_v18 = vmov 5  }
 0x42b   : > { %3803 = vperm.xlu0 %13776, %v14919_v39  }
 0x42d   : > { %4024 = vperm.xlu1 %13775, %v15008_v48   ;;  %v15088_v53 = vpop.permute.xlu1 %3495 }
 0x42f   : > { %3807 = vperm.xlu0 %13776, %v14955_v61  }
 0x431   : > { %13777 = vset.pattern.permute.xlu1 %v17054_v34  ;;  %v15093_v0 = vpop.permute.xlu1 %3500 }
 0x432   : > { %4410 = vperm.xlu1 %13777, %v14977_v27  }
 0x433   : > { %3594 = vperm.xlu0 %13776, %v3552_v45   ;;  %v17175_v45 = vmov 3  }
 0x435   : > { %v15098_v54 = vpop.permute.xlu1 %4000 }
 0x436   : > { %13778 = vset.pattern.permute.xlu1 %v17155_v40  ;;  %17163 = vst [vmem:[#allocation57_spill] sm:$0xff] %v15098_v54 }
 0x437   : > { %4792 = vperm.xlu1 %13778, %v14955_v61   ;;  %3823 = vperm.xlu0 %13776, %v15049_v23  }
 0x439   : > { %v15101_v42 = vpop.permute.xlu1 %4382 }
 0x43a   : > { %17164 = vst [vmem:[#allocation58_spill] sm:$0xff] %v15101_v42  ;;  %v17166_v42 = vmov 2  }
 0x43b   : > { %13779 = vset.pattern.permute.xlu1 %v17062_v37 }
 0x43c   : > { %5178 = vperm.xlu1 %13779, %v14942_v63  }
 0x43d   : > { %v15104_v34 = vpop.permute.xlu1 %3579 }
 0x440   : > { %5182 = vperm.xlu1 %13779, %v14919_v39  }
 0x441   : > { %v15108_v35 = vpop.permute.xlu1 %3584 }
 0x444   : > { %13780 = vset.pattern.permute.xlu1 %v17157_v43 }
 0x445   : > { %3614 = vperm.xlu1 %13780, %v3556_v32   ;;  %v15111_v33 = vpop.permute.xlu1 %3811 }
 0x449   : > { %3831 = vperm.xlu1 %13780, %v15070_v46   ;;  %v15114_v37 = vpop.permute.xlu1 %4193 }
 0x44a   : > { %17165 = vst [vmem:[#allocation59_spill] sm:$0xff] %v15114_v37 }
 0x44d   : > { %13782 = vset.pattern.permute.xlu1 %v17166_v42  ;;  %v15118_v54 = vpop.permute.xlu1 %4579 }
 0x44e   : > { %4217 = vperm.xlu1 %13782, %v15049_v23   ;;  %17167 = vst [vmem:[#allocation60_spill] sm:$0xff] %v15118_v54 }
 0x451   : > { %v15122_v22 = vpop.permute.xlu1 %4583 }
 0x452   : > { %13784 = vset.pattern.permute.xlu1 %v17168_v18  ;;  %17169 = vst [vmem:[#allocation61_spill] sm:$0xff] %v15122_v22 }
 0x453   : > { %4603 = vperm.xlu1 %13784, %v14925_v36  }
 0x455   : > { %v15126_v32 = vpop.permute.xlu1 %3510 }
 0x456   : > { %17170 = vst [vmem:[#allocation62_spill] sm:$0xff] %v15126_v32 }
 0x457   : > { %4607 = vperm.xlu1 %13784, %v14977_v27  }
 0x459   : > { %v15130_v37 = vpop.permute.xlu1 %4004 }
 0x45a   : > { %17171 = vst [vmem:[#allocation63_spill] sm:$0xff] %v15130_v37 }
 0x45b   : > { %13785 = vset.pattern.permute.xlu1 %v17156_v38 }
 0x45c   : > { %4993 = vperm.xlu1 %13785, %v14960_v56  }
 0x45d   : > { %v15133_v54 = vpop.permute.xlu1 %4390 }
 0x45e   : > { %17172 = vst [vmem:[#allocation64_spill] sm:$0xff] %v15133_v54 }
 0x460   : > { %13786 = vset.pattern.permute.xlu1 %v17173_v24 }
 0x461   : > { %4028 = vperm.xlu1 %13786, %v15070_v46   ;;  %v15137_v22 = vpop.permute.xlu1 %4394 }
 0x462   : > { %17174 = vst [vmem:[#allocation65_spill] sm:$0xff] %v15137_v22  ;;  %v17178_v22 = vmov 0.0  }
 0x465   : > { %13788 = vset.pattern.permute.xlu1 %v17175_v45  ;;  %v15141_v32 = vpop.permute.xlu1 %4780 }
 0x466   : > { %4414 = vperm.xlu1 %13788, %v15049_v23   ;;  %17176 = vst [vmem:[#allocation66_spill] sm:$0xff] %v15141_v32 }
 0x469   : > { %v15151_v54 = vpop.permute.xlu1 %3589 }
 0x46a   : > { %4418 = vperm.xlu1 %13788, %v15008_v48   ;;  %17177 = vst [vmem:[#allocation67_spill] sm:$0xff] %v15151_v54 }
 0x46e   : > { %13789 = vset.pattern.permute.xlu1 %v17155_v40 }
 0x46f   : > { %4804 = vperm.xlu1 %13789, %v14977_v27  }
 0x4e1   : > { %v2676_v57 = vpop.f32.mrb[8].mxu0 }
 0x4e2   : > { %v15144_v62 = vadd.f32 %v2676_v57, %v15021_v28  ;;  %v12166_v37 = vpop.f32.mrb[9].mxu0  ;;  %v15313_v28 = vld [vmem:[%s14654_s21 + $0x48] sm:$0xff] }
 0x4e3   : > { %17192 = vst [vmem:[#allocation80_spill] sm:$0xff] %v15313_v28 }
 0x4e4   : > { %12170 = vmatmul.mubr.msk.f32.vlgmr.msra.gmra.mrb[10].mxu0 %vm1646_vm2, %v15144_v62  ;;  %12195 = vmatmul.mubr.msk.f32.vlgmr.msra.gmra.mrb[20].mxu1 %vm1646_vm2, %v15144_v62 }
 0x4e5   : > { %12173 = vmatpush3.msk.msra.mxu0 %vm1653_vm1, %v14738_v31  ;;  %12174 = vmatprep.mubr.msk.f32.mxu0 %vm14231_vm3, %v17178_v22  ;;  %v15168_v31 = vpop.permute.xlu1 %3815 }
 0x4e6   : > { %12203 = vmatpush3.msk.msra.mxu1 %vm1653_vm1, %v14727_v30  ;;  %12204 = vmatprep.mubr.msk.f32.mxu1 %vm14231_vm3, %v17178_v22  ;;  %17179 = vst [vmem:[#allocation68_spill] sm:$0xff] %v15168_v31 }
 0x4e7   : > { %12177 = vmatprep.subr.mxu0 %v17178_v22  ;;  %12217 = vmatprep.subr.msk.mxu1 %vm1653_vm1, %v14724_v29 }
 0x4e8   : > { %12175 = vmatmul.mubr.msk.f32.vlgmr.msra.gmra.mrb[12].mxu0 %vm1646_vm2, %v15144_v62  ;;  %12205 = vmatmul.mubr.msk.f32.vlgmr.msra.gmra.mrb[22].mxu1 %vm1646_vm2, %v15144_v62 }
 0x4e9   : > { %12178 = vmatpush3.msk.msra.mxu0 %vm1653_vm1, %v14779_v47  ;;  %12179 = vmatprep.mubr.msk.f32.mxu0 %vm14231_vm3, %v17178_v22  ;;  %v15185_v30 = vpop.permute.xlu1 %3819 }
 0x4ea   : > { %12218 = vmatpush3.msk.msra.mxu1 %vm1653_vm1, %v14724_v29  ;;  %12219 = vmatprep.mubr.msk.f32.mxu1 %vm1646_vm2, %v14657_v3  ;;  %17180 = vst [vmem:[#allocation69_spill] sm:$0xff] %v15185_v30  ;;  %v15286_v29 = vld [vmem:[%s14654_s21 + $0x28] sm:$0xff] }
 0x4eb   : > { %12182 = vmatprep.subr.mxu0 %v17178_v22  ;;  %12257 = vmatprep.subr.msk.mxu1 %vm1653_vm1, %v14779_v47 }
 0x4ec   : > { %12180 = vmatmul.mubr.msk.f32.vlgmr.msra.gmra.mrb[14].mxu0 %vm1646_vm2, %v15144_v62  ;;  %12220 = vmatmul.mubr.msk.f32.vlgmr.msra.gmra.mrb[24].mxu1 %vm1646_vm2, %v14660_v4 }
 0x4ed   : > { %12183 = vmatpush3.msk.msra.mxu0 %vm1653_vm1, %v14794_v49  ;;  %12184 = vmatprep.mubr.msk.f32.mxu0 %vm14231_vm3, %v17178_v22  ;;  %v15201_v3 = vpop.permute.xlu1 %4205  ;;  %v15299_v49 = vld [vmem:[%s14654_s21 + $0x38] sm:$0xff] }
 0x4ee   : > { %12222 = vmatprep.mubr.msk.f32.mxu1 %vm1646_vm2, %v14663_v5  ;;  %12187 = vmatprep.subr.mxu0 %v17178_v22  ;;  %17181 = vst [vmem:[#allocation70_spill] sm:$0xff] %v15201_v3  ;;  %v17183_v5 = vmov 8   ;;  %17189 = vst [vmem:[#allocation77_spill] sm:$0xff] %v15299_v49  ;;  %v3555_v3 = vld [vmem:[%s17153_s18 + $0x50] sm:$0xff] }
 0x4ef   : > { %12258 = vmatpush3.msk.msra.mxu1 %vm1653_vm1, %v14779_v47  ;;  %13790 = vset.pattern.permute.xlu1 %v17183_v5  ;;  %v15294_v47 = vld [vmem:[%s14654_s21 + $0x30] sm:$0xff] }
 0x4f0   : > { %12185 = vmatmul.mubr.msk.f32.vlgmr.msra.gmra.mrb[16].mxu0 %vm1646_vm2, %v15144_v62  ;;  %12223 = vmatmul.mubr.msk.f32.gmra.mrb[26].mxu1 %vm1646_vm2, %v14668_v7 }
 0x4f1   : > { %12188 = vmatpush3.msk.msra.mxu0 %vm1653_vm1, %v14805_v50  ;;  %12189 = vmatprep.mubr.msk.f32.mxu0 %vm14231_vm3, %v17178_v22  ;;  %v15217_v4 = vpop.permute.xlu1 %4587 }
 0x4f2   : > { %12225 = vmatprep.mubr.msk.f32.mxu1 %vm1646_vm2, %v14673_v9  ;;  %12197 = vmatprep.subr.mxu0 %v17178_v22  ;;  %17182 = vst [vmem:[#allocation71_spill] sm:$0xff] %v15217_v4  ;;  %v5324_v4 = vld [vmem:[%s15366_s1 + $0x8] sm:$0xf] }
 0x4f3   : > { %12297 = vmatprep.subr.msk.mxu1 %vm1653_vm1, %v14805_v50  ;;  %5186 = vperm.xlu1 %13790, %v14955_v61  }
 0x4f4   : > { %12190 = vmatmul.mubr.msk.f32.vlgmr.msra.gmra.mrb[18].mxu0 %vm1646_vm2, %v15144_v62  ;;  %12226 = vmatmul.mubr.msk.f32.gmra.mrb[28].mxu1 %vm1646_vm2, %v14676_v10 }
 0x4f5   : > { %12198 = vmatpush3.msk.msra.mxu0 %vm1653_vm1, %v14827_v52  ;;  %12199 = vmatprep.mubr.msk.f32.mxu0 %vm14231_vm3, %v17178_v22  ;;  %v15231_v7 = vpop.permute.xlu1 %4973 }
 0x4f6   : > { %12228 = vmatprep.mubr.msk.f32.mxu1 %vm1646_vm2, %v14687_v15  ;;  %12207 = vmatprep.subr.mxu0 %v17178_v22  ;;  %17184 = vst [vmem:[#allocation72_spill] sm:$0xff] %v15231_v7  ;;  %v15251_v15 = vld [vmem:[%s14654_s21] sm:$0xff]  ;;  %v15318_v7 = vld [vmem:[%s14654_s21 + $0x50] sm:$0xff] }
 0x4f7   : > { %13791 = vset.pattern.permute.xlu1 %v17166_v42  ;;  %17193 = vst [vmem:[#allocation81_spill] sm:$0xff] %v15318_v7  ;;  %3609 = vperm.xlu0 %13776, %v3555_v3  }
 0x4f8   : > { %12200 = vmatmul.mubr.msk.f32.vlgmr.msra.gmra.mrb[20].mxu0 %vm1646_vm2, %v15144_v62  ;;  %12229 = vmatmul.mubr.msk.f32.gmra.mrb[30].mxu1 %vm1646_vm2, %v14690_v16  ;;  %v15257_v16 = vld [vmem:[%s14654_s21 + $0x8] sm:$0xff] }
 0x4f9   : > { %12231 = vmatprep.mubr.msk.f32.mxu1 %vm1646_vm2, %v14700_v20  ;;  %12209 = vmatprep.mubr.msk.f32.mxu0 %vm14231_vm3, %v17178_v22  ;;  %v15240_v9 = vpop.permute.xlu1 %4977  ;;  %v15262_v20 = vld [vmem:[%s14654_s21 + $0x10] sm:$0xff] }
 0x4fa   : > { %17185 = vst [vmem:[#allocation73_spill] sm:$0xff] %v15240_v9  ;;  %4225 = vperm.xlu1 %13791, %v15070_v46   ;;  %v15324_v9 = vld [vmem:[%s14654_s21 + $0x58] sm:$0xff] }
 0x4fb   : > { %17194 = vst [vmem:[#allocation82_spill] sm:$0xff] %v15324_v9  ;;  %3835 = vperm.xlu0 %13776, %v15057_v58  }
 0x4fc   : > { %12232 = vmatmul.mubr.msk.f32.gmra.mrb[32].mxu1 %vm1646_vm2, %v14703_v21 }
 0x4fd   : > { %12234 = vmatprep.mubr.msk.f32.mxu1 %vm1646_vm2, %v14711_v25  ;;  %v15248_v10 = vpop.permute.xlu1 %3520  ;;  %v15275_v25 = vld [vmem:[%s14654_s21 + $0x18] sm:$0xff] }
 0x4fe   : > { %17186 = vst [vmem:[#allocation74_spill] sm:$0xff] %v15248_v10  ;;  %4229 = vperm.xlu1 %13791, %v15057_v58  }
 0x4ff   : > { %13781 = vset.pattern.permute.xlu0 %v17166_v42 }
 0x500   : > { %12235 = vmatmul.mubr.msk.f32.gmra.mrb[34].mxu1 %vm1646_vm2, %v14714_v26  ;;  %v15280_v26 = vld [vmem:[%s14654_s21 + $0x20] sm:$0xff]  ;;  %4189 = vperm.xlu0 %13781, %v14935_v2  }
 0x501   : > { %12259 = vmatprep.mubr.msk.f32.mxu1 %vm1646_vm2, %v15251_v15  ;;  %v15271_v21 = vpop.permute.xlu1 %4012 }
 0x502   : > { %13793 = vset.pattern.permute.xlu1 %v17168_v18  ;;  %17187 = vst [vmem:[#allocation75_spill] sm:$0xff] %v15271_v21 }
 0x503   : > { %4615 = vperm.xlu1 %13793, %v15008_v48  }
 0x504   : > { %12260 = vmatmul.mubr.msk.f32.vlgmr.msra.gmra.mrb[36].mxu1 %vm1646_vm2, %v15257_v16  ;;  %4197 = vperm.xlu0 %13781, %v14919_v39  }
 0x505   : > { %12262 = vmatprep.mubr.msk.f32.mxu1 %vm1646_vm2, %v15262_v20  ;;  %12298 = vmatpush3.msk.msra.mxu1 %vm1653_vm1, %v14805_v50  ;;  %v15291_v37 = vpop.permute.xlu1 %4398  ;;  %v15305_v50 = vld [vmem:[%s14654_s21 + $0x40] sm:$0xff]  ;;  %s17237_s21 = sld [smem:[#allocation38_spill]] }
 0x506   : > { %12337 = vmatprep.subr.msk.mxu1 %vm1653_vm1, %v14827_v52  ;;  %17188 = vst [vmem:[#allocation76_spill] sm:$0xff] %v15291_v37  ;;  %17190 = vst [vmem:[#allocation78_spill] sm:$0xff] %v15305_v50  ;;  %v17196_v37 = vmov 0.0|0.0  }
 0x507   : > { %13794 = vset.pattern.permute.xlu1 %v17156_v38 }
 0x508   : > { %12263 = vmatmul.mubr.msk.f32.gmra.mrb[38].mxu1 %vm1646_vm2, %v15275_v25  ;;  %4997 = vperm.xlu1 %13794, %v14925_v36  }
 0x509   : > { %12265 = vmatprep.mubr.msk.f32.mxu1 %vm1646_vm2, %v15280_v26  ;;  %v15310_v57 = vpop.permute.xlu1 %4402  ;;  %4201 = vperm.xlu0 %13781, %v14955_v61  }
 0x50a   : > { %17191 = vst [vmem:[#allocation79_spill] sm:$0xff] %v15310_v57  ;;  %v5323_v57 = vld [vmem:[%s15366_s1] sm:$0xff] }
 0x50c   : > { %12266 = vmatmul.mubr.msk.f32.gmra.mrb[40].mxu1 %vm1646_vm2, %v15286_v29  ;;  %13795 = vset.pattern.permute.xlu1 %v17175_v45 }
 0x50d   : > { %12268 = vmatprep.mubr.msk.f32.mxu1 %vm1646_vm2, %v15294_v47  ;;  %4422 = vperm.xlu1 %13795, %v15070_v46   ;;  %v15328_v32 = vpop.permute.xlu1 %4788 }
 0x50e   : > { %17195 = vst [vmem:[#allocation83_spill] sm:$0xff] %v15328_v32  ;;  %4213 = vperm.xlu0 %13781, %v14977_v27  }
 0x510   : > { %12269 = vmatmul.mubr.msk.f32.gmra.mrb[42].mxu1 %vm1646_vm2, %v15299_v49 }
 0x511   : > { %12271 = vmatprep.mubr.msk.f32.mxu1 %vm1646_vm2, %v15305_v50  ;;  %4426 = vperm.xlu1 %13795, %v15057_v58   ;;  %v15342_v32 = vpop.permute.xlu1 %5170 }
 0x512   : > { %17198 = vst [vmem:[#allocation84_spill] sm:$0xff] %v15342_v32  ;;  %4221 = vperm.xlu0 %13781, %v15008_v48  }
 0x514   : > { %12272 = vmatmul.mubr.msk.f32.gmra.mrb[44].mxu1 %vm1646_vm2, %v15313_v28 }
 0x515   : > { %12274 = vmatprep.mubr.msk.f32.mxu1 %vm1646_vm2, %v15318_v7  ;;  %13796 = vset.pattern.permute.xlu1 %v17155_v40 }
 0x516   : > { %4812 = vperm.xlu1 %13796, %v15008_v48   ;;  %13783 = vset.pattern.permute.xlu0 %v17173_v24 }
 0x517   : > { %3996 = vperm.xlu0 %13783, %v14942_v63  }
 0x518   : > { %12275 = vmatmul.mubr.msk.f32.gmra.mrb[46].mxu1 %vm1646_vm2, %v15324_v9 }
 0x519   : > { %12299 = vmatprep.mubr.msk.f32.mxu1 %vm1646_vm2, %v15251_v15 }
 0x51a   : > { %13797 = vset.pattern.permute.xlu1 %v17183_v5 }
 0x51b   : > { %5194 = vperm.xlu1 %13797, %v14925_v36   ;;  %4008 = vperm.xlu0 %13783, %v14960_v56  }
 0x51c   : > { %12300 = vmatmul.mubr.msk.f32.vlgmr.msra.gmra.mrb[48].mxu1 %vm1646_vm2, %v15257_v16 }
 0x51d   : > { %12302 = vmatprep.mubr.msk.f32.mxu1 %vm1646_vm2, %v15262_v20  ;;  %12338 = vmatpush3.msk.msra.mxu1 %vm1653_vm1, %v14827_v52  ;;  %v15353_v52 = vpop.permute.xlu1 %3599 }
 0x51e   : > { %12995 = vmatprep.subr.bf16.mxu1 %v17196_v37  ;;  %17199 = vst [vmem:[#allocation85_spill] sm:$0xff] %v15353_v52 }
 0x51f   : > { %13799 = vset.pattern.permute.xlu1 %v17168_v18  ;;  %4016 = vperm.xlu0 %13783, %v14977_v27  }
 0x520   : > { %12303 = vmatmul.mubr.msk.f32.gmra.mrb[50].mxu1 %vm1646_vm2, %v15275_v25  ;;  %4619 = vperm.xlu1 %13799, %v15070_v46  }
 0x521   : > { %12305 = vmatprep.mubr.msk.f32.mxu1 %vm1646_vm2, %v15280_v26  ;;  %v15363_v32 = vpop.permute.xlu1 %3604 }
 0x522   : > { %17200 = vst [vmem:[#allocation86_spill] sm:$0xff] %v15363_v32  ;;  %v12996_v32 = vpack.c.bf16 %v5324_v4, %v5323_v57  ;;  %v5326_v57 = vld [vmem:[%s17203_s9] sm:$0x3]  ;;  %s17407_s9 = sld [smem:[#allocation48_spill]] }
 0x523   : > { %4032 = vperm.xlu0 %13783, %v15057_v58  }
 0x524   : > { %12306 = vmatmul.mubr.msk.f32.gmra.mrb[52].mxu1 %vm1646_vm2, %v15286_v29  ;;  %4623 = vperm.xlu1 %13799, %v15057_v58  }
 0x525   : > { %12308 = vmatprep.mubr.msk.f32.mxu1 %vm1646_vm2, %v15294_v47  ;;  %v15378_v21 = vpop.permute.xlu1 %3827 }
 0x526   : > { %17201 = vst [vmem:[#allocation87_spill] sm:$0xff] %v15378_v21 }
 0x527   : > { %13787 = vset.pattern.permute.xlu0 %v17168_v18 }
 0x528   : > { %12309 = vmatmul.mubr.msk.f32.gmra.mrb[54].mxu1 %vm1646_vm2, %v15299_v49  ;;  %13800 = vset.pattern.permute.xlu1 %v17156_v38 }
 0x529   : > { %12311 = vmatprep.mubr.msk.f32.mxu1 %vm1646_vm2, %v15305_v50  ;;  %5009 = vperm.xlu1 %13800, %v15008_v48   ;;  %v15390_v52 = vpop.permute.xlu1 %4209 }
 0x52a   : > { %17202 = vst [vmem:[#allocation88_spill] sm:$0xff] %v15390_v52  ;;  %4591 = vperm.xlu0 %13787, %v14919_v39  }
 0x52c   : > { %12312 = vmatmul.mubr.msk.f32.gmra.mrb[56].mxu1 %vm1646_vm2, %v15313_v28 }
 0x52d   : > { %12314 = vmatprep.mubr.msk.f32.mxu1 %vm1646_vm2, %v15318_v7  ;;  %13801 = vset.pattern.permute.xlu1 %v17155_v40 }
 0x52e   : > { %4816 = vperm.xlu1 %13801, %v15070_v46   ;;  %4611 = vperm.xlu0 %13787, %v15049_v23  }
 0x530   : > { %12315 = vmatmul.mubr.msk.f32.gmra.mrb[58].mxu1 %vm1646_vm2, %v15324_v9 }
 0x531   : > { %12339 = vmatprep.mubr.msk.f32.mxu1 %vm1646_vm2, %v15251_v15 }
 0x532   : > { %13803 = vset.pattern.permute.xlu1 %v17183_v5  ;;  %13792 = vset.pattern.permute.xlu0 %v17183_v5 }
 0x533   : > { %5202 = vperm.xlu1 %13803, %v15049_v23   ;;  %5174 = vperm.xlu0 %13792, %v14935_v2  }
 0x534   : > { %12340 = vmatmul.mubr.msk.f32.vlgmr.msra.gmra.mrb[60].mxu1 %vm1646_vm2, %v15257_v16 }
 0x535   : > { %12342 = vmatprep.mubr.msk.f32.mxu1 %vm1646_vm2, %v15262_v20  ;;  %12998 = vmatpush3.bf16.msk.msra.mxu1 %vm14860_vm5, %v12996_v32  ;;  %v15402_v32 = vpop.permute.xlu1 %4595 }
 0x536   : > { %12999 = vmatprep.subr.bf16.mxu1 %v17196_v37  ;;  %17204 = vst [vmem:[#allocation89_spill] sm:$0xff] %v15402_v32  ;;  %v5325_v32 = vld [vmem:[#allocation6] sm:$0x3] }
 0x537   : > { %5206 = vperm.xlu1 %13803, %v15008_v48   ;;  %5190 = vperm.xlu0 %13792, %v14960_v56  }
 0x538   : > { %12343 = vmatmul.mubr.msk.f32.gmra.mrb[62].mxu1 %vm1646_vm2, %v15275_v25 }
 0x539   : > { %12345 = vmatprep.mubr.msk.f32.mxu1 %vm1646_vm2, %v15280_v26  ;;  %v15412_v4 = vpop.permute.xlu1 %4599 }
 0x53a   : > { %17205 = vst [vmem:[#allocation90_spill] sm:$0xff] %v15412_v4 }
 0x53b   : > { %13804 = vset.pattern.permute.xlu1 %v17156_v38  ;;  %5198 = vperm.xlu0 %13792, %v14977_v27  }
 0x53c   : > { %12346 = vmatmul.mubr.msk.f32.gmra.mrb[64].mxu1 %vm1646_vm2, %v15286_v29  ;;  %5017 = vperm.xlu1 %13804, %v15057_v58  }
 0x53d   : > { %12348 = vmatprep.mubr.msk.f32.mxu1 %vm1646_vm2, %v15294_v47  ;;  %v15423_v12 = vpop.permute.xlu1 %4985 }
 0x53e   : > { %17206 = vst [vmem:[#allocation91_spill] sm:$0xff] %v15423_v12 }
 0x53f   : > { %13798 = vset.pattern.permute.xlu0 %v17155_v40 }
 0x540   : > { %12349 = vmatmul.mubr.msk.f32.gmra.mrb[66].mxu1 %vm1646_vm2, %v15299_v49  ;;  %13805 = vset.pattern.permute.xlu1 %v17183_v5 }
 0x541   : > { %12351 = vmatprep.mubr.msk.f32.mxu1 %vm1646_vm2, %v15305_v50  ;;  %5210 = vperm.xlu1 %13805, %v15070_v46   ;;  %v15431_v4 = vpop.permute.xlu1 %3525 }
 0x542   : > { %17207 = vst [vmem:[#allocation92_spill] sm:$0xff] %v15431_v4  ;;  %4776 = vperm.xlu0 %13798, %v14930_v60  }
 0x544   : > { %12352 = vmatmul.mubr.msk.f32.gmra.mrb[68].mxu1 %vm1646_vm2, %v15313_v28 }
 0x545   : > { %12354 = vmatprep.mubr.msk.f32.mxu1 %vm1646_vm2, %v15318_v7  ;;  %13807 = vset.pattern.permute.xlu1 %v17157_v43  ;;  %v15434_v52 = vpop.permute.xlu1 %4020 }
 0x546   : > { %5329 = vperm.xlu1 %13807, %v5326_v57   ;;  %17208 = vst [vmem:[#allocation93_spill] sm:$0xff] %v15434_v52  ;;  %v2684_v52 = vpop.permute.xlu0 %2683  ;;  %4784 = vperm.xlu0 %13798, %v14942_v63  }
 0x548   : > { %12355 = vmatmul.mubr.msk.f32.gmra.mrb[70].mxu1 %vm1646_vm2, %v15324_v9  ;;  %v5424_v9 = vld [vmem:[%s17229_s0 + $0x8] sm:$0xff] }
 0x549   : > { %12408 = vmatprep.mubr.msk.f32.mxu1 %vm14231_vm3, %v17178_v22  ;;  %v15436_v21 = vpop.permute.xlu1 %4024 }
 0x54a   : > { %13808 = vset.pattern.permute.xlu1 %v17154_v1  ;;  %17209 = vst [vmem:[#allocation94_spill] sm:$0xff] %v15436_v21  ;;  %v2845_v3 = vpop.permute.xlu0 %2844  ;;  %4796 = vperm.xlu0 %13798, %v14960_v56  }
 0x54c   : > { %12409 = vmatmul.mubr.msk.f32.vlgmr.msra.gmra.mrb[72].mxu1 %vm2415_vm7, %v5325_v32 }
 0x54d   : > { %12415 = vmatprep.mubr.msk.f32.mxu1 %vm14231_vm3, %v17178_v22  ;;  %v15438_v12 = vpop.permute.xlu1 %4410 }
 0x54e   : > { %17210 = vst [vmem:[#allocation95_spill] sm:$0xff] %v15438_v12  ;;  %4800 = vperm.xlu0 %13798, %v14925_v36   ;;  %v5423_v36 = vld [vmem:[%s17229_s0] sm:$0xff] }
 0x54f   : > { %v15519_v49 = vpack.c.bf16 %v5424_v9, %v5423_v36  ;;  %v3538_v36 = vmul.f32 %v15286_v29, %v15093_v0 }
 0x551   : > { %v15441_v31 = vpop.permute.xlu1 %4792  ;;  %17231 = vst [vmem:[#allocation115_spill] sm:$0xff] %v15519_v49  ;;  %13001 = vmatpush3.bf16.msra.mxu1 %v15519_v49  ;;  %v17248_v49 = vld [vmem:[#allocation81_spill] sm:$0xff] }
 0x552   : > { %17211 = vst [vmem:[#allocation96_spill] sm:$0xff] %v15441_v31  ;;  %4808 = vperm.xlu0 %13798, %v15049_v23   ;;  %13002 = vmatprep.subr.bf16.mxu1 %v17196_v37 }
 0x555   : > { %v15444_v32 = vpop.permute.xlu1 %5178 }
 0x556   : > { %17212 = vst [vmem:[#allocation97_spill] sm:$0xff] %v15444_v32  ;;  %v15459_v32 = vpop.permute.xlu0 %3072  ;;  %4820 = vperm.xlu0 %13798, %v15057_v58  }
 0x559   : > { %v15449_v57 = vpop.permute.xlu1 %5182 }
 0x55a   : > { %17213 = vst [vmem:[#allocation98_spill] sm:$0xff] %v15449_v57  ;;  %v15465_v57 = vpop.permute.xlu0 %3300  ;;  %13802 = vset.pattern.permute.xlu0 %v17156_v38 }
 0x55b   : > { %4981 = vperm.xlu0 %13802, %v14942_v63   ;;  %v3622_v63 = vadd.f32 %v15108_v35, %v3538_v36 }
 0x55d   : > { %v15452_v12 = vpop.permute.xlu1 %3614 }
 0x55e   : > { %17214 = vst [vmem:[#allocation99_spill] sm:$0xff] %v15452_v12  ;;  %v3491_v4 = vpop.permute.xlu0 %3490 }
 0x55f   : > { %4989 = vperm.xlu0 %13802, %v14955_v61  }
 0x561   : > { %v15456_v31 = vpop.permute.xlu1 %3831 }
 0x562   : > { %17215 = vst [vmem:[#allocation100_spill] sm:$0xff] %v15456_v31  ;;  %v15475_v31 = vpop.permute.xlu0 %3505 }
 0x563   : > { %17219 = vst [vmem:[#allocation104_spill] sm:$0xff] %v15475_v31  ;;  %5001 = vperm.xlu0 %13802, %v14977_v27  }
 0x565   : > { %v15462_v21 = vpop.permute.xlu1 %4217 }
 0x566   : > { %17216 = vst [vmem:[#allocation101_spill] sm:$0xff] %v15462_v21  ;;  %v15480_v54 = vpop.permute.xlu0 %3515 }
 0x567   : > { %17221 = vst [vmem:[#allocation106_spill] sm:$0xff] %v15480_v54  ;;  %5005 = vperm.xlu0 %13802, %v15049_v23  }
 0x569   : > { %v15467_v12 = vpop.permute.xlu1 %4603 }
 0x56a   : > { %17217 = vst [vmem:[#allocation102_spill] sm:$0xff] %v15467_v12  ;;  %v15486_v30 = vpop.permute.xlu0 %3530 }
 0x56b   : > { %17223 = vst [vmem:[#allocation108_spill] sm:$0xff] %v15486_v30  ;;  %5013 = vperm.xlu0 %13802, %v15070_v46  }
 0x56d   : > { %v15471_v48 = vpop.permute.xlu1 %4607 }
 0x56e   : > { %17218 = vst [vmem:[#allocation103_spill] sm:$0xff] %v15471_v48  ;;  %v15492_v39 = vpop.permute.xlu0 %4386 }
 0x56f   : > { %17225 = vst [vmem:[#allocation110_spill] sm:$0xff] %v15492_v39  ;;  %13806 = vset.pattern.permute.xlu0 %v17183_v5 }
 0x570   : > { %5214 = vperm.xlu0 %13806, %v15057_v58  }
 0x571   : > { %v15477_v21 = vpop.permute.xlu1 %4993 }
 0x572   : > { %17220 = vst [vmem:[#allocation105_spill] sm:$0xff] %v15477_v21  ;;  %v15498_v54 = vpop.permute.xlu0 %4406 }
 0x573   : > { %17227 = vst [vmem:[#allocation112_spill] sm:$0xff] %v15498_v54 }
 0x574   : > { %13809 = vset.pattern.permute.xlu0 %v17157_v43 }
 0x575   : > { %v15483_v12 = vpop.permute.xlu1 %4028 }
 0x576   : > { %17222 = vst [vmem:[#allocation107_spill] sm:$0xff] %v15483_v12 }
 0x579   : > { %v15489_v48 = vpop.permute.xlu1 %4414 }
 0x57a   : > { %17224 = vst [vmem:[#allocation109_spill] sm:$0xff] %v15489_v48  ;;  %v3560_v48 = vpop.permute.xlu0 %3559 }
 0x57d   : > { %v15494_v21 = vpop.permute.xlu1 %4418 }
 0x57e   : > { %17226 = vst [vmem:[#allocation111_spill] sm:$0xff] %v15494_v21  ;;  %v2686_v21 = vmul.f32 %v2684_v52, %v15144_v62  ;;  %v3796_v39 = vpop.permute.xlu0 %3795 }
 0x580   : > { %v2693_v56 = vadd.f32 %v15024_v51, %v2686_v21 }
 0x581   : > { %v15501_v2 = vpop.permute.xlu1 %4804 }
 0x582   : > { %17228 = vst [vmem:[#allocation113_spill] sm:$0xff] %v15501_v2 }
 0x585   : > { %v15504_v12 = vpop.permute.xlu1 %5186 }
 0x586   : > { %17230 = vst [vmem:[#allocation114_spill] sm:$0xff] %v15504_v12 }
 0x589   : > { %v15513_v2 = vpop.permute.xlu1 %4225 }
 0x5b7   : > { %v2763_v30 = vpop.f32.mrb[10].mxu0  ;;  %v15508_v60 = vpop.f32.mrb[20].mxu1 }
 0x5b8   : > { %v2771_v54 = vmul.f32 %v15026_v41, %v2763_v30  ;;  %v12171_v10 = vpop.f32.mrb[11].mxu0  ;;  %v12196_v31 = vpop.f32.mrb[21].mxu1  ;;  %v15521_v41 = vld [vmem:[#allocation8] sm:$0x3] }
 0x5b9   : > { %v3533_v31 = vmul.f32 %v15251_v15, %v15038_v8  ;;  %v3570_v30 = vpop.permute.xlu0 %3569  ;;  %5412 = vperm.xlu1 %13808, %v15521_v41   ;;  %v3535_v8 = vmul.f32 %v15262_v20, %v15054_v14 }
 0x5ba   : > { %v2772_v52 = vadd.f32 %v2771_v54, %v2693_v56 }
 0x5bb   : > { %v2839_v1 = vpop.f32.mrb[12].mxu0  ;;  %v15515_v12 = vpop.f32.mrb[22].mxu1 }
 0x5bc   : > { %v2847_v7 = vmul.f32 %v2845_v3, %v2839_v1  ;;  %v12176_v28 = vpop.f32.mrb[13].mxu0  ;;  %v12206_v50 = vpop.f32.mrb[23].mxu1  ;;  %v3536_v1 = vmul.f32 %v15275_v25, %v3491_v4  ;;  %v3617_v3 = vadd.f32 %v3560_v48, %v3533_v31  ;;  %v3303_v27 = vmul.f32 %v15465_v57, %v15515_v12  ;;  %v13879_v57 = vld [vmem:[%s14257_s17 + $0x4] sm:$0xf] }
 0x5bd   : > { %13810 = vset.pattern.permute.xlu1 %v17157_v43 }
 0x5be   : > { %v2848_v51 = vadd.f32 %v2847_v7, %v2772_v52  ;;  %v3804_v7 = vpop.permute.xlu0 %3803  ;;  %5500 = vperm.xlu1 %13810, %v15521_v41   ;;  %v3620_v31 = vadd.f32 %v15074_v13, %v3536_v1 }
 0x5bf   : > { %v2915_v10 = vpop.f32.mrb[14].mxu0  ;;  %v12221_v54 = vpop.f32.mrb[24].mxu1 }
 0x5c0   : > { %v2923_v9 = vmul.f32 %v15028_v44, %v2915_v10  ;;  %v3839_v21 = vmul.f32 %v12221_v54, %v3796_v39  ;;  %v12181_v50 = vpop.f32.mrb[15].mxu0  ;;  %v3731_v28 = vpop.f32.mrb[25].mxu1  ;;  %v3619_v54 = vadd.f32 %v3570_v30, %v3535_v8 }
 0x5c1   : > { %v3838_v56 = vmul.f32 %v15046_v19, %v3731_v28  ;;  %v15541_v39 = vpop.permute.xlu1 %4229  ;;  %v3537_v19 = vmul.f32 %v15280_v26, %v15088_v53 }
 0x5c2   : > { %v2924_v4 = vadd.f32 %v2923_v9, %v2848_v51  ;;  %v15539_v44 = vadd.f32 %v3839_v21, %v15043_v59  ;;  %v3808_v53 = vpop.permute.xlu0 %3807  ;;  %13811 = vset.pattern.permute.xlu1 %v17173_v24 }
 0x5c3   : > { %v15547_v14 = vadd.f32 %v3838_v56, %v3617_v3  ;;  %v2991_v48 = vpop.f32.mrb[16].mxu0  ;;  %v12224_v52 = vpop.f32.mrb[26].mxu1  ;;  %v3621_v13 = vadd.f32 %v15104_v34, %v3537_v19  ;;  %5579 = vperm.xlu1 %13811, %v15521_v41   ;;  %v3305_v56 = vadd.s32 3, %v14855_v11  ;;  %v3151_v34 = vmul.f32 %v15032_v6, %v15508_v60  ;;  %v17234_v6 = vld [vmem:[#allocation50_spill] sm:$0xff] }
 0x5c4   : > { %v2999_v0 = vmul.f32 %v15030_v55, %v2991_v48  ;;  %v3841_v51 = vmul.f32 %v12224_v52, %v3804_v7  ;;  %v12186_v59 = vpop.f32.mrb[17].mxu0  ;;  %v3741_v10 = vpop.f32.mrb[27].mxu1  ;;  %v17233_v48 = vld [vmem:[#allocation53_spill] sm:$0xff] }
 0x5c5   : > { %v3840_v9 = vmul.f32 %v15079_v17, %v3741_v10  ;;  %v15564_v61 = vpop.permute.xlu1 %4615  ;;  %vm3306_vm13 = vcmp.eq.s32.totalorder %v17234_v6, %v3305_v56 }
 0x5c6   : > { %v3000_v21 = vadd.f32 %v2999_v0, %v2924_v4  ;;  %v15553_v50 = vadd.f32 %v3841_v51, %v3620_v31  ;;  %17232 = vst [vmem:[#allocation116_spill] sm:$0xff] %v15564_v61 }
 0x5c7   : > { %v15558_v1 = vadd.f32 %v3840_v9, %v3619_v54  ;;  %v3067_v55 = vpop.f32.mrb[18].mxu0  ;;  %v12227_v28 = vpop.f32.mrb[28].mxu1  ;;  %13813 = vset.pattern.permute.xlu1 %v17175_v45  ;;  %v15589_v54 = vsel %vm3306_vm13, 1.0, %v17178_v22 }
 0x5c8   : > { %v3075_v17 = vmul.f32 %v15459_v32, %v3067_v55  ;;  %v12191_v30 = vpop.f32.mrb[19].mxu0  ;;  %v3843_v35 = vmul.f32 %v12227_v28, %v15111_v33  ;;  %v3751_v8 = vpop.f32.mrb[29].mxu1  ;;  %5737 = vperm.xlu1 %13813, %v15521_v41   ;;  %17236 = vst [vmem:[#allocation117_spill] sm:$0xff] %v15589_v54 }
 0x5c9   : > { %v3842_v3 = vmul.f32 %v3808_v53, %v3751_v8  ;;  %v15586_v59 = vpop.permute.xlu1 %4997  ;;  %v5416_v53 = vld [vmem:[%s17237_s21] sm:$0x3]  ;;  %s17409_s21 = sld [smem:[#allocation47_spill]] }
 0x5ca   : > { %v3076_v7 = vadd.f32 %v3075_v17, %v3000_v21  ;;  %v15568_v36 = vadd.f32 %v3843_v35, %v3622_v63  ;;  %17235 = vst [vmem:[#allocation53_spill] sm:$0xff] %v15586_v59  ;;  %v15620_v21 = vpop.permute.xlu0 %3594  ;;  %v13880_v17 = vld [vmem:[%s14257_s17 + $0xc] sm:$0xf]  ;;  %5419 = vperm.xlu0 %13809, %v5416_v53   ;;  %v17250_v59 = vld [vmem:[#allocation82_spill] sm:$0xff] }
 0x5cb   : > { %v3219_v4 = vpop.f32.mrb[20].mxu0  ;;  %v15571_v19 = vadd.f32 %v3842_v3, %v3621_v13  ;;  %v15573_v32 = vpop.f32.mrb[30].mxu1  ;;  %v17239_v13 = vld [vmem:[#allocation52_spill] sm:$0xff]  ;;  %v13881_v3 = vld [vmem:[%s14257_s17 + $0x18] sm:$0xf] }
 0x5cc   : > { %v3152_v33 = vadd.f32 %v3151_v34, %v3076_v7  ;;  %v3227_v52 = vmul.f32 %v17233_v48, %v3219_v4  ;;  %v12201_v31 = vpop.f32.mrb[21].mxu0  ;;  %v15577_v0 = vpop.f32.mrb[31].mxu1  ;;  %13814 = vset.pattern.permute.xlu1 %v17168_v18 }
 0x5cd   : > { %5816 = vperm.xlu1 %13814, %v15521_v41   ;;  %v15610_v46 = vpop.permute.xlu1 %4422 }
 0x5ce   : > { %v3228_v60 = vadd.f32 %v3227_v52, %v3152_v33  ;;  %17238 = vst [vmem:[#allocation118_spill] sm:$0xff] %v15610_v46  ;;  %v15641_v35 = vpop.permute.xlu0 %3823  ;;  %13812 = vset.pattern.permute.xlu0 %v17166_v42 }
 0x5cf   : > { %v15584_v51 = vpop.f32.mrb[32].mxu1  ;;  %5658 = vperm.xlu0 %13812, %v15521_v41  }
 0x5d0   : > { %v3304_v10 = vadd.f32 %v3303_v27, %v3228_v60  ;;  %v15591_v9 = vpop.f32.mrb[33].mxu1  ;;  %v17243_v27 = vld [vmem:[#allocation77_spill] sm:$0xff] }
 0x5d1   : > { %13816 = vset.pattern.permute.xlu1 %v17156_v38  ;;  %v15626_v28 = vpop.permute.xlu1 %4426 }
 0x5d2   : > { %12208 = vmatpush3.msk.msra.mxu0 %vm3313_vm14, %v3304_v10  ;;  %5974 = vperm.xlu1 %13816, %v15521_v41   ;;  %17240 = vst [vmem:[#allocation119_spill] sm:$0xff] %v15626_v28  ;;  %v15655_v7 = vpop.permute.xlu0 %3609  ;;  %v17244_v10 = vld [vmem:[#allocation78_spill] sm:$0xff] }
 0x5d3   : > { %12210 = vmatmul.mubr.msk.f32.vlgmr.msra.gmra.mrb[22].mxu0 %vm3309_vm15, %v15589_v54  ;;  %12212 = vmatprep.subr.mxu0 %v17178_v22  ;;  %v15600_v12 = vpop.f32.mrb[34].mxu1 }
 0x5d4   : > { %12213 = vmatpush3.msk.msra.mxu0 %vm3313_vm14, %v15144_v62  ;;  %v15604_v23 = vpop.f32.mrb[35].mxu1  ;;  %12214 = vmatprep.mubr.msk.f32.mxu0 %vm14231_vm3, %v17178_v22 }
 0x5d5   : > { %12237 = vmatprep.subr.msk.mxu0 %vm1653_vm1, %v13879_v57  ;;  %v15648_v56 = vpop.permute.xlu1 %4812  ;;  %13815 = vset.pattern.permute.xlu0 %v17155_v40 }
 0x5d6   : > { %13817 = vset.pattern.permute.xlu1 %v17183_v5  ;;  %17241 = vst [vmem:[#allocation120_spill] sm:$0xff] %v15648_v56  ;;  %5895 = vperm.xlu0 %13815, %v15521_v41   ;;  %v15671_v31 = vpop.permute.xlu0 %3835 }
 0x5d7   : > { %v15615_v63 = vpop.f32.mrb[36].mxu1  ;;  %6053 = vperm.xlu1 %13817, %v15521_v41  }
 0x5d8   : > { %v15618_v62 = vpop.f32.mrb[37].mxu1 }
 0x5d9   : > { %v15664_v48 = vpop.permute.xlu1 %5194 }
 0x5da   : > { %17242 = vst [vmem:[#allocation121_spill] sm:$0xff] %v15664_v48  ;;  %13818 = vset.pattern.permute.xlu0 %v17157_v43  ;;  %v15682_v41 = vpop.permute.xlu0 %4189 }
 0x5db   : > { %12215 = vmatmul.mubr.msk.f32.vlgmr.msra.gmra.mrb[22].mxu0 %vm3309_vm15, %v17239_v13  ;;  %v12264_v55 = vpop.f32.mrb[38].mxu1  ;;  %13819 = vset.pattern.permute.xlu1 %v17157_v43 }
 0x5dc   : > { %12238 = vmatpush3.msk.msra.mxu0 %vm1653_vm1, %v13879_v57  ;;  %12239 = vmatprep.mubr.msk.f32.mxu0 %vm1646_vm2, %v15251_v15  ;;  %v15632_v58 = vpop.f32.mrb[39].mxu1 }
 0x5dd   : > { %12277 = vmatprep.subr.msk.mxu0 %vm1653_vm1, %v13880_v17  ;;  %v15684_v53 = vpop.permute.xlu1 %4619 }
 0x5de   : > { %17245 = vst [vmem:[#allocation77_spill] sm:$0xff] %v15684_v53  ;;  %v4198_v48 = vpop.permute.xlu0 %4197 }
 0x5df   : > { %12240 = vmatmul.mubr.msk.f32.vlgmr.msra.gmra.mrb[24].mxu0 %vm1646_vm2, %v15257_v16  ;;  %v15639_v30 = vpop.f32.mrb[40].mxu1  ;;  %v15694_v56 = vmul.f32 %v12264_v55, %v4198_v48 }
 0x5e0   : > { %12242 = vmatprep.mubr.msk.f32.mxu0 %vm1646_vm2, %v15262_v20  ;;  %12278 = vmatpush3.msk.msra.mxu0 %vm1653_vm1, %v13880_v17  ;;  %v4145_v8 = vpop.f32.mrb[41].mxu1  ;;  %v17246_v17 = vld [vmem:[#allocation80_spill] sm:$0xff] }
 0x5e1   : > { %12317 = vmatprep.subr.msk.mxu0 %vm1653_vm1, %v13881_v3  ;;  %v15700_v53 = vpop.permute.xlu1 %4623 }
 0x5e2   : > { %17252 = vst [vmem:[#allocation82_spill] sm:$0xff] %v15700_v53  ;;  %v4202_v61 = vpop.permute.xlu0 %4201 }
 0x5e3   : > { %12243 = vmatmul.mubr.msk.f32.gmra.mrb[26].mxu0 %vm1646_vm2, %v15275_v25  ;;  %v12270_v34 = vpop.f32.mrb[42].mxu1 }
 0x5e4   : > { %12245 = vmatprep.mubr.msk.f32.mxu0 %vm1646_vm2, %v15280_v26  ;;  %v15659_v4 = vpop.f32.mrb[43].mxu1 }
 0x5e6   : > { %v4214_v53 = vpop.permute.xlu0 %4213 }
 0x5e7   : > { %12246 = vmatmul.mubr.msk.f32.gmra.mrb[28].mxu0 %vm1646_vm2, %v15286_v29  ;;  %v12273_v33 = vpop.f32.mrb[44].mxu1 }
 0x5e8   : > { %12248 = vmatprep.mubr.msk.f32.mxu0 %vm1646_vm2, %v15294_v47  ;;  %v15669_v52 = vpop.f32.mrb[45].mxu1 }
 0x5eb   : > { %12249 = vmatmul.mubr.msk.f32.gmra.mrb[30].mxu0 %vm1646_vm2, %v17243_v27  ;;  %v15675_v60 = vpop.f32.mrb[46].mxu1 }
 0x5ec   : > { %12251 = vmatprep.mubr.msk.f32.mxu0 %vm1646_vm2, %v17244_v10  ;;  %v15680_v57 = vpop.f32.mrb[47].mxu1 }
 0x5ef   : > { %12252 = vmatmul.mubr.msk.f32.gmra.mrb[32].mxu0 %vm1646_vm2, %v17246_v17  ;;  %v15688_v54 = vpop.f32.mrb[48].mxu1 }
 0x5f0   : > { %17247 = vst [vmem:[#allocation78_spill] sm:$0xff] %v15688_v54  ;;  %12254 = vmatprep.mubr.msk.f32.mxu0 %vm1646_vm2, %v17248_v49  ;;  %v15692_v13 = vpop.f32.mrb[49].mxu1  ;;  %v15706_v54 = vmul.f32 %v4202_v61, %v4145_v8  ;;  %v15721_v61 = vmul.f32 %v12270_v34, %v4214_v53 }
 0x5f1   : > { %17249 = vst [vmem:[#allocation80_spill] sm:$0xff] %v15692_v13 }
 0x5f3   : > { %12255 = vmatmul.mubr.msk.f32.gmra.mrb[34].mxu0 %vm1646_vm2, %v17250_v59  ;;  %v15698_v46 = vpop.f32.mrb[50].mxu1 }
 0x5f4   : > { %17251 = vst [vmem:[#allocation81_spill] sm:$0xff] %v15698_v46  ;;  %12279 = vmatprep.mubr.msk.f32.mxu0 %vm1646_vm2, %v15251_v15  ;;  %v15704_v28 = vpop.f32.mrb[51].mxu1  ;;  %v13882_v46 = vld [vmem:[%s14257_s17 + $0x20] sm:$0xf] }
 0x5f5   : > { %17253 = vst [vmem:[#allocation122_spill] sm:$0xff] %v15704_v28  ;;  %v15719_v28 = vpop.permute.xlu1 %5009 }
 0x5f6   : > { %17256 = vst [vmem:[#allocation125_spill] sm:$0xff] %v15719_v28 }
 0x5f7   : > { %12280 = vmatmul.mubr.msk.f32.vlgmr.msra.gmra.mrb[36].mxu0 %vm1646_vm2, %v15257_v16  ;;  %v15710_v55 = vpop.f32.mrb[52].mxu1 }
 0x5f8   : > { %17254 = vst [vmem:[#allocation123_spill] sm:$0xff] %v15710_v55  ;;  %12282 = vmatprep.mubr.msk.f32.mxu0 %vm1646_vm2, %v15262_v20  ;;  %12318 = vmatpush3.msk.msra.mxu0 %vm1653_vm1, %v13881_v3  ;;  %v15715_v48 = vpop.f32.mrb[53].mxu1  ;;  %v4222_v3 = vpop.permute.xlu0 %4221 }
 0x5f9   : > { %17255 = vst [vmem:[#allocation124_spill] sm:$0xff] %v15715_v48  ;;  %12357 = vmatprep.subr.msk.mxu0 %vm1653_vm1, %v13882_v46  ;;  %v15731_v48 = vmul.f32 %v12273_v33, %v4222_v3  ;;  %v15737_v34 = vpop.permute.xlu1 %4816 }
 0x5fa   : > { %17260 = vst [vmem:[#allocation129_spill] sm:$0xff] %v15737_v34 }
 0x5fb   : > { %12283 = vmatmul.mubr.msk.f32.gmra.mrb[38].mxu0 %vm1646_vm2, %v15275_v25  ;;  %v15725_v8 = vpop.f32.mrb[54].mxu1 }
 0x5fc   : > { %17257 = vst [vmem:[#allocation126_spill] sm:$0xff] %v15725_v8  ;;  %12285 = vmatprep.mubr.msk.f32.mxu0 %vm1646_vm2, %v15280_v26  ;;  %v15729_v55 = vpop.f32.mrb[55].mxu1 }
 0x5fd   : > { %17258 = vst [vmem:[#allocation127_spill] sm:$0xff] %v15729_v55  ;;  %v15751_v3 = vpop.permute.xlu1 %5202 }
 0x5fe   : > { %17264 = vst [vmem:[#allocation133_spill] sm:$0xff] %v15751_v3 }
 0x5ff   : > { %12286 = vmatmul.mubr.msk.f32.gmra.mrb[40].mxu0 %vm1646_vm2, %v15286_v29  ;;  %v15735_v13 = vpop.f32.mrb[56].mxu1 }
 0x600   : > { %17259 = vst [vmem:[#allocation128_spill] sm:$0xff] %v15735_v13  ;;  %12288 = vmatprep.mubr.msk.f32.mxu0 %vm1646_vm2, %v15294_v47  ;;  %v15741_v53 = vpop.f32.mrb[57].mxu1 }
 0x601   : > { %17261 = vst [vmem:[#allocation130_spill] sm:$0xff] %v15741_v53 }
 0x603   : > { %12289 = vmatmul.mubr.msk.f32.gmra.mrb[42].mxu0 %vm1646_vm2, %v17243_v27  ;;  %v15745_v28 = vpop.f32.mrb[58].mxu1 }
 0x604   : > { %17262 = vst [vmem:[#allocation131_spill] sm:$0xff] %v15745_v28  ;;  %12291 = vmatprep.mubr.msk.f32.mxu0 %vm1646_vm2, %v17244_v10  ;;  %v15749_v33 = vpop.f32.mrb[59].mxu1  ;;  %v15763_v28 = vpop.permute.xlu1 %5206 }
 0x605   : > { %17263 = vst [vmem:[#allocation132_spill] sm:$0xff] %v15749_v33  ;;  %17267 = vst [vmem:[#allocation136_spill] sm:$0xff] %v15763_v28  ;;  %v11466_v33 = vld [vmem:[%s17229_s0 + $0x10] sm:$0xff] }
 0x607   : > { %12292 = vmatmul.mubr.msk.f32.gmra.mrb[44].mxu0 %vm1646_vm2, %v17246_v17  ;;  %v15755_v34 = vpop.f32.mrb[60].mxu1 }
 0x608   : > { %17265 = vst [vmem:[#allocation134_spill] sm:$0xff] %v15755_v34  ;;  %12294 = vmatprep.mubr.msk.f32.mxu0 %vm1646_vm2, %v17248_v49  ;;  %v15759_v53 = vpop.f32.mrb[61].mxu1  ;;  %v15780_v28 = vpop.permute.xlu1 %5017 }
 0x609   : > { %17266 = vst [vmem:[#allocation135_spill] sm:$0xff] %v15759_v53  ;;  %17272 = vst [vmem:[#allocation141_spill] sm:$0xff] %v15780_v28 }
 0x60b   : > { %12295 = vmatmul.mubr.msk.f32.gmra.mrb[46].mxu0 %vm1646_vm2, %v17250_v59  ;;  %v15765_v13 = vpop.f32.mrb[62].mxu1 }
 0x60c   : > { %17268 = vst [vmem:[#allocation137_spill] sm:$0xff] %v15765_v13  ;;  %12319 = vmatprep.mubr.msk.f32.mxu0 %vm1646_vm2, %v15251_v15  ;;  %v15769_v3 = vpop.f32.mrb[63].mxu1 }
 0x60d   : > { %17269 = vst [vmem:[#allocation138_spill] sm:$0xff] %v15769_v3 }
 0x60f   : > { %12320 = vmatmul.mubr.msk.f32.vlgmr.msra.gmra.mrb[48].mxu0 %vm1646_vm2, %v15257_v16  ;;  %v15773_v34 = vpop.f32.mrb[64].mxu1 }
 0x610   : > { %17270 = vst [vmem:[#allocation139_spill] sm:$0xff] %v15773_v34  ;;  %12322 = vmatprep.mubr.msk.f32.mxu0 %vm1646_vm2, %v15262_v20  ;;  %12358 = vmatpush3.msk.msra.mxu0 %vm1653_vm1, %v13882_v46  ;;  %v15778_v53 = vpop.f32.mrb[65].mxu1  ;;  %v15793_v46 = vpop.permute.xlu1 %5210 }
 0x611   : > { %17271 = vst [vmem:[#allocation140_spill] sm:$0xff] %v15778_v53  ;;  %12977 = vmatprep.subr.bf16.mxu0 %v17196_v37  ;;  %17275 = vst [vmem:[#allocation144_spill] sm:$0xff] %v15793_v46  ;;  %v11467_v46 = vld [vmem:[%s17229_s0 + $0x18] sm:$0xff] }
 0x612   : > { %v15815_v8 = vpack.c.bf16 %v11467_v46, %v11466_v33  ;;  %v11484_v46 = vld [vmem:[%s17229_s0 + $0x80] sm:$0xff] }
 0x613   : > { %12323 = vmatmul.mubr.msk.f32.gmra.mrb[50].mxu0 %vm1646_vm2, %v15275_v25  ;;  %v15785_v13 = vpop.f32.mrb[66].mxu1 }
 0x614   : > { %17273 = vst [vmem:[#allocation142_spill] sm:$0xff] %v15785_v13  ;;  %12325 = vmatprep.mubr.msk.f32.mxu0 %vm1646_vm2, %v15280_v26  ;;  %v15789_v34 = vpop.f32.mrb[67].mxu1  ;;  %v5330_v3 = vpop.permute.xlu1 %5329  ;;  %17280 = vst [vmem:[#allocation149_spill] sm:$0xff] %v15815_v8 }
 0x615   : > { %17274 = vst [vmem:[#allocation143_spill] sm:$0xff] %v15789_v34 }
 0x617   : > { %12326 = vmatmul.mubr.msk.f32.gmra.mrb[52].mxu0 %vm1646_vm2, %v15286_v29  ;;  %v15795_v28 = vpop.f32.mrb[68].mxu1 }
 0x618   : > { %17276 = vst [vmem:[#allocation145_spill] sm:$0xff] %v15795_v28  ;;  %12328 = vmatprep.mubr.msk.f32.mxu0 %vm1646_vm2, %v15294_v47  ;;  %v15799_v53 = vpop.f32.mrb[69].mxu1 }
 0x619   : > { %17277 = vst [vmem:[#allocation146_spill] sm:$0xff] %v15799_v53 }
 0x61b   : > { %12329 = vmatmul.mubr.msk.f32.gmra.mrb[54].mxu0 %vm1646_vm2, %v17243_v27  ;;  %v15803_v13 = vpop.f32.mrb[70].mxu1 }
 0x61c   : > { %17278 = vst [vmem:[#allocation147_spill] sm:$0xff] %v15803_v13  ;;  %12331 = vmatprep.mubr.msk.f32.mxu0 %vm1646_vm2, %v17244_v10  ;;  %v15807_v34 = vpop.f32.mrb[71].mxu1 }
 0x61d   : > { %17279 = vst [vmem:[#allocation148_spill] sm:$0xff] %v15807_v34  ;;  %v17296_v34 = vld [vmem:[#allocation55_spill] sm:$0xff] }
 0x61f   : > { %12332 = vmatmul.mubr.msk.f32.gmra.mrb[56].mxu0 %vm1646_vm2, %v17246_v17  ;;  %v5404_v28 = vpop.f32.mrb[72].mxu1 }
 0x620   : > { %12334 = vmatprep.mubr.msk.f32.mxu0 %vm1646_vm2, %v17248_v49  ;;  %v5405_v53 = vadd.f32 %v5404_v28, %v5330_v3  ;;  %v12410_v55 = vpop.f32.mrb[73].mxu1  ;;  %v6150_v28 = vld [vmem:[%s17282_s10] sm:$0x7]  ;;  %s17414_s10 = sld [smem:[#allocation24_spill]] }
 0x621   : > { %v11478_v55 = vld [vmem:[%s17229_s0 + $0x60] sm:$0xff]  ;;  %6153 = vperm.xlu1 %13819, %v6150_v28  }
 0x622   : > { %v15817_v13 = vmax.f32 %v5405_v53, 0.0  ;;  %v11479_v53 = vld [vmem:[%s17229_s0 + $0x68] sm:$0xff] }
 0x623   : > { %12335 = vmatmul.mubr.msk.f32.gmra.mrb[58].mxu0 %vm1646_vm2, %v17250_v59  ;;  %v15874_v3 = vpack.c.bf16 %v11479_v53, %v11478_v55 }
 0x624   : > { %17281 = vst [vmem:[#allocation150_spill] sm:$0xff] %v15817_v13  ;;  %12359 = vmatprep.mubr.msk.f32.mxu0 %vm1646_vm2, %v15251_v15  ;;  %12416 = vmatmul.mubr.msk.f32.vlgmr.msra.gmra.mrb[74].mxu1 %vm5425_vm4, %v15817_v13  ;;  %v15857_v15 = vpop.permute.xlu0 %3996 }
 0x625   : > { %13004 = vmatpush3.bf16.msra.mxu1 %v15815_v8  ;;  %12422 = vmatprep.mubr.msk.f32.mxu1 %vm14231_vm3, %v17178_v22  ;;  %17284 = vst [vmem:[#allocation152_spill] sm:$0xff] %v15874_v3 }
 0x626   : > { %13008 = vmatprep.subr.bf16.mxu1 %v17196_v37 }
 0x627   : > { %12360 = vmatmul.mubr.msk.f32.vlgmr.msra.gmra.mrb[60].mxu0 %vm1646_vm2, %v15257_v16 }
 0x628   : > { %12362 = vmatprep.mubr.msk.f32.mxu0 %vm1646_vm2, %v15262_v20  ;;  %12423 = vmatmul.mubr.msk.f32.vlgmr.msra.gmra.mrb[76].mxu1 %vm5425_vm4, %v15817_v13  ;;  %v15859_v16 = vpop.permute.xlu0 %4008 }
 0x629   : > { %12436 = vmatprep.mubr.msk.f32.mxu1 %vm14231_vm3, %v17178_v22 }
 0x62b   : > { %12363 = vmatmul.mubr.msk.f32.gmra.mrb[62].mxu0 %vm1646_vm2, %v15275_v25  ;;  %v11472_v25 = vld [vmem:[%s17229_s0 + $0x30] sm:$0xff] }
 0x62c   : > { %12365 = vmatprep.mubr.msk.f32.mxu0 %vm1646_vm2, %v15280_v26  ;;  %v15861_v20 = vpop.permute.xlu0 %4016  ;;  %v11473_v26 = vld [vmem:[%s17229_s0 + $0x38] sm:$0xff] }
 0x62f   : > { %12366 = vmatmul.mubr.msk.f32.gmra.mrb[64].mxu0 %vm1646_vm2, %v15286_v29  ;;  %v15865_v29 = vpack.c.bf16 %v11473_v26, %v11472_v25  ;;  %v11485_v25 = vld [vmem:[%s17229_s0 + $0x88] sm:$0xff]  ;;  %v17285_v26 = vmov 4  }
 0x630   : > { %12368 = vmatprep.mubr.msk.f32.mxu0 %vm1646_vm2, %v15294_v47  ;;  %v15872_v33 = vpop.permute.xlu0 %4032  ;;  %13820 = vset.pattern.permute.xlu1 %v17285_v26  ;;  %v15887_v8 = vpack.c.bf16 %v11485_v25, %v11484_v46  ;;  %v6059_v25 = vadd.s32 2, %v14855_v11  ;;  %v15932_v11 = vld [vmem:[%s17288_s26 + $0x8] sm:$0xf] }
 0x631   : > { %17283 = vst [vmem:[#allocation151_spill] sm:$0xff] %v15865_v29  ;;  %13010 = vmatpush3.bf16.msra.mxu1 %v15865_v29  ;;  %v15885_v29 = vld [vmem:[#allocation11] sm:$0x7] }
 0x632   : > { %13014 = vmatprep.subr.bf16.mxu1 %v17196_v37  ;;  %17286 = vst [vmem:[#allocation153_spill] sm:$0xff] %v15887_v8  ;;  %6235 = vperm.xlu1 %13820, %v15885_v29   ;;  %vm6060_vm6 = vcmp.eq.s32.totalorder %v17234_v6, %v6059_v25  ;;  %v17297_v6 = vld [vmem:[#allocation54_spill] sm:$0xff] }
 0x633   : > { %12369 = vmatmul.mubr.msk.f32.gmra.mrb[66].mxu0 %vm1646_vm2, %v17243_v27 }
 0x634   : > { %12371 = vmatprep.mubr.msk.f32.mxu0 %vm1646_vm2, %v17244_v10  ;;  %12437 = vmatmul.mubr.msk.f32.vlgmr.msra.gmra.mrb[78].mxu1 %vm5425_vm4, %v15817_v13  ;;  %v15892_v28 = vpop.permute.xlu0 %4591 }
 0x635   : > { %13016 = vmatpush3.bf16.msra.mxu1 %v15874_v3  ;;  %12450 = vmatprep.mubr.msk.f32.mxu1 %vm14231_vm3, %v17178_v22  ;;  %17287 = vst [vmem:[#allocation154_spill] sm:$0xff] %v15892_v28  ;;  %v15923_v3 = vld [vmem:[%s17288_s26] sm:$0xff]  ;;  %v7017_v28 = vld [vmem:[%s17294_s15 + $0x8] sm:$0xf] }
 0x636   : > { %13020 = vmatprep.subr.bf16.mxu1 %v17196_v37  ;;  %13821 = vset.pattern.permute.xlu1 %v17157_v43  ;;  %v11487_v37 = vsel %vm6060_vm6, 1.0, %v17178_v22 }
 0x637   : > { %12372 = vmatmul.mubr.msk.f32.gmra.mrb[68].mxu0 %vm1646_vm2, %v17246_v17  ;;  %6320 = vperm.xlu1 %13821, %v15885_v29  }
 0x638   : > { %12374 = vmatprep.mubr.msk.f32.mxu0 %vm1646_vm2, %v17248_v49  ;;  %12451 = vmatmul.mubr.msk.f32.vlgmr.msra.gmra.mrb[80].mxu1 %vm5425_vm4, %v15817_v13  ;;  %v15904_v55 = vpop.permute.xlu0 %4611 }
 0x639   : > { %13022 = vmatpush3.bf16.msra.mxu1 %v15887_v8  ;;  %12464 = vmatprep.mubr.msk.f32.mxu1 %vm14231_vm3, %v17178_v22  ;;  %17289 = vst [vmem:[#allocation155_spill] sm:$0xff] %v15904_v55 }
 0x63a   : > { %12472 = vmatprep.subr.mxu1 %v17178_v22  ;;  %6065 = vperm.xlu0 %13818, %v11487_v37   ;;  %v4233_v37 = vmul.f32 %v15615_v63, %v15682_v41 }
 0x63b   : > { %12375 = vmatmul.mubr.msk.f32.gmra.mrb[70].mxu0 %vm1646_vm2, %v17250_v59  ;;  %13823 = vset.pattern.permute.xlu1 %v17166_v42 }
 0x63c   : > { %12401 = vmatprep.mubr.msk.f32.mxu0 %vm14231_vm3, %v17178_v22  ;;  %12465 = vmatmul.mubr.msk.f32.vlgmr.msra.gmra.mrb[82].mxu1 %vm5425_vm4, %v15817_v13  ;;  %v15908_v53 = vpop.permute.xlu0 %5174 }
 0x63d   : > { %12474 = vmatprep.mubr.msk.f32.mxu1 %vm14231_vm3, %v17178_v22  ;;  %6472 = vperm.xlu1 %13823, %v15885_v29   ;;  %17291 = vst [vmem:[#allocation156_spill] sm:$0xff] %v15908_v53  ;;  %v17298_v22 = vld [vmem:[#allocation56_spill] sm:$0xff] }
 0x63e   : > { %v4232_v55 = vmul.f32 %v17298_v22, %v15618_v62 }
 0x640   : > { %v15912_v46 = vpop.permute.xlu0 %5190 }
 0x641   : > { %13824 = vset.pattern.permute.xlu1 %v17175_v45  ;;  %17292 = vst [vmem:[#allocation157_spill] sm:$0xff] %v15912_v46  ;;  %v6239_v46 = vld [vmem:[%s17290_s11] sm:$0x7] }
 0x642   : > { %6548 = vperm.xlu1 %13824, %v15885_v29   ;;  %6242 = vperm.xlu0 %13818, %v6239_v46  }
 0x644   : > { %v15918_v8 = vpop.permute.xlu0 %5198 }
 0x645   : > { %17293 = vst [vmem:[#allocation158_spill] sm:$0xff] %v15918_v8 }
 0x646   : > { %13826 = vset.pattern.permute.xlu1 %v17155_v40  ;;  %13822 = vset.pattern.permute.xlu0 %v17173_v24 }
 0x647   : > { %6700 = vperm.xlu1 %13826, %v15885_v29   ;;  %6396 = vperm.xlu0 %13822, %v15885_v29  }
 0x648   : > { %v15929_v53 = vpop.permute.xlu0 %4776 }
 0x649   : > { %17295 = vst [vmem:[#allocation159_spill] sm:$0xff] %v15929_v53 }
 0x64b   : > { %13827 = vset.pattern.permute.xlu1 %v17156_v38  ;;  %13825 = vset.pattern.permute.xlu0 %v17168_v18 }
 0x64c   : > { %6776 = vperm.xlu1 %13827, %v15885_v29   ;;  %v15950_v63 = vpop.permute.xlu0 %4784  ;;  %6624 = vperm.xlu0 %13825, %v15885_v29  }
 0x650   : > { %13829 = vset.pattern.permute.xlu1 %v17285_v26  ;;  %13828 = vset.pattern.permute.xlu0 %v17183_v5 }
 0x651   : > { %7006 = vperm.xlu1 %13829, %v15923_v3   ;;  %6852 = vperm.xlu0 %13828, %v15885_v29  }
 0x655   : > { %7011 = vperm.xlu1 %13829, %v15932_v11   ;;  %13830 = vset.pattern.permute.xlu0 %v17157_v43 }
 0x659   : > { %13831 = vset.pattern.permute.xlu1 %v17157_v43 }
 0x65a   : > { %7025 = vperm.xlu1 %13831, %v7017_v28  }
 0x65e   : > { %7111 = vperm.xlu1 %13831, %v15923_v3  }
 0x662   : > { %13832 = vset.pattern.permute.xlu1 %v17173_v24 }
 0x663   : > { %7198 = vperm.xlu1 %13832, %v15923_v3  }
 0x667   : > { %13834 = vset.pattern.permute.xlu1 %v17166_v42 }
 0x668   : > { %7285 = vperm.xlu1 %13834, %v15923_v3  }
 0x66c   : > { %7289 = vperm.xlu1 %13834, %v15932_v11  }
 0x6b2   : > { %v12241_v8 = vpop.f32.mrb[24].mxu0 }
 0x6b3   : > { %v4036_v13 = vmul.f32 %v12241_v8, %v17296_v34  ;;  %v3928_v25 = vpop.f32.mrb[25].mxu0  ;;  %v17299_v8 = vld [vmem:[#allocation62_spill] sm:$0xff] }
 0x6b4   : > { %v4035_v38 = vmul.f32 %v17297_v6, %v3928_v25  ;;  %v3540_v34 = vmul.f32 %v17243_v27, %v17299_v8  ;;  %v17300_v6 = vld [vmem:[#allocation57_spill] sm:$0xff]  ;;  %v17303_v27 = vld [vmem:[#allocation106_spill] sm:$0xff] }
 0x6b5   : > { %v4048_v26 = vadd.f32 %v4036_v13, %v15539_v44  ;;  %v17301_v44 = vld [vmem:[#allocation104_spill] sm:$0xff]  ;;  %v3541_v41 = vmul.f32 %v17244_v10, %v17303_v27  ;;  %v17306_v10 = vld [vmem:[#allocation67_spill] sm:$0xff] }
 0x6b6   : > { %v4047_v53 = vadd.f32 %v4035_v38, %v15547_v14  ;;  %v12244_v40 = vpop.f32.mrb[26].mxu0  ;;  %v3539_v22 = vmul.f32 %v15294_v47, %v17301_v44  ;;  %v17313_v27 = vld [vmem:[#allocation87_spill] sm:$0xff] }
 0x6b7   : > { %v4038_v46 = vmul.f32 %v12244_v40, %v17300_v6  ;;  %v3938_v25 = vpop.f32.mrb[27].mxu0  ;;  %v15948_v45 = vadd.f32 %v4233_v37, %v4048_v26  ;;  %v17302_v40 = vld [vmem:[#allocation74_spill] sm:$0xff]  ;;  %v17304_v26 = vld [vmem:[#allocation59_spill] sm:$0xff] }
 0x6b8   : > { %v4037_v38 = vmul.f32 %v15857_v15, %v3938_v25  ;;  %v15956_v14 = vadd.f32 %v4232_v55, %v4047_v53  ;;  %v3542_v13 = vmul.f32 %v17246_v17, %v17302_v40  ;;  %v4234_v37 = vmul.f32 %v17304_v26, %v15632_v58  ;;  %v17305_v15 = vld [vmem:[#allocation69_spill] sm:$0xff]  ;;  %v17307_v58 = vld [vmem:[#allocation68_spill] sm:$0xff] }
 0x6b9   : > { %v4050_v62 = vadd.f32 %v4038_v46, %v15553_v50  ;;  %v3845_v55 = vmul.f32 %v15573_v32, %v17305_v15  ;;  %v3624_v53 = vadd.f32 %v15620_v21, %v3540_v34  ;;  %v3623_v17 = vadd.f32 %v17306_v10, %v3539_v22  ;;  %v17309_v32 = vld [vmem:[#allocation108_spill] sm:$0xff]  ;;  %v17311_v22 = vld [vmem:[#allocation85_spill] sm:$0xff] }
 0x6ba   : > { %v4049_v47 = vadd.f32 %v4037_v38, %v15558_v1  ;;  %v12247_v8 = vpop.f32.mrb[28].mxu0  ;;  %v3844_v46 = vmul.f32 %v17307_v58, %v15577_v0  ;;  %v17308_v1 = vld [vmem:[#allocation63_spill] sm:$0xff]  ;;  %v3544_v21 = vmul.f32 %v17250_v59, %v17309_v32  ;;  %v15987_v38 = vpop.permute.xlu0 %4796  ;;  %v3625_v0 = vadd.f32 %v17311_v22, %v3541_v41 }
 0x6bb   : > { %v4040_v50 = vmul.f32 %v12247_v8, %v15859_v16  ;;  %v3948_v28 = vpop.f32.mrb[29].mxu0  ;;  %v15972_v6 = vadd.f32 %v15694_v56, %v4050_v62  ;;  %v17310_v16 = vld [vmem:[#allocation70_spill] sm:$0xff]  ;;  %v3847_v26 = vmul.f32 %v15584_v51, %v17313_v27  ;;  %v3857_v59 = vadd.f32 %v3845_v55, %v3624_v53  ;;  %v17317_v55 = vld [vmem:[#allocation88_spill] sm:$0xff] }
 0x6bc   : > { %v4039_v25 = vmul.f32 %v17308_v1, %v3948_v28  ;;  %v15979_v44 = vadd.f32 %v4234_v37, %v4049_v47  ;;  %v4237_v56 = vmul.f32 %v15639_v30, %v17310_v16  ;;  %v17312_v62 = vld [vmem:[#allocation86_spill] sm:$0xff]  ;;  %v3846_v30 = vmul.f32 %v15641_v35, %v15591_v9  ;;  %v17316_v9 = vld [vmem:[#allocation99_spill] sm:$0xff] }
 0x6bd   : > { %v4052_v34 = vadd.f32 %v4040_v50, %v15568_v36  ;;  %v3626_v40 = vadd.f32 %v17312_v62, %v3542_v13  ;;  %v17314_v50 = vld [vmem:[#allocation92_spill] sm:$0xff]  ;;  %v3856_v28 = vadd.f32 %v3844_v46, %v3623_v17  ;;  %v17315_v13 = vld [vmem:[#allocation75_spill] sm:$0xff]  ;;  %v3628_v35 = vadd.f32 %v17316_v9, %v3544_v21  ;;  %v17318_v46 = vld [vmem:[#allocation94_spill] sm:$0xff] }
 0x6be   : > { %v4051_v37 = vadd.f32 %v4039_v25, %v15571_v19  ;;  %v12250_v47 = vpop.f32.mrb[30].mxu0  ;;  %v3543_v41 = vmul.f32 %v17248_v49, %v17314_v50  ;;  %v4238_v53 = vmul.f32 %v17317_v55, %v15659_v4  ;;  %v3858_v58 = vadd.f32 %v3846_v30, %v3625_v0  ;;  %v16019_v29 = vpop.permute.xlu0 %4800  ;;  %v17319_v21 = vld [vmem:[#allocation100_spill] sm:$0xff] }
 0x6bf   : > { %v4042_v36 = vmul.f32 %v12250_v47, %v15861_v20  ;;  %v3958_v8 = vpop.f32.mrb[31].mxu0  ;;  %v15998_v15 = vadd.f32 %v4237_v56, %v4052_v34  ;;  %v3859_v20 = vadd.f32 %v3847_v26, %v3626_v40  ;;  %v3848_v16 = vmul.f32 %v17319_v21, %v15604_v23  ;;  %v17320_v56 = vld [vmem:[#allocation93_spill] sm:$0xff]  ;;  %v17327_v55 = vld [vmem:[#allocation80_spill] sm:$0xff] }
 0x6c0   : > { %v4041_v10 = vmul.f32 %v17315_v13, %v3958_v8  ;;  %v16004_v51 = vadd.f32 %v15706_v54, %v4051_v37  ;;  %v3849_v54 = vmul.f32 %v15600_v12, %v15671_v31  ;;  %v3627_v4 = vadd.f32 %v15655_v7, %v3543_v41  ;;  %v17321_v12 = vld [vmem:[#allocation101_spill] sm:$0xff]  ;;  %v17322_v37 = vld [vmem:[#allocation107_spill] sm:$0xff]  ;;  %v17331_v21 = vld [vmem:[#allocation64_spill] sm:$0xff] }
 0x6c1   : > { %v4054_v19 = vadd.f32 %v4042_v36, %v3857_v59  ;;  %v4240_v31 = vmul.f32 %v17321_v12, %v15669_v52  ;;  %v4243_v52 = vmul.f32 %v15675_v60, %v15541_v39  ;;  %v17325_v39 = vld [vmem:[#allocation61_spill] sm:$0xff]  ;;  %v17326_v60 = vld [vmem:[#allocation78_spill] sm:$0xff]  ;;  %v17335_v12 = vld [vmem:[#allocation71_spill] sm:$0xff] }
 0x6c2   : > { %v4053_v49 = vadd.f32 %v4041_v10, %v3856_v28  ;;  %v12253_v17 = vpop.f32.mrb[32].mxu0  ;;  %v3861_v40 = vadd.f32 %v3849_v54, %v3628_v35  ;;  %v3860_v26 = vadd.f32 %v3848_v16, %v3627_v4  ;;  %v16041_v36 = vpop.permute.xlu0 %4808  ;;  %v17324_v10 = vld [vmem:[#allocation58_spill] sm:$0xff]  ;;  %v4627_v35 = vmul.f32 %v17326_v60, %v17325_v39 }
 0x6c3   : > { %v4044_v1 = vmul.f32 %v12253_v17, %v17318_v46  ;;  %v3968_v25 = vpop.f32.mrb[33].mxu0  ;;  %v16017_v32 = vadd.f32 %v15721_v61, %v4054_v19  ;;  %v17329_v17 = vld [vmem:[#allocation65_spill] sm:$0xff] }
 0x6c4   : > { %v4043_v34 = vmul.f32 %v17320_v56, %v3968_v25  ;;  %v16025_v22 = vadd.f32 %v4238_v53, %v4053_v49  ;;  %v17330_v25 = vmov 3   ;;  %v17333_v56 = vld [vmem:[#allocation81_spill] sm:$0xff] }
 0x6c5   : > { %v4056_v0 = vadd.f32 %v4044_v1, %v3859_v20  ;;  %13836 = vset.pattern.permute.xlu1 %v17330_v25 }
 0x6c6   : > { %v4055_v62 = vadd.f32 %v4043_v34, %v3858_v58  ;;  %v12256_v61 = vpop.f32.mrb[34].mxu0  ;;  %v16059_v46 = vpop.permute.xlu0 %4820  ;;  %7376 = vperm.xlu1 %13836, %v15932_v11  }
 0x6c7   : > { %v4046_v27 = vmul.f32 %v12256_v61, %v15872_v33  ;;  %v3978_v23 = vpop.f32.mrb[35].mxu0  ;;  %v16033_v7 = vadd.f32 %v15731_v48, %v4056_v0  ;;  %v4242_v33 = vmul.f32 %v15513_v2, %v15680_v57  ;;  %v17323_v48 = vld [vmem:[#allocation110_spill] sm:$0xff]  ;;  %v17328_v2 = vld [vmem:[#allocation60_spill] sm:$0xff] }
 0x6c8   : > { %v4045_v47 = vmul.f32 %v17322_v37, %v3978_v23  ;;  %v16037_v59 = vadd.f32 %v4240_v31, %v4055_v62  ;;  %v4626_v57 = vmul.f32 %v17328_v2, %v17327_v55  ;;  %v17334_v0 = vld [vmem:[#allocation122_spill] sm:$0xff] }
 0x6c9   : > { %v4058_v30 = vadd.f32 %v4046_v27, %v3861_v40  ;;  %v4628_v31 = vmul.f32 %v17335_v12, %v17334_v0  ;;  %v17336_v40 = vld [vmem:[#allocation79_spill] sm:$0xff]  ;;  %v17350_v12 = vld [vmem:[#allocation109_spill] sm:$0xff] }
 0x6ca   : > { %v4057_v8 = vadd.f32 %v4045_v47, %v3860_v26  ;;  %v12281_v50 = vpop.f32.mrb[36].mxu0  ;;  %v16077_v37 = vpop.permute.xlu0 %4981  ;;  %v17337_v47 = vld [vmem:[#allocation76_spill] sm:$0xff]  ;;  %13837 = vset.pattern.permute.xlu1 %v17168_v18 }
 0x6cb   : > { %v4430_v41 = vmul.f32 %v12281_v50, %v17323_v48  ;;  %v4322_v28 = vpop.f32.mrb[37].mxu0  ;;  %v16046_v13 = vadd.f32 %v4243_v52, %v4058_v30  ;;  %7459 = vperm.xlu1 %13837, %v15923_v3   ;;  %v17341_v48 = vld [vmem:[#allocation89_spill] sm:$0xff] }
 0x6cc   : > { %v4429_v19 = vmul.f32 %v17324_v10, %v4322_v28  ;;  %v16050_v9 = vadd.f32 %v4242_v33, %v4057_v8  ;;  %v17339_v33 = vld [vmem:[#allocation123_spill] sm:$0xff] }
 0x6cd   : > { %v4442_v20 = vadd.f32 %v4430_v41, %v15948_v45  ;;  %v17332_v45 = vld [vmem:[#allocation154_spill] sm:$0xff] }
 0x6ce   : > { %v4441_v53 = vadd.f32 %v4429_v19, %v15956_v14  ;;  %v12284_v49 = vpop.f32.mrb[38].mxu0  ;;  %v4629_v34 = vmul.f32 %v17333_v56, %v17332_v45  ;;  %v17342_v19 = vld [vmem:[#allocation95_spill] sm:$0xff] }
 0x6cf   : > { %v4432_v58 = vmul.f32 %v12284_v49, %v17329_v17  ;;  %v4332_v54 = vpop.f32.mrb[39].mxu0  ;;  %v16061_v1 = vadd.f32 %v4627_v35, %v4442_v20  ;;  %v17343_v20 = vld [vmem:[#allocation112_spill] sm:$0xff]  ;;  %v4990_v17 = vpop.permute.xlu0 %4989  ;;  %v17349_v56 = vld [vmem:[#allocation111_spill] sm:$0xff] }
 0x6d0   : > { %v4431_v16 = vmul.f32 %v17331_v21, %v4332_v54  ;;  %v16065_v4 = vadd.f32 %v4626_v57, %v4441_v53  ;;  %v17344_v57 = vld [vmem:[#allocation103_spill] sm:$0xff]  ;;  %v17345_v53 = vld [vmem:[#allocation126_spill] sm:$0xff] }
 0x6d1   : > { %v4444_v14 = vadd.f32 %v4432_v58, %v15972_v6  ;;  %v17338_v6 = vld [vmem:[#allocation90_spill] sm:$0xff]  ;;  %v17346_v58 = vmov 6   ;;  %v17347_v54 = vld [vmem:[#allocation127_spill] sm:$0xff] }
 0x6d2   : > { %v4443_v62 = vadd.f32 %v4431_v16, %v15979_v44  ;;  %v12287_v61 = vpop.f32.mrb[40].mxu0  ;;  %v4631_v8 = vmul.f32 %v17339_v33, %v17338_v6  ;;  %v17340_v44 = vld [vmem:[#allocation124_spill] sm:$0xff]  ;;  %13839 = vset.pattern.permute.xlu1 %v17346_v58  ;;  %v17355_v33 = vld [vmem:[#allocation82_spill] sm:$0xff] }
 0x6d3   : > { %v4434_v27 = vmul.f32 %v12287_v61, %v17336_v40  ;;  %v4342_v23 = vpop.f32.mrb[41].mxu0  ;;  %v16075_v26 = vadd.f32 %v4629_v34, %v4444_v14  ;;  %v4630_v41 = vmul.f32 %v17341_v48, %v17340_v44  ;;  %7546 = vperm.xlu1 %13839, %v15923_v3   ;;  %v17352_v61 = vld [vmem:[#allocation128_spill] sm:$0xff]  ;;  %v17357_v44 = vld [vmem:[#allocation119_spill] sm:$0xff] }
 0x6d4   : > { %v4433_v52 = vmul.f32 %v17337_v47, %v4342_v23  ;;  %v16080_v30 = vadd.f32 %v4628_v31, %v4443_v62  ;;  %v17353_v23 = vld [vmem:[#allocation130_spill] sm:$0xff]  ;;  %v17354_v47 = vld [vmem:[#allocation155_spill] sm:$0xff] }
 0x6d5   : > { %v4446_v50 = vadd.f32 %v4434_v27, %v15998_v15  ;;  %v4633_v15 = vmul.f32 %v17345_v53, %v17344_v57 }
 0x6d6   : > { %v4445_v28 = vadd.f32 %v4433_v52, %v16004_v51  ;;  %v12290_v10 = vpop.f32.mrb[42].mxu0  ;;  %v17348_v51 = vld [vmem:[#allocation102_spill] sm:$0xff] }
 0x6d7   : > { %v4436_v39 = vmul.f32 %v12290_v10, %v17342_v19  ;;  %v4352_v60 = vpop.f32.mrb[43].mxu0  ;;  %v16091_v35 = vadd.f32 %v4631_v8, %v4446_v50  ;;  %v4632_v21 = vmul.f32 %v17348_v51, %v17347_v54  ;;  %7550 = vperm.xlu1 %13839, %v15932_v11   ;;  %v17356_v8 = vld [vmem:[#allocation131_spill] sm:$0xff]  ;;  %v17358_v19 = vld [vmem:[#allocation132_spill] sm:$0xff] }
 0x6d8   : > { %v4435_v55 = vmul.f32 %v17343_v20, %v4352_v60  ;;  %v16094_v2 = vadd.f32 %v4630_v41, %v4445_v28  ;;  %v4637_v50 = vmul.f32 %v17356_v8, %v17355_v33  ;;  %v5002_v28 = vpop.permute.xlu0 %5001  ;;  %v17360_v60 = vld [vmem:[#allocation118_spill] sm:$0xff] }
 0x6d9   : > { %v4448_v49 = vadd.f32 %v4436_v39, %v16017_v32  ;;  %v17351_v32 = vld [vmem:[#allocation116_spill] sm:$0xff]  ;;  %v17359_v39 = vld [vmem:[#allocation77_spill] sm:$0xff]  ;;  %v17370_v8 = vld [vmem:[#allocation138_spill] sm:$0xff] }
 0x6da   : > { %v4447_v16 = vadd.f32 %v4435_v55, %v16025_v22  ;;  %v12293_v45 = vpop.f32.mrb[44].mxu0  ;;  %v4635_v40 = vmul.f32 %v17352_v61, %v17351_v32  ;;  %v4634_v22 = vmul.f32 %v17354_v47, %v17353_v23  ;;  %v17366_v32 = vld [vmem:[#allocation135_spill] sm:$0xff]  ;;  %v17367_v61 = vld [vmem:[#allocation72_spill] sm:$0xff] }
 0x6db   : > { %v4438_v34 = vmul.f32 %v12293_v45, %v17349_v56  ;;  %v4362_v14 = vpop.f32.mrb[45].mxu0  ;;  %v16105_v0 = vadd.f32 %v4633_v15, %v4448_v49  ;;  %v17361_v15 = vmov 7   ;;  %v17362_v49 = vld [vmem:[#allocation66_spill] sm:$0xff]  ;;  %v17369_v47 = vld [vmem:[#allocation83_spill] sm:$0xff] }
 0x6dc   : > { %v4437_v31 = vmul.f32 %v17350_v12, %v4362_v14  ;;  %v16108_v62 = vadd.f32 %v4632_v21, %v4447_v16  ;;  %13841 = vset.pattern.permute.xlu1 %v17361_v15  ;;  %v17363_v16 = vld [vmem:[#allocation159_spill] sm:$0xff]  ;;  %v17364_v14 = vld [vmem:[#allocation73_spill] sm:$0xff]  ;;  %v17365_v12 = vld [vmem:[#allocation134_spill] sm:$0xff] }
 0x6dd   : > { %v4450_v27 = vadd.f32 %v4438_v34, %v16033_v7  ;;  %v4636_v7 = vmul.f32 %v17359_v39, %v17358_v19  ;;  %7637 = vperm.xlu1 %13841, %v15932_v11   ;;  %v5413_v34 = vpop.permute.xlu1 %5412 }
 0x6de   : > { %v4449_v52 = vadd.f32 %v4437_v31, %v16037_v59  ;;  %v12296_v6 = vpop.f32.mrb[46].mxu0  ;;  %v5006_v31 = vpop.permute.xlu0 %5005 }
 0x6df   : > { %v4440_v48 = vmul.f32 %v12296_v6, %v17357_v44  ;;  %v4372_v41 = vpop.f32.mrb[47].mxu0  ;;  %v16120_v10 = vadd.f32 %v4635_v40, %v4450_v27  ;;  %v5020_v40 = vmul.f32 %v17367_v61, %v17366_v32  ;;  %v17371_v44 = vld [vmem:[#allocation91_spill] sm:$0xff]  ;;  %v17378_v32 = vld [vmem:[#allocation142_spill] sm:$0xff] }
 0x6e0   : > { %v4439_v20 = vmul.f32 %v17360_v60, %v4372_v41  ;;  %v16125_v55 = vadd.f32 %v4634_v22, %v4449_v52  ;;  %v5242_v60 = vld [vmem:[%s17368_s22] sm:$0x3f]  ;;  %v5027_v61 = vmul.f32 %v17378_v32, %v5002_v28  ;;  %v17382_v28 = vld [vmem:[#allocation125_spill] sm:$0xff]  ;;  %s17415_s22 = sld [smem:[#allocation26_spill]] }
 0x6e1   : > { %v4452_v59 = vadd.f32 %v4440_v48, %v16046_v13  ;;  %v5021_v13 = vmul.f32 %v17365_v12, %v17364_v14  ;;  %13842 = vset.pattern.permute.xlu1 %v17183_v5  ;;  %v17372_v48 = vld [vmem:[#allocation137_spill] sm:$0xff] }
 0x6e2   : > { %v4451_v57 = vadd.f32 %v4439_v20, %v16050_v9  ;;  %v12321_v53 = vpop.f32.mrb[48].mxu0  ;;  %7720 = vperm.xlu1 %13842, %v15923_v3   ;;  %v17377_v12 = vld [vmem:[#allocation113_spill] sm:$0xff] }
 0x6e3   : > { %v4824_v54 = vmul.f32 %v12321_v53, %v17362_v49  ;;  %v4716_v51 = vpop.f32.mrb[49].mxu0  ;;  %v16131_v21 = vadd.f32 %v4637_v50, %v4452_v59  ;;  %v5014_v59 = vpop.permute.xlu0 %5013  ;;  %v17373_v53 = vld [vmem:[#allocation96_spill] sm:$0xff] }
 0x6e4   : > { %v4823_v45 = vmul.f32 %v17363_v16, %v4716_v51  ;;  %v16135_v56 = vadd.f32 %v4636_v7, %v4451_v57  ;;  %v5501_v7 = vpop.permute.xlu1 %5500  ;;  %v17376_v16 = vld [vmem:[#allocation139_spill] sm:$0xff] }
 0x6e5   : > { %v4836_v9 = vadd.f32 %v4824_v54, %v16061_v1  ;;  %v5022_v1 = vmul.f32 %v16077_v37, %v17370_v8  ;;  %v17374_v54 = vld [vmem:[#allocation140_spill] sm:$0xff] }
 0x6e6   : > { %v4835_v27 = vadd.f32 %v4823_v45, %v16065_v4  ;;  %v12324_v23 = vpop.f32.mrb[50].mxu0  ;;  %v5023_v4 = vmul.f32 %v17372_v48, %v17371_v44  ;;  %v5024_v51 = vmul.f32 %v4990_v17, %v17374_v54  ;;  %13844 = vset.pattern.permute.xlu1 %v17157_v43  ;;  %v17383_v48 = vld [vmem:[#allocation145_spill] sm:$0xff] }
 0x6e7   : > { %v4826_v22 = vmul.f32 %v12324_v23, %v17369_v47  ;;  %v4726_v52 = vpop.f32.mrb[51].mxu0  ;;  %v16144_v6 = vadd.f32 %v5021_v13, %v4836_v9  ;;  %5245 = vperm.xlu1 %13844, %v5242_v60  }
 0x6e8   : > { %v4825_v33 = vmul.f32 %v15950_v63, %v4726_v52  ;;  %v16150_v50 = vadd.f32 %v5020_v40, %v4835_v27  ;;  %v16174_v27 = vpop.permute.xlu0 %5214  ;;  %v5580_v47 = vpop.permute.xlu1 %5579  ;;  %v17380_v52 = vld [vmem:[#allocation53_spill] sm:$0xff] }
 0x6e9   : > { %v4838_v41 = vadd.f32 %v4826_v22, %v16075_v26  ;;  %v17375_v26 = vld [vmem:[#allocation105_spill] sm:$0xff]  ;;  %v17379_v22 = vld [vmem:[#allocation143_spill] sm:$0xff] }
 0x6ea   : > { %v4837_v19 = vadd.f32 %v4825_v33, %v16080_v30  ;;  %v12327_v39 = vpop.f32.mrb[52].mxu0  ;;  %v5025_v30 = vmul.f32 %v17376_v16, %v17375_v26  ;;  %v17386_v26 = vld [vmem:[#allocation141_spill] sm:$0xff]  ;;  %v17387_v16 = vld [vmem:[#allocation147_spill] sm:$0xff] }
 0x6eb   : > { %v4828_v20 = vmul.f32 %v12327_v39, %v15987_v38  ;;  %v4736_v63 = vpop.f32.mrb[53].mxu0  ;;  %v16159_v57 = vadd.f32 %v5023_v4, %v4838_v41  ;;  %v5029_v4 = vmul.f32 %v17383_v48, %v17382_v28  ;;  %v17391_v48 = vld [vmem:[#allocation84_spill] sm:$0xff] }
 0x6ec   : > { %v16161_v37 = vadd.f32 %v5022_v1, %v4837_v19  ;;  %v4827_v49 = vmul.f32 %v17373_v53, %v4736_v63  ;;  %v17381_v1 = vld [vmem:[#allocation150_spill] sm:$0xff]  ;;  %v17384_v19 = vld [vmem:[#allocation120_spill] sm:$0xff] }
 0x6ed   : > { %v4840_v45 = vadd.f32 %v4828_v20, %v16091_v35  ;;  %v5415_v44 = vmul.f32 %v5413_v34, %v17381_v1 }
 0x6ee   : > { %v4839_v38 = vadd.f32 %v4827_v49, %v16094_v2  ;;  %v12330_v14 = vpop.f32.mrb[54].mxu0  ;;  %v5026_v2 = vmul.f32 %v17380_v52, %v17379_v22  ;;  %v16191_v49 = vpop.permute.xlu1 %5737 }
 0x6ef   : > { %v4830_v13 = vmul.f32 %v12330_v14, %v17377_v12  ;;  %v4746_v9 = vpop.f32.mrb[55].mxu0  ;;  %v16172_v40 = vadd.f32 %v5025_v30, %v4840_v45  ;;  %v5031_v30 = vmul.f32 %v17387_v16, %v17386_v26  ;;  %v17395_v16 = vmov 0.0|0.0  }
 0x6f0   : > { %v16176_v17 = vadd.f32 %v5024_v51, %v4839_v38  ;;  %v4829_v23 = vmul.f32 %v16019_v29, %v4746_v9  ;;  %v5420_v29 = vpop.permute.xlu0 %5419  ;;  %v17389_v9 = vld [vmem:[#allocation148_spill] sm:$0xff] }
 0x6f1   : > { %v4842_v35 = vadd.f32 %v4830_v13, %v16105_v0  ;;  %v17385_v0 = vld [vmem:[#allocation146_spill] sm:$0xff]  ;;  %v5422_v51 = vadd.f32 %v5420_v29, %v5415_v44  ;;  %v17388_v13 = vld [vmem:[#allocation129_spill] sm:$0xff]  ;;  %v5030_v32 = vmul.f32 %v5014_v59, %v17389_v9 }
 0x6f2   : > { %v4841_v33 = vadd.f32 %v4829_v23, %v16108_v62  ;;  %v12333_v8 = vpop.f32.mrb[56].mxu0  ;;  %v5028_v63 = vmul.f32 %v5006_v31, %v17385_v0  ;;  %v16202_v52 = vpop.permute.xlu1 %5816 }
 0x6f3   : > { %v16186_v41 = vadd.f32 %v5027_v61, %v4842_v35  ;;  %v4832_v39 = vmul.f32 %v12333_v8, %v17384_v19  ;;  %v4756_v60 = vpop.f32.mrb[57].mxu0 }
 0x6f4   : > { %v4831_v20 = vmul.f32 %v16041_v36, %v4756_v60  ;;  %v5038_v53 = vadd.f32 %v5026_v2, %v4841_v33  ;;  %v17390_v2 = vld [vmem:[#allocation156_spill] sm:$0xff]  ;;  %v17392_v60 = vld [vmem:[#allocation98_spill] sm:$0xff] }
 0x6f5   : > { %v4844_v62 = vadd.f32 %v4832_v39, %v16120_v10 }
 0x6f6   : > { %v4843_v34 = vadd.f32 %v4831_v20, %v16125_v55  ;;  %v12336_v54 = vpop.f32.mrb[58].mxu0 }
 0x6f7   : > { %v4834_v45 = vmul.f32 %v12336_v54, %v16059_v46  ;;  %v4766_v38 = vpop.f32.mrb[59].mxu0  ;;  %v5041_v14 = vadd.f32 %v5029_v4, %v4844_v62  ;;  %v5495_v12 = vpop.f32.mrb[74].mxu1 }
 0x6f8   : > { %v5040_v36 = vadd.f32 %v5028_v63, %v4843_v34  ;;  %v4833_v31 = vmul.f32 %v17388_v13, %v4766_v38  ;;  %v5503_v61 = vmul.f32 %v5501_v7, %v5495_v12  ;;  %v12417_v23 = vpop.f32.mrb[75].mxu1  ;;  %v17393_v63 = vld [vmem:[#allocation97_spill] sm:$0xff]  ;;  %v16212_v34 = vpop.permute.xlu1 %5974 }
 0x6f9   : > { %v4846_v10 = vadd.f32 %v4834_v45, %v16131_v21  ;;  %v17396_v45 = vld [vmem:[#allocation114_spill] sm:$0xff]  ;;  %v17398_v23 = vld [vmem:[#allocation121_spill] sm:$0xff] }
 0x6fa   : > { %v4845_v55 = vadd.f32 %v4833_v31, %v16135_v56  ;;  %v12361_v35 = vpop.f32.mrb[60].mxu0  ;;  %v5504_v22 = vadd.f32 %v5503_v61, %v5422_v51 }
 0x6fb   : > { %v5218_v46 = vmul.f32 %v12361_v35, %v17390_v2  ;;  %v5110_v33 = vpop.f32.mrb[61].mxu0  ;;  %v5043_v8 = vadd.f32 %v5031_v30, %v4846_v10  ;;  %v5574_v44 = vpop.f32.mrb[76].mxu1 }
 0x6fc   : > { %v5042_v28 = vadd.f32 %v5030_v32, %v4845_v55  ;;  %v5217_v4 = vmul.f32 %v17391_v48, %v5110_v33  ;;  %v5582_v19 = vmul.f32 %v5580_v47, %v5574_v44  ;;  %v12424_v59 = vpop.f32.mrb[77].mxu1  ;;  %v16221_v9 = vpop.permute.xlu1 %6053  ;;  %v17400_v33 = vld [vmem:[#allocation133_spill] sm:$0xff] }
 0x6fd   : > { %v5230_v7 = vadd.f32 %v5218_v46, %v16144_v6  ;;  %v17394_v6 = vld [vmem:[#allocation157_spill] sm:$0xff] }
 0x6fe   : > { %v5229_v21 = vadd.f32 %v5217_v4, %v16150_v50  ;;  %v12364_v39 = vpop.f32.mrb[62].mxu0  ;;  %v16208_v56 = vadd.f32 %v5582_v19, %v5504_v22 }
 0x6ff   : > { %v5220_v29 = vmul.f32 %v12364_v39, %v17392_v60  ;;  %v5120_v20 = vpop.f32.mrb[63].mxu0 }
 0x700   : > { %v12978_v0 = vpack.c.bf16 %v5230_v7, %v5229_v21  ;;  %v5219_v62 = vmul.f32 %v17393_v63, %v5120_v20  ;;  %v16230_v48 = vpop.permute.xlu1 %6153  ;;  %v17402_v21 = vld [vmem:[#allocation144_spill] sm:$0xff] }
 0x701   : > { %v5232_v54 = vadd.f32 %v5220_v29, %v16159_v57  ;;  %v17397_v57 = vld [vmem:[#allocation158_spill] sm:$0xff] }
 0x702   : > { %v5231_v47 = vadd.f32 %v5219_v62, %v16161_v37  ;;  %v12367_v51 = vpop.f32.mrb[64].mxu0  ;;  %12979 = vmatpush3.bf16.msra.mxu0 %v12978_v0  ;;  %v5241_v0 = vld [vmem:[%s17401_s3] sm:$0x3f]  ;;  %s17416_s3 = sld [smem:[#allocation49_spill]] }
 0x703   : > { %v5222_v26 = vmul.f32 %v12367_v51, %v17394_v6  ;;  %v5130_v50 = vpop.f32.mrb[65].mxu0  ;;  %12980 = vmatprep.subr.bf16.mxu0 %v17395_v16  ;;  %v11481_v51 = vld [vmem:[%s17229_s0 + $0x70] sm:$0xff]  ;;  %v11482_v6 = vld [vmem:[%s17229_s0 + $0x78] sm:$0xff] }
 0x704   : > { %v12981_v30 = vpack.c.bf16 %v5232_v54, %v5231_v47  ;;  %v5221_v38 = vmul.f32 %v17396_v45, %v5130_v50  ;;  %v16235_v29 = vpop.permute.xlu1 %6235  ;;  %v11476_v54 = vld [vmem:[%s17229_s0 + $0x58] sm:$0xff]  ;;  %v16264_v50 = vpack.c.bf16 %v11482_v6, %v11481_v51 }
 0x705   : > { %v5234_v12 = vadd.f32 %v5222_v26, %v16172_v40  ;;  %v17399_v40 = vld [vmem:[#allocation136_spill] sm:$0xff] }
 0x706   : > { %v5233_v13 = vadd.f32 %v5221_v38, %v16176_v17  ;;  %v12370_v31 = vpop.f32.mrb[66].mxu0  ;;  %12982 = vmatpush3.bf16.msra.mxu0 %v12981_v30  ;;  %v17404_v38 = vld [vmem:[#allocation52_spill] sm:$0xff] }
 0x707   : > { %v5224_v37 = vmul.f32 %v12370_v31, %v17397_v57  ;;  %v5140_v32 = vpop.f32.mrb[67].mxu0  ;;  %12983 = vmatprep.subr.bf16.mxu0 %v17395_v16  ;;  %v16293_v57 = vld [vmem:[%s15366_s1 + $0x8] sm:$0xf] }
 0x708   : > { %v12984_v61 = vpack.c.bf16 %v5234_v12, %v5233_v13  ;;  %v5223_v10 = vmul.f32 %v17398_v23, %v5140_v32  ;;  %v16243_v62 = vpop.permute.xlu1 %6320  ;;  %v17405_v13 = vld [vmem:[#allocation115_spill] sm:$0xff]  ;;  %v5732_v23 = vpop.f32.mrb[78].mxu1 }
 0x709   : > { %v5236_v55 = vadd.f32 %v5224_v37, %v16186_v41 }
 0x70a   : > { %v5235_v35 = vadd.f32 %v5223_v10, %v5038_v53  ;;  %v12373_v22 = vpop.f32.mrb[68].mxu0  ;;  %12985 = vmatpush3.bf16.msra.mxu0 %v12984_v61  ;;  %v12438_v10 = vpop.f32.mrb[79].mxu1 }
 0x70b   : > { %v5226_v2 = vmul.f32 %v12373_v22, %v17399_v40  ;;  %v5150_v17 = vpop.f32.mrb[69].mxu0  ;;  %12986 = vmatprep.subr.bf16.mxu0 %v17395_v16 }
 0x70c   : > { %v12987_v46 = vpack.c.bf16 %v5236_v55, %v5235_v35  ;;  %v5225_v44 = vmul.f32 %v17400_v33, %v5150_v17  ;;  %v16257_v26 = vpop.permute.xlu1 %6472  ;;  %v5890_v55 = vpop.f32.mrb[80].mxu1 }
 0x70d   : > { %v5238_v4 = vadd.f32 %v5226_v2, %v5041_v14  ;;  %v11469_v14 = vld [vmem:[%s17229_s0 + $0x20] sm:$0xff]  ;;  %v12452_v35 = vpop.f32.mrb[81].mxu1 }
 0x70e   : > { %v5237_v19 = vadd.f32 %v5225_v44, %v5040_v36  ;;  %v12376_v59 = vpop.f32.mrb[70].mxu0  ;;  %12988 = vmatpush3.bf16.msra.mxu0 %v12987_v46  ;;  %v11470_v36 = vld [vmem:[%s17229_s0 + $0x28] sm:$0xff]  ;;  %v5659_v46 = vpop.permute.xlu0 %5658  ;;  %v7895_v35 = vld [vmem:[#allocation2] sm:$0x1] }
 0x70f   : > { %v5228_v41 = vmul.f32 %v12376_v59, %v16174_v27  ;;  %v5160_v53 = vpop.f32.mrb[71].mxu0  ;;  %12989 = vmatprep.subr.bf16.mxu0 %v17395_v16  ;;  %v16241_v63 = vpack.c.bf16 %v11470_v36, %v11469_v14  ;;  %v6048_v22 = vpop.f32.mrb[82].mxu1  ;;  %7898 = vperm.xlu1 %13844, %v7895_v35  }
 0x710   : > { %v12990_v7 = vpack.c.bf16 %v5238_v4, %v5237_v19  ;;  %v5227_v39 = vmul.f32 %v17402_v21, %v5160_v53  ;;  %v16267_v30 = vpop.permute.xlu1 %6548  ;;  %v12466_v40 = vpop.f32.mrb[83].mxu1  ;;  %v5740_v19 = vmul.f32 %v16191_v49, %v5732_v23 }
 0x711   : > { %v5240_v60 = vadd.f32 %v5228_v41, %v5043_v8  ;;  %v11475_v8 = vld [vmem:[%s17229_s0 + $0x50] sm:$0xff]  ;;  %v17410_v40 = vmov 4  }
 0x712   : > { %v5239_v20 = vadd.f32 %v5227_v39, %v5042_v28  ;;  %12991 = vmatpush3.bf16.msra.mxu0 %v12990_v7  ;;  %v17403_v28 = vmov 0.0   ;;  %v16252_v47 = vpack.c.bf16 %v11476_v54, %v11475_v8  ;;  %v5896_v41 = vpop.permute.xlu0 %5895  ;;  %v6056_v8 = vmul.f32 %v16221_v9, %v6048_v22  ;;  %v7016_v9 = vld [vmem:[%s17294_s15] sm:$0xff] }
 0x713   : > { %12992 = vmatprep.subr.bf16.mxu0 %v17395_v16  ;;  %7020 = vperm.xlu0 %13830, %v7016_v9   ;;  %v7993_v22 = vld [vmem:[%s17407_s9] sm:$0x7]  ;;  %s17418_s9 = sld [smem:[#allocation45_spill]] }
 0x714   : > { %v12993_v27 = vpack.c.bf16 %v5240_v60, %v5239_v20  ;;  %v16277_v45 = vpop.permute.xlu1 %6700  ;;  %v5898_v60 = vmul.f32 %v5896_v41, %v5890_v55  ;;  %v6149_v55 = vld [vmem:[#allocation9] sm:$0x7]  ;;  %7996 = vperm.xlu1 %13844, %v7993_v22  }
 0x716   : > { %12994 = vmatpush3.bf16.msra.mxu0 %v12993_v27 }
 0x717   : > { %13005 = vmatprep.subr.bf16.mxu0 %v17395_v16  ;;  %7115 = vperm.xlu0 %13830, %v15932_v11  }
 0x718   : > { %v16284_v12 = vpop.permute.xlu1 %6776  ;;  %13846 = vset.pattern.permute.xlu1 %v17410_v40 }
 0x719   : > { %12402 = vmatmul.mubr.msk.f32.vlgmr.msra.gmra.mrb[22].mxu0 %vm1533_vm0, %v5241_v0  ;;  %vm6076_vm0 = vcmask 1041408  }
 0x71a   : > { %13007 = vmatpush3.bf16.msra.mxu0 %v16241_v63  ;;  %12429 = vmatprep.mubr.msk.f32.mxu0 %vm14231_vm3, %v17403_v28 }
 0x71b   : > { %13011 = vmatprep.subr.bf16.mxu0 %v17395_v16  ;;  %13833 = vset.pattern.permute.xlu0 %v17173_v24 }
 0x71c   : > { %v16290_v31 = vpop.permute.xlu1 %7006  ;;  %7202 = vperm.xlu0 %13833, %v15932_v11  }
 0x71d   : > { %12430 = vmatmul.mubr.msk.f32.vlgmr.msra.gmra.mrb[72].mxu0 %vm5425_vm4, %v17381_v1 }
 0x71e   : > { %13013 = vmatpush3.bf16.msra.mxu0 %v16252_v47  ;;  %12443 = vmatprep.mubr.msk.f32.mxu0 %vm14231_vm3, %v17403_v28 }
 0x71f   : > { %13017 = vmatprep.subr.bf16.mxu0 %v17395_v16 }
 0x720   : > { %13835 = vset.pattern.permute.xlu0 %v17330_v25 }
 0x721   : > { %12444 = vmatmul.mubr.msk.f32.vlgmr.msra.gmra.mrb[74].mxu0 %vm5425_vm4, %v17381_v1  ;;  %7372 = vperm.xlu0 %13835, %v15923_v3  }
 0x722   : > { %13019 = vmatpush3.bf16.msra.mxu0 %v16264_v50  ;;  %12457 = vmatprep.mubr.msk.f32.mxu0 %vm14231_vm3, %v17403_v28 }
 0x723   : > { %12467 = vmatprep.subr.mxu0 %v17403_v28 }
 0x725   : > { %12458 = vmatmul.mubr.msk.f32.vlgmr.msra.gmra.mrb[76].mxu0 %vm5425_vm4, %v17381_v1  ;;  %13838 = vset.pattern.permute.xlu0 %v17168_v18 }
 0x726   : > { %12468 = vmatpush3.msk.msra.mxu0 %vm6076_vm0, %v17381_v1  ;;  %12469 = vmatprep.mubr.msk.f32.mxu0 %vm14231_vm3, %v17403_v28  ;;  %v7012_v1 = vpop.permute.xlu1 %7011 }
 0x727   : > { %13023 = vmatprep.subr.bf16.mxu0 %v17395_v16  ;;  %v7015_v37 = vmul.f32 %v16293_v57, %v7012_v1  ;;  %7463 = vperm.xlu0 %13838, %v15932_v11  }
 0x729   : > { %12470 = vmatmul.mubr.msk.f32.vlgmr.msra.gmra.mrb[78].mxu0 %vm6073_vm8, %v17404_v38 }
 0x72a   : > { %13025 = vmatpush3.bf16.msra.mxu0 %v17405_v13  ;;  %12481 = vmatprep.mubr.msk.f32.mxu0 %vm14231_vm3, %v17403_v28  ;;  %v7026_v32 = vpop.permute.xlu1 %7025 }
 0x72b   : > { %13029 = vmatprep.subr.bf16.mxu0 %v17395_v16  ;;  %v16296_v61 = vadd.f32 %v7026_v32, %v7015_v37  ;;  %v6066_v32 = vpop.permute.xlu0 %6065  ;;  %13840 = vset.pattern.permute.xlu0 %v17361_v15 }
 0x72c   : > { %7633 = vperm.xlu0 %13840, %v15923_v3   ;;  %v17411_v3 = vld [vmem:[#allocation151_spill] sm:$0xff] }
 0x730   : > { %13843 = vset.pattern.permute.xlu0 %v17183_v5 }
 0x731   : > { %7724 = vperm.xlu0 %13843, %v15932_v11   ;;  %v17412_v11 = vld [vmem:[#allocation152_spill] sm:$0xff] }
 0x735   : > { %13845 = vset.pattern.permute.xlu0 %v17157_v43 }
 0x7ec   : > { %v16298_v2 = vpop.f32.mrb[22].mxu0 }
 0x7ed   : > { %v12403_v17 = vpop.f32.mrb[23].mxu0 }
 0x7ee   : > { %v7982_v17 = vld [vmem:[%s17409_s21] sm:$0x7]  ;;  %s17419_s21 = sld [smem:[#allocation44_spill]] }
 0x7ef   : > { %7985 = vperm.xlu0 %13845, %v7982_v17  }
 0x7f0   : > { %v5653_v33 = vpop.f32.mrb[72].mxu0 }
 0x7f1   : > { %v5661_v44 = vmul.f32 %v5659_v46, %v5653_v33  ;;  %v12431_v4 = vpop.f32.mrb[73].mxu0 }
 0x7f2   : > { %v16377_v4 = vld [vmem:[%s15366_s1] sm:$0xff]  ;;  %s11288_s1 = sshll.u32 %s17424_s2, 2 }
 0x7f3   : > { %v5662_v59 = vadd.f32 %v5661_v44, %v16208_v56  ;;  %v17406_v56 = vld [vmem:[#allocation50_spill] sm:$0xff]  ;;  %s16404_s11 = scalar_lea.vmem %s17414_s10, %s11288_s1  ;;  %s17420_s10 = sld [smem:[#allocation27_spill]] }
 0x7f4   : > { %v5811_v53 = vpop.f32.mrb[74].mxu0  ;;  %v16306_v6 = vsub.s32 0, %v17406_v56  ;;  %v8007_v56 = vld [vmem:[%s17416_s3] sm:$0x7]  ;;  %s17422_s1 = sld [smem:[#allocation28_spill]] }
 0x7f5   : > { %v5741_v7 = vadd.f32 %v5740_v19, %v5662_v59  ;;  %v5819_v21 = vmul.f32 %v16202_v52, %v5811_v53  ;;  %v12445_v39 = vpop.f32.mrb[75].mxu0  ;;  %v7894_v19 = vld [vmem:[#allocation12] sm:$0x1]  ;;  %v6243_v59 = vpop.permute.xlu0 %6242  ;;  %8010 = vperm.xlu0 %13845, %v8007_v56  }
 0x7f7   : > { %v5820_v20 = vadd.f32 %v5819_v21, %v5741_v7  ;;  %v7014_v21 = vmul.f32 %v16377_v4, %v16290_v31  ;;  %v8019_v31 = vld [vmem:[%s17415_s22 + $0x28] sm:$0xff] }
 0x7f8   : > { %v5969_v14 = vpop.f32.mrb[76].mxu0 }
 0x7f9   : > { %v5899_v36 = vadd.f32 %v5898_v60, %v5820_v20  ;;  %v5977_v27 = vmul.f32 %v16212_v34, %v5969_v14  ;;  %v12459_v0 = vpop.f32.mrb[77].mxu0  ;;  %v17408_v34 = vld [vmem:[#allocation149_spill] sm:$0xff]  ;;  %v16425_v41 = vpop.permute.xlu0 %6396  ;;  %v8014_v20 = vld [vmem:[%s17415_s22] sm:$0xff]  ;;  %v8015_v14 = vld [vmem:[%s17415_s22 + $0x8] sm:$0xff]  ;;  %13848 = vset.pattern.permute.xlu0 %v17173_v24 }
 0x7fa   : > { %v8017_v0 = vld [vmem:[%s17415_s22 + $0x18] sm:$0xff] }
 0x7fb   : > { %v5978_v54 = vadd.f32 %v5977_v27, %v5899_v36  ;;  %v8016_v36 = vld [vmem:[%s17415_s22 + $0x10] sm:$0xff]  ;;  %v16438_v27 = vpack.c.bf16 %v8015_v14, %v8014_v20 }
 0x7fc   : > { %v6145_v51 = vpop.f32.mrb[78].mxu0 }
 0x7fd   : > { %v6057_v49 = vadd.f32 %v6056_v8, %v5978_v54  ;;  %v12471_v1 = vpop.f32.mrb[79].mxu0  ;;  %v16427_v53 = vpop.permute.xlu0 %6624  ;;  %v16442_v8 = vpack.c.bf16 %v8017_v0, %v8016_v36  ;;  %v8018_v54 = vld [vmem:[%s17415_s22 + $0x20] sm:$0xff] }
 0x7fe   : > { %v8020_v1 = vld [vmem:[%s17415_s22 + $0x30] sm:$0xff] }
 0x7ff   : > { %v6058_v37 = vmax.f32 %v6057_v49, 0.0  ;;  %v8000_v49 = vld [vmem:[#allocation15] sm:$0x7] }
 0x800   : > { %8003 = vperm.xlu1 %13846, %v8000_v49   ;;  %8182 = vperm.xlu0 %13848, %v8000_v49  }
 0x801   : > { %v6071_v52 = vrot.slane %v6058_v37, %v16306_v6  ;;  %v16429_v7 = vpop.permute.xlu0 %6852  ;;  %v8021_v37 = vld [vmem:[%s17415_s22 + $0x38] sm:$0xff] }
 0x803   : > { %v6072_v23 = vmul.f32 %v6071_v52, %v6066_v32  ;;  %v16455_v52 = vpack.c.bf16 %v8021_v37, %v8020_v1  ;;  %v7112_v32 = vpop.permute.xlu1 %7111 }
 0x804   : > { %13847 = vset.pattern.permute.xlu1 %v17157_v43  ;;  %13851 = vset.pattern.permute.xlu0 %v17168_v18 }
 0x805   : > { %v6146_v10 = vadd.f32 %v6145_v51, %v6072_v23  ;;  %v7021_v39 = vpop.permute.xlu0 %7020  ;;  %v16448_v51 = vpack.c.bf16 %v8019_v31, %v8018_v54  ;;  %8097 = vperm.xlu1 %13847, %v8000_v49   ;;  %8437 = vperm.xlu0 %13851, %v8000_v49  }
 0x806   : > { %v16433_v60 = vadd.f32 %v7021_v39, %v7014_v21 }
 0x807   : > { %12473 = vmatpush3.msk.msra.mxu1 %vm3313_vm14, %v6146_v10  ;;  %v7199_v23 = vpop.permute.xlu1 %7198 }
 0x808   : > { %12475 = vmatmul.mubr.msk.f32.vlgmr.msra.gmra.mrb[84].mxu1 %vm3309_vm15, %v6149_v55  ;;  %13026 = vmatprep.subr.bf16.mxu1 %v17395_v16 }
 0x809   : > { %13028 = vmatpush3.bf16.msra.mxu1 %v17408_v34  ;;  %12488 = vmatprep.mubr.msk.f32.mxu1 %vm14231_vm3, %v17403_v28  ;;  %v7116_v21 = vpop.permute.xlu0 %7115 }
 0x80a   : > { %13032 = vmatprep.subr.bf16.mxu1 %v17395_v16  ;;  %13849 = vset.pattern.permute.xlu1 %v17166_v42 }
 0x80b   : > { %8267 = vperm.xlu1 %13849, %v8000_v49   ;;  %13854 = vset.pattern.permute.xlu0 %v17183_v5  ;;  %v16470_v10 = vpop.permute.xlu1 %7285 }
 0x80c   : > { %8692 = vperm.xlu0 %13854, %v8000_v49  }
 0x80f   : > { %13850 = vset.pattern.permute.xlu1 %v17330_v25  ;;  %v16472_v55 = vpop.permute.xlu1 %7289 }
 0x810   : > { %8352 = vperm.xlu1 %13850, %v8000_v49   ;;  %13857 = vset.pattern.permute.xlu0 %v17157_v43 }
 0x814   : > { %13852 = vset.pattern.permute.xlu1 %v17346_v58 }
 0x815   : > { %8522 = vperm.xlu1 %13852, %v8000_v49  }
 0x819   : > { %13853 = vset.pattern.permute.xlu1 %v17361_v15 }
 0x81a   : > { %8607 = vperm.xlu1 %13853, %v8000_v49  }
 0x81e   : > { %13855 = vset.pattern.permute.xlu1 %v17410_v40 }
 0x8db   : > { %v6228_v46 = vpop.f32.mrb[84].mxu1 }
 0x8dc   : > { %v16333_v33 = vadd.f32 %v6228_v46, %v16230_v48  ;;  %v12476_v44 = vpop.f32.mrb[85].mxu1  ;;  %v17413_v48 = vld [vmem:[#allocation153_spill] sm:$0xff] }
 0x8de   : > { %12482 = vmatmul.mubr.msk.f32.vlgmr.msra.gmra.mrb[80].mxu0 %vm5425_vm4, %v16333_v33  ;;  %12489 = vmatmul.mubr.msk.f32.vlgmr.msra.gmra.mrb[86].mxu1 %vm5425_vm4, %v16333_v33  ;;  %v6238_v35 = vmul.f32 %v16235_v29, %v16333_v33 }
 0x8df   : > { %13031 = vmatpush3.bf16.msra.mxu0 %v16241_v63  ;;  %13034 = vmatpush3.bf16.msra.mxu1 %v17411_v3 }
 0x8e0   : > { %12495 = vmatprep.mubr.msk.f32.mxu0 %vm14231_vm3, %v17403_v28  ;;  %12502 = vmatprep.mubr.msk.f32.mxu1 %vm14231_vm3, %v17403_v28  ;;  %v6245_v44 = vadd.f32 %v6243_v59, %v6238_v35  ;;  %v7203_v35 = vpop.permute.xlu0 %7202 }
 0x8e1   : > { %13035 = vmatprep.subr.bf16.mxu0 %v17395_v16  ;;  %13038 = vmatprep.subr.bf16.mxu1 %v17395_v16 }
 0x8e2   : > { %12496 = vmatmul.mubr.msk.f32.vlgmr.msra.gmra.mrb[82].mxu0 %vm5425_vm4, %v16333_v33  ;;  %12503 = vmatmul.mubr.msk.f32.vlgmr.msra.gmra.mrb[88].mxu1 %vm5425_vm4, %v16333_v33 }
 0x8e3   : > { %13037 = vmatpush3.bf16.msra.mxu0 %v16252_v47  ;;  %13040 = vmatpush3.bf16.msra.mxu1 %v17412_v11 }
 0x8e4   : > { %12509 = vmatprep.mubr.msk.f32.mxu0 %vm14231_vm3, %v17403_v28  ;;  %12516 = vmatprep.mubr.msk.f32.mxu1 %vm14231_vm3, %v17403_v28 }
 0x8e5   : > { %13041 = vmatprep.subr.bf16.mxu0 %v17395_v16  ;;  %13044 = vmatprep.subr.bf16.mxu1 %v17395_v16 }
 0x8e6   : > { %12510 = vmatmul.mubr.msk.f32.vlgmr.msra.gmra.mrb[84].mxu0 %vm5425_vm4, %v16333_v33  ;;  %12517 = vmatmul.mubr.msk.f32.vlgmr.msra.gmra.mrb[90].mxu1 %vm5425_vm4, %v16333_v33 }
 0x8e7   : > { %13043 = vmatpush3.bf16.msra.mxu0 %v16264_v50  ;;  %13046 = vmatpush3.bf16.msra.mxu1 %v17413_v48 }
 0x8e8   : > { %12523 = vmatprep.mubr.msk.f32.mxu0 %vm14231_vm3, %v17403_v28  ;;  %12530 = vmatprep.mubr.msk.f32.mxu1 %vm14231_vm3, %v17403_v28 }
 0x8e9   : > { %13048 = vmatprep.subr.bf16.mxu1 %v17405_v13  ;;  %12533 = vmatprep.subr.mxu0 %v17403_v28 }
 0x8ea   : > { %12524 = vmatmul.mubr.msk.f32.vlgmr.msra.gmra.mrb[86].mxu0 %vm5425_vm4, %v16333_v33  ;;  %12531 = vmatmul.mubr.msk.f32.vlgmr.msra.gmra.mrb[92].mxu1 %vm5425_vm4, %v16333_v33 }
 0x8eb   : > { %13050 = vmatpush3.bf16.msra.mxu1 %v17405_v13  ;;  %12547 = vmatprep.mubr.msk.f32.mxu1 %vm5425_vm4, %v16377_v4  ;;  %v16413_v13 = vld [vmem:[%s16404_s11] sm:$0xf] }
 0x8ec   : > { %13052 = vmatprep.subr.bf16.mxu1 %v17408_v34  ;;  %12535 = vmatprep.mubr.msk.f32.mxu0 %vm14231_vm3, %v17403_v28 }
 0x8ee   : > { %12548 = vmatmul.mubr.msk.f32.vlgmr.msra.gmra.mrb[94].mxu1 %vm5425_vm4, %v16293_v57 }
 0x8ef   : > { %13054 = vmatpush3.bf16.msra.mxu1 %v17408_v34  ;;  %12554 = vmatprep.mubr.msk.f32.mxu1 %vm5425_vm4, %v16377_v4  ;;  %v16474_v34 = vpop.permute.xlu1 %7376 }
 0x8f0   : > { %13060 = vmatprep.subr.bf16.mxu1 %v17411_v3 }
 0x8f2   : > { %12555 = vmatmul.mubr.msk.f32.vlgmr.msra.gmra.mrb[96].mxu1 %vm5425_vm4, %v16293_v57 }
 0x8f3   : > { %13062 = vmatpush3.bf16.msra.mxu1 %v17411_v3  ;;  %12568 = vmatprep.mubr.msk.f32.mxu1 %vm5425_vm4, %v16377_v4  ;;  %v16476_v9 = vpop.permute.xlu1 %7459 }
 0x8f4   : > { %13068 = vmatprep.subr.bf16.mxu1 %v17412_v11 }
 0x8f6   : > { %12569 = vmatmul.mubr.msk.f32.vlgmr.msra.gmra.mrb[98].mxu1 %vm5425_vm4, %v16293_v57 }
 0x8f7   : > { %13070 = vmatpush3.bf16.msra.mxu1 %v17412_v11  ;;  %12582 = vmatprep.mubr.msk.f32.mxu1 %vm5425_vm4, %v16377_v4  ;;  %v16480_v22 = vpop.permute.xlu1 %7546 }
 0x8f8   : > { %13076 = vmatprep.subr.bf16.mxu1 %v17413_v48 }
 0x8fa   : > { %12583 = vmatmul.mubr.msk.f32.vlgmr.msra.gmra.mrb[100].mxu1 %vm5425_vm4, %v16293_v57 }
 0x8fb   : > { %13078 = vmatpush3.bf16.msra.mxu1 %v17413_v48  ;;  %12596 = vmatprep.mubr.msk.f32.mxu1 %vm5425_vm4, %v16377_v4  ;;  %v16485_v54 = vpop.permute.xlu1 %7550 }
 0x8fc   : > { %12611 = vmatprep.subr.mxu1 %v17403_v28 }
 0x8fe   : > { %12597 = vmatmul.mubr.msk.f32.vlgmr.msra.gmra.mrb[102].mxu1 %vm5425_vm4, %v16293_v57 }
 0x8ff   : > { %12612 = vmatpush3.msk.msra.mxu1 %vm1653_vm1, %v16413_v13  ;;  %12613 = vmatprep.mubr.msk.f32.mxu1 %vm14231_vm3, %v17403_v28 }
 0x900   : > { %13083 = vmatprep.subr.bf16.mxu1 %v17395_v16 }
 0x902   : > { %12614 = vmatmul.mubr.msk.f32.vlgmr.msra.gmra.mrb[104].mxu1 %vm1646_vm2, %v7894_v19 }
 0x903   : > { %12632 = vmatprep.mubr.msk.f32.mxu1 %vm14231_vm3, %v17403_v28  ;;  %13085 = vmatpush3.bf16.msra.mxu1 %v16438_v27 }
 0x904   : > { %13086 = vmatprep.subr.bf16.mxu1 %v17395_v16 }
 0x907   : > { %13088 = vmatpush3.bf16.msra.mxu1 %v16442_v8 }
 0x908   : > { %13089 = vmatprep.subr.bf16.mxu1 %v17395_v16 }
 0x90b   : > { %13091 = vmatpush3.bf16.msra.mxu1 %v16448_v51 }
 0x90c   : > { %13092 = vmatprep.subr.bf16.mxu1 %v17395_v16 }
 0x90f   : > { %13094 = vmatpush3.bf16.msra.mxu1 %v16455_v52 }
 0x910   : > { %13107 = vmatprep.subr.bf16.mxu1 %v17395_v16 }
 0x9b1   : > { %v6315_v17 = vpop.f32.mrb[80].mxu0  ;;  %v6391_v46 = vpop.f32.mrb[86].mxu1 }
 0x9b2   : > { %v6323_v40 = vmul.f32 %v16243_v62, %v6315_v17  ;;  %v12483_v3 = vpop.f32.mrb[81].mxu0  ;;  %v12490_v11 = vpop.f32.mrb[87].mxu1  ;;  %v6399_v19 = vmul.f32 %v16425_v41, %v6391_v46 }
 0x9b4   : > { %v6324_v48 = vadd.f32 %v6323_v40, %v6245_v44 }
 0x9b5   : > { %v6467_v39 = vpop.f32.mrb[82].mxu0  ;;  %v6543_v20 = vpop.f32.mrb[88].mxu1 }
 0x9b6   : > { %v6400_v14 = vadd.f32 %v6399_v19, %v6324_v48  ;;  %v6475_v36 = vmul.f32 %v16257_v26, %v6467_v39  ;;  %v12497_v0 = vpop.f32.mrb[83].mxu0  ;;  %v12504_v29 = vpop.f32.mrb[89].mxu1  ;;  %v6551_v59 = vmul.f32 %v16267_v30, %v6543_v20 }
 0x9b7   : > { %v16491_v19 = vpop.permute.xlu1 %7637  ;;  %v16494_v20 = vpop.permute.xlu0 %7372 }
 0x9b8   : > { %v6476_v31 = vadd.f32 %v6475_v36, %v6400_v14 }
 0x9b9   : > { %v6619_v49 = vpop.f32.mrb[84].mxu0  ;;  %v6695_v62 = vpop.f32.mrb[90].mxu1 }
 0x9ba   : > { %v6552_v56 = vadd.f32 %v6551_v59, %v6476_v31  ;;  %v6627_v1 = vmul.f32 %v16427_v53, %v6619_v49  ;;  %v12511_v37 = vpop.f32.mrb[85].mxu0  ;;  %v12518_v41 = vpop.f32.mrb[91].mxu1  ;;  %v6703_v46 = vmul.f32 %v16277_v45, %v6695_v62 }
 0x9bb   : > { %v16498_v31 = vpop.permute.xlu1 %7720  ;;  %v16509_v49 = vpop.permute.xlu0 %7463 }
 0x9bc   : > { %v6628_v17 = vadd.f32 %v6627_v1, %v6552_v56 }
 0x9bd   : > { %v6771_v44 = vpop.f32.mrb[86].mxu0  ;;  %v6847_v26 = vpop.f32.mrb[92].mxu1 }
 0x9be   : > { %v6704_v40 = vadd.f32 %v6703_v46, %v6628_v17  ;;  %v6779_v3 = vmul.f32 %v16284_v12, %v6771_v44  ;;  %v12525_v11 = vpop.f32.mrb[87].mxu0  ;;  %v12532_v48 = vpop.f32.mrb[93].mxu1  ;;  %v6855_v39 = vmul.f32 %v16429_v7, %v6847_v26  ;;  %v17417_v12 = vld [vmem:[#allocation117_spill] sm:$0xff] }
 0x9bf   : > { %v16519_v37 = vpop.permute.xlu1 %5245  ;;  %v16525_v41 = vpop.permute.xlu0 %7633 }
 0x9c0   : > { %v6780_v30 = vadd.f32 %v6779_v3, %v6704_v40 }
 0x9c1   : > { %v12549_v53 = vpop.f32.mrb[94].mxu1 }
 0x9c2   : > { %v6856_v14 = vadd.f32 %v6855_v39, %v6780_v30  ;;  %v7119_v36 = vmul.f32 %v12549_v53, %v7116_v21  ;;  %v7101_v0 = vpop.f32.mrb[95].mxu1  ;;  %v11536_v30 = vld [vmem:[%s17415_s22 + $0x80] sm:$0xff] }
 0x9c3   : > { %v7118_v29 = vmul.f32 %v7112_v32, %v7101_v0  ;;  %v16544_v44 = vpop.permute.xlu0 %7724  ;;  %v11540_v0 = vld [vmem:[%s17415_s22 + $0xa0] sm:$0xff] }
 0x9c4   : > { %12534 = vmatpush3.msk.msra.mxu0 %vm3313_vm14, %v6856_v14  ;;  %v7121_v45 = vadd.f32 %v7119_v36, %v16296_v61  ;;  %v11539_v36 = vld [vmem:[%s17415_s22 + $0x98] sm:$0xff] }
 0x9c5   : > { %12536 = vmatmul.mubr.msk.f32.vlgmr.msra.gmra.mrb[88].mxu0 %vm3309_vm15, %v17417_v12  ;;  %12538 = vmatprep.subr.mxu0 %v17403_v28  ;;  %v7120_v7 = vadd.f32 %v7118_v29, %v16433_v60  ;;  %v12556_v59 = vpop.f32.mrb[96].mxu1  ;;  %v11541_v29 = vld [vmem:[%s17415_s22 + $0xa8] sm:$0xff] }
 0x9c6   : > { %12539 = vmatpush3.msk.msra.mxu0 %vm3313_vm14, %v16333_v33  ;;  %12540 = vmatprep.mubr.msk.f32.mxu0 %vm14231_vm3, %v17403_v28  ;;  %v7206_v32 = vmul.f32 %v12556_v59, %v7203_v35  ;;  %v7188_v21 = vpop.f32.mrb[97].mxu1  ;;  %v7899_v35 = vpop.permute.xlu1 %7898  ;;  %v11543_v59 = vld [vmem:[%s17415_s22 + $0xb8] sm:$0xff] }
 0x9c7   : > { %13056 = vmatprep.subr.bf16.mxu0 %v16241_v63  ;;  %v7205_v61 = vmul.f32 %v7199_v23, %v7188_v21  ;;  %v7986_v11 = vpop.permute.xlu0 %7985  ;;  %v11554_v21 = vld [vmem:[%s17415_s22 + $0x140] sm:$0xff] }
 0x9c8   : > { %v16511_v62 = vadd.f32 %v7206_v32, %v7121_v45  ;;  %v16576_v45 = vpack.c.bf16 %v11541_v29, %v11540_v0  ;;  %v11575_v0 = vld [vmem:[%s17415_s22 + $0x1d8] sm:$0xff] }
 0x9c9   : > { %v16513_v56 = vadd.f32 %v7205_v61, %v7120_v7  ;;  %v16515_v1 = vpop.f32.mrb[98].mxu1  ;;  %v11542_v7 = vld [vmem:[%s17415_s22 + $0xb0] sm:$0xff]  ;;  %v11555_v61 = vld [vmem:[%s17415_s22 + $0x148] sm:$0xff] }
 0x9ca   : > { %v16517_v60 = vpop.f32.mrb[99].mxu1  ;;  %v16582_v32 = vpack.c.bf16 %v11543_v59, %v11542_v7  ;;  %v11576_v7 = vld [vmem:[%s17415_s22 + $0x1e0] sm:$0xff]  ;;  %v11577_v59 = vld [vmem:[%s17415_s22 + $0x1e8] sm:$0xff] }
 0x9cd   : > { %12541 = vmatmul.mubr.msk.f32.vlgmr.msra.gmra.mrb[88].mxu0 %vm3309_vm15, %v17404_v38  ;;  %v16523_v33 = vpop.f32.mrb[100].mxu1 }
 0x9ce   : > { %13058 = vmatpush3.bf16.msra.mxu0 %v16241_v63  ;;  %12561 = vmatprep.mubr.msk.f32.mxu0 %vm5425_vm4, %v16377_v4  ;;  %v16530_v23 = vpop.f32.mrb[101].mxu1  ;;  %v7904_v63 = vrot.slane %v7899_v35, %v16306_v6  ;;  %v16588_v35 = vpack.c.bf16 %v11555_v61, %v11554_v21  ;;  %v16633_v21 = vpack.c.bf16 %v11577_v59, %v11576_v7  ;;  %v11578_v61 = vld [vmem:[%s17415_s22 + $0x1f0] sm:$0xff] }
 0x9cf   : > { %13064 = vmatprep.subr.bf16.mxu0 %v16252_v47 }
 0x9d1   : > { %12562 = vmatmul.mubr.msk.f32.vlgmr.msra.gmra.mrb[90].mxu0 %vm5425_vm4, %v16293_v57  ;;  %v16535_v17 = vpop.f32.mrb[102].mxu1 }
 0x9d2   : > { %13066 = vmatpush3.bf16.msra.mxu0 %v16252_v47  ;;  %12575 = vmatprep.mubr.msk.f32.mxu0 %vm5425_vm4, %v16377_v4  ;;  %v16541_v46 = vpop.f32.mrb[103].mxu1 }
 0x9d3   : > { %13072 = vmatprep.subr.bf16.mxu0 %v16264_v50 }
 0x9d5   : > { %12576 = vmatmul.mubr.msk.f32.vlgmr.msra.gmra.mrb[92].mxu0 %vm5425_vm4, %v16293_v57  ;;  %v7977_v26 = vpop.f32.mrb[104].mxu1 }
 0x9d6   : > { %13074 = vmatpush3.bf16.msra.mxu0 %v16264_v50  ;;  %12589 = vmatprep.mubr.msk.f32.mxu0 %vm5425_vm4, %v16377_v4  ;;  %v7978_v47 = vadd.f32 %v7977_v26, %v7904_v63  ;;  %v12615_v40 = vpop.f32.mrb[105].mxu1  ;;  %v11537_v50 = vld [vmem:[%s17415_s22 + $0x88] sm:$0xff]  ;;  %v7997_v4 = vpop.permute.xlu1 %7996  ;;  %v11556_v63 = vld [vmem:[%s17415_s22 + $0x150] sm:$0xff]  ;;  %v11557_v26 = vld [vmem:[%s17415_s22 + $0x158] sm:$0xff] }
 0x9d7   : > { %13079 = vmatprep.subr.bf16.mxu0 %v17395_v16  ;;  %v16559_v53 = vpack.c.bf16 %v11537_v50, %v11536_v30  ;;  %v11558_v40 = vld [vmem:[%s17415_s22 + $0x160] sm:$0xff]  ;;  %v11561_v30 = vld [vmem:[%s17415_s22 + $0x178] sm:$0xff] }
 0x9d8   : > { %v7981_v3 = vmax.f32 %v7978_v47, 0.0  ;;  %v16599_v47 = vpack.c.bf16 %v11557_v26, %v11556_v63  ;;  %v11579_v63 = vld [vmem:[%s17415_s22 + $0x1f8] sm:$0xff] }
 0x9d9   : > { %12590 = vmatmul.mubr.msk.f32.vlgmr.msra.gmra.mrb[94].mxu0 %vm5425_vm4, %v16293_v57  ;;  %v11538_v57 = vld [vmem:[%s17415_s22 + $0x90] sm:$0xff]  ;;  %v16639_v26 = vpack.c.bf16 %v11579_v63, %v11578_v61 }
 0x9da   : > { %v7991_v48 = vrot.slane %v7981_v3, %v16306_v6  ;;  %12603 = vmatprep.mubr.msk.f32.mxu0 %vm14231_vm3, %v17403_v28  ;;  %v16568_v6 = vpack.c.bf16 %v11539_v36, %v11538_v57  ;;  %v11559_v3 = vld [vmem:[%s17415_s22 + $0x168] sm:$0xff]  ;;  %v11574_v36 = vld [vmem:[%s17415_s22 + $0x1d0] sm:$0xff] }
 0x9db   : > { %v16627_v29 = vpack.c.bf16 %v11575_v0, %v11574_v36 }
 0x9dc   : > { %v7992_v39 = vmul.f32 %v7991_v48, %v7986_v11  ;;  %v16605_v11 = vpack.c.bf16 %v11559_v3, %v11558_v40  ;;  %v11560_v48 = vld [vmem:[%s17415_s22 + $0x170] sm:$0xff]  ;;  %v8849_v3 = vld [vmem:[%s14445_s7] sm:$0xf] }
 0x9dd   : > { %v16611_v50 = vpack.c.bf16 %v11561_v30, %v11560_v48  ;;  %v8842_v40 = vld [vmem:[#allocation17] sm:$0xf] }
 0x9de   : > { %v16561_v14 = vadd.f32 %v7997_v4, %v7992_v39  ;;  %v11572_v4 = vld [vmem:[%s17415_s22 + $0x1c0] sm:$0xff]  ;;  %v11573_v39 = vld [vmem:[%s17415_s22 + $0x1c8] sm:$0xff]  ;;  %8845 = vperm.xlu1 %13855, %v8842_v40   ;;  %8929 = vperm.xlu0 %13857, %v8842_v40  }
 0x9df   : > { %v16617_v57 = vpack.c.bf16 %v11573_v39, %v11572_v4 }
 0x9e0   : > { %12633 = vmatmul.mubr.msk.f32.vlgmr.msra.gmra.mrb[106].mxu1 %vm8022_vm9, %v16561_v14 }
 0x9e1   : > { %13109 = vmatpush3.bf16.msra.mxu1 %v16559_v53  ;;  %12670 = vmatprep.mubr.msk.f32.mxu1 %vm14231_vm3, %v17403_v28 }
 0x9e2   : > { %13110 = vmatprep.subr.bf16.mxu1 %v17395_v16  ;;  %13856 = vset.pattern.permute.xlu1 %v17157_v43 }
 0x9e3   : > { %13860 = vset.pattern.permute.xlu0 %v17330_v25  ;;  %8852 = vperm.xlu1 %13856, %v8849_v3   ;;  %v7732_v25 = vld [vmem:[%s17418_s9] sm:$0x3f] }
 0x9e4   : > { %9157 = vperm.xlu0 %13860, %v8842_v40  }
 0x9e5   : > { %13112 = vmatpush3.bf16.msra.mxu1 %v16568_v6 }
 0x9e6   : > { %13113 = vmatprep.subr.bf16.mxu1 %v17395_v16 }
 0x9e7   : > { %13858 = vset.pattern.permute.xlu1 %v17173_v24 }
 0x9e8   : > { %13863 = vset.pattern.permute.xlu0 %v17361_v15  ;;  %9005 = vperm.xlu1 %13858, %v8842_v40  }
 0x9e9   : > { %13115 = vmatpush3.bf16.msra.mxu1 %v16576_v45  ;;  %9385 = vperm.xlu0 %13863, %v8842_v40  }
 0x9ea   : > { %13116 = vmatprep.subr.bf16.mxu1 %v17395_v16 }
 0x9ec   : > { %13859 = vset.pattern.permute.xlu1 %v17166_v42 }
 0x9ed   : > { %13118 = vmatpush3.bf16.msra.mxu1 %v16582_v32  ;;  %13866 = vset.pattern.permute.xlu0 %v17157_v43 }
 0x9ee   : > { %13131 = vmatprep.subr.bf16.mxu1 %v17395_v16  ;;  %9081 = vperm.xlu1 %13859, %v8842_v40  }
 0x9f0   : > { %12671 = vmatmul.mubr.msk.f32.vlgmr.msra.gmra.mrb[108].mxu1 %vm8022_vm9, %v16561_v14 }
 0x9f1   : > { %13133 = vmatpush3.bf16.msra.mxu1 %v16588_v35  ;;  %12708 = vmatprep.mubr.msk.f32.mxu1 %vm14231_vm3, %v17403_v28 }
 0x9f2   : > { %13134 = vmatprep.subr.bf16.mxu1 %v17395_v16  ;;  %13861 = vset.pattern.permute.xlu1 %v17168_v18  ;;  %v7380_v18 = vmul.f32 %v16515_v1, %v16474_v34  ;;  %v7553_v34 = vmul.f32 %v16480_v22, %v16530_v23 }
 0x9f3   : > { %9233 = vperm.xlu1 %13861, %v8842_v40  }
 0x9f5   : > { %13136 = vmatpush3.bf16.msra.mxu1 %v16599_v47 }
 0x9f6   : > { %13137 = vmatprep.subr.bf16.mxu1 %v17395_v16 }
 0x9f7   : > { %13862 = vset.pattern.permute.xlu1 %v17346_v58  ;;  %v7379_v58 = vmul.f32 %v16494_v20, %v16517_v60  ;;  %v7728_v20 = vmul.f32 %v16535_v17, %v16544_v44 }
 0x9f8   : > { %9309 = vperm.xlu1 %13862, %v8842_v40  }
 0x9f9   : > { %13139 = vmatpush3.bf16.msra.mxu1 %v16605_v11 }
 0x9fa   : > { %13140 = vmatprep.subr.bf16.mxu1 %v17395_v16 }
 0x9fc   : > { %13864 = vset.pattern.permute.xlu1 %v17183_v5 }
 0x9fd   : > { %13142 = vmatpush3.bf16.msra.mxu1 %v16611_v50  ;;  %9461 = vperm.xlu1 %13864, %v8842_v40   ;;  %v7731_v40 = vld [vmem:[%s17419_s21] sm:$0x3f] }
 0x9fe   : > { %13155 = vmatprep.subr.bf16.mxu1 %v17395_v16 }
 0xa00   : > { %12709 = vmatmul.mubr.msk.f32.vlgmr.msra.gmra.mrb[110].mxu1 %vm8022_vm9, %v16561_v14 }
 0xa01   : > { %13157 = vmatpush3.bf16.msra.mxu1 %v16617_v57  ;;  %12746 = vmatprep.mubr.msk.f32.mxu1 %vm14231_vm3, %v17403_v28 }
 0xa02   : > { %13158 = vmatprep.subr.bf16.mxu1 %v17395_v16  ;;  %13865 = vset.pattern.permute.xlu1 %v17157_v43 }
 0xa03   : > { %7735 = vperm.xlu1 %13865, %v7732_v25   ;;  %v5318_v25 = vadd.f32 %v16298_v2, %v16519_v37 }
 0xa05   : > { %13160 = vmatpush3.bf16.msra.mxu1 %v16627_v29 }
 0xa06   : > { %13161 = vmatprep.subr.bf16.mxu1 %v17395_v16 }
 0xa09   : > { %13163 = vmatpush3.bf16.msra.mxu1 %v16633_v21 }
 0xa0a   : > { %13164 = vmatprep.subr.bf16.mxu1 %v17395_v16 }
 0xa0d   : > { %13166 = vmatpush3.bf16.msra.mxu1 %v16639_v26 }
 0xa0e   : > { %12768 = vmatprep.subr.mxu1 %v17403_v28 }
 0xa10   : > { %12747 = vmatmul.mubr.msk.f32.vlgmr.msra.gmra.mrb[112].mxu1 %vm8022_vm9, %v16561_v14 }
 0xa11   : > { %12770 = vmatprep.mubr.msk.f32.mxu1 %vm14231_vm3, %v17403_v28 }
 0xaa4   : > { %v12563_v24 = vpop.f32.mrb[90].mxu0 }
 0xaa5   : > { %v7293_v15 = vmul.f32 %v12563_v24, %v16472_v55  ;;  %v7275_v42 = vpop.f32.mrb[91].mxu0  ;;  %v11529_v24 = vld [vmem:[%s17415_s22 + $0x50] sm:$0xff] }
 0xaa6   : > { %v7292_v48 = vmul.f32 %v16470_v10, %v7275_v42  ;;  %v7554_v10 = vmul.f32 %v16523_v33, %v16485_v54 }
 0xaa7   : > { %v7295_v30 = vadd.f32 %v7293_v15, %v16511_v62  ;;  %v11530_v15 = vld [vmem:[%s17415_s22 + $0x58] sm:$0xff] }
 0xaa8   : > { %v7294_v5 = vadd.f32 %v7292_v48, %v16513_v56  ;;  %v12577_v4 = vpop.f32.mrb[92].mxu0  ;;  %v16701_v42 = vpack.c.bf16 %v11530_v15, %v11529_v24  ;;  %v11531_v48 = vld [vmem:[%s17415_s22 + $0x60] sm:$0xff] }
 0xaa9   : > { %v7382_v39 = vadd.f32 %v7380_v18, %v7295_v30  ;;  %v7467_v43 = vmul.f32 %v12577_v4, %v16509_v49  ;;  %v7449_v36 = vpop.f32.mrb[93].mxu0  ;;  %v11532_v18 = vld [vmem:[%s17415_s22 + $0x68] sm:$0xff]  ;;  %v11585_v15 = vld [vmem:[%s17415_s22 + $0x220] sm:$0xff] }
 0xaaa   : > { %v7381_v0 = vadd.f32 %v7379_v58, %v7294_v5  ;;  %v7466_v55 = vmul.f32 %v16476_v9, %v7449_v36  ;;  %v7727_v9 = vmul.f32 %v16498_v31, %v16541_v46  ;;  %v5322_v31 = vld [vmem:[%s17420_s10] sm:$0xf]  ;;  %v11528_v46 = vld [vmem:[%s17415_s22 + $0x48] sm:$0xff]  ;;  %v16711_v30 = vpack.c.bf16 %v11532_v18, %v11531_v48  ;;  %v11533_v58 = vld [vmem:[%s17415_s22 + $0x70] sm:$0xff] }
 0xaab   : > { %v7469_v7 = vadd.f32 %v7467_v43, %v7382_v39  ;;  %v11534_v5 = vld [vmem:[%s17415_s22 + $0x78] sm:$0xff]  ;;  %v11545_v39 = vld [vmem:[%s17415_s22 + $0xc0] sm:$0xff]  ;;  %v11546_v43 = vld [vmem:[%s17415_s22 + $0xc8] sm:$0xff] }
 0xaac   : > { %v7468_v62 = vadd.f32 %v7466_v55, %v7381_v0  ;;  %v12591_v1 = vpop.f32.mrb[94].mxu0  ;;  %v16717_v4 = vpack.c.bf16 %v11534_v5, %v11533_v58  ;;  %v16723_v36 = vpack.c.bf16 %v11546_v43, %v11545_v39  ;;  %v11547_v0 = vld [vmem:[%s17415_s22 + $0xd0] sm:$0xff]  ;;  %v11548_v55 = vld [vmem:[%s17415_s22 + $0xd8] sm:$0xff]  ;;  %v11586_v48 = vld [vmem:[%s17415_s22 + $0x228] sm:$0xff] }
 0xaad   : > { %v7556_v56 = vadd.f32 %v7554_v10, %v7469_v7  ;;  %v7641_v49 = vmul.f32 %v12591_v1, %v16491_v19  ;;  %v7623_v60 = vpop.f32.mrb[95].mxu0  ;;  %v16731_v10 = vpack.c.bf16 %v11548_v55, %v11547_v0  ;;  %v11549_v7 = vld [vmem:[%s17415_s22 + $0xe0] sm:$0xff]  ;;  %v11551_v1 = vld [vmem:[%s17415_s22 + $0xf0] sm:$0xff]  ;;  %v16795_v18 = vpack.c.bf16 %v11586_v48, %v11585_v15  ;;  %v11588_v58 = vld [vmem:[%s17415_s22 + $0x238] sm:$0xff] }
 0xaae   : > { %v7555_v59 = vadd.f32 %v7553_v34, %v7468_v62  ;;  %v7640_v54 = vmul.f32 %v16525_v41, %v7623_v60  ;;  %v11527_v41 = vld [vmem:[%s17415_s22 + $0x40] sm:$0xff]  ;;  %v11550_v34 = vld [vmem:[%s17415_s22 + $0xe8] sm:$0xff] }
 0xaaf   : > { %v7643_v33 = vadd.f32 %v7641_v49, %v7556_v56  ;;  %v16693_v3 = vpack.c.bf16 %v11528_v46, %v11527_v41  ;;  %v16739_v62 = vpack.c.bf16 %v11550_v34, %v11549_v7  ;;  %v11563_v49 = vld [vmem:[%s17415_s22 + $0x180] sm:$0xff]  ;;  %v11564_v60 = vld [vmem:[%s17415_s22 + $0x188] sm:$0xff]  ;;  %v11583_v46 = vld [vmem:[%s17415_s22 + $0x210] sm:$0xff] }
 0xab0   : > { %v7642_v22 = vadd.f32 %v7640_v54, %v7555_v59  ;;  %v11565_v59 = vld [vmem:[%s17415_s22 + $0x190] sm:$0xff]  ;;  %v11566_v54 = vld [vmem:[%s17415_s22 + $0x198] sm:$0xff] }
 0xab1   : > { %v7730_v23 = vadd.f32 %v7728_v20, %v7643_v33  ;;  %v11552_v20 = vld [vmem:[%s17415_s22 + $0xf8] sm:$0xff]  ;;  %v16759_v33 = vpack.c.bf16 %v11566_v54, %v11565_v59 }
 0xab2   : > { %v7729_v61 = vadd.f32 %v7727_v9, %v7642_v22  ;;  %v16745_v56 = vpack.c.bf16 %v11552_v20, %v11551_v1  ;;  %v16751_v9 = vpack.c.bf16 %v11564_v60, %v11563_v49  ;;  %v11567_v22 = vld [vmem:[%s17415_s22 + $0x1a0] sm:$0xff] }
 0xab3   : > { %v16679_v63 = vpop.f32.mrb[106].mxu1 }
 0xab4   : > { %v13080_v17 = vpack.c.bf16 %v7730_v23, %v7729_v61  ;;  %v12634_v44 = vpop.f32.mrb[107].mxu1  ;;  %v11568_v23 = vld [vmem:[%s17415_s22 + $0x1a8] sm:$0xff] }
 0xab5   : > { %v16767_v61 = vpack.c.bf16 %v11568_v23, %v11567_v22  ;;  %v11570_v44 = vld [vmem:[%s17415_s22 + $0x1b8] sm:$0xff] }
 0xab6   : > { %13082 = vmatpush3.bf16.msk.msra.mxu0 %vm14860_vm5, %v13080_v17  ;;  %v11569_v17 = vld [vmem:[%s17415_s22 + $0x1b0] sm:$0xff] }
 0xab7   : > { %12606 = vmatprep.subr.mxu0 %v17403_v28  ;;  %v16773_v19 = vpack.c.bf16 %v11570_v44, %v11569_v17 }
 0xab9   : > { %12604 = vmatmul.mubr.msk.f32.vlgmr.msra.gmra.mrb[88].mxu0 %vm2415_vm7, %v7731_v40  ;;  %v11581_v40 = vld [vmem:[%s17415_s22 + $0x200] sm:$0xff] }
 0xaba   : > { %12607 = vmatpush3.msk.msra.mxu0 %vm1653_vm1, %v5322_v31  ;;  %12608 = vmatprep.mubr.msk.f32.mxu0 %vm14231_vm3, %v17403_v28  ;;  %v11582_v31 = vld [vmem:[%s17415_s22 + $0x208] sm:$0xff] }
 0xabb   : > { %13095 = vmatprep.subr.bf16.mxu0 %v17395_v16  ;;  %v16779_v41 = vpack.c.bf16 %v11582_v31, %v11581_v40 }
 0xac1   : > { %12609 = vmatmul.mubr.msk.f32.vlgmr.msra.gmra.mrb[88].mxu0 %vm1646_vm2, %v5318_v25  ;;  %v11584_v25 = vld [vmem:[%s17415_s22 + $0x218] sm:$0xff] }
 0xac2   : > { %13097 = vmatpush3.bf16.msra.mxu0 %v16693_v3  ;;  %12651 = vmatprep.mubr.msk.f32.mxu0 %vm14231_vm3, %v17403_v28  ;;  %v16787_v24 = vpack.c.bf16 %v11584_v25, %v11583_v46 }
 0xac3   : > { %13098 = vmatprep.subr.bf16.mxu0 %v17395_v16  ;;  %v16708_v2 = vpop.f32.mrb[108].mxu1 }
 0xac4   : > { %v12672_v37 = vpop.f32.mrb[109].mxu1 }
 0xac5   : > { %v11587_v37 = vld [vmem:[%s17415_s22 + $0x230] sm:$0xff] }
 0xac6   : > { %13100 = vmatpush3.bf16.msra.mxu0 %v16701_v42  ;;  %v16801_v5 = vpack.c.bf16 %v11588_v58, %v11587_v37 }
 0xac7   : > { %13101 = vmatprep.subr.bf16.mxu0 %v17395_v16 }
 0xaca   : > { %13103 = vmatpush3.bf16.msra.mxu0 %v16711_v30 }
 0xacb   : > { %13104 = vmatprep.subr.bf16.mxu0 %v17395_v16 }
 0xace   : > { %13106 = vmatpush3.bf16.msra.mxu0 %v16717_v4 }
 0xacf   : > { %13119 = vmatprep.subr.bf16.mxu0 %v17395_v16 }
 0xad1   : > { %12652 = vmatmul.mubr.msk.f32.vlgmr.msra.gmra.mrb[96].mxu0 %vm8022_vm9, %v16561_v14 }
 0xad2   : > { %13121 = vmatpush3.bf16.msra.mxu0 %v16723_v36  ;;  %12689 = vmatprep.mubr.msk.f32.mxu0 %vm14231_vm3, %v17403_v28 }
 0xad3   : > { %13122 = vmatprep.subr.bf16.mxu0 %v17395_v16  ;;  %v16811_v39 = vpop.f32.mrb[110].mxu1 }
 0xad4   : > { %v12710_v43 = vpop.f32.mrb[111].mxu1 }
 0xad6   : > { %13124 = vmatpush3.bf16.msra.mxu0 %v16731_v10 }
 0xad7   : > { %13125 = vmatprep.subr.bf16.mxu0 %v17395_v16 }
 0xada   : > { %13127 = vmatpush3.bf16.msra.mxu0 %v16739_v62 }
 0xadb   : > { %13128 = vmatprep.subr.bf16.mxu0 %v17395_v16 }
 0xade   : > { %13130 = vmatpush3.bf16.msra.mxu0 %v16745_v56 }
 0xadf   : > { %13143 = vmatprep.subr.bf16.mxu0 %v17395_v16 }
 0xae1   : > { %12690 = vmatmul.mubr.msk.f32.vlgmr.msra.gmra.mrb[98].mxu0 %vm8022_vm9, %v16561_v14 }
 0xae2   : > { %13145 = vmatpush3.bf16.msra.mxu0 %v16751_v9  ;;  %12727 = vmatprep.mubr.msk.f32.mxu0 %vm14231_vm3, %v17403_v28 }
 0xae3   : > { %13146 = vmatprep.subr.bf16.mxu0 %v17395_v16 }
 0xae6   : > { %13148 = vmatpush3.bf16.msra.mxu0 %v16759_v33 }
 0xae7   : > { %13149 = vmatprep.subr.bf16.mxu0 %v17395_v16 }
 0xaea   : > { %13151 = vmatpush3.bf16.msra.mxu0 %v16767_v61 }
 0xaeb   : > { %13152 = vmatprep.subr.bf16.mxu0 %v17395_v16 }
 0xaee   : > { %13154 = vmatpush3.bf16.msra.mxu0 %v16773_v19 }
 0xaef   : > { %13167 = vmatprep.subr.bf16.mxu0 %v17395_v16 }
 0xaf1   : > { %12728 = vmatmul.mubr.msk.f32.vlgmr.msra.gmra.mrb[100].mxu0 %vm8022_vm9, %v16561_v14 }
 0xaf2   : > { %13169 = vmatpush3.bf16.msra.mxu0 %v16779_v41  ;;  %12765 = vmatprep.mubr.msk.f32.mxu0 %vm14231_vm3, %v17403_v28 }
 0xaf3   : > { %13170 = vmatprep.subr.bf16.mxu0 %v17395_v16 }
 0xaf6   : > { %13172 = vmatpush3.bf16.msra.mxu0 %v16787_v24 }
 0xaf7   : > { %13173 = vmatprep.subr.bf16.mxu0 %v17395_v16 }
 0xafa   : > { %13175 = vmatpush3.bf16.msra.mxu0 %v16795_v18 }
 0xafb   : > { %13176 = vmatprep.subr.bf16.mxu0 %v17395_v16 }
 0xafe   : > { %13178 = vmatpush3.bf16.msra.mxu0 %v16801_v5 }
 0xaff   : > { %13179 = vmatprep.subr.bf16.mxu0 %v17395_v16 }
 0xb01   : > { %12766 = vmatmul.mubr.msk.f32.vlgmr.msra.gmra.mrb[102].mxu0 %vm8022_vm9, %v16561_v14 }
 0xb02   : > { %13181 = vmatpush3.bf16.msra.mxu0 %v16438_v27  ;;  %12794 = vmatprep.mubr.msk.f32.mxu0 %vm14231_vm3, %v17403_v28  ;;  %v8602_v27 = vpop.f32.mrb[112].mxu1 }
 0xb03   : > { %13182 = vmatprep.subr.bf16.mxu0 %v17395_v16 }
 0xb06   : > { %13184 = vmatpush3.bf16.msra.mxu0 %v16442_v8  ;;  %v12748_v8 = vpop.f32.mrb[113].mxu1 }
 0xb07   : > { %13185 = vmatprep.subr.bf16.mxu0 %v17395_v16  ;;  %v9784_v8 = vld [vmem:[#allocation4 + $0x508] sm:$0xff] }
 0xb0a   : > { %13187 = vmatpush3.bf16.msra.mxu0 %v16448_v51 }
 0xb0b   : > { %13188 = vmatprep.subr.bf16.mxu0 %v17395_v16 }
 0xb0e   : > { %13190 = vmatpush3.bf16.msra.mxu0 %v16455_v52 }
 0xb0f   : > { %13203 = vmatprep.subr.bf16.mxu0 %v17395_v16 }
 0xb11   : > { %12795 = vmatmul.mubr.msk.f32.vlgmr.msra.gmra.mrb[104].mxu0 %vm8022_vm9, %v16413_v13 }
 0xb12   : > { %13205 = vmatpush3.bf16.msra.mxu0 %v16559_v53  ;;  %12832 = vmatprep.mubr.msk.f32.mxu0 %vm14231_vm3, %v17403_v28  ;;  %v8004_v53 = vpop.permute.xlu1 %8003 }
 0xb13   : > { %13206 = vmatprep.subr.bf16.mxu0 %v17395_v16 }
 0xb16   : > { %13208 = vmatpush3.bf16.msra.mxu0 %v16568_v6  ;;  %v8006_v6 = vmul.f32 %v8004_v53, %v16561_v14  ;;  %v9751_v53 = vld [vmem:[#allocation4 + $0x400] sm:$0xff] }
 0xb17   : > { %13209 = vmatprep.subr.bf16.mxu0 %v17395_v16 }
 0xb1a   : > { %13211 = vmatpush3.bf16.msra.mxu0 %v16576_v45  ;;  %v8098_v45 = vpop.permute.xlu1 %8097 }
 0xb1b   : > { %13212 = vmatprep.subr.bf16.mxu0 %v17395_v16 }
 0xb1e   : > { %13214 = vmatpush3.bf16.msra.mxu0 %v16582_v32  ;;  %v8011_v32 = vpop.permute.xlu0 %8010 }
 0xb1f   : > { %13227 = vmatprep.subr.bf16.mxu0 %v17395_v16 }
 0xb21   : > { %12833 = vmatmul.mubr.msk.f32.vlgmr.msra.gmra.mrb[106].mxu0 %vm8022_vm9, %v16413_v13 }
 0xb22   : > { %13229 = vmatpush3.bf16.msra.mxu0 %v16588_v35  ;;  %12870 = vmatprep.mubr.msk.f32.mxu0 %vm14231_vm3, %v17403_v28  ;;  %v8013_v35 = vadd.f32 %v8011_v32, %v8006_v6  ;;  %v9783_v6 = vld [vmem:[#allocation4 + $0x500] sm:$0xff]  ;;  %v9816_v32 = vld [vmem:[#allocation4 + $0x608] sm:$0xff] }
 0xb23   : > { %13230 = vmatprep.subr.bf16.mxu0 %v17395_v16 }
 0xb26   : > { %13232 = vmatpush3.bf16.msra.mxu0 %v16599_v47  ;;  %v8100_v47 = vmul.f32 %v8098_v45, %v16679_v63  ;;  %v13288_v45 = vpack.c.bf16 %v9783_v6, %v9751_v53  ;;  %v9721_v53 = vld [vmem:[#allocation4 + $0x310] sm:$0xff]  ;;  %v9754_v6 = vld [vmem:[#allocation4 + $0x418] sm:$0xff] }
 0xb27   : > { %13233 = vmatprep.subr.bf16.mxu0 %v17395_v16 }
 0xb2a   : > { %13235 = vmatpush3.bf16.msra.mxu0 %v16605_v11  ;;  %v8183_v11 = vpop.permute.xlu0 %8182 }
 0xb2b   : > { %13236 = vmatprep.subr.bf16.mxu0 %v17395_v16 }
 0xb2e   : > { %13238 = vmatpush3.bf16.msra.mxu0 %v16611_v50  ;;  %v8438_v1 = vpop.permute.xlu0 %8437 }
 0xb2f   : > { %13251 = vmatprep.subr.bf16.mxu0 %v17395_v16  ;;  %v8440_v59 = vmul.f32 %v8438_v1, %v16811_v39 }
 0xb31   : > { %12871 = vmatmul.mubr.msk.f32.vlgmr.msra.gmra.mrb[108].mxu0 %vm8022_vm9, %v16413_v13 }
 0xb32   : > { %13253 = vmatpush3.bf16.msra.mxu0 %v16617_v57  ;;  %12908 = vmatprep.mubr.msk.f32.mxu0 %vm14231_vm3, %v17403_v28  ;;  %v8101_v57 = vadd.f32 %v8100_v47, %v8013_v35  ;;  %v9848_v35 = vld [vmem:[#allocation4 + $0x708] sm:$0xff] }
 0xb33   : > { %13254 = vmatprep.subr.bf16.mxu0 %v17395_v16  ;;  %v13290_v47 = vpack.c.bf16 %v9848_v35, %v9816_v32  ;;  %v9753_v35 = vld [vmem:[#allocation4 + $0x410] sm:$0xff] }
 0xb36   : > { %13256 = vmatpush3.bf16.msra.mxu0 %v16627_v29 }
 0xb37   : > { %13257 = vmatprep.subr.bf16.mxu0 %v17395_v16 }
 0xb3a   : > { %13259 = vmatpush3.bf16.msra.mxu0 %v16633_v21 }
 0xb3b   : > { %13260 = vmatprep.subr.bf16.mxu0 %v17395_v16 }
 0xb3e   : > { %13262 = vmatpush3.bf16.msra.mxu0 %v16639_v26  ;;  %v8268_v26 = vpop.permute.xlu1 %8267 }
 0xb3f   : > { %v8270_v0 = vmul.f32 %v8268_v26, %v16708_v2  ;;  %v8693_v2 = vpop.permute.xlu0 %8692 }
 0xb41   : > { %12909 = vmatmul.mubr.msk.f32.vlgmr.msra.gmra.mrb[110].mxu0 %vm8022_vm9, %v16413_v13 }
 0xb42   : > { %9946 = vmatprep.mubr.f32.mxu0 %v17403_v28  ;;  %v8353_v34 = vpop.permute.xlu1 %8352 }
 0xb46   : > { %v8523_v63 = vpop.permute.xlu1 %8522 }
 0xb4a   : > { %v8608_v40 = vpop.permute.xlu1 %8607 }
 0xb4b   : > { %v8610_v31 = vmul.f32 %v8608_v40, %v8602_v27  ;;  %v9752_v27 = vld [vmem:[#allocation4 + $0x408] sm:$0xff] }
 0xb94   : > { %v16858_v51 = vpop.f32.mrb[88].mxu0 }
 0xb95   : > { %v12610_v52 = vpop.f32.mrb[89].mxu0 }
 0xb96   : > { %v13286_v52 = vpack.c.bf16 %v9784_v8, %v9752_v27 }
 0xba4   : > { %v8177_v50 = vpop.f32.mrb[96].mxu0 }
 0xba5   : > { %v8185_v29 = vmul.f32 %v8183_v11, %v8177_v50  ;;  %v12653_v21 = vpop.f32.mrb[97].mxu0  ;;  %v9815_v11 = vld [vmem:[#allocation4 + $0x600] sm:$0xff] }
 0xba6   : > { %v9847_v50 = vld [vmem:[#allocation4 + $0x700] sm:$0xff] }
 0xba7   : > { %v8186_v55 = vadd.f32 %v8185_v29, %v8101_v57  ;;  %v13292_v57 = vpack.c.bf16 %v9847_v50, %v9815_v11  ;;  %v8846_v29 = vpop.permute.xlu1 %8845  ;;  %v9818_v11 = vld [vmem:[#allocation4 + $0x618] sm:$0xff] }
 0xba8   : > { %v9850_v50 = vld [vmem:[#allocation4 + $0x718] sm:$0xff] }
 0xba9   : > { %v8271_v7 = vadd.f32 %v8270_v0, %v8186_v55  ;;  %v8930_v0 = vpop.permute.xlu0 %8929 }
 0xbab   : > { %v8853_v21 = vpop.permute.xlu1 %8852 }
 0xbaf   : > { %v9006_v55 = vpop.permute.xlu1 %9005 }
 0xbb4   : > { %v8347_v20 = vpop.f32.mrb[98].mxu0 }
 0xbb5   : > { %v8355_v49 = vmul.f32 %v8353_v34, %v8347_v20  ;;  %v12691_v60 = vpop.f32.mrb[99].mxu0  ;;  %v9082_v20 = vpop.permute.xlu1 %9081 }
 0xbb7   : > { %v8356_v54 = vadd.f32 %v8355_v49, %v8271_v7 }
 0xbb9   : > { %v8441_v22 = vadd.f32 %v8440_v59, %v8356_v54 }
 0xbc4   : > { %v8517_v23 = vpop.f32.mrb[100].mxu0 }
 0xbc5   : > { %v8525_v17 = vmul.f32 %v8523_v63, %v8517_v23  ;;  %v12729_v44 = vpop.f32.mrb[101].mxu0  ;;  %v9158_v23 = vpop.permute.xlu0 %9157 }
 0xbc7   : > { %v8526_v46 = vadd.f32 %v8525_v17, %v8441_v22  ;;  %v9234_v17 = vpop.permute.xlu1 %9233 }
 0xbc9   : > { %v8611_v25 = vadd.f32 %v8610_v31, %v8526_v46 }
 0xbd4   : > { %v8687_v15 = vpop.f32.mrb[102].mxu0 }
 0xbd5   : > { %v8695_v48 = vmul.f32 %v8693_v2, %v8687_v15  ;;  %v12767_v37 = vpop.f32.mrb[103].mxu0  ;;  %v9386_v15 = vpop.permute.xlu0 %9385 }
 0xbd7   : > { %v8696_v58 = vadd.f32 %v8695_v48, %v8611_v25  ;;  %v9310_v48 = vpop.permute.xlu1 %9309 }
 0xbd9   : > { %12769 = vmatpush3.msk.msra.mxu1 %vm3313_vm14, %v8696_v58 }
 0xbda   : > { %12771 = vmatmul.mubr.msk.f32.vlgmr.msra.gmra.mrb[114].mxu1 %vm3309_vm15, %v17417_v12  ;;  %12773 = vmatprep.subr.mxu1 %v17403_v28 }
 0xbdb   : > { %12774 = vmatpush3.msk.msra.mxu1 %vm3313_vm14, %v16561_v14  ;;  %12775 = vmatprep.mubr.msk.f32.mxu1 %vm14231_vm3, %v17403_v28 }
 0xbdc   : > { %13191 = vmatprep.subr.bf16.mxu1 %v17395_v16 }
 0xbe2   : > { %12776 = vmatmul.mubr.msk.f32.vlgmr.msra.gmra.mrb[114].mxu1 %vm3309_vm15, %v17404_v38  ;;  %v13885_v38 = vld [vmem:[%s16404_s11] sm:$0xf]  ;;  %s11624_s11 = sshll.u32 %s17424_s2, 8 }
 0xbe3   : > { %13193 = vmatpush3.bf16.msra.mxu1 %v16693_v3  ;;  %12813 = vmatprep.mubr.msk.f32.mxu1 %vm14231_vm3, %v17403_v28  ;;  %v8848_v26 = vmul.f32 %v13885_v38, %v8846_v29  ;;  %v9817_v29 = vld [vmem:[#allocation4 + $0x610] sm:$0xff]  ;;  %s16993_s3 = scalar_lea.vmem %s14460_s28, %s11624_s11 }
 0xbe4   : > { %13194 = vmatprep.subr.bf16.mxu1 %v17395_v16  ;;  %v16879_v12 = vpop.f32.mrb[104].mxu0 }
 0xbe5   : > { %v12796_v39 = vpop.f32.mrb[105].mxu0  ;;  %v8855_v7 = vadd.f32 %v8853_v21, %v8848_v26  ;;  %v8932_v34 = vmul.f32 %v8930_v0, %v16879_v12  ;;  %v9849_v21 = vld [vmem:[#allocation4 + $0x710] sm:$0xff]  ;;  %v9628_v0 = vld [vmem:[#allocation4 + $0x28] sm:$0xff] }
 0xbe6   : > { %v13308_v26 = vpack.c.bf16 %v9849_v21, %v9817_v29  ;;  %v9633_v29 = vld [vmem:[#allocation4 + $0x50] sm:$0xff] }
 0xbe7   : > { %13196 = vmatpush3.bf16.msra.mxu1 %v16701_v42  ;;  %v8933_v1 = vadd.f32 %v8932_v34, %v8855_v7  ;;  %v9630_v7 = vld [vmem:[#allocation4 + $0x38] sm:$0xff]  ;;  %v9665_v21 = vld [vmem:[#allocation4 + $0x150] sm:$0xff] }
 0xbe8   : > { %13197 = vmatprep.subr.bf16.mxu1 %v17395_v16 }
 0xbeb   : > { %13199 = vmatpush3.bf16.msra.mxu1 %v16711_v30 }
 0xbec   : > { %13200 = vmatprep.subr.bf16.mxu1 %v17395_v16 }
 0xbef   : > { %13202 = vmatpush3.bf16.msra.mxu1 %v16717_v4 }
 0xbf0   : > { %13215 = vmatprep.subr.bf16.mxu1 %v17395_v16 }
 0xbf2   : > { %12814 = vmatmul.mubr.msk.f32.vlgmr.msra.gmra.mrb[116].mxu1 %vm8022_vm9, %v16413_v13 }
 0xbf3   : > { %13217 = vmatpush3.bf16.msra.mxu1 %v16723_v36  ;;  %12851 = vmatprep.mubr.msk.f32.mxu1 %vm14231_vm3, %v17403_v28  ;;  %v9467_v36 = vld [vmem:[%s14455_s23] sm:$0x3f] }
 0xbf4   : > { %13218 = vmatprep.subr.bf16.mxu1 %v17395_v16  ;;  %9470 = vperm.xlu0 %13866, %v9467_v36   ;;  %v7892_v36 = vld [vmem:[%s17422_s1 + $0x8] sm:$0xff] }
 0xbf7   : > { %13220 = vmatpush3.bf16.msra.mxu1 %v16731_v10  ;;  %v9624_v10 = vld [vmem:[#allocation4 + $0x8] sm:$0xff] }
 0xbf8   : > { %13221 = vmatprep.subr.bf16.mxu1 %v17395_v16 }
 0xbfb   : > { %13223 = vmatpush3.bf16.msra.mxu1 %v16739_v62  ;;  %v9656_v62 = vld [vmem:[#allocation4 + $0x108] sm:$0xff] }
 0xbfc   : > { %13224 = vmatprep.subr.bf16.mxu1 %v17395_v16 }
 0xbff   : > { %13226 = vmatpush3.bf16.msra.mxu1 %v16745_v56  ;;  %v13278_v56 = vpack.c.bf16 %v9656_v62, %v9624_v10 }
 0xc00   : > { %13239 = vmatprep.subr.bf16.mxu1 %v17395_v16 }
 0xc01   : > { %13279 = vmatprep.subr.bf16.mxu0 %v13278_v56  ;;  %v9626_v56 = vld [vmem:[#allocation4 + $0x18] sm:$0xff] }
 0xc02   : > { %12852 = vmatmul.mubr.msk.f32.vlgmr.msra.gmra.mrb[118].mxu1 %vm8022_vm9, %v16413_v13 }
 0xc03   : > { %13241 = vmatpush3.bf16.msra.mxu1 %v16751_v9  ;;  %12889 = vmatprep.mubr.msk.f32.mxu1 %vm14231_vm3, %v17403_v28  ;;  %v9623_v9 = vld [vmem:[#allocation4] sm:$0xff] }
 0xc04   : > { %13242 = vmatprep.subr.bf16.mxu1 %v17395_v16 }
 0xc07   : > { %13244 = vmatpush3.bf16.msra.mxu1 %v16759_v33  ;;  %v9655_v33 = vld [vmem:[#allocation4 + $0x100] sm:$0xff] }
 0xc08   : > { %13245 = vmatprep.subr.bf16.mxu1 %v17395_v16 }
 0xc0b   : > { %13247 = vmatpush3.bf16.msra.mxu1 %v16767_v61  ;;  %v13280_v61 = vpack.c.bf16 %v9655_v33, %v9623_v9  ;;  %v9466_v33 = vld [vmem:[%s14450_s16] sm:$0x3f] }
 0xc0c   : > { %13248 = vmatprep.subr.bf16.mxu1 %v17395_v16 }
 0xc0d   : > { %13281 = vmatpush1.bf16.msra.mxu0 %v13280_v61 }
 0xc0f   : > { %13250 = vmatpush3.bf16.msra.mxu1 %v16773_v19  ;;  %v9688_v19 = vld [vmem:[#allocation4 + $0x208] sm:$0xff] }
 0xc10   : > { %13263 = vmatprep.subr.bf16.mxu1 %v17395_v16 }
 0xc12   : > { %12890 = vmatmul.mubr.msk.f32.vlgmr.msra.gmra.mrb[120].mxu1 %vm8022_vm9, %v16413_v13  ;;  %v9076_v13 = vpop.f32.mrb[106].mxu0 }
 0xc13   : > { %13265 = vmatpush3.bf16.msra.mxu1 %v16779_v41  ;;  %12927 = vmatprep.mubr.msk.f32.mxu1 %vm14231_vm3, %v17403_v28  ;;  %v12834_v14 = vpop.f32.mrb[107].mxu0  ;;  %v9720_v41 = vld [vmem:[#allocation4 + $0x308] sm:$0xff]  ;;  %v9084_v54 = vmul.f32 %v9082_v20, %v9076_v13 }
 0xc14   : > { %13266 = vmatprep.subr.bf16.mxu1 %v17395_v16  ;;  %v9228_v3 = vpop.f32.mrb[108].mxu0  ;;  %v9462_v14 = vpop.permute.xlu1 %9461 }
 0xc15   : > { %v12872_v42 = vpop.f32.mrb[109].mxu0  ;;  %v9236_v46 = vmul.f32 %v9234_v17, %v9228_v3  ;;  %v9658_v3 = vld [vmem:[#allocation4 + $0x118] sm:$0xff] }
 0xc16   : > { %v16927_v30 = vpop.f32.mrb[110].mxu0  ;;  %v9694_v17 = vld [vmem:[#allocation4 + $0x238] sm:$0xff] }
 0xc17   : > { %13268 = vmatpush3.bf16.msra.mxu1 %v16787_v24  ;;  %v12910_v4 = vpop.f32.mrb[111].mxu0  ;;  %v13282_v24 = vpack.c.bf16 %v9720_v41, %v9688_v19  ;;  %v9388_v39 = vmul.f32 %v9386_v15, %v16927_v30  ;;  %v13294_v19 = vpack.c.bf16 %v9658_v3, %v9626_v56  ;;  %v9625_v30 = vld [vmem:[#allocation4 + $0x10] sm:$0xff] }
 0xc18   : > { %13269 = vmatprep.subr.bf16.mxu1 %v17395_v16  ;;  %v7891_v4 = vld [vmem:[%s17422_s1] sm:$0xff]  ;;  %v9657_v41 = vld [vmem:[#allocation4 + $0x110] sm:$0xff] }
 0xc19   : > { %13283 = vmatprep.subr.bf16.mxu0 %v13282_v24  ;;  %v13276_v61 = vpack.c.bf16 %v7892_v36, %v7891_v4  ;;  %v7736_v24 = vpop.permute.xlu1 %7735 }
 0xc1a   : > { %v13539_v27 = vadd.f32 %v16858_v51, %v7736_v24  ;;  %v13306_v51 = vpack.c.bf16 %v9850_v50, %v9818_v11  ;;  %v9631_v11 = vld [vmem:[#allocation4 + $0x40] sm:$0xff] }
 0xc1b   : > { %13271 = vmatpush3.bf16.msra.mxu1 %v16795_v18  ;;  %v9687_v18 = vld [vmem:[#allocation4 + $0x200] sm:$0xff] }
 0xc1c   : > { %13272 = vmatprep.subr.bf16.mxu1 %v17395_v16  ;;  %v9663_v50 = vld [vmem:[#allocation4 + $0x140] sm:$0xff] }
 0xc1f   : > { %13274 = vmatpush3.bf16.msra.mxu1 %v16801_v5  ;;  %v9719_v5 = vld [vmem:[#allocation4 + $0x300] sm:$0xff] }
 0xc20   : > { %12930 = vmatprep.subr.mxu1 %v17403_v28  ;;  %v13284_v43 = vpack.c.bf16 %v9719_v5, %v9687_v18  ;;  %v9690_v18 = vld [vmem:[#allocation4 + $0x218] sm:$0xff] }
 0xc21   : > { %v9722_v5 = vld [vmem:[#allocation4 + $0x318] sm:$0xff] }
 0xc22   : > { %12928 = vmatmul.mubr.msk.f32.vlgmr.msra.gmra.mrb[122].mxu1 %vm8022_vm9, %v13885_v38  ;;  %13285 = vmatpush1.bf16.msra.mxu0 %v13284_v43  ;;  %v13296_v43 = vpack.c.bf16 %v9657_v41, %v9625_v30  ;;  %v13298_v8 = vpack.c.bf16 %v9722_v5, %v9690_v18  ;;  %v9822_v30 = vld [vmem:[#allocation4 + $0x638] sm:$0xff]  ;;  %v9819_v5 = vld [vmem:[#allocation4 + $0x620] sm:$0xff] }
 0xc23   : > { %12932 = vmatprep.mubr.msk.f32.mxu1 %vm14231_vm3, %v17403_v28  ;;  %13287 = vmatprep.subr.bf16.mxu0 %v13286_v52  ;;  %v9689_v52 = vld [vmem:[#allocation4 + $0x210] sm:$0xff]  ;;  %v9854_v41 = vld [vmem:[#allocation4 + $0x738] sm:$0xff] }
 0xc26   : > { %13289 = vmatpush1.bf16.msra.mxu0 %v13288_v45  ;;  %v9786_v45 = vld [vmem:[#allocation4 + $0x518] sm:$0xff] }
 0xc27   : > { %13291 = vmatprep.subr.bf16.mxu0 %v13290_v47  ;;  %v13302_v32 = vpack.c.bf16 %v9786_v45, %v9754_v6  ;;  %v9785_v47 = vld [vmem:[#allocation4 + $0x510] sm:$0xff]  ;;  %v9632_v6 = vld [vmem:[#allocation4 + $0x48] sm:$0xff] }
 0xc28   : > { %v9664_v45 = vld [vmem:[#allocation4 + $0x148] sm:$0xff] }
 0xc2a   : > { %13293 = vmatpush1.bf16.msra.mxu0 %v13292_v57  ;;  %v13304_v57 = vpack.c.bf16 %v9785_v47, %v9753_v35 }
 0xcc5   : > { %v9000_v49 = vpop.f32.mrb[116].mxu1 }
 0xcc6   : > { %v9008_v60 = vmul.f32 %v9006_v55, %v9000_v49  ;;  %v12815_v59 = vpop.f32.mrb[117].mxu1  ;;  %v9660_v55 = vld [vmem:[#allocation4 + $0x128] sm:$0xff]  ;;  %v9627_v49 = vld [vmem:[#allocation4 + $0x20] sm:$0xff] }
 0xcc7   : > { %v13310_v34 = vpack.c.bf16 %v9660_v55, %v9628_v0  ;;  %v9629_v59 = vld [vmem:[#allocation4 + $0x30] sm:$0xff]  ;;  %v9728_v0 = vld [vmem:[#allocation4 + $0x348] sm:$0xff]  ;;  %v9698_v55 = vld [vmem:[#allocation4 + $0x258] sm:$0xff] }
 0xcc8   : > { %v9009_v22 = vadd.f32 %v9008_v60, %v8933_v1  ;;  %v9662_v1 = vld [vmem:[#allocation4 + $0x138] sm:$0xff]  ;;  %v9659_v60 = vld [vmem:[#allocation4 + $0x120] sm:$0xff] }
 0xcc9   : > { %v13326_v20 = vpack.c.bf16 %v9662_v1, %v9630_v7  ;;  %13311 = vmatprep.subr.bf16.mxu0 %v13310_v34  ;;  %v9730_v7 = vld [vmem:[#allocation4 + $0x358] sm:$0xff]  ;;  %v13344_v34 = vpack.c.bf16 %v9663_v50, %v9631_v11  ;;  %v13360_v1 = vpack.c.bf16 %v9665_v21, %v9633_v29  ;;  %v9764_v29 = vld [vmem:[#allocation4 + $0x468] sm:$0xff] }
 0xcca   : > { %v9085_v63 = vadd.f32 %v9084_v54, %v9009_v22  ;;  %v9661_v54 = vld [vmem:[#allocation4 + $0x130] sm:$0xff]  ;;  %v9692_v22 = vld [vmem:[#allocation4 + $0x228] sm:$0xff] }
 0xccb   : > { %v9796_v21 = vld [vmem:[#allocation4 + $0x568] sm:$0xff] }
 0xcd5   : > { %v9152_v44 = vpop.f32.mrb[118].mxu1 }
 0xcd6   : > { %v9160_v40 = vmul.f32 %v9158_v23, %v9152_v44  ;;  %v12853_v31 = vpop.f32.mrb[119].mxu1  ;;  %v9724_v23 = vld [vmem:[#allocation4 + $0x328] sm:$0xff]  ;;  %v9726_v44 = vld [vmem:[#allocation4 + $0x338] sm:$0xff] }
 0xcd7   : > { %v13312_v31 = vpack.c.bf16 %v9659_v60, %v9627_v49  ;;  %v9727_v49 = vld [vmem:[#allocation4 + $0x340] sm:$0xff] }
 0xcd8   : > { %v9161_v25 = vadd.f32 %v9160_v40, %v9085_v63  ;;  %v9471_v63 = vpop.permute.xlu0 %9470 }
 0xcda   : > { %v9237_v2 = vadd.f32 %v9236_v46, %v9161_v25  ;;  %v13328_v46 = vpack.c.bf16 %v9661_v54, %v9629_v59  ;;  %v9691_v25 = vld [vmem:[#allocation4 + $0x220] sm:$0xff]  ;;  %v13362_v59 = vpack.c.bf16 %v9730_v7, %v9698_v55  ;;  %v9697_v54 = vld [vmem:[#allocation4 + $0x250] sm:$0xff] }
 0xce5   : > { %v9304_v37 = vpop.f32.mrb[120].mxu1 }
 0xce6   : > { %v9312_v58 = vmul.f32 %v9310_v48, %v9304_v37  ;;  %v12891_v12 = vpop.f32.mrb[121].mxu1  ;;  %v13314_v37 = vpack.c.bf16 %v9724_v23, %v9692_v22  ;;  %v9729_v22 = vld [vmem:[#allocation4 + $0x350] sm:$0xff]  ;;  %v9792_v23 = vld [vmem:[#allocation4 + $0x548] sm:$0xff] }
 0xce7   : > { %v9693_v12 = vld [vmem:[#allocation4 + $0x230] sm:$0xff] }
 0xce8   : > { %v9313_v38 = vadd.f32 %v9312_v58, %v9237_v2  ;;  %v9723_v2 = vld [vmem:[#allocation4 + $0x320] sm:$0xff]  ;;  %v13330_v58 = vpack.c.bf16 %v9726_v44, %v9694_v17  ;;  %v9762_v17 = vld [vmem:[#allocation4 + $0x458] sm:$0xff] }
 0xce9   : > { %v13316_v4 = vpack.c.bf16 %v9723_v2, %v9691_v25  ;;  %v9794_v44 = vld [vmem:[#allocation4 + $0x558] sm:$0xff]  ;;  %v9791_v25 = vld [vmem:[#allocation4 + $0x540] sm:$0xff] }
 0xcea   : > { %v9389_v13 = vadd.f32 %v9388_v39, %v9313_v38  ;;  %v9725_v39 = vld [vmem:[#allocation4 + $0x330] sm:$0xff]  ;;  %v9756_v38 = vld [vmem:[#allocation4 + $0x428] sm:$0xff] }
 0xceb   : > { %v13332_v36 = vpack.c.bf16 %v9725_v39, %v9693_v12  ;;  %v9824_v12 = vld [vmem:[#allocation4 + $0x648] sm:$0xff] }
 0xcec   : > { %v9856_v39 = vld [vmem:[#allocation4 + $0x748] sm:$0xff] }
 0xcf5   : > { %v9456_v42 = vpop.f32.mrb[122].mxu1 }
 0xcf6   : > { %v9464_v10 = vmul.f32 %v9462_v14, %v9456_v42  ;;  %v12929_v62 = vpop.f32.mrb[123].mxu1  ;;  %v9758_v14 = vld [vmem:[#allocation4 + $0x438] sm:$0xff] }
 0xcf7   : > { %v9790_v42 = vld [vmem:[#allocation4 + $0x538] sm:$0xff]  ;;  %v9787_v62 = vld [vmem:[#allocation4 + $0x520] sm:$0xff] }
 0xcf8   : > { %v9465_v9 = vadd.f32 %v9464_v10, %v9389_v13  ;;  %v9788_v13 = vld [vmem:[#allocation4 + $0x528] sm:$0xff]  ;;  %v9755_v10 = vld [vmem:[#allocation4 + $0x420] sm:$0xff]  ;;  %v13334_v3 = vpack.c.bf16 %v9790_v42, %v9758_v14 }
 0xcf9   : > { %v13318_v56 = vpack.c.bf16 %v9788_v13, %v9756_v38  ;;  %v13320_v24 = vpack.c.bf16 %v9787_v62, %v9755_v10  ;;  %v9826_v38 = vld [vmem:[#allocation4 + $0x658] sm:$0xff]  ;;  %v13354_v10 = vpack.c.bf16 %v9856_v39, %v9824_v12 }
 0xcfa   : > { %12931 = vmatpush3.msk.msra.mxu1 %vm1653_vm1, %v9465_v9  ;;  %v9757_v9 = vld [vmem:[#allocation4 + $0x430] sm:$0xff]  ;;  %v9858_v13 = vld [vmem:[#allocation4 + $0x758] sm:$0xff] }
 0xcfb   : > { %12933 = vmatmul.mubr.msk.f32.vlgmr.msra.gmra.mrb[114].mxu1 %vm1646_vm2, %v9466_v33  ;;  %13275 = vmatprep.subr.bf16.mxu1 %v17395_v16  ;;  %v13300_v16 = vpack.c.bf16 %v9721_v53, %v9689_v52  ;;  %v9789_v33 = vld [vmem:[#allocation4 + $0x530] sm:$0xff]  ;;  %v13370_v62 = vpack.c.bf16 %v9858_v13, %v9826_v38  ;;  %v9642_v12 = vld [vmem:[#allocation4 + $0x98] sm:$0xff] }
 0xcfc   : > { %13277 = vmatpush3.bf16.msra.mxu1 %v13276_v61  ;;  %12939 = vmatprep.mubr.msk.f32.mxu1 %vm14231_vm3, %v17403_v28  ;;  %v9820_v61 = vld [vmem:[#allocation4 + $0x628] sm:$0xff]  ;;  %v13336_v18 = vpack.c.bf16 %v9789_v33, %v9757_v9  ;;  %v9821_v52 = vld [vmem:[#allocation4 + $0x630] sm:$0xff]  ;;  %v9674_v39 = vld [vmem:[#allocation4 + $0x198] sm:$0xff] }
 0xcfd   : > { %13295 = vmatprep.subr.bf16.mxu1 %v13294_v19  ;;  %v9852_v19 = vld [vmem:[#allocation4 + $0x728] sm:$0xff]  ;;  %v9853_v53 = vld [vmem:[#allocation4 + $0x730] sm:$0xff] }
 0xcfe   : > { %v13340_v47 = vpack.c.bf16 %v9853_v53, %v9821_v52  ;;  %v9636_v9 = vld [vmem:[#allocation4 + $0x68] sm:$0xff] }
 0xcff   : > { %v9668_v33 = vld [vmem:[#allocation4 + $0x168] sm:$0xff] }
 0xd00   : > { %v9700_v52 = vld [vmem:[#allocation4 + $0x268] sm:$0xff] }
 0xd01   : > { %v9732_v53 = vld [vmem:[#allocation4 + $0x368] sm:$0xff] }
 0xd02   : > { %v13378_v11 = vpack.c.bf16 %v9732_v53, %v9700_v52  ;;  %v9770_v52 = vld [vmem:[#allocation4 + $0x498] sm:$0xff] }
 0xd03   : > { %12940 = vmatmul.mubr.msk.f32.vlgmr.msra.gmra.mrb[114].mxu1 %vm5425_vm4, %v13539_v27  ;;  %v13322_v27 = vpack.c.bf16 %v9852_v19, %v9820_v61  ;;  %v9638_v61 = vld [vmem:[#allocation4 + $0x78] sm:$0xff] }
 0xd04   : > { %13297 = vmatpush1.bf16.msra.mxu1 %v13296_v43  ;;  %10017 = vmatprep.mubr.f32.mxu1 %v17403_v28  ;;  %v9851_v43 = vld [vmem:[#allocation4 + $0x720] sm:$0xff]  ;;  %v9670_v19 = vld [vmem:[#allocation4 + $0x178] sm:$0xff] }
 0xd05   : > { %13299 = vmatprep.subr.bf16.mxu1 %v13298_v8  ;;  %v13338_v8 = vpack.c.bf16 %v9854_v41, %v9822_v30  ;;  %v13324_v35 = vpack.c.bf16 %v9851_v43, %v9819_v5  ;;  %v13374_v5 = vpack.c.bf16 %v9668_v33, %v9636_v9  ;;  %v13390_v43 = vpack.c.bf16 %v9670_v19, %v9638_v61  ;;  %v9706_v9 = vld [vmem:[#allocation4 + $0x298] sm:$0xff] }
 0xd06   : > { %v9738_v33 = vld [vmem:[#allocation4 + $0x398] sm:$0xff] }
 0xd07   : > { %v9802_v53 = vld [vmem:[#allocation4 + $0x598] sm:$0xff] }
 0xd08   : > { %13301 = vmatpush1.bf16.msra.mxu1 %v13300_v16  ;;  %v9634_v16 = vld [vmem:[#allocation4 + $0x58] sm:$0xff] }
 0xd09   : > { %13303 = vmatprep.subr.bf16.mxu1 %v13302_v32  ;;  %v9666_v32 = vld [vmem:[#allocation4 + $0x158] sm:$0xff] }
 0xd0c   : > { %13305 = vmatpush1.bf16.msra.mxu1 %v13304_v57  ;;  %v13342_v57 = vpack.c.bf16 %v9664_v45, %v9632_v6  ;;  %v9702_v6 = vld [vmem:[#allocation4 + $0x278] sm:$0xff] }
 0xd0d   : > { %13307 = vmatprep.subr.bf16.mxu1 %v13306_v51  ;;  %v13358_v51 = vpack.c.bf16 %v9666_v32, %v9634_v16  ;;  %v9734_v45 = vld [vmem:[#allocation4 + $0x378] sm:$0xff] }
 0xd0e   : > { %v13394_v50 = vpack.c.bf16 %v9734_v45, %v9702_v6 }
 0xd10   : > { %13309 = vmatpush1.bf16.msra.mxu1 %v13308_v26  ;;  %v9696_v26 = vld [vmem:[#allocation4 + $0x248] sm:$0xff] }
 0xd11   : > { %13327 = vmatprep.subr.bf16.mxu1 %v13326_v20  ;;  %v9695_v20 = vld [vmem:[#allocation4 + $0x240] sm:$0xff]  ;;  %v13346_v60 = vpack.c.bf16 %v9728_v0, %v9696_v26  ;;  %v9766_v26 = vld [vmem:[#allocation4 + $0x478] sm:$0xff] }
 0xd12   : > { %v9798_v0 = vld [vmem:[#allocation4 + $0x578] sm:$0xff] }
 0xdd6   : > { %v9619_v40 = vpop.f32.mrb[114].mxu1 }
 0xdd7   : > { %v16943_v15 = vadd.f32 %v9619_v40, %v9471_v63  ;;  %v12941_v48 = vpop.f32.mrb[115].mxu1  ;;  %v9760_v63 = vld [vmem:[#allocation4 + $0x448] sm:$0xff]  ;;  %v13348_v40 = vpack.c.bf16 %v9727_v49, %v9695_v20  ;;  %v13382_v20 = vpack.c.bf16 %v9796_v21, %v9764_v29  ;;  %v13398_v49 = vpack.c.bf16 %v9798_v0, %v9766_v26  ;;  %v9834_v29 = vld [vmem:[#allocation4 + $0x698] sm:$0xff] }
 0xdd8   : > { %v13350_v2 = vpack.c.bf16 %v9792_v23, %v9760_v63  ;;  %v13366_v48 = vpack.c.bf16 %v9794_v44, %v9762_v17  ;;  %v9830_v63 = vld [vmem:[#allocation4 + $0x678] sm:$0xff] }
 0xdd9   : > { %11605 = vmatmul.mubr.msk.f32.vlgmr.msra.gmra.mrb[112].mxu0 %vm8022_vm9, %v16943_v15  ;;  %11606 = vmatmul.mubr.msk.f32.vlgmr.msra.gmra.mrb[124].mxu1 %vm8022_vm9, %v16943_v15  ;;  %v9862_v23 = vld [vmem:[#allocation4 + $0x778] sm:$0xff] }
 0xdda   : > { %13313 = vmatpush1.bf16.msra.mxu0 %v13312_v31  ;;  %13329 = vmatpush1.bf16.msra.mxu1 %v13328_v46  ;;  %v13364_v31 = vpack.c.bf16 %v9729_v22, %v9697_v54  ;;  %v9759_v46 = vld [vmem:[#allocation4 + $0x440] sm:$0xff]  ;;  %v9828_v54 = vld [vmem:[#allocation4 + $0x668] sm:$0xff]  ;;  %v9866_v21 = vld [vmem:[#allocation4 + $0x798] sm:$0xff] }
 0xddb   : > { %13315 = vmatprep.subr.bf16.mxu0 %v13314_v37  ;;  %13331 = vmatprep.subr.bf16.mxu1 %v13330_v58  ;;  %v9761_v37 = vld [vmem:[#allocation4 + $0x450] sm:$0xff]  ;;  %v13352_v14 = vpack.c.bf16 %v9791_v25, %v9759_v46  ;;  %v9860_v22 = vld [vmem:[#allocation4 + $0x768] sm:$0xff]  ;;  %v13402_v25 = vpack.c.bf16 %v9862_v23, %v9830_v63 }
 0xddc   : > { %10088 = vmatprep.mubr.f32.mxu0 %v17403_v28  ;;  %10159 = vmatprep.mubr.f32.mxu1 %v17403_v28  ;;  %v9793_v58 = vld [vmem:[#allocation4 + $0x550] sm:$0xff]  ;;  %v13386_v46 = vpack.c.bf16 %v9860_v22, %v9828_v54  ;;  %v9646_v54 = vld [vmem:[#allocation4 + $0xb8] sm:$0xff] }
 0xddd   : > { %v13368_v42 = vpack.c.bf16 %v9793_v58, %v9761_v37  ;;  %v9640_v37 = vld [vmem:[#allocation4 + $0x88] sm:$0xff]  ;;  %v9678_v22 = vld [vmem:[#allocation4 + $0x1b8] sm:$0xff] }
 0xdde   : > { %13317 = vmatpush1.bf16.msra.mxu0 %v13316_v4  ;;  %13333 = vmatpush1.bf16.msra.mxu1 %v13332_v36  ;;  %v9823_v4 = vld [vmem:[#allocation4 + $0x640] sm:$0xff]  ;;  %v9672_v58 = vld [vmem:[#allocation4 + $0x188] sm:$0xff] }
 0xddf   : > { %13319 = vmatprep.subr.bf16.mxu0 %v13318_v56  ;;  %13335 = vmatprep.subr.bf16.mxu1 %v13334_v3  ;;  %v9855_v36 = vld [vmem:[#allocation4 + $0x740] sm:$0xff]  ;;  %v9825_v56 = vld [vmem:[#allocation4 + $0x650] sm:$0xff] }
 0xde0   : > { %v9857_v3 = vld [vmem:[#allocation4 + $0x750] sm:$0xff]  ;;  %v13356_v30 = vpack.c.bf16 %v9855_v36, %v9823_v4  ;;  %v13406_v4 = vpack.c.bf16 %v9672_v58, %v9640_v37  ;;  %v13422_v36 = vpack.c.bf16 %v9674_v39, %v9642_v12  ;;  %v9710_v37 = vld [vmem:[#allocation4 + $0x2b8] sm:$0xff] }
 0xde1   : > { %v13372_v41 = vpack.c.bf16 %v9857_v3, %v9825_v56  ;;  %v9704_v56 = vld [vmem:[#allocation4 + $0x288] sm:$0xff]  ;;  %v9742_v58 = vld [vmem:[#allocation4 + $0x3b8] sm:$0xff] }
 0xde2   : > { %13321 = vmatpush1.bf16.msra.mxu0 %v13320_v24  ;;  %13337 = vmatpush1.bf16.msra.mxu1 %v13336_v18  ;;  %v9635_v24 = vld [vmem:[#allocation4 + $0x60] sm:$0xff]  ;;  %v9736_v3 = vld [vmem:[#allocation4 + $0x388] sm:$0xff] }
 0xde3   : > { %13323 = vmatprep.subr.bf16.mxu0 %v13322_v27  ;;  %13339 = vmatprep.subr.bf16.mxu1 %v13338_v8  ;;  %v9667_v18 = vld [vmem:[#allocation4 + $0x160] sm:$0xff]  ;;  %v9637_v27 = vld [vmem:[#allocation4 + $0x70] sm:$0xff] }
 0xde4   : > { %v9669_v8 = vld [vmem:[#allocation4 + $0x170] sm:$0xff]  ;;  %v13376_v16 = vpack.c.bf16 %v9667_v18, %v9635_v24  ;;  %v13410_v24 = vpack.c.bf16 %v9736_v3, %v9704_v56  ;;  %v13426_v18 = vpack.c.bf16 %v9738_v33, %v9706_v9  ;;  %v9774_v56 = vld [vmem:[#allocation4 + $0x4b8] sm:$0xff] }
 0xde5   : > { %v13392_v32 = vpack.c.bf16 %v9669_v8, %v9637_v27  ;;  %v9768_v27 = vld [vmem:[#allocation4 + $0x488] sm:$0xff]  ;;  %v9806_v3 = vld [vmem:[#allocation4 + $0x5b8] sm:$0xff] }
 0xde6   : > { %13325 = vmatpush1.bf16.msra.mxu0 %v13324_v35  ;;  %13341 = vmatpush1.bf16.msra.mxu1 %v13340_v47  ;;  %v9699_v35 = vld [vmem:[#allocation4 + $0x260] sm:$0xff]  ;;  %v9800_v8 = vld [vmem:[#allocation4 + $0x588] sm:$0xff] }
 0xde7   : > { %13343 = vmatprep.subr.bf16.mxu0 %v13342_v57  ;;  %13359 = vmatprep.subr.bf16.mxu1 %v13358_v51  ;;  %v9731_v47 = vld [vmem:[#allocation4 + $0x360] sm:$0xff]  ;;  %v9701_v57 = vld [vmem:[#allocation4 + $0x270] sm:$0xff] }
 0xde8   : > { %v9733_v51 = vld [vmem:[#allocation4 + $0x370] sm:$0xff]  ;;  %v13380_v55 = vpack.c.bf16 %v9731_v47, %v9699_v35  ;;  %v13414_v35 = vpack.c.bf16 %v9800_v8, %v9768_v27  ;;  %v13430_v47 = vpack.c.bf16 %v9802_v53, %v9770_v52  ;;  %v9838_v27 = vld [vmem:[#allocation4 + $0x6b8] sm:$0xff] }
 0xde9   : > { %11607 = vmatmul.mubr.msk.f32.vlgmr.msra.gmra.mrb[114].mxu0 %vm8022_vm9, %v16943_v15  ;;  %11608 = vmatmul.mubr.msk.f32.vlgmr.msra.gmra.mrb[126].mxu1 %vm8022_vm9, %v16943_v15  ;;  %v13396_v7 = vpack.c.bf16 %v9733_v51, %v9701_v57  ;;  %v9832_v57 = vld [vmem:[#allocation4 + $0x688] sm:$0xff]  ;;  %v9870_v8 = vld [vmem:[#allocation4 + $0x7b8] sm:$0xff] }
 0xdea   : > { %13345 = vmatpush1.bf16.msra.mxu0 %v13344_v34  ;;  %13361 = vmatpush1.bf16.msra.mxu1 %v13360_v1  ;;  %v9763_v34 = vld [vmem:[#allocation4 + $0x460] sm:$0xff]  ;;  %v9864_v51 = vld [vmem:[#allocation4 + $0x788] sm:$0xff] }
 0xdeb   : > { %13347 = vmatprep.subr.bf16.mxu0 %v13346_v60  ;;  %13363 = vmatprep.subr.bf16.mxu1 %v13362_v59  ;;  %v9795_v1 = vld [vmem:[#allocation4 + $0x560] sm:$0xff]  ;;  %v9765_v60 = vld [vmem:[#allocation4 + $0x470] sm:$0xff] }
 0xdec   : > { %10230 = vmatprep.mubr.f32.mxu0 %v17403_v28  ;;  %10301 = vmatprep.mubr.f32.mxu1 %v17403_v28  ;;  %v9797_v59 = vld [vmem:[#allocation4 + $0x570] sm:$0xff]  ;;  %v13384_v17 = vpack.c.bf16 %v9795_v1, %v9763_v34  ;;  %v13418_v34 = vpack.c.bf16 %v9864_v51, %v9832_v57  ;;  %v13434_v1 = vpack.c.bf16 %v9866_v21, %v9834_v29  ;;  %v9650_v57 = vld [vmem:[#allocation4 + $0xd8] sm:$0xff] }
 0xded   : > { %v13400_v44 = vpack.c.bf16 %v9797_v59, %v9765_v60  ;;  %v9644_v60 = vld [vmem:[#allocation4 + $0xa8] sm:$0xff]  ;;  %v9682_v51 = vld [vmem:[#allocation4 + $0x1d8] sm:$0xff] }
 0xdee   : > { %13349 = vmatpush1.bf16.msra.mxu0 %v13348_v40  ;;  %13365 = vmatpush1.bf16.msra.mxu1 %v13364_v31  ;;  %v9827_v40 = vld [vmem:[#allocation4 + $0x660] sm:$0xff]  ;;  %v9676_v59 = vld [vmem:[#allocation4 + $0x1a8] sm:$0xff] }
 0xdef   : > { %13351 = vmatprep.subr.bf16.mxu0 %v13350_v2  ;;  %13367 = vmatprep.subr.bf16.mxu1 %v13366_v48  ;;  %v9859_v31 = vld [vmem:[#allocation4 + $0x760] sm:$0xff]  ;;  %v9829_v2 = vld [vmem:[#allocation4 + $0x670] sm:$0xff] }
 0xdf0   : > { %v9861_v48 = vld [vmem:[#allocation4 + $0x770] sm:$0xff]  ;;  %v13388_v38 = vpack.c.bf16 %v9859_v31, %v9827_v40  ;;  %v13438_v40 = vpack.c.bf16 %v9676_v59, %v9644_v60  ;;  %v13454_v31 = vpack.c.bf16 %v9678_v22, %v9646_v54  ;;  %v9714_v60 = vld [vmem:[#allocation4 + $0x2d8] sm:$0xff] }
 0xdf1   : > { %v13404_v13 = vpack.c.bf16 %v9861_v48, %v9829_v2  ;;  %v9708_v2 = vld [vmem:[#allocation4 + $0x2a8] sm:$0xff]  ;;  %v9746_v59 = vld [vmem:[#allocation4 + $0x3d8] sm:$0xff] }
 0xdf2   : > { %13353 = vmatpush1.bf16.msra.mxu0 %v13352_v14  ;;  %13369 = vmatpush1.bf16.msra.mxu1 %v13368_v42  ;;  %v9639_v14 = vld [vmem:[#allocation4 + $0x80] sm:$0xff]  ;;  %v9740_v48 = vld [vmem:[#allocation4 + $0x3a8] sm:$0xff] }
 0xdf3   : > { %13355 = vmatprep.subr.bf16.mxu0 %v13354_v10  ;;  %13371 = vmatprep.subr.bf16.mxu1 %v13370_v62  ;;  %v9671_v42 = vld [vmem:[#allocation4 + $0x180] sm:$0xff]  ;;  %v9641_v10 = vld [vmem:[#allocation4 + $0x90] sm:$0xff] }
 0xdf4   : > { %v9673_v62 = vld [vmem:[#allocation4 + $0x190] sm:$0xff]  ;;  %v13408_v61 = vpack.c.bf16 %v9671_v42, %v9639_v14  ;;  %v13442_v14 = vpack.c.bf16 %v9740_v48, %v9708_v2  ;;  %v13458_v42 = vpack.c.bf16 %v9742_v58, %v9710_v37  ;;  %v9778_v2 = vld [vmem:[#allocation4 + $0x4d8] sm:$0xff] }
 0xdf5   : > { %v13424_v19 = vpack.c.bf16 %v9673_v62, %v9641_v10  ;;  %v9772_v10 = vld [vmem:[#allocation4 + $0x4a8] sm:$0xff]  ;;  %v9810_v48 = vld [vmem:[#allocation4 + $0x5d8] sm:$0xff] }
 0xdf6   : > { %13357 = vmatpush1.bf16.msra.mxu0 %v13356_v30  ;;  %13373 = vmatpush1.bf16.msra.mxu1 %v13372_v41  ;;  %v9703_v30 = vld [vmem:[#allocation4 + $0x280] sm:$0xff]  ;;  %v9804_v62 = vld [vmem:[#allocation4 + $0x5a8] sm:$0xff] }
 0xdf7   : > { %13375 = vmatprep.subr.bf16.mxu0 %v13374_v5  ;;  %13391 = vmatprep.subr.bf16.mxu1 %v13390_v43  ;;  %v9735_v41 = vld [vmem:[#allocation4 + $0x380] sm:$0xff]  ;;  %v9705_v5 = vld [vmem:[#allocation4 + $0x290] sm:$0xff] }
 0xdf8   : > { %v9737_v43 = vld [vmem:[#allocation4 + $0x390] sm:$0xff]  ;;  %v13412_v6 = vpack.c.bf16 %v9735_v41, %v9703_v30  ;;  %v13446_v30 = vpack.c.bf16 %v9804_v62, %v9772_v10  ;;  %v13462_v41 = vpack.c.bf16 %v9806_v3, %v9774_v56  ;;  %v9842_v10 = vld [vmem:[#allocation4 + $0x6d8] sm:$0xff] }
 0xdf9   : > { %11609 = vmatmul.mubr.msk.f32.vlgmr.msra.gmra.mrb[116].mxu0 %vm8022_vm9, %v16943_v15  ;;  %11610 = vmatmul.mubr.msk.f32.vlgmr.msra.gmra.mrb[128].mxu1 %vm8022_vm9, %v16943_v15  ;;  %v13428_v45 = vpack.c.bf16 %v9737_v43, %v9705_v5  ;;  %v9836_v5 = vld [vmem:[#allocation4 + $0x6a8] sm:$0xff]  ;;  %v9874_v62 = vld [vmem:[#allocation4 + $0x7d8] sm:$0xff] }
 0xdfa   : > { %13377 = vmatpush1.bf16.msra.mxu0 %v13376_v16  ;;  %13393 = vmatpush1.bf16.msra.mxu1 %v13392_v32  ;;  %v9767_v16 = vld [vmem:[#allocation4 + $0x480] sm:$0xff]  ;;  %v9868_v43 = vld [vmem:[#allocation4 + $0x7a8] sm:$0xff] }
 0xdfb   : > { %13379 = vmatprep.subr.bf16.mxu0 %v13378_v11  ;;  %13395 = vmatprep.subr.bf16.mxu1 %v13394_v50  ;;  %v9799_v32 = vld [vmem:[#allocation4 + $0x580] sm:$0xff]  ;;  %v9769_v11 = vld [vmem:[#allocation4 + $0x490] sm:$0xff] }
 0xdfc   : > { %10372 = vmatprep.mubr.f32.mxu0 %v17403_v28  ;;  %10443 = vmatprep.mubr.f32.mxu1 %v17403_v28  ;;  %v9801_v50 = vld [vmem:[#allocation4 + $0x590] sm:$0xff]  ;;  %v13416_v26 = vpack.c.bf16 %v9799_v32, %v9767_v16  ;;  %v13450_v16 = vpack.c.bf16 %v9868_v43, %v9836_v5  ;;  %v13466_v32 = vpack.c.bf16 %v9870_v8, %v9838_v27  ;;  %v9654_v5 = vld [vmem:[#allocation4 + $0xf8] sm:$0xff] }
 0xdfd   : > { %v13432_v0 = vpack.c.bf16 %v9801_v50, %v9769_v11  ;;  %v9648_v11 = vld [vmem:[#allocation4 + $0xc8] sm:$0xff]  ;;  %v9686_v43 = vld [vmem:[#allocation4 + $0x1f8] sm:$0xff] }
 0xdfe   : > { %13381 = vmatpush1.bf16.msra.mxu0 %v13380_v55  ;;  %13397 = vmatpush1.bf16.msra.mxu1 %v13396_v7  ;;  %v9831_v55 = vld [vmem:[#allocation4 + $0x680] sm:$0xff]  ;;  %v9680_v50 = vld [vmem:[#allocation4 + $0x1c8] sm:$0xff] }
 0xdff   : > { %13383 = vmatprep.subr.bf16.mxu0 %v13382_v20  ;;  %13399 = vmatprep.subr.bf16.mxu1 %v13398_v49  ;;  %v9863_v7 = vld [vmem:[#allocation4 + $0x780] sm:$0xff]  ;;  %v9833_v20 = vld [vmem:[#allocation4 + $0x690] sm:$0xff] }
 0xe00   : > { %v9865_v49 = vld [vmem:[#allocation4 + $0x790] sm:$0xff]  ;;  %v13420_v63 = vpack.c.bf16 %v9863_v7, %v9831_v55  ;;  %v13470_v55 = vpack.c.bf16 %v9680_v50, %v9648_v11  ;;  %v13486_v7 = vpack.c.bf16 %v9682_v51, %v9650_v57  ;;  %v9718_v11 = vld [vmem:[#allocation4 + $0x2f8] sm:$0xff] }
 0xe01   : > { %v13436_v23 = vpack.c.bf16 %v9865_v49, %v9833_v20  ;;  %v9712_v20 = vld [vmem:[#allocation4 + $0x2c8] sm:$0xff]  ;;  %v9750_v50 = vld [vmem:[#allocation4 + $0x3f8] sm:$0xff] }
 0xe02   : > { %13385 = vmatpush1.bf16.msra.mxu0 %v13384_v17  ;;  %13401 = vmatpush1.bf16.msra.mxu1 %v13400_v44  ;;  %v9643_v17 = vld [vmem:[#allocation4 + $0xa0] sm:$0xff]  ;;  %v9744_v49 = vld [vmem:[#allocation4 + $0x3c8] sm:$0xff] }
 0xe03   : > { %13387 = vmatprep.subr.bf16.mxu0 %v13386_v46  ;;  %13403 = vmatprep.subr.bf16.mxu1 %v13402_v25  ;;  %v9675_v44 = vld [vmem:[#allocation4 + $0x1a0] sm:$0xff]  ;;  %v9645_v46 = vld [vmem:[#allocation4 + $0xb0] sm:$0xff] }
 0xe04   : > { %v9677_v25 = vld [vmem:[#allocation4 + $0x1b0] sm:$0xff]  ;;  %v13440_v12 = vpack.c.bf16 %v9675_v44, %v9643_v17  ;;  %v13474_v17 = vpack.c.bf16 %v9744_v49, %v9712_v20  ;;  %v13490_v44 = vpack.c.bf16 %v9746_v59, %v9714_v60  ;;  %v9782_v20 = vld [vmem:[#allocation4 + $0x4f8] sm:$0xff] }
 0xe05   : > { %v13456_v39 = vpack.c.bf16 %v9677_v25, %v9645_v46  ;;  %v9776_v46 = vld [vmem:[#allocation4 + $0x4c8] sm:$0xff]  ;;  %v9814_v49 = vld [vmem:[#allocation4 + $0x5f8] sm:$0xff] }
 0xe06   : > { %13389 = vmatpush1.bf16.msra.mxu0 %v13388_v38  ;;  %13405 = vmatpush1.bf16.msra.mxu1 %v13404_v13  ;;  %v9707_v38 = vld [vmem:[#allocation4 + $0x2a0] sm:$0xff]  ;;  %v9808_v25 = vld [vmem:[#allocation4 + $0x5c8] sm:$0xff] }
 0xe07   : > { %13407 = vmatprep.subr.bf16.mxu0 %v13406_v4  ;;  %13423 = vmatprep.subr.bf16.mxu1 %v13422_v36  ;;  %v9739_v13 = vld [vmem:[#allocation4 + $0x3a0] sm:$0xff]  ;;  %v9709_v4 = vld [vmem:[#allocation4 + $0x2b0] sm:$0xff] }
 0xe08   : > { %v9741_v36 = vld [vmem:[#allocation4 + $0x3b0] sm:$0xff]  ;;  %v13444_v9 = vpack.c.bf16 %v9739_v13, %v9707_v38  ;;  %v13478_v38 = vpack.c.bf16 %v9808_v25, %v9776_v46  ;;  %v13494_v13 = vpack.c.bf16 %v9810_v48, %v9778_v2  ;;  %v9846_v46 = vld [vmem:[#allocation4 + $0x6f8] sm:$0xff] }
 0xe09   : > { %11611 = vmatmul.mubr.msk.f32.vlgmr.msra.gmra.mrb[118].mxu0 %vm8022_vm9, %v16943_v15  ;;  %11612 = vmatmul.mubr.msk.f32.vlgmr.msra.gmra.mrb[130].mxu1 %vm8022_vm9, %v16943_v15  ;;  %v13460_v33 = vpack.c.bf16 %v9741_v36, %v9709_v4  ;;  %v9840_v4 = vld [vmem:[#allocation4 + $0x6c8] sm:$0xff]  ;;  %v9878_v25 = vld [vmem:[#allocation4 + $0x7f8] sm:$0xff] }
 0xe0a   : > { %13409 = vmatpush1.bf16.msra.mxu0 %v13408_v61  ;;  %13425 = vmatpush1.bf16.msra.mxu1 %v13424_v19  ;;  %v9771_v61 = vld [vmem:[#allocation4 + $0x4a0] sm:$0xff]  ;;  %v9872_v36 = vld [vmem:[#allocation4 + $0x7c8] sm:$0xff] }
 0xe0b   : > { %13411 = vmatprep.subr.bf16.mxu0 %v13410_v24  ;;  %13427 = vmatprep.subr.bf16.mxu1 %v13426_v18  ;;  %v9803_v19 = vld [vmem:[#allocation4 + $0x5a0] sm:$0xff]  ;;  %v9773_v24 = vld [vmem:[#allocation4 + $0x4b0] sm:$0xff] }
 0xe0c   : > { %10514 = vmatprep.mubr.f32.mxu0 %v17403_v28  ;;  %10585 = vmatprep.mubr.f32.mxu1 %v17403_v28  ;;  %v9805_v18 = vld [vmem:[#allocation4 + $0x5b0] sm:$0xff]  ;;  %v13448_v52 = vpack.c.bf16 %v9803_v19, %v9771_v61  ;;  %v13482_v61 = vpack.c.bf16 %v9872_v36, %v9840_v4  ;;  %v13498_v19 = vpack.c.bf16 %v9874_v62, %v9842_v10 }
 0xe0d   : > { %v13464_v53 = vpack.c.bf16 %v9805_v18, %v9773_v24  ;;  %v9652_v24 = vld [vmem:[#allocation4 + $0xe8] sm:$0xff] }
 0xe0e   : > { %13413 = vmatpush1.bf16.msra.mxu0 %v13412_v6  ;;  %13429 = vmatpush1.bf16.msra.mxu1 %v13428_v45  ;;  %v9835_v6 = vld [vmem:[#allocation4 + $0x6a0] sm:$0xff]  ;;  %v9684_v18 = vld [vmem:[#allocation4 + $0x1e8] sm:$0xff] }
 0xe0f   : > { %13415 = vmatprep.subr.bf16.mxu0 %v13414_v35  ;;  %13431 = vmatprep.subr.bf16.mxu1 %v13430_v47  ;;  %v9867_v45 = vld [vmem:[#allocation4 + $0x7a0] sm:$0xff]  ;;  %v9837_v35 = vld [vmem:[#allocation4 + $0x6b0] sm:$0xff] }
 0xe10   : > { %v9869_v47 = vld [vmem:[#allocation4 + $0x7b0] sm:$0xff]  ;;  %v13452_v29 = vpack.c.bf16 %v9867_v45, %v9835_v6  ;;  %v13502_v6 = vpack.c.bf16 %v9684_v18, %v9652_v24  ;;  %v13518_v45 = vpack.c.bf16 %v9686_v43, %v9654_v5 }
 0xe11   : > { %v13468_v21 = vpack.c.bf16 %v9869_v47, %v9837_v35  ;;  %v9716_v35 = vld [vmem:[#allocation4 + $0x2e8] sm:$0xff] }
 0xe12   : > { %13417 = vmatpush1.bf16.msra.mxu0 %v13416_v26  ;;  %13433 = vmatpush1.bf16.msra.mxu1 %v13432_v0  ;;  %v9647_v26 = vld [vmem:[#allocation4 + $0xc0] sm:$0xff]  ;;  %v9748_v47 = vld [vmem:[#allocation4 + $0x3e8] sm:$0xff] }
 0xe13   : > { %13419 = vmatprep.subr.bf16.mxu0 %v13418_v34  ;;  %13435 = vmatprep.subr.bf16.mxu1 %v13434_v1  ;;  %v9679_v0 = vld [vmem:[#allocation4 + $0x1c0] sm:$0xff]  ;;  %v9649_v34 = vld [vmem:[#allocation4 + $0xd0] sm:$0xff] }
 0xe14   : > { %v9681_v1 = vld [vmem:[#allocation4 + $0x1d0] sm:$0xff]  ;;  %v13472_v54 = vpack.c.bf16 %v9679_v0, %v9647_v26  ;;  %v13506_v26 = vpack.c.bf16 %v9748_v47, %v9716_v35  ;;  %v13522_v0 = vpack.c.bf16 %v9750_v50, %v9718_v11 }
 0xe15   : > { %v13488_v22 = vpack.c.bf16 %v9681_v1, %v9649_v34  ;;  %v9780_v34 = vld [vmem:[#allocation4 + $0x4e8] sm:$0xff] }
 0xe16   : > { %13421 = vmatpush1.bf16.msra.mxu0 %v13420_v63  ;;  %13437 = vmatpush1.bf16.msra.mxu1 %v13436_v23  ;;  %v9711_v63 = vld [vmem:[#allocation4 + $0x2c0] sm:$0xff]  ;;  %v9812_v1 = vld [vmem:[#allocation4 + $0x5e8] sm:$0xff] }
 0xe17   : > { %13439 = vmatprep.subr.bf16.mxu0 %v13438_v40  ;;  %13455 = vmatprep.subr.bf16.mxu1 %v13454_v31  ;;  %v9743_v23 = vld [vmem:[#allocation4 + $0x3c0] sm:$0xff]  ;;  %v9713_v40 = vld [vmem:[#allocation4 + $0x2d0] sm:$0xff] }
 0xe18   : > { %v9745_v31 = vld [vmem:[#allocation4 + $0x3d0] sm:$0xff]  ;;  %v13476_v37 = vpack.c.bf16 %v9743_v23, %v9711_v63  ;;  %v13510_v63 = vpack.c.bf16 %v9812_v1, %v9780_v34  ;;  %v13526_v23 = vpack.c.bf16 %v9814_v49, %v9782_v20 }
 0xe19   : > { %11613 = vmatmul.mubr.msk.f32.vlgmr.msra.gmra.mrb[120].mxu0 %vm8022_vm9, %v16943_v15  ;;  %11614 = vmatmul.mubr.msk.f32.vlgmr.msra.gmra.mrb[132].mxu1 %vm8022_vm9, %v16943_v15  ;;  %v13492_v58 = vpack.c.bf16 %v9745_v31, %v9713_v40  ;;  %v9844_v40 = vld [vmem:[#allocation4 + $0x6e8] sm:$0xff] }
 0xe1a   : > { %13441 = vmatpush1.bf16.msra.mxu0 %v13440_v12  ;;  %13457 = vmatpush1.bf16.msra.mxu1 %v13456_v39  ;;  %v9775_v12 = vld [vmem:[#allocation4 + $0x4c0] sm:$0xff]  ;;  %v9876_v31 = vld [vmem:[#allocation4 + $0x7e8] sm:$0xff] }
 0xe1b   : > { %13443 = vmatprep.subr.bf16.mxu0 %v13442_v14  ;;  %13459 = vmatprep.subr.bf16.mxu1 %v13458_v42  ;;  %v9807_v39 = vld [vmem:[#allocation4 + $0x5c0] sm:$0xff]  ;;  %v9777_v14 = vld [vmem:[#allocation4 + $0x4d0] sm:$0xff] }
 0xe1c   : > { %10656 = vmatprep.mubr.f32.mxu0 %v17403_v28  ;;  %10727 = vmatprep.mubr.f32.mxu1 %v17403_v28  ;;  %v9809_v42 = vld [vmem:[#allocation4 + $0x5d0] sm:$0xff]  ;;  %v13480_v56 = vpack.c.bf16 %v9807_v39, %v9775_v12  ;;  %v13530_v12 = vpack.c.bf16 %v9878_v25, %v9846_v46  ;;  %v9875_v39 = vld [vmem:[#allocation4 + $0x7e0] sm:$0xff] }
 0xe1d   : > { %v13496_v3 = vpack.c.bf16 %v9809_v42, %v9777_v14 }
 0xe1e   : > { %13445 = vmatpush1.bf16.msra.mxu0 %v13444_v9  ;;  %13461 = vmatpush1.bf16.msra.mxu1 %v13460_v33  ;;  %v9839_v9 = vld [vmem:[#allocation4 + $0x6c0] sm:$0xff] }
 0xe1f   : > { %13447 = vmatprep.subr.bf16.mxu0 %v13446_v30  ;;  %13463 = vmatprep.subr.bf16.mxu1 %v13462_v41  ;;  %v9871_v33 = vld [vmem:[#allocation4 + $0x7c0] sm:$0xff]  ;;  %v9841_v30 = vld [vmem:[#allocation4 + $0x6d0] sm:$0xff] }
 0xe20   : > { %v9873_v41 = vld [vmem:[#allocation4 + $0x7d0] sm:$0xff]  ;;  %v13484_v27 = vpack.c.bf16 %v9871_v33, %v9839_v9 }
 0xe21   : > { %v13500_v8 = vpack.c.bf16 %v9873_v41, %v9841_v30 }
 0xe22   : > { %13449 = vmatpush1.bf16.msra.mxu0 %v13448_v52  ;;  %13465 = vmatpush1.bf16.msra.mxu1 %v13464_v53  ;;  %v9651_v52 = vld [vmem:[#allocation4 + $0xe0] sm:$0xff] }
 0xe23   : > { %13451 = vmatprep.subr.bf16.mxu0 %v13450_v16  ;;  %13467 = vmatprep.subr.bf16.mxu1 %v13466_v32  ;;  %v9683_v53 = vld [vmem:[#allocation4 + $0x1e0] sm:$0xff]  ;;  %v9653_v16 = vld [vmem:[#allocation4 + $0xf0] sm:$0xff] }
 0xe24   : > { %v9685_v32 = vld [vmem:[#allocation4 + $0x1f0] sm:$0xff]  ;;  %v13504_v57 = vpack.c.bf16 %v9683_v53, %v9651_v52 }
 0xe25   : > { %v13520_v51 = vpack.c.bf16 %v9685_v32, %v9653_v16 }
 0xe26   : > { %13453 = vmatpush1.bf16.msra.mxu0 %v13452_v29  ;;  %13469 = vmatpush1.bf16.msra.mxu1 %v13468_v21  ;;  %v9715_v29 = vld [vmem:[#allocation4 + $0x2e0] sm:$0xff] }
 0xe27   : > { %13471 = vmatprep.subr.bf16.mxu0 %v13470_v55  ;;  %13487 = vmatprep.subr.bf16.mxu1 %v13486_v7  ;;  %v9747_v21 = vld [vmem:[#allocation4 + $0x3e0] sm:$0xff]  ;;  %v9717_v55 = vld [vmem:[#allocation4 + $0x2f0] sm:$0xff] }
 0xe28   : > { %v9749_v7 = vld [vmem:[#allocation4 + $0x3f0] sm:$0xff]  ;;  %v13508_v60 = vpack.c.bf16 %v9747_v21, %v9715_v29 }
 0xe29   : > { %11615 = vmatmul.mubr.msk.f32.vlgmr.msra.gmra.mrb[122].mxu0 %vm8022_vm9, %v16943_v15  ;;  %11616 = vmatmul.mubr.msk.f32.vlgmr.msra.gmra.mrb[134].mxu1 %vm8022_vm9, %v16943_v15  ;;  %v13524_v59 = vpack.c.bf16 %v9749_v7, %v9717_v55 }
 0xe2a   : > { %13473 = vmatpush1.bf16.msra.mxu0 %v13472_v54  ;;  %13489 = vmatpush1.bf16.msra.mxu1 %v13488_v22  ;;  %v9779_v54 = vld [vmem:[#allocation4 + $0x4e0] sm:$0xff] }
 0xe2b   : > { %13475 = vmatprep.subr.bf16.mxu0 %v13474_v17  ;;  %13491 = vmatprep.subr.bf16.mxu1 %v13490_v44  ;;  %v9811_v22 = vld [vmem:[#allocation4 + $0x5e0] sm:$0xff]  ;;  %v9781_v17 = vld [vmem:[#allocation4 + $0x4f0] sm:$0xff] }
 0xe2c   : > { %10798 = vmatprep.mubr.f32.mxu0 %v17403_v28  ;;  %10869 = vmatprep.mubr.f32.mxu1 %v17403_v28  ;;  %v9813_v44 = vld [vmem:[#allocation4 + $0x5f0] sm:$0xff]  ;;  %v13512_v2 = vpack.c.bf16 %v9811_v22, %v9779_v54 }
 0xe2d   : > { %v13528_v48 = vpack.c.bf16 %v9813_v44, %v9781_v17 }
 0xe2e   : > { %13477 = vmatpush1.bf16.msra.mxu0 %v13476_v37  ;;  %13493 = vmatpush1.bf16.msra.mxu1 %v13492_v58  ;;  %v9843_v37 = vld [vmem:[#allocation4 + $0x6e0] sm:$0xff]  ;;  %v13514_v58 = vpack.c.bf16 %v9876_v31, %v9844_v40 }
 0xe2f   : > { %13479 = vmatprep.subr.bf16.mxu0 %v13478_v38  ;;  %13495 = vmatprep.subr.bf16.mxu1 %v13494_v13  ;;  %v9845_v38 = vld [vmem:[#allocation4 + $0x6f0] sm:$0xff]  ;;  %v13516_v14 = vpack.c.bf16 %v9875_v39, %v9843_v37 }
 0xe30   : > { %v9877_v13 = vld [vmem:[#allocation4 + $0x7f0] sm:$0xff] }
 0xe31   : > { %v13532_v42 = vpack.c.bf16 %v9877_v13, %v9845_v38 }
 0xe32   : > { %13481 = vmatpush1.bf16.msra.mxu0 %v13480_v56  ;;  %13497 = vmatpush1.bf16.msra.mxu1 %v13496_v3 }
 0xe33   : > { %13483 = vmatprep.subr.bf16.mxu0 %v13482_v61  ;;  %13499 = vmatprep.subr.bf16.mxu1 %v13498_v19 }
 0xe36   : > { %13485 = vmatpush1.bf16.msra.mxu0 %v13484_v27  ;;  %13501 = vmatpush1.bf16.msra.mxu1 %v13500_v8 }
 0xe37   : > { %13503 = vmatprep.subr.bf16.mxu0 %v13502_v6  ;;  %13519 = vmatprep.subr.bf16.mxu1 %v13518_v45 }
 0xe39   : > { %11617 = vmatmul.mubr.msk.f32.vlgmr.msra.gmra.mrb[124].mxu0 %vm8022_vm9, %v16943_v15  ;;  %11618 = vmatmul.mubr.msk.f32.vlgmr.msra.gmra.mrb[136].mxu1 %vm8022_vm9, %v16943_v15 }
 0xe3a   : > { %13505 = vmatpush1.bf16.msra.mxu0 %v13504_v57  ;;  %13521 = vmatpush1.bf16.msra.mxu1 %v13520_v51 }
 0xe3b   : > { %13507 = vmatprep.subr.bf16.mxu0 %v13506_v26  ;;  %13523 = vmatprep.subr.bf16.mxu1 %v13522_v0 }
 0xe3c   : > { %10940 = vmatprep.mubr.f32.mxu0 %v17403_v28  ;;  %11011 = vmatprep.mubr.f32.mxu1 %v17403_v28 }
 0xe3e   : > { %13509 = vmatpush1.bf16.msra.mxu0 %v13508_v60  ;;  %13525 = vmatpush1.bf16.msra.mxu1 %v13524_v59 }
 0xe3f   : > { %13511 = vmatprep.subr.bf16.mxu0 %v13510_v63  ;;  %13527 = vmatprep.subr.bf16.mxu1 %v13526_v23 }
 0xe42   : > { %13513 = vmatpush1.bf16.msra.mxu0 %v13512_v2  ;;  %13529 = vmatpush1.bf16.msra.mxu1 %v13528_v48 }
 0xe43   : > { %13515 = vmatprep.subr.bf16.mxu0 %v13514_v58  ;;  %13531 = vmatprep.subr.bf16.mxu1 %v13530_v12 }
 0xe46   : > { %13517 = vmatpush1.bf16.msra.mxu0 %v13516_v14  ;;  %13533 = vmatpush1.bf16.msra.mxu1 %v13532_v42 }
 0xe49   : > { %11619 = vmatmul.mubr.msk.f32.vlgmr.msra.gmra.mrb[126].mxu0 %vm8022_vm9, %v16943_v15  ;;  %11620 = vmatmul.mubr.msk.f32.vlgmr.msra.gmra.mrb[138].mxu1 %vm8022_vm9, %v16943_v15 }
 0xeac   : > { %v9948_v28 = vpop.f32.mrb[112].mxu0  ;;  %v10019_v4 = vpop.f32.mrb[124].mxu1 }
 0xead   : > { %11018 = vst [vmem:[%s16993_s3] sm:$0x3f] %v9948_v28  ;;  %11020 = vst [vmem:[%s16993_s3 + $0x10] sm:$0x3f] %v10019_v4  ;;  %v9950_v36 = vpop.f32.mrb[113].mxu0  ;;  %v10021_v10 = vpop.f32.mrb[125].mxu1 }
 0xeae   : > { %11019 = vst [vmem:[%s16993_s3 + $0x8] sm:$0x3f] %v9950_v36  ;;  %11021 = vst [vmem:[%s16993_s3 + $0x18] sm:$0x3f] %v10021_v10 }
 0xebc   : > { %v10090_v15 = vpop.f32.mrb[114].mxu0  ;;  %v10161_v62 = vpop.f32.mrb[126].mxu1 }
 0xebd   : > { %11022 = vst [vmem:[%s16993_s3 + $0x20] sm:$0x3f] %v10090_v15  ;;  %11024 = vst [vmem:[%s16993_s3 + $0x30] sm:$0x3f] %v10161_v62  ;;  %v10092_v56 = vpop.f32.mrb[115].mxu0  ;;  %v10163_v3 = vpop.f32.mrb[127].mxu1 }
 0xebe   : > { %11023 = vst [vmem:[%s16993_s3 + $0x28] sm:$0x3f] %v10092_v56  ;;  %11025 = vst [vmem:[%s16993_s3 + $0x38] sm:$0x3f] %v10163_v3 }
 0xecc   : > { %v10232_v9 = vpop.f32.mrb[116].mxu0  ;;  %v10303_v33 = vpop.f32.mrb[128].mxu1 }
 0xecd   : > { %11026 = vst [vmem:[%s16993_s3 + $0x40] sm:$0x3f] %v10232_v9  ;;  %11028 = vst [vmem:[%s16993_s3 + $0x50] sm:$0x3f] %v10303_v33  ;;  %v10234_v61 = vpop.f32.mrb[117].mxu0  ;;  %v10305_v19 = vpop.f32.mrb[129].mxu1 }
 0xece   : > { %11027 = vst [vmem:[%s16993_s3 + $0x48] sm:$0x3f] %v10234_v61  ;;  %11029 = vst [vmem:[%s16993_s3 + $0x58] sm:$0x3f] %v10305_v19 }
 0xedc   : > { %v10374_v30 = vpop.f32.mrb[118].mxu0  ;;  %v10445_v41 = vpop.f32.mrb[130].mxu1 }
 0xedd   : > { %11030 = vst [vmem:[%s16993_s3 + $0x60] sm:$0x3f] %v10374_v30  ;;  %11032 = vst [vmem:[%s16993_s3 + $0x70] sm:$0x3f] %v10445_v41  ;;  %v10376_v24 = vpop.f32.mrb[119].mxu0  ;;  %v10447_v18 = vpop.f32.mrb[131].mxu1 }
 0xede   : > { %11031 = vst [vmem:[%s16993_s3 + $0x68] sm:$0x3f] %v10376_v24  ;;  %11033 = vst [vmem:[%s16993_s3 + $0x78] sm:$0x3f] %v10447_v18 }
 0xeec   : > { %v10516_v5 = vpop.f32.mrb[120].mxu0  ;;  %v10587_v43 = vpop.f32.mrb[132].mxu1 }
 0xeed   : > { %11034 = vst [vmem:[%s16993_s3 + $0x80] sm:$0x3f] %v10516_v5  ;;  %11036 = vst [vmem:[%s16993_s3 + $0x90] sm:$0x3f] %v10587_v43  ;;  %v10518_v27 = vpop.f32.mrb[121].mxu0  ;;  %v10589_v8 = vpop.f32.mrb[133].mxu1 }
 0xeee   : > { %11035 = vst [vmem:[%s16993_s3 + $0x88] sm:$0x3f] %v10518_v27  ;;  %11037 = vst [vmem:[%s16993_s3 + $0x98] sm:$0x3f] %v10589_v8 }
 0xefc   : > { %v10658_v52 = vpop.f32.mrb[122].mxu0  ;;  %v10729_v53 = vpop.f32.mrb[134].mxu1 }
 0xefd   : > { %11038 = vst [vmem:[%s16993_s3 + $0xa0] sm:$0x3f] %v10658_v52  ;;  %11040 = vst [vmem:[%s16993_s3 + $0xb0] sm:$0x3f] %v10729_v53  ;;  %v10660_v6 = vpop.f32.mrb[123].mxu0  ;;  %v10731_v45 = vpop.f32.mrb[135].mxu1 }
 0xefe   : > { %11039 = vst [vmem:[%s16993_s3 + $0xa8] sm:$0x3f] %v10660_v6  ;;  %11041 = vst [vmem:[%s16993_s3 + $0xb8] sm:$0x3f] %v10731_v45 }
 0xf0c   : > { %v10800_v16 = vpop.f32.mrb[124].mxu0  ;;  %v10871_v32 = vpop.f32.mrb[136].mxu1 }
 0xf0d   : > { %11042 = vst [vmem:[%s16993_s3 + $0xc0] sm:$0x3f] %v10800_v16  ;;  %11044 = vst [vmem:[%s16993_s3 + $0xd0] sm:$0x3f] %v10871_v32  ;;  %v10802_v35 = vpop.f32.mrb[125].mxu0  ;;  %v10873_v47 = vpop.f32.mrb[137].mxu1 }
 0xf0e   : > { %11043 = vst [vmem:[%s16993_s3 + $0xc8] sm:$0x3f] %v10802_v35  ;;  %11045 = vst [vmem:[%s16993_s3 + $0xd8] sm:$0x3f] %v10873_v47 }
 0xf1c   : > { %v10942_v11 = vpop.f32.mrb[126].mxu0  ;;  %v11013_v50 = vpop.f32.mrb[138].mxu1 }
 0xf1d   : > { %11046 = vst [vmem:[%s16993_s3 + $0xe0] sm:$0x3f] %v10942_v11  ;;  %11048 = vst [vmem:[%s16993_s3 + $0xf0] sm:$0x3f] %v11013_v50  ;;  %v10944_v57 = vpop.f32.mrb[127].mxu0  ;;  %v11015_v51 = vpop.f32.mrb[139].mxu1 }
 0xf1e   : > { %11047 = vst [vmem:[%s16993_s3 + $0xe8] sm:$0x3f] %v10944_v57  ;;  %11049 = vst [vmem:[%s16993_s3 + $0xf8] sm:$0x3f] %v11015_v51 }
 0xf1f PF: > { %s110_s27 = sadd.s32 1, %s14164_s27  }
 0xf20   : > { %p107_p1 = scmp.ge.s32.totalorder %s110_s27, 4  }
 0xf22   :  { %109 = sbr.rel (!%p107_p1) target bundleno = 78 (0x4e), region = 339 }
 0xf29   :  { %11071 = vsyncpa [#allocation5], 1 }
 0xf2a   :  { %11073 = vsyncpa [#allocation5 + $0x1], 1 }
 0xf2b   :  { %11074 = vsyncpa [#allocation7], 1 }
 0xf2c   :  { %11075 = vsyncpa [#allocation10], 1 }
 0xf2d   :  { %11076 = vsyncpa [#allocation13], 1 }
 0xf2e   :  { %11077 = vsyncpa [#allocation16], 1 }

</bundles_post_ra>
